<compile_context>
chip_gen: v6e
topology: v6e:2x2x1
jax: 0.10.0
libtpu: 0.0.40
codegen_flags: <defaults>
</compile_context>

<pallas_src>
import functools

import jax
import jax.numpy as jnp
from jax.experimental import pallas as pl
from jax.experimental.pallas import tpu as pltpu

# ---- model config (BERT-base-like widths, small depth/seq for the demo) ----
H = 768                 # hidden size (fixed by Linear(768, num_labels) in the module)
HEADS = 12
DH = H // HEADS         # 64
LAYERS = 2
INTER = 3072
VOCAB = 1000
TYPE_VOCAB = 2
MAX_POS = 128
NUM_LABELS = 5          # len(labels)
NUM_LABELS_PAD = 128    # pad classifier output dim to a lane-friendly multiple of 128
LN_EPS = 1e-12


# ----------------------------- dense (matmul + bias + act) -----------------------------
def _dense_kernel(x_ref, w_ref, b_ref, o_ref, acc_ref, *, activation):
    k = pl.program_id(2)

    @pl.when(k == 0)
    def _():
        acc_ref[...] = jnp.zeros_like(acc_ref)

    acc_ref[...] += jnp.dot(x_ref[...], w_ref[...],
                            preferred_element_type=jnp.float32)

    @pl.when(k == pl.num_programs(2) - 1)
    def _():
        y = acc_ref[...] + b_ref[...]
        if activation == "relu":
            y = jnp.maximum(y, 0.0)
        elif activation == "tanh":
            y = jnp.tanh(y)
        elif activation == "gelu":
            # TODO(synk): HF BERT uses exact erf GELU; tanh-approx kept (EUP-friendly, tiny delta).
            y = jax.nn.gelu(y)
        o_ref[...] = y.astype(o_ref.dtype)


def dense(x, w, b, activation="none", out_dtype=jnp.float32, tm=256, tn=256, tk=256):
    """y = act(x @ w + b). bf16 MXU inputs, f32 accumulation, tiled over (M, N, K)."""
    M, K = x.shape
    K2, N = w.shape
    assert K == K2
    tm, tn, tk = min(tm, M), min(tn, N), min(tk, K)
    assert M % tm == 0 and N % tn == 0 and K % tk == 0, (M, N, K, tm, tn, tk)
    kernel = functools.partial(_dense_kernel, activation=activation)
    return pl.pallas_call(
        kernel,
        out_shape=jax.ShapeDtypeStruct((M, N), out_dtype),
        grid_spec=pltpu.PrefetchScalarGridSpec(
            num_scalar_prefetch=0,
            grid=(M // tm, N // tn, K // tk),
            in_specs=[
                pl.BlockSpec((tm, tk), lambda i, j, k: (i, k)),
                pl.BlockSpec((tk, tn), lambda i, j, k: (k, j)),
                pl.BlockSpec((1, tn), lambda i, j, k: (0, j)),
            ],
            out_specs=pl.BlockSpec((tm, tn), lambda i, j, k: (i, j)),
            scratch_shapes=[pltpu.VMEM((tm, tn), jnp.float32)],
        ),
        compiler_params=pltpu.CompilerParams(
            dimension_semantics=("parallel", "parallel", "arbitrary")),
    )(x.astype(jnp.bfloat16), w.astype(jnp.bfloat16),
      b.astype(jnp.float32).reshape(1, N))


# ------------------------- layernorm (row-tiled, optional residual fuse) -------------------------
def _ln_kernel(x_ref, g_ref, b_ref, o_ref):
    x = x_ref[...].astype(jnp.float32)
    mean = jnp.mean(x, axis=-1, keepdims=True)
    c = x - mean
    var = jnp.mean(c * c, axis=-1, keepdims=True)
    y = c * jax.lax.rsqrt(var + LN_EPS)
    o_ref[...] = (y * g_ref[...] + b_ref[...]).astype(o_ref.dtype)


def _ln_res_kernel(x_ref, r_ref, g_ref, b_ref, o_ref):
    x = x_ref[...].astype(jnp.float32) + r_ref[...].astype(jnp.float32)
    mean = jnp.mean(x, axis=-1, keepdims=True)
    c = x - mean
    var = jnp.mean(c * c, axis=-1, keepdims=True)
    y = c * jax.lax.rsqrt(var + LN_EPS)
    o_ref[...] = (y * g_ref[...] + b_ref[...]).astype(o_ref.dtype)


def layernorm(x, g, b, residual=None, tm=512):
    M, Hd = x.shape
    tm = min(tm, M)
    assert M % tm == 0
    row = pl.BlockSpec((tm, Hd), lambda i: (i, 0))
    vec = pl.BlockSpec((1, Hd), lambda i: (0, 0))
    g2, b2 = g.reshape(1, Hd), b.reshape(1, Hd)
    if residual is None:
        kernel, in_specs, args = _ln_kernel, [row, vec, vec], (x, g2, b2)
    else:
        kernel, in_specs, args = _ln_res_kernel, [row, row, vec, vec], (x, residual, g2, b2)
    return pl.pallas_call(
        kernel,
        out_shape=jax.ShapeDtypeStruct((M, Hd), jnp.float32),
        grid_spec=pltpu.PrefetchScalarGridSpec(
            num_scalar_prefetch=0, grid=(M // tm,),
            in_specs=in_specs, out_specs=row),
        compiler_params=pltpu.CompilerParams(dimension_semantics=("parallel",)),
    )(*args)


# ------------------- attention: one grid step per batch, all heads, packed QKV -------------------
def _attn_kernel(qkv_ref, mb_ref, o_ref, *, scale):
    # qkv_ref: (S, 3H) bf16, mb_ref: (1, S) f32 additive mask bias, o_ref: (S, H) bf16
    mb = mb_ref[...]
    for h in range(HEADS):
        q = qkv_ref[:, h * DH:(h + 1) * DH] * scale                     # bf16, scale folded in
        k = qkv_ref[:, H + h * DH:H + (h + 1) * DH]
        v = qkv_ref[:, 2 * H + h * DH:2 * H + (h + 1) * DH]
        s = jax.lax.dot_general(q, k, (((1,), (1,)), ((), ())),
                                preferred_element_type=jnp.float32)     # (S, S)
        s = s + mb
        m = jnp.max(s, axis=-1, keepdims=True)
        p = jnp.exp(s - m)
        p = p * pl.reciprocal(jnp.sum(p, axis=-1, keepdims=True), approx=True)
        ctx = jnp.dot(p.astype(v.dtype), v, preferred_element_type=jnp.float32)
        o_ref[:, h * DH:(h + 1) * DH] = ctx.astype(o_ref.dtype)
    # TODO(synk): for long sequences (S >~ 1K) switch to an online-softmax (flash) form with a
    # KV grid axis instead of materializing the full (S, S) score tile.


def attention(qkv, mask_bias):
    B, S, threeH = qkv.shape
    assert threeH == 3 * H
    kernel = functools.partial(_attn_kernel, scale=1.0 / (DH ** 0.5))
    return pl.pallas_call(
        kernel,
        out_shape=jax.ShapeDtypeStruct((B, S, H), jnp.bfloat16),
        grid_spec=pltpu.PrefetchScalarGridSpec(
            num_scalar_prefetch=0,
            grid=(B,),
            in_specs=[pl.BlockSpec((None, S, 3 * H), lambda b: (b, 0, 0)),
                      pl.BlockSpec((None, 1, S), lambda b: (b, 0, 0))],
            out_specs=pl.BlockSpec((None, S, H), lambda b: (b, 0, 0)),
        ),
        compiler_params=pltpu.CompilerParams(dimension_semantics=("parallel",)),
    )(qkv, mask_bias)


# ---------------------- fused pooler (tanh) + classifier (relu), M = batch ----------------------
def _pool_cls_kernel(cls_ref, pw_ref, pb_ref, cw_ref, cb_ref, o_ref):
    pooled = jnp.tanh(jnp.dot(cls_ref[...], pw_ref[...],
                              preferred_element_type=jnp.float32) + pb_ref[...])
    logits = jnp.dot(pooled, cw_ref[...],
                     preferred_element_type=jnp.float32) + cb_ref[...]
    o_ref[...] = jnp.maximum(logits, 0.0).astype(o_ref.dtype)


def pool_and_classify(cls_tok, pw, pb, cw, cb):
    Bn, Hd = cls_tok.shape
    Np = cw.shape[1]
    return pl.pallas_call(
        _pool_cls_kernel,
        out_shape=jax.ShapeDtypeStruct((Bn, Np), jnp.float32),
    )(cls_tok, pw, pb.reshape(1, Hd), cw, cb.reshape(1, Np))


# -------------------------------- parameter init --------------------------------
def init_params(key):
    def nrm(k, shape, scale=0.02):
        return scale * jax.random.normal(k, shape, dtype=jnp.float32)

    keys = iter(jax.random.split(key, 64))
    p = {
        "word_emb": nrm(next(keys), (VOCAB, H)),
        "pos_emb": nrm(next(keys), (MAX_POS, H)),
        "tok_emb": nrm(next(keys), (TYPE_VOCAB, H)),
        "emb_ln_g": jnp.ones((H,), jnp.float32),
        "emb_ln_b": jnp.zeros((H,), jnp.float32),
        "layers": [],
    }
    for _ in range(LAYERS):
        p["layers"].append({
            # fused Q/K/V projection: weight (H, 3H), bias (3H,)
            "w_qkv": nrm(next(keys), (H, 3 * H)), "b_qkv": jnp.zeros((3 * H,), jnp.float32),
            "wo": nrm(next(keys), (H, H)), "bo": jnp.zeros((H,), jnp.float32),
            "ln1_g": jnp.ones((H,), jnp.float32), "ln1_b": jnp.zeros((H,), jnp.float32),
            "wi": nrm(next(keys), (H, INTER)), "bi": jnp.zeros((INTER,), jnp.float32),
            "wf": nrm(next(keys), (INTER, H)), "bf": jnp.zeros((H,), jnp.float32),
            "ln2_g": jnp.ones((H,), jnp.float32), "ln2_b": jnp.zeros((H,), jnp.float32),
        })
    p["pool_w"] = nrm(next(keys), (H, H))
    p["pool_b"] = jnp.zeros((H,), jnp.float32)
    cls_w = nrm(next(keys), (H, NUM_LABELS))
    cls_b = jnp.zeros((NUM_LABELS,), jnp.float32)
    p["cls_w"] = jnp.pad(cls_w, ((0, 0), (0, NUM_LABELS_PAD - NUM_LABELS)))
    p["cls_b"] = jnp.pad(cls_b, (0, NUM_LABELS_PAD - NUM_LABELS))
    return p


# -------------------------------- forward pass --------------------------------
def bert_classifier_forward(params, input_ids, mask):
    B, S = input_ids.shape
    # embeddings (word + position + token_type(=0)) -> layernorm
    we = jnp.take(params["word_emb"], input_ids, axis=0)      # (B, S, H)
    pe = params["pos_emb"][:S]                                # (S, H)
    te = params["tok_emb"][0]                                 # (H,)
    x = (we + pe[None, :, :] + te[None, None, :]).reshape(B * S, H)
    x = layernorm(x, params["emb_ln_g"], params["emb_ln_b"])

    # HF-style extended attention mask: (1 - mask) * -10000 added to the logits
    mask_bias = ((1.0 - mask.astype(jnp.float32)) * -10000.0)[:, None, :]  # (B, 1, S)

    for l in params["layers"]:
        qkv = dense(x, l["w_qkv"], l["b_qkv"], out_dtype=jnp.bfloat16)     # (B*S, 3H)
        ctx = attention(qkv.reshape(B, S, 3 * H), mask_bias)               # (B, S, H) bf16
        attn_out = dense(ctx.reshape(B * S, H), l["wo"], l["bo"])          # f32
        x = layernorm(attn_out, l["ln1_g"], l["ln1_b"], residual=x)        # LN(x + attn_out)
        ffn = dense(x, l["wi"], l["bi"], activation="gelu", out_dtype=jnp.bfloat16)
        ffn_out = dense(ffn, l["wf"], l["bf"])                             # f32
        x = layernorm(ffn_out, l["ln2_g"], l["ln2_b"], residual=x)         # LN(x + ffn_out)

    cls_tok = x.reshape(B, S, H)[:, 0, :]                                  # (B, H) [CLS] token
    # pooler tanh + classifier Linear(768, num_labels) + ReLU (padded to 128 cols, sliced)
    logits = pool_and_classify(cls_tok, params["pool_w"], params["pool_b"],
                               params["cls_w"], params["cls_b"])
    return logits[:, :NUM_LABELS]


if __name__ == "__main__":
    key = jax.random.PRNGKey(0)
    kp, kids = jax.random.split(key)
    params = init_params(kp)

    B, S = 2, 8
    input_ids = jax.random.randint(kids, (B, S), 0, VOCAB, dtype=jnp.int32)
    mask = jnp.array([[1, 1, 1, 1, 1, 1, 1, 1],
                      [1, 1, 1, 1, 1, 1, 0, 0]], dtype=jnp.int32)

    out = jax.jit(bert_classifier_forward)(params, input_ids, mask)
    out = jax.block_until_ready(out)
    assert out.shape == (B, NUM_LABELS)
    assert bool(jnp.all(out >= 0.0))   # ReLU output is non-negative
    print("KERNEL_OK")
</pallas_src>

<mosaic_0001>
module attributes {stable_mosaic.version = 11 : i64} {
  func.func @_ln_kernel(%arg0: i32, %arg1: memref<16x768xf32, #tpu.memory_space<vmem>>, %arg2: memref<1x768xf32, #tpu.memory_space<vmem>>, %arg3: memref<1x768xf32, #tpu.memory_space<vmem>>, %arg4: memref<16x768xf32, #tpu.memory_space<vmem>>) attributes {dimension_semantics = [#tpu.dimension_semantics<parallel>], iteration_bounds = array<i64: 1>, scalar_prefetch = 0 : i64, scratch_operands = 0 : i64, tpu.core_type = #tpu.core_type<tc>, window_params = [{transform_indices = @transform_0, window_bounds = array<i64: 16, 768>}, {pipeline_mode = #tpu.pipeline_mode<synchronous>, transform_indices = @transform_1, window_bounds = array<i64: 1, 768>}, {pipeline_mode = #tpu.pipeline_mode<synchronous>, transform_indices = @transform_2, window_bounds = array<i64: 1, 768>}, {transform_indices = @transform_3, window_bounds = array<i64: 16, 768>}]} {
    %c0 = arith.constant 0 : index
    %c0_0 = arith.constant 0 : index
    %0 = vector.load %arg1[%c0, %c0_0] : memref<16x768xf32, #tpu.memory_space<vmem>>, vector<16x768xf32>
    %cst = arith.constant dense<0.000000e+00> : vector<16xf32>
    %1 = vector.multi_reduction <add>, %0, %cst [1] : vector<16x768xf32> to vector<16xf32>
    %2 = vector.shape_cast %1 : vector<16xf32> to vector<16x1xf32>
    %cst_1 = arith.constant 7.680000e+02 : f32
    %3 = vector.broadcast %cst_1 : f32 to vector<16x1xf32>
    %4 = arith.divf %2, %3 : vector<16x1xf32>
    %5 = vector.broadcast %4 : vector<16x1xf32> to vector<16x768xf32>
    %6 = arith.subf %0, %5 : vector<16x768xf32>
    %7 = arith.mulf %6, %6 : vector<16x768xf32>
    %cst_2 = arith.constant dense<0.000000e+00> : vector<16xf32>
    %8 = vector.multi_reduction <add>, %7, %cst_2 [1] : vector<16x768xf32> to vector<16xf32>
    %9 = vector.shape_cast %8 : vector<16xf32> to vector<16x1xf32>
    %cst_3 = arith.constant 7.680000e+02 : f32
    %10 = vector.broadcast %cst_3 : f32 to vector<16x1xf32>
    %11 = arith.divf %9, %10 : vector<16x1xf32>
    %cst_4 = arith.constant 9.99999996E-13 : f32
    %12 = vector.broadcast %cst_4 : f32 to vector<16x1xf32>
    %13 = arith.addf %11, %12 : vector<16x1xf32>
    %14 = math.rsqrt %13 : vector<16x1xf32>
    %15 = vector.broadcast %14 : vector<16x1xf32> to vector<16x768xf32>
    %16 = arith.mulf %6, %15 : vector<16x768xf32>
    %c0_5 = arith.constant 0 : index
    %c0_6 = arith.constant 0 : index
    %17 = vector.load %arg2[%c0_5, %c0_6] : memref<1x768xf32, #tpu.memory_space<vmem>>, vector<1x768xf32>
    %18 = vector.broadcast %17 : vector<1x768xf32> to vector<16x768xf32>
    %19 = arith.mulf %16, %18 : vector<16x768xf32>
    %c0_7 = arith.constant 0 : index
    %c0_8 = arith.constant 0 : index
    %20 = vector.load %arg3[%c0_7, %c0_8] : memref<1x768xf32, #tpu.memory_space<vmem>>, vector<1x768xf32>
    %21 = vector.broadcast %20 : vector<1x768xf32> to vector<16x768xf32>
    %22 = arith.addf %19, %21 : vector<16x768xf32>
    %c0_9 = arith.constant 0 : index
    %c0_10 = arith.constant 0 : index
    %23 = vector.load %arg4[%c0_9, %c0_10] : memref<16x768xf32, #tpu.memory_space<vmem>>, vector<16x768xf32>
    tpu.vector_store %arg4[%c0_9, %c0_10], %22 {strides = array<i32>} : memref<16x768xf32, #tpu.memory_space<vmem>>, vector<16x768xf32>,
    return
  }
  func.func @transform_0(%arg0: i32) -> (i32, i32) {
    %c0_i32 = arith.constant 0 : i32
    %c0_i32_0 = arith.constant 0 : i32
    return %arg0, %c0_i32 : i32, i32
  }
  func.func @transform_1(%arg0: i32) -> (i32, i32) {
    %c0_i32 = arith.constant 0 : i32
    %c0_i32_0 = arith.constant 0 : i32
    %c0_i32_1 = arith.constant 0 : i32
    return %c0_i32, %c0_i32_0 : i32, i32
  }
  func.func @transform_2(%arg0: i32) -> (i32, i32) {
    %c0_i32 = arith.constant 0 : i32
    %c0_i32_0 = arith.constant 0 : i32
    %c0_i32_1 = arith.constant 0 : i32
    return %c0_i32, %c0_i32_0 : i32, i32
  }
  func.func @transform_3(%arg0: i32) -> (i32, i32) {
    %c0_i32 = arith.constant 0 : i32
    %c0_i32_0 = arith.constant 0 : i32
    return %arg0, %c0_i32 : i32, i32
  }
}

module attributes {stable_mosaic.version = 11 : i64} {
  func.func @_dense_kernel(%arg0: i32, %arg1: i32, %arg2: i32, %arg3: memref<16x256xbf16, #tpu.memory_space<vmem>>, %arg4: memref<256x256xbf16, #tpu.memory_space<vmem>>, %arg5: memref<1x256xf32, #tpu.memory_space<vmem>>, %arg6: memref<16x256xbf16, #tpu.memory_space<vmem>>, %arg7: memref<16x256xf32, #tpu.memory_space<vmem>>) attributes {dimension_semantics = [#tpu.dimension_semantics<parallel>, #tpu.dimension_semantics<parallel>, #tpu.dimension_semantics<arbitrary>], iteration_bounds = array<i64: 1, 9, 3>, scalar_prefetch = 0 : i64, scratch_operands = 1 : i64, tpu.core_type = #tpu.core_type<tc>, window_params = [{transform_indices = @transform_0, window_bounds = array<i64: 16, 256>}, {transform_indices = @transform_1, window_bounds = array<i64: 256, 256>}, {transform_indices = @transform_2, window_bounds = array<i64: 1, 256>}, {transform_indices = @transform_3, window_bounds = array<i64: 16, 256>}]} {
    %c0_i32 = arith.constant 0 : i32
    %0 = arith.cmpi eq, %arg2, %c0_i32 : i32
    %1 = arith.extui %0 : i1 to i32
    %c0_i32_0 = arith.constant 0 : i32
    %2 = arith.cmpi ne, %1, %c0_i32_0 : i32
    scf.if %2 {
      %cst_9 = arith.constant 0.000000e+00 : f32
      %12 = vector.broadcast %cst_9 : f32 to vector<16x256xf32>
      %c0_10 = arith.constant 0 : index
      %c0_11 = arith.constant 0 : index
      %13 = vector.load %arg7[%c0_10, %c0_11] : memref<16x256xf32, #tpu.memory_space<vmem>>, vector<16x256xf32>
      tpu.vector_store %arg7[%c0_10, %c0_11], %12 {strides = array<i32>} : memref<16x256xf32, #tpu.memory_space<vmem>>, vector<16x256xf32>,
    } else {
    }
    %c0 = arith.constant 0 : index
    %c0_1 = arith.constant 0 : index
    %3 = vector.load %arg7[%c0, %c0_1] : memref<16x256xf32, #tpu.memory_space<vmem>>, vector<16x256xf32>
    %c0_2 = arith.constant 0 : index
    %c0_3 = arith.constant 0 : index
    %4 = vector.load %arg3[%c0_2, %c0_3] : memref<16x256xbf16, #tpu.memory_space<vmem>>, vector<16x256xbf16>
    %c0_4 = arith.constant 0 : index
    %c0_5 = arith.constant 0 : index
    %5 = vector.load %arg4[%c0_4, %c0_5] : memref<256x256xbf16, #tpu.memory_space<vmem>>, vector<256x256xbf16>
    %cst = arith.constant dense<0.000000e+00> : vector<16x256xf32>
    %6 = tpu.matmul %4, %5, %cst {dimension_numbers = #tpu.dot_dimension_numbers<[1], [0], [0], [1], [0, 0, 1, 1], [], []>} : vector<16x256xbf16>, vector<256x256xbf16>, vector<16x256xf32> -> vector<16x256xf32>
    %7 = arith.addf %3, %6 : vector<16x256xf32>
    %c0_6 = arith.constant 0 : index
    %c0_7 = arith.constant 0 : index
    %8 = vector.load %arg7[%c0_6, %c0_7] : memref<16x256xf32, #tpu.memory_space<vmem>>, vector<16x256xf32>
    tpu.vector_store %arg7[%c0_6, %c0_7], %7 {strides = array<i32>} : memref<16x256xf32, #tpu.memory_space<vmem>>, vector<16x256xf32>,
    %c2_i32 = arith.constant 2 : i32
    %9 = arith.cmpi eq, %arg2, %c2_i32 : i32
    %10 = arith.extui %9 : i1 to i32
    %c0_i32_8 = arith.constant 0 : i32
    %11 = arith.cmpi ne, %10, %c0_i32_8 : i32
    scf.if %11 {
      %c0_9 = arith.constant 0 : index
      %c0_10 = arith.constant 0 : index
      %12 = vector.load %arg7[%c0_9, %c0_10] : memref<16x256xf32, #tpu.memory_space<vmem>>, vector<16x256xf32>
      %c0_11 = arith.constant 0 : index
      %c0_12 = arith.constant 0 : index
      %13 = vector.load %arg5[%c0_11, %c0_12] : memref<1x256xf32, #tpu.memory_space<vmem>>, vector<1x256xf32>
      %14 = vector.broadcast %13 : vector<1x256xf32> to vector<16x256xf32>
      %15 = arith.addf %12, %14 : vector<16x256xf32>
      %16 = arith.truncf %15 : vector<16x256xf32> to vector<16x256xbf16>
      %c0_13 = arith.constant 0 : index
      %c0_14 = arith.constant 0 : index
      %17 = vector.load %arg6[%c0_13, %c0_14] : memref<16x256xbf16, #tpu.memory_space<vmem>>, vector<16x256xbf16>
      tpu.vector_store %arg6[%c0_13, %c0_14], %16 {strides = array<i32>} : memref<16x256xbf16, #tpu.memory_space<vmem>>, vector<16x256xbf16>,
    } else {
    }
    return
  }
  func.func @transform_0(%arg0: i32, %arg1: i32, %arg2: i32) -> (i32, i32) {
    %c0_i32 = arith.constant 0 : i32
    return %arg0, %arg2 : i32, i32
  }
  func.func @transform_1(%arg0: i32, %arg1: i32, %arg2: i32) -> (i32, i32) {
    %c0_i32 = arith.constant 0 : i32
    return %arg2, %arg1 : i32, i32
  }
  func.func @transform_2(%arg0: i32, %arg1: i32, %arg2: i32) -> (i32, i32) {
    %c0_i32 = arith.constant 0 : i32
    %c0_i32_0 = arith.constant 0 : i32
    return %c0_i32, %arg1 : i32, i32
  }
  func.func @transform_3(%arg0: i32, %arg1: i32, %arg2: i32) -> (i32, i32) {
    %c0_i32 = arith.constant 0 : i32
    return %arg0, %arg1 : i32, i32
  }
}

module attributes {stable_mosaic.version = 11 : i64} {
  func.func @_attn_kernel(%arg0: i32, %arg1: memref<1x8x2304xbf16, #tpu.memory_space<vmem>>, %arg2: memref<1x1x8xf32, #tpu.memory_space<vmem>>, %arg3: memref<1x8x768xbf16, #tpu.memory_space<vmem>>) attributes {dimension_semantics = [#tpu.dimension_semantics<parallel>], iteration_bounds = array<i64: 2>, scalar_prefetch = 0 : i64, scratch_operands = 0 : i64, tpu.core_type = #tpu.core_type<tc>, window_params = [{transform_indices = @transform_0, window_bounds = array<i64: 1, 8, 2304>}, {transform_indices = @transform_1, window_bounds = array<i64: 1, 1, 8>}, {transform_indices = @transform_2, window_bounds = array<i64: 1, 8, 768>}]} {
    %c0 = arith.constant 0 : index
    %c0_0 = arith.constant 0 : index
    %c0_1 = arith.constant 0 : index
    %0 = vector.load %arg2[%c0, %c0_0, %c0_1] : memref<1x1x8xf32, #tpu.memory_space<vmem>>, vector<1x1x8xf32>
    %1 = vector.shape_cast %0 : vector<1x1x8xf32> to vector<1x8xf32>
    %c0_2 = arith.constant 0 : index
    %c0_3 = arith.constant 0 : index
    %c0_4 = arith.constant 0 : index
    %2 = vector.load %arg1[%c0_2, %c0_3, %c0_4] : memref<1x8x2304xbf16, #tpu.memory_space<vmem>>, vector<1x8x64xbf16>
    %3 = vector.shape_cast %2 : vector<1x8x64xbf16> to vector<8x64xbf16>
    %cst = arith.constant 1.250000e-01 : bf16
    %4 = vector.broadcast %cst : bf16 to vector<8x64xbf16>
    %5 = arith.mulf %3, %4 : vector<8x64xbf16>
    %c0_5 = arith.constant 0 : index
    %c0_6 = arith.constant 0 : index
    %c768 = arith.constant 768 : index
    %6 = vector.load %arg1[%c0_5, %c0_6, %c768] : memref<1x8x2304xbf16, #tpu.memory_space<vmem>>, vector<1x8x64xbf16>
    %7 = vector.shape_cast %6 : vector<1x8x64xbf16> to vector<8x64xbf16>
    %c0_7 = arith.constant 0 : index
    %c0_8 = arith.constant 0 : index
    %c1536 = arith.constant 1536 : index
    %8 = vector.load %arg1[%c0_7, %c0_8, %c1536] : memref<1x8x2304xbf16, #tpu.memory_space<vmem>>, vector<1x8x64xbf16>
    %9 = vector.shape_cast %8 : vector<1x8x64xbf16> to vector<8x64xbf16>
    %cst_9 = arith.constant dense<0.000000e+00> : vector<8x8xf32>
    %10 = tpu.matmul %5, %7, %cst_9 {dimension_numbers = #tpu.dot_dimension_numbers<[1], [1], [0], [0], [0, 0, 1, 0], [], []>} : vector<8x64xbf16>, vector<8x64xbf16>, vector<8x8xf32> -> vector<8x8xf32>
    %11 = vector.broadcast %1 : vector<1x8xf32> to vector<8x8xf32>
    %12 = arith.addf %10, %11 : vector<8x8xf32>
    %cst_10 = arith.constant dense<0xFF800000> : vector<8xf32>
    %13 = vector.multi_reduction <maximumf>, %12, %cst_10 [1] : vector<8x8xf32> to vector<8xf32>
    %14 = vector.shape_cast %13 : vector<8xf32> to vector<8x1xf32>
    %15 = vector.broadcast %14 : vector<8x1xf32> to vector<8x8xf32>
    %16 = arith.subf %12, %15 : vector<8x8xf32>
    %17 = math.exp %16 : vector<8x8xf32>
    %cst_11 = arith.constant dense<0.000000e+00> : vector<8xf32>
    %18 = vector.multi_reduction <add>, %17, %cst_11 [1] : vector<8x8xf32> to vector<8xf32>
    %19 = vector.shape_cast %18 : vector<8xf32> to vector<8x1xf32>
    %20 = tpu.reciprocal %19 {approx = true} : vector<8x1xf32> -> vector<8x1xf32>
    %21 = vector.broadcast %20 : vector<8x1xf32> to vector<8x8xf32>
    %22 = arith.mulf %17, %21 : vector<8x8xf32>
    %23 = arith.truncf %22 : vector<8x8xf32> to vector<8x8xbf16>
    %cst_12 = arith.constant dense<0.000000e+00> : vector<8x64xf32>
    %24 = tpu.matmul %23, %9, %cst_12 {dimension_numbers = #tpu.dot_dimension_numbers<[1], [0], [0], [1], [0, 0, 1, 1], [], []>} : vector<8x8xbf16>, vector<8x64xbf16>, vector<8x64xf32> -> vector<8x64xf32>
    %25 = arith.truncf %24 : vector<8x64xf32> to vector<8x64xbf16>
    %c0_13 = arith.constant 0 : index
    %c0_14 = arith.constant 0 : index
    %c0_15 = arith.constant 0 : index
    %26 = vector.load %arg3[%c0_13, %c0_14, %c0_15] : memref<1x8x768xbf16, #tpu.memory_space<vmem>>, vector<1x8x64xbf16>
    %27 = vector.shape_cast %26 : vector<1x8x64xbf16> to vector<8x64xbf16>
    %28 = vector.shape_cast %25 : vector<8x64xbf16> to vector<1x8x64xbf16>
    tpu.vector_store %arg3[%c0_13, %c0_14, %c0_15], %28 {strides = array<i32>} : memref<1x8x768xbf16, #tpu.memory_space<vmem>>, vector<1x8x64xbf16>,
    %c0_16 = arith.constant 0 : index
    %c0_17 = arith.constant 0 : index
    %c64 = arith.constant 64 : index
    %29 = vector.load %arg1[%c0_16, %c0_17, %c64] : memref<1x8x2304xbf16, #tpu.memory_space<vmem>>, vector<1x8x64xbf16>
    %30 = vector.shape_cast %29 : vector<1x8x64xbf16> to vector<8x64xbf16>
    %cst_18 = arith.constant 1.250000e-01 : bf16
    %31 = vector.broadcast %cst_18 : bf16 to vector<8x64xbf16>
    %32 = arith.mulf %30, %31 : vector<8x64xbf16>
    %c0_19 = arith.constant 0 : index
    %c0_20 = arith.constant 0 : index
    %c832 = arith.constant 832 : index
    %33 = vector.load %arg1[%c0_19, %c0_20, %c832] : memref<1x8x2304xbf16, #tpu.memory_space<vmem>>, vector<1x8x64xbf16>
    %34 = vector.shape_cast %33 : vector<1x8x64xbf16> to vector<8x64xbf16>
    %c0_21 = arith.constant 0 : index
    %c0_22 = arith.constant 0 : index
    %c1600 = arith.constant 1600 : index
    %35 = vector.load %arg1[%c0_21, %c0_22, %c1600] : memref<1x8x2304xbf16, #tpu.memory_space<vmem>>, vector<1x8x64xbf16>
    %36 = vector.shape_cast %35 : vector<1x8x64xbf16> to vector<8x64xbf16>
    %cst_23 = arith.constant dense<0.000000e+00> : vector<8x8xf32>
    %37 = tpu.matmul %32, %34, %cst_23 {dimension_numbers = #tpu.dot_dimension_numbers<[1], [1], [0], [0], [0, 0, 1, 0], [], []>} : vector<8x64xbf16>, vector<8x64xbf16>, vector<8x8xf32> -> vector<8x8xf32>
    %38 = vector.broadcast %1 : vector<1x8xf32> to vector<8x8xf32>
    %39 = arith.addf %37, %38 : vector<8x8xf32>
    %cst_24 = arith.constant dense<0xFF800000> : vector<8xf32>
    %40 = vector.multi_reduction <maximumf>, %39, %cst_24 [1] : vector<8x8xf32> to vector<8xf32>
    %41 = vector.shape_cast %40 : vector<8xf32> to vector<8x1xf32>
    %42 = vector.broadcast %41 : vector<8x1xf32> to vector<8x8xf32>
    %43 = arith.subf %39, %42 : vector<8x8xf32>
    %44 = math.exp %43 : vector<8x8xf32>
    %cst_25 = arith.constant dense<0.000000e+00> : vector<8xf32>
    %45 = vector.multi_reduction <add>, %44, %cst_25 [1] : vector<8x8xf32> to vector<8xf32>
    %46 = vector.shape_cast %45 : vector<8xf32> to vector<8x1xf32>
    %47 = tpu.reciprocal %46 {approx = true} : vector<8x1xf32> -> vector<8x1xf32>
    %48 = vector.broadcast %47 : vector<8x1xf32> to vector<8x8xf32>
    %49 = arith.mulf %44, %48 : vector<8x8xf32>
    %50 = arith.truncf %49 : vector<8x8xf32> to vector<8x8xbf16>
    %cst_26 = arith.constant dense<0.000000e+00> : vector<8x64xf32>
    %51 = tpu.matmul %50, %36, %cst_26 {dimension_numbers = #tpu.dot_dimension_numbers<[1], [0], [0], [1], [0, 0, 1, 1], [], []>} : vector<8x8xbf16>, vector<8x64xbf16>, vector<8x64xf32> -> vector<8x64xf32>
    %52 = arith.truncf %51 : vector<8x64xf32> to vector<8x64xbf16>
    %c0_27 = arith.constant 0 : index
    %c0_28 = arith.constant 0 : index
    %c64_29 = arith.constant 64 : index
    %53 = vector.load %arg3[%c0_27, %c0_28, %c64_29] : memref<1x8x768xbf16, #tpu.memory_space<vmem>>, vector<1x8x64xbf16>
    %54 = vector.shape_cast %53 : vector<1x8x64xbf16> to vector<8x64xbf16>
    %55 = vector.shape_cast %52 : vector<8x64xbf16> to vector<1x8x64xbf16>
    tpu.vector_store %arg3[%c0_27, %c0_28, %c64_29], %55 {strides = array<i32>} : memref<1x8x768xbf16, #tpu.memory_space<vmem>>, vector<1x8x64xbf16>,
    %c0_30 = arith.constant 0 : index
    %c0_31 = arith.constant 0 : index
    %c128 = arith.constant 128 : index
    %56 = vector.load %arg1[%c0_30, %c0_31, %c128] : memref<1x8x2304xbf16, #tpu.memory_space<vmem>>, vector<1x8x64xbf16>
    %57 = vector.shape_cast %56 : vector<1x8x64xbf16> to vector<8x64xbf16>
    %cst_32 = arith.constant 1.250000e-01 : bf16
    %58 = vector.broadcast %cst_32 : bf16 to vector<8x64xbf16>
    %59 = arith.mulf %57, %58 : vector<8x64xbf16>
    %c0_33 = arith.constant 0 : index
    %c0_34 = arith.constant 0 : index
    %c896 = arith.constant 896 : index
    %60 = vector.load %arg1[%c0_33, %c0_34, %c896] : memref<1x8x2304xbf16, #tpu.memory_space<vmem>>, vector<1x8x64xbf16>
    %61 = vector.shape_cast %60 : vector<1x8x64xbf16> to vector<8x64xbf16>
    %c0_35 = arith.constant 0 : index
    %c0_36 = arith.constant 0 : index
    %c1664 = arith.constant 1664 : index
    %62 = vector.load %arg1[%c0_35, %c0_36, %c1664] : memref<1x8x2304xbf16, #tpu.memory_space<vmem>>, vector<1x8x64xbf16>
    %63 = vector.shape_cast %62 : vector<1x8x64xbf16> to vector<8x64xbf16>
    %cst_37 = arith.constant dense<0.000000e+00> : vector<8x8xf32>
    %64 = tpu.matmul %59, %61, %cst_37 {dimension_numbers = #tpu.dot_dimension_numbers<[1], [1], [0], [0], [0, 0, 1, 0], [], []>} : vector<8x64xbf16>, vector<8x64xbf16>, vector<8x8xf32> -> vector<8x8xf32>
    %65 = vector.broadcast %1 : vector<1x8xf32> to vector<8x8xf32>
    %66 = arith.addf %64, %65 : vector<8x8xf32>
    %cst_38 = arith.constant dense<0xFF800000> : vector<8xf32>
    %67 = vector.multi_reduction <maximumf>, %66, %cst_38 [1] : vector<8x8xf32> to vector<8xf32>
    %68 = vector.shape_cast %67 : vector<8xf32> to vector<8x1xf32>
    %69 = vector.broadcast %68 : vector<8x1xf32> to vector<8x8xf32>
    %70 = arith.subf %66, %69 : vector<8x8xf32>
    %71 = math.exp %70 : vector<8x8xf32>
    %cst_39 = arith.constant dense<0.000000e+00> : vector<8xf32>
    %72 = vector.multi_reduction <add>, %71, %cst_39 [1] : vector<8x8xf32> to vector<8xf32>
    %73 = vector.shape_cast %72 : vector<8xf32> to vector<8x1xf32>
    %74 = tpu.reciprocal %73 {approx = true} : vector<8x1xf32> -> vector<8x1xf32>
    %75 = vector.broadcast %74 : vector<8x1xf32> to vector<8x8xf32>
    %76 = arith.mulf %71, %75 : vector<8x8xf32>
    %77 = arith.truncf %76 : vector<8x8xf32> to vector<8x8xbf16>
    %cst_40 = arith.constant dense<0.000000e+00> : vector<8x64xf32>
    %78 = tpu.matmul %77, %63, %cst_40 {dimension_numbers = #tpu.dot_dimension_numbers<[1], [0], [0], [1], [0, 0, 1, 1], [], []>} : vector<8x8xbf16>, vector<8x64xbf16>, vector<8x64xf32> -> vector<8x64xf32>
    %79 = arith.truncf %78 : vector<8x64xf32> to vector<8x64xbf16>
    %c0_41 = arith.constant 0 : index
    %c0_42 = arith.constant 0 : index
    %c128_43 = arith.constant 128 : index
    %80 = vector.load %arg3[%c0_41, %c0_42, %c128_43] : memref<1x8x768xbf16, #tpu.memory_space<vmem>>, vector<1x8x64xbf16>
    %81 = vector.shape_cast %80 : vector<1x8x64xbf16> to vector<8x64xbf16>
    %82 = vector.shape_cast %79 : vector<8x64xbf16> to vector<1x8x64xbf16>
    tpu.vector_store %arg3[%c0_41, %c0_42, %c128_43], %82 {strides = array<i32>} : memref<1x8x768xbf16, #tpu.memory_space<vmem>>, vector<1x8x64xbf16>,
    %c0_44 = arith.constant 0 : index
    %c0_45 = arith.constant 0 : index
    %c192 = arith.constant 192 : index
    %83 = vector.load %arg1[%c0_44, %c0_45, %c192] : memref<1x8x2304xbf16, #tpu.memory_space<vmem>>, vector<1x8x64xbf16>
    %84 = vector.shape_cast %83 : vector<1x8x64xbf16> to vector<8x64xbf16>
    %cst_46 = arith.constant 1.250000e-01 : bf16
    %85 = vector.broadcast %cst_46 : bf16 to vector<8x64xbf16>
    %86 = arith.mulf %84, %85 : vector<8x64xbf16>
    %c0_47 = arith.constant 0 : index
    %c0_48 = arith.constant 0 : index
    %c960 = arith.constant 960 : index
    %87 = vector.load %arg1[%c0_47, %c0_48, %c960] : memref<1x8x2304xbf16, #tpu.memory_space<vmem>>, vector<1x8x64xbf16>
    %88 = vector.shape_cast %87 : vector<1x8x64xbf16> to vector<8x64xbf16>
    %c0_49 = arith.constant 0 : index
    %c0_50 = arith.constant 0 : index
    %c1728 = arith.constant 1728 : index
    %89 = vector.load %arg1[%c0_49, %c0_50, %c1728] : memref<1x8x2304xbf16, #tpu.memory_space<vmem>>, vector<1x8x64xbf16>
    %90 = vector.shape_cast %89 : vector<1x8x64xbf16> to vector<8x64xbf16>
    %cst_51 = arith.constant dense<0.000000e+00> : vector<8x8xf32>
    %91 = tpu.matmul %86, %88, %cst_51 {dimension_numbers = #tpu.dot_dimension_numbers<[1], [1], [0], [0], [0, 0, 1, 0], [], []>} : vector<8x64xbf16>, vector<8x64xbf16>, vector<8x8xf32> -> vector<8x8xf32>
    %92 = vector.broadcast %1 : vector<1x8xf32> to vector<8x8xf32>
    %93 = arith.addf %91, %92 : vector<8x8xf32>
    %cst_52 = arith.constant dense<0xFF800000> : vector<8xf32>
    %94 = vector.multi_reduction <maximumf>, %93, %cst_52 [1] : vector<8x8xf32> to vector<8xf32>
    %95 = vector.shape_cast %94 : vector<8xf32> to vector<8x1xf32>
    %96 = vector.broadcast %95 : vector<8x1xf32> to vector<8x8xf32>
    %97 = arith.subf %93, %96 : vector<8x8xf32>
    %98 = math.exp %97 : vector<8x8xf32>
    %cst_53 = arith.constant dense<0.000000e+00> : vector<8xf32>
    %99 = vector.multi_reduction <add>, %98, %cst_53 [1] : vector<8x8xf32> to vector<8xf32>
    %100 = vector.shape_cast %99 : vector<8xf32> to vector<8x1xf32>
    %101 = tpu.reciprocal %100 {approx = true} : vector<8x1xf32> -> vector<8x1xf32>
    %102 = vector.broadcast %101 : vector<8x1xf32> to vector<8x8xf32>
    %103 = arith.mulf %98, %102 : vector<8x8xf32>
    %104 = arith.truncf %103 : vector<8x8xf32> to vector<8x8xbf16>
    %cst_54 = arith.constant dense<0.000000e+00> : vector<8x64xf32>
    %105 = tpu.matmul %104, %90, %cst_54 {dimension_numbers = #tpu.dot_dimension_numbers<[1], [0], [0], [1], [0, 0, 1, 1], [], []>} : vector<8x8xbf16>, vector<8x64xbf16>, vector<8x64xf32> -> vector<8x64xf32>
    %106 = arith.truncf %105 : vector<8x64xf32> to vector<8x64xbf16>
    %c0_55 = arith.constant 0 : index
    %c0_56 = arith.constant 0 : index
    %c192_57 = arith.constant 192 : index
    %107 = vector.load %arg3[%c0_55, %c0_56, %c192_57] : memref<1x8x768xbf16, #tpu.memory_space<vmem>>, vector<1x8x64xbf16>
    %108 = vector.shape_cast %107 : vector<1x8x64xbf16> to vector<8x64xbf16>
    %109 = vector.shape_cast %106 : vector<8x64xbf16> to vector<1x8x64xbf16>
    tpu.vector_store %arg3[%c0_55, %c0_56, %c192_57], %109 {strides = array<i32>} : memref<1x8x768xbf16, #tpu.memory_space<vmem>>, vector<1x8x64xbf16>,
    %c0_58 = arith.constant 0 : index
    %c0_59 = arith.constant 0 : index
    %c256 = arith.constant 256 : index
    %110 = vector.load %arg1[%c0_58, %c0_59, %c256] : memref<1x8x2304xbf16, #tpu.memory_space<vmem>>, vector<1x8x64xbf16>
    %111 = vector.shape_cast %110 : vector<1x8x64xbf16> to vector<8x64xbf16>
    %cst_60 = arith.constant 1.250000e-01 : bf16
    %112 = vector.broadcast %cst_60 : bf16 to vector<8x64xbf16>
    %113 = arith.mulf %111, %112 : vector<8x64xbf16>
    %c0_61 = arith.constant 0 : index
    %c0_62 = arith.constant 0 : index
    %c1024 = arith.constant 1024 : index
    %114 = vector.load %arg1[%c0_61, %c0_62, %c1024] : memref<1x8x2304xbf16, #tpu.memory_space<vmem>>, vector<1x8x64xbf16>
    %115 = vector.shape_cast %114 : vector<1x8x64xbf16> to vector<8x64xbf16>
    %c0_63 = arith.constant 0 : index
    %c0_64 = arith.constant 0 : index
    %c1792 = arith.constant 1792 : index
    %116 = vector.load %arg1[%c0_63, %c0_64, %c1792] : memref<1x8x2304xbf16, #tpu.memory_space<vmem>>, vector<1x8x64xbf16>
    %117 = vector.shape_cast %116 : vector<1x8x64xbf16> to vector<8x64xbf16>
    %cst_65 = arith.constant dense<0.000000e+00> : vector<8x8xf32>
    %118 = tpu.matmul %113, %115, %cst_65 {dimension_numbers = #tpu.dot_dimension_numbers<[1], [1], [0], [0], [0, 0, 1, 0], [], []>} : vector<8x64xbf16>, vector<8x64xbf16>, vector<8x8xf32> -> vector<8x8xf32>
    %119 = vector.broadcast %1 : vector<1x8xf32> to vector<8x8xf32>
    %120 = arith.addf %118, %119 : vector<8x8xf32>
    %cst_66 = arith.constant dense<0xFF800000> : vector<8xf32>
    %121 = vector.multi_reduction <maximumf>, %120, %cst_66 [1] : vector<8x8xf32> to vector<8xf32>
    %122 = vector.shape_cast %121 : vector<8xf32> to vector<8x1xf32>
    %123 = vector.broadcast %122 : vector<8x1xf32> to vector<8x8xf32>
    %124 = arith.subf %120, %123 : vector<8x8xf32>
    %125 = math.exp %124 : vector<8x8xf32>
    %cst_67 = arith.constant dense<0.000000e+00> : vector<8xf32>
    %126 = vector.multi_reduction <add>, %125, %cst_67 [1] : vector<8x8xf32> to vector<8xf32>
    %127 = vector.shape_cast %126 : vector<8xf32> to vector<8x1xf32>
    %128 = tpu.reciprocal %127 {approx = true} : vector<8x1xf32> -> vector<8x1xf32>
    %129 = vector.broadcast %128 : vector<8x1xf32> to vector<8x8xf32>
    %130 = arith.mulf %125, %129 : vector<8x8xf32>
    %131 = arith.truncf %130 : vector<8x8xf32> to vector<8x8xbf16>
    %cst_68 = arith.constant dense<0.000000e+00> : vector<8x64xf32>
    %132 = tpu.matmul %131, %117, %cst_68 {dimension_numbers = #tpu.dot_dimension_numbers<[1], [0], [0], [1], [0, 0, 1, 1], [], []>} : vector<8x8xbf16>, vector<8x64xbf16>, vector<8x64xf32> -> vector<8x64xf32>
    %133 = arith.truncf %132 : vector<8x64xf32> to vector<8x64xbf16>
    %c0_69 = arith.constant 0 : index
    %c0_70 = arith.constant 0 : index
    %c256_71 = arith.constant 256 : index
    %134 = vector.load %arg3[%c0_69, %c0_70, %c256_71] : memref<1x8x768xbf16, #tpu.memory_space<vmem>>, vector<1x8x64xbf16>
    %135 = vector.shape_cast %134 : vector<1x8x64xbf16> to vector<8x64xbf16>
    %136 = vector.shape_cast %133 : vector<8x64xbf16> to vector<1x8x64xbf16>
    tpu.vector_store %arg3[%c0_69, %c0_70, %c256_71], %136 {strides = array<i32>} : memref<1x8x768xbf16, #tpu.memory_space<vmem>>, vector<1x8x64xbf16>,
    %c0_72 = arith.constant 0 : index
    %c0_73 = arith.constant 0 : index
    %c320 = arith.constant 320 : index
    %137 = vector.load %arg1[%c0_72, %c0_73, %c320] : memref<1x8x2304xbf16, #tpu.memory_space<vmem>>, vector<1x8x64xbf16>
    %138 = vector.shape_cast %137 : vector<1x8x64xbf16> to vector<8x64xbf16>
    %cst_74 = arith.constant 1.250000e-01 : bf16
    %139 = vector.broadcast %cst_74 : bf16 to vector<8x64xbf16>
    %140 = arith.mulf %138, %139 : vector<8x64xbf16>
    %c0_75 = arith.constant 0 : index
    %c0_76 = arith.constant 0 : index
    %c1088 = arith.constant 1088 : index
    %141 = vector.load %arg1[%c0_75, %c0_76, %c1088] : memref<1x8x2304xbf16, #tpu.memory_space<vmem>>, vector<1x8x64xbf16>
    %142 = vector.shape_cast %141 : vector<1x8x64xbf16> to vector<8x64xbf16>
    %c0_77 = arith.constant 0 : index
    %c0_78 = arith.constant 0 : index
    %c1856 = arith.constant 1856 : index
    %143 = vector.load %arg1[%c0_77, %c0_78, %c1856] : memref<1x8x2304xbf16, #tpu.memory_space<vmem>>, vector<1x8x64xbf16>
    %144 = vector.shape_cast %143 : vector<1x8x64xbf16> to vector<8x64xbf16>
    %cst_79 = arith.constant dense<0.000000e+00> : vector<8x8xf32>
    %145 = tpu.matmul %140, %142, %cst_79 {dimension_numbers = #tpu.dot_dimension_numbers<[1], [1], [0], [0], [0, 0, 1, 0], [], []>} : vector<8x64xbf16>, vector<8x64xbf16>, vector<8x8xf32> -> vector<8x8xf32>
    %146 = vector.broadcast %1 : vector<1x8xf32> to vector<8x8xf32>
    %147 = arith.addf %145, %146 : vector<8x8xf32>
    %cst_80 = arith.constant dense<0xFF800000> : vector<8xf32>
    %148 = vector.multi_reduction <maximumf>, %147, %cst_80 [1] : vector<8x8xf32> to vector<8xf32>
    %149 = vector.shape_cast %148 : vector<8xf32> to vector<8x1xf32>
    %150 = vector.broadcast %149 : vector<8x1xf32> to vector<8x8xf32>
    %151 = arith.subf %147, %150 : vector<8x8xf32>
    %152 = math.exp %151 : vector<8x8xf32>
    %cst_81 = arith.constant dense<0.000000e+00> : vector<8xf32>
    %153 = vector.multi_reduction <add>, %152, %cst_81 [1] : vector<8x8xf32> to vector<8xf32>
    %154 = vector.shape_cast %153 : vector<8xf32> to vector<8x1xf32>
    %155 = tpu.reciprocal %154 {approx = true} : vector<8x1xf32> -> vector<8x1xf32>
    %156 = vector.broadcast %155 : vector<8x1xf32> to vector<8x8xf32>
    %157 = arith.mulf %152, %156 : vector<8x8xf32>
    %158 = arith.truncf %157 : vector<8x8xf32> to vector<8x8xbf16>
    %cst_82 = arith.constant dense<0.000000e+00> : vector<8x64xf32>
    %159 = tpu.matmul %158, %144, %cst_82 {dimension_numbers = #tpu.dot_dimension_numbers<[1], [0], [0], [1], [0, 0, 1, 1], [], []>} : vector<8x8xbf16>, vector<8x64xbf16>, vector<8x64xf32> -> vector<8x64xf32>
    %160 = arith.truncf %159 : vector<8x64xf32> to vector<8x64xbf16>
    %c0_83 = arith.constant 0 : index
    %c0_84 = arith.constant 0 : index
    %c320_85 = arith.constant 320 : index
    %161 = vector.load %arg3[%c0_83, %c0_84, %c320_85] : memref<1x8x768xbf16, #tpu.memory_space<vmem>>, vector<1x8x64xbf16>
    %162 = vector.shape_cast %161 : vector<1x8x64xbf16> to vector<8x64xbf16>
    %163 = vector.shape_cast %160 : vector<8x64xbf16> to vector<1x8x64xbf16>
    tpu.vector_store %arg3[%c0_83, %c0_84, %c320_85], %163 {strides = array<i32>} : memref<1x8x768xbf16, #tpu.memory_space<vmem>>, vector<1x8x64xbf16>,
    %c0_86 = arith.constant 0 : index
    %c0_87 = arith.constant 0 : index
    %c384 = arith.constant 384 : index
    %164 = vector.load %arg1[%c0_86, %c0_87, %c384] : memref<1x8x2304xbf16, #tpu.memory_space<vmem>>, vector<1x8x64xbf16>
    %165 = vector.shape_cast %164 : vector<1x8x64xbf16> to vector<8x64xbf16>
    %cst_88 = arith.constant 1.250000e-01 : bf16
    %166 = vector.broadcast %cst_88 : bf16 to vector<8x64xbf16>
    %167 = arith.mulf %165, %166 : vector<8x64xbf16>
    %c0_89 = arith.constant 0 : index
    %c0_90 = arith.constant 0 : index
    %c1152 = arith.constant 1152 : index
    %168 = vector.load %arg1[%c0_89, %c0_90, %c1152] : memref<1x8x2304xbf16, #tpu.memory_space<vmem>>, vector<1x8x64xbf16>
    %169 = vector.shape_cast %168 : vector<1x8x64xbf16> to vector<8x64xbf16>
    %c0_91 = arith.constant 0 : index
    %c0_92 = arith.constant 0 : index
    %c1920 = arith.constant 1920 : index
    %170 = vector.load %arg1[%c0_91, %c0_92, %c1920] : memref<1x8x2304xbf16, #tpu.memory_space<vmem>>, vector<1x8x64xbf16>
    %171 = vector.shape_cast %170 : vector<1x8x64xbf16> to vector<8x64xbf16>
    %cst_93 = arith.constant dense<0.000000e+00> : vector<8x8xf32>
    %172 = tpu.matmul %167, %169, %cst_93 {dimension_numbers = #tpu.dot_dimension_numbers<[1], [1], [0], [0], [0, 0, 1, 0], [], []>} : vector<8x64xbf16>, vector<8x64xbf16>, vector<8x8xf32> -> vector<8x8xf32>
    %173 = vector.broadcast %1 : vector<1x8xf32> to vector<8x8xf32>
    %174 = arith.addf %172, %173 : vector<8x8xf32>
    %cst_94 = arith.constant dense<0xFF800000> : vector<8xf32>
    %175 = vector.multi_reduction <maximumf>, %174, %cst_94 [1] : vector<8x8xf32> to vector<8xf32>
    %176 = vector.shape_cast %175 : vector<8xf32> to vector<8x1xf32>
    %177 = vector.broadcast %176 : vector<8x1xf32> to vector<8x8xf32>
    %178 = arith.subf %174, %177 : vector<8x8xf32>
    %179 = math.exp %178 : vector<8x8xf32>
    %cst_95 = arith.constant dense<0.000000e+00> : vector<8xf32>
    %180 = vector.multi_reduction <add>, %179, %cst_95 [1] : vector<8x8xf32> to vector<8xf32>
    %181 = vector.shape_cast %180 : vector<8xf32> to vector<8x1xf32>
    %182 = tpu.reciprocal %181 {approx = true} : vector<8x1xf32> -> vector<8x1xf32>
    %183 = vector.broadcast %182 : vector<8x1xf32> to vector<8x8xf32>
    %184 = arith.mulf %179, %183 : vector<8x8xf32>
    %185 = arith.truncf %184 : vector<8x8xf32> to vector<8x8xbf16>
    %cst_96 = arith.constant dense<0.000000e+00> : vector<8x64xf32>
    %186 = tpu.matmul %185, %171, %cst_96 {dimension_numbers = #tpu.dot_dimension_numbers<[1], [0], [0], [1], [0, 0, 1, 1], [], []>} : vector<8x8xbf16>, vector<8x64xbf16>, vector<8x64xf32> -> vector<8x64xf32>
    %187 = arith.truncf %186 : vector<8x64xf32> to vector<8x64xbf16>
    %c0_97 = arith.constant 0 : index
    %c0_98 = arith.constant 0 : index
    %c384_99 = arith.constant 384 : index
    %188 = vector.load %arg3[%c0_97, %c0_98, %c384_99] : memref<1x8x768xbf16, #tpu.memory_space<vmem>>, vector<1x8x64xbf16>
    %189 = vector.shape_cast %188 : vector<1x8x64xbf16> to vector<8x64xbf16>
    %190 = vector.shape_cast %187 : vector<8x64xbf16> to vector<1x8x64xbf16>
    tpu.vector_store %arg3[%c0_97, %c0_98, %c384_99], %190 {strides = array<i32>} : memref<1x8x768xbf16, #tpu.memory_space<vmem>>, vector<1x8x64xbf16>,
    %c0_100 = arith.constant 0 : index
    %c0_101 = arith.constant 0 : index
    %c448 = arith.constant 448 : index
    %191 = vector.load %arg1[%c0_100, %c0_101, %c448] : memref<1x8x2304xbf16, #tpu.memory_space<vmem>>, vector<1x8x64xbf16>
    %192 = vector.shape_cast %191 : vector<1x8x64xbf16> to vector<8x64xbf16>
    %cst_102 = arith.constant 1.250000e-01 : bf16
    %193 = vector.broadcast %cst_102 : bf16 to vector<8x64xbf16>
    %194 = arith.mulf %192, %193 : vector<8x64xbf16>
    %c0_103 = arith.constant 0 : index
    %c0_104 = arith.constant 0 : index
    %c1216 = arith.constant 1216 : index
    %195 = vector.load %arg1[%c0_103, %c0_104, %c1216] : memref<1x8x2304xbf16, #tpu.memory_space<vmem>>, vector<1x8x64xbf16>
    %196 = vector.shape_cast %195 : vector<1x8x64xbf16> to vector<8x64xbf16>
    %c0_105 = arith.constant 0 : index
    %c0_106 = arith.constant 0 : index
    %c1984 = arith.constant 1984 : index
    %197 = vector.load %arg1[%c0_105, %c0_106, %c1984] : memref<1x8x2304xbf16, #tpu.memory_space<vmem>>, vector<1x8x64xbf16>
    %198 = vector.shape_cast %197 : vector<1x8x64xbf16> to vector<8x64xbf16>
    %cst_107 = arith.constant dense<0.000000e+00> : vector<8x8xf32>
    %199 = tpu.matmul %194, %196, %cst_107 {dimension_numbers = #tpu.dot_dimension_numbers<[1], [1], [0], [0], [0, 0, 1, 0], [], []>} : vector<8x64xbf16>, vector<8x64xbf16>, vector<8x8xf32> -> vector<8x8xf32>
    %200 = vector.broadcast %1 : vector<1x8xf32> to vector<8x8xf32>
    %201 = arith.addf %199, %200 : vector<8x8xf32>
    %cst_108 = arith.constant dense<0xFF800000> : vector<8xf32>
    %202 = vector.multi_reduction <maximumf>, %201, %cst_108 [1] : vector<8x8xf32> to vector<8xf32>
    %203 = vector.shape_cast %202 : vector<8xf32> to vector<8x1xf32>
    %204 = vector.broadcast %203 : vector<8x1xf32> to vector<8x8xf32>
    %205 = arith.subf %201, %204 : vector<8x8xf32>
    %206 = math.exp %205 : vector<8x8xf32>
    %cst_109 = arith.constant dense<0.000000e+00> : vector<8xf32>
    %207 = vector.multi_reduction <add>, %206, %cst_109 [1] : vector<8x8xf32> to vector<8xf32>
    %208 = vector.shape_cast %207 : vector<8xf32> to vector<8x1xf32>
    %209 = tpu.reciprocal %208 {approx = true} : vector<8x1xf32> -> vector<8x1xf32>
    %210 = vector.broadcast %209 : vector<8x1xf32> to vector<8x8xf32>
    %211 = arith.mulf %206, %210 : vector<8x8xf32>
    %212 = arith.truncf %211 : vector<8x8xf32> to vector<8x8xbf16>
    %cst_110 = arith.constant dense<0.000000e+00> : vector<8x64xf32>
    %213 = tpu.matmul %212, %198, %cst_110 {dimension_numbers = #tpu.dot_dimension_numbers<[1], [0], [0], [1], [0, 0, 1, 1], [], []>} : vector<8x8xbf16>, vector<8x64xbf16>, vector<8x64xf32> -> vector<8x64xf32>
    %214 = arith.truncf %213 : vector<8x64xf32> to vector<8x64xbf16>
    %c0_111 = arith.constant 0 : index
    %c0_112 = arith.constant 0 : index
    %c448_113 = arith.constant 448 : index
    %215 = vector.load %arg3[%c0_111, %c0_112, %c448_113] : memref<1x8x768xbf16, #tpu.memory_space<vmem>>, vector<1x8x64xbf16>
    %216 = vector.shape_cast %215 : vector<1x8x64xbf16> to vector<8x64xbf16>
    %217 = vector.shape_cast %214 : vector<8x64xbf16> to vector<1x8x64xbf16>
    tpu.vector_store %arg3[%c0_111, %c0_112, %c448_113], %217 {strides = array<i32>} : memref<1x8x768xbf16, #tpu.memory_space<vmem>>, vector<1x8x64xbf16>,
    %c0_114 = arith.constant 0 : index
    %c0_115 = arith.constant 0 : index
    %c512 = arith.constant 512 : index
    %218 = vector.load %arg1[%c0_114, %c0_115, %c512] : memref<1x8x2304xbf16, #tpu.memory_space<vmem>>, vector<1x8x64xbf16>
    %219 = vector.shape_cast %218 : vector<1x8x64xbf16> to vector<8x64xbf16>
    %cst_116 = arith.constant 1.250000e-01 : bf16
    %220 = vector.broadcast %cst_116 : bf16 to vector<8x64xbf16>
    %221 = arith.mulf %219, %220 : vector<8x64xbf16>
    %c0_117 = arith.constant 0 : index
    %c0_118 = arith.constant 0 : index
    %c1280 = arith.constant 1280 : index
    %222 = vector.load %arg1[%c0_117, %c0_118, %c1280] : memref<1x8x2304xbf16, #tpu.memory_space<vmem>>, vector<1x8x64xbf16>
    %223 = vector.shape_cast %222 : vector<1x8x64xbf16> to vector<8x64xbf16>
    %c0_119 = arith.constant 0 : index
    %c0_120 = arith.constant 0 : index
    %c2048 = arith.constant 2048 : index
    %224 = vector.load %arg1[%c0_119, %c0_120, %c2048] : memref<1x8x2304xbf16, #tpu.memory_space<vmem>>, vector<1x8x64xbf16>
    %225 = vector.shape_cast %224 : vector<1x8x64xbf16> to vector<8x64xbf16>
    %cst_121 = arith.constant dense<0.000000e+00> : vector<8x8xf32>
    %226 = tpu.matmul %221, %223, %cst_121 {dimension_numbers = #tpu.dot_dimension_numbers<[1], [1], [0], [0], [0, 0, 1, 0], [], []>} : vector<8x64xbf16>, vector<8x64xbf16>, vector<8x8xf32> -> vector<8x8xf32>
    %227 = vector.broadcast %1 : vector<1x8xf32> to vector<8x8xf32>
    %228 = arith.addf %226, %227 : vector<8x8xf32>
    %cst_122 = arith.constant dense<0xFF800000> : vector<8xf32>
    %229 = vector.multi_reduction <maximumf>, %228, %cst_122 [1] : vector<8x8xf32> to vector<8xf32>
    %230 = vector.shape_cast %229 : vector<8xf32> to vector<8x1xf32>
    %231 = vector.broadcast %230 : vector<8x1xf32> to vector<8x8xf32>
    %232 = arith.subf %228, %231 : vector<8x8xf32>
    %233 = math.exp %232 : vector<8x8xf32>
    %cst_123 = arith.constant dense<0.000000e+00> : vector<8xf32>
    %234 = vector.multi_reduction <add>, %233, %cst_123 [1] : vector<8x8xf32> to vector<8xf32>
    %235 = vector.shape_cast %234 : vector<8xf32> to vector<8x1xf32>
    %236 = tpu.reciprocal %235 {approx = true} : vector<8x1xf32> -> vector<8x1xf32>
    %237 = vector.broadcast %236 : vector<8x1xf32> to vector<8x8xf32>
    %238 = arith.mulf %233, %237 : vector<8x8xf32>
    %239 = arith.truncf %238 : vector<8x8xf32> to vector<8x8xbf16>
    %cst_124 = arith.constant dense<0.000000e+00> : vector<8x64xf32>
    %240 = tpu.matmul %239, %225, %cst_124 {dimension_numbers = #tpu.dot_dimension_numbers<[1], [0], [0], [1], [0, 0, 1, 1], [], []>} : vector<8x8xbf16>, vector<8x64xbf16>, vector<8x64xf32> -> vector<8x64xf32>
    %241 = arith.truncf %240 : vector<8x64xf32> to vector<8x64xbf16>
    %c0_125 = arith.constant 0 : index
    %c0_126 = arith.constant 0 : index
    %c512_127 = arith.constant 512 : index
    %242 = vector.load %arg3[%c0_125, %c0_126, %c512_127] : memref<1x8x768xbf16, #tpu.memory_space<vmem>>, vector<1x8x64xbf16>
    %243 = vector.shape_cast %242 : vector<1x8x64xbf16> to vector<8x64xbf16>
    %244 = vector.shape_cast %241 : vector<8x64xbf16> to vector<1x8x64xbf16>
    tpu.vector_store %arg3[%c0_125, %c0_126, %c512_127], %244 {strides = array<i32>} : memref<1x8x768xbf16, #tpu.memory_space<vmem>>, vector<1x8x64xbf16>,
    %c0_128 = arith.constant 0 : index
    %c0_129 = arith.constant 0 : index
    %c576 = arith.constant 576 : index
    %245 = vector.load %arg1[%c0_128, %c0_129, %c576] : memref<1x8x2304xbf16, #tpu.memory_space<vmem>>, vector<1x8x64xbf16>
    %246 = vector.shape_cast %245 : vector<1x8x64xbf16> to vector<8x64xbf16>
    %cst_130 = arith.constant 1.250000e-01 : bf16
    %247 = vector.broadcast %cst_130 : bf16 to vector<8x64xbf16>
    %248 = arith.mulf %246, %247 : vector<8x64xbf16>
    %c0_131 = arith.constant 0 : index
    %c0_132 = arith.constant 0 : index
    %c1344 = arith.constant 1344 : index
    %249 = vector.load %arg1[%c0_131, %c0_132, %c1344] : memref<1x8x2304xbf16, #tpu.memory_space<vmem>>, vector<1x8x64xbf16>
    %250 = vector.shape_cast %249 : vector<1x8x64xbf16> to vector<8x64xbf16>
    %c0_133 = arith.constant 0 : index
    %c0_134 = arith.constant 0 : index
    %c2112 = arith.constant 2112 : index
    %251 = vector.load %arg1[%c0_133, %c0_134, %c2112] : memref<1x8x2304xbf16, #tpu.memory_space<vmem>>, vector<1x8x64xbf16>
    %252 = vector.shape_cast %251 : vector<1x8x64xbf16> to vector<8x64xbf16>
    %cst_135 = arith.constant dense<0.000000e+00> : vector<8x8xf32>
    %253 = tpu.matmul %248, %250, %cst_135 {dimension_numbers = #tpu.dot_dimension_numbers<[1], [1], [0], [0], [0, 0, 1, 0], [], []>} : vector<8x64xbf16>, vector<8x64xbf16>, vector<8x8xf32> -> vector<8x8xf32>
    %254 = vector.broadcast %1 : vector<1x8xf32> to vector<8x8xf32>
    %255 = arith.addf %253, %254 : vector<8x8xf32>
    %cst_136 = arith.constant dense<0xFF800000> : vector<8xf32>
    %256 = vector.multi_reduction <maximumf>, %255, %cst_136 [1] : vector<8x8xf32> to vector<8xf32>
    %257 = vector.shape_cast %256 : vector<8xf32> to vector<8x1xf32>
    %258 = vector.broadcast %257 : vector<8x1xf32> to vector<8x8xf32>
    %259 = arith.subf %255, %258 : vector<8x8xf32>
    %260 = math.exp %259 : vector<8x8xf32>
    %cst_137 = arith.constant dense<0.000000e+00> : vector<8xf32>
    %261 = vector.multi_reduction <add>, %260, %cst_137 [1] : vector<8x8xf32> to vector<8xf32>
    %262 = vector.shape_cast %261 : vector<8xf32> to vector<8x1xf32>
    %263 = tpu.reciprocal %262 {approx = true} : vector<8x1xf32> -> vector<8x1xf32>
    %264 = vector.broadcast %263 : vector<8x1xf32> to vector<8x8xf32>
    %265 = arith.mulf %260, %264 : vector<8x8xf32>
    %266 = arith.truncf %265 : vector<8x8xf32> to vector<8x8xbf16>
    %cst_138 = arith.constant dense<0.000000e+00> : vector<8x64xf32>
    %267 = tpu.matmul %266, %252, %cst_138 {dimension_numbers = #tpu.dot_dimension_numbers<[1], [0], [0], [1], [0, 0, 1, 1], [], []>} : vector<8x8xbf16>, vector<8x64xbf16>, vector<8x64xf32> -> vector<8x64xf32>
    %268 = arith.truncf %267 : vector<8x64xf32> to vector<8x64xbf16>
    %c0_139 = arith.constant 0 : index
    %c0_140 = arith.constant 0 : index
    %c576_141 = arith.constant 576 : index
    %269 = vector.load %arg3[%c0_139, %c0_140, %c576_141] : memref<1x8x768xbf16, #tpu.memory_space<vmem>>, vector<1x8x64xbf16>
    %270 = vector.shape_cast %269 : vector<1x8x64xbf16> to vector<8x64xbf16>
    %271 = vector.shape_cast %268 : vector<8x64xbf16> to vector<1x8x64xbf16>
    tpu.vector_store %arg3[%c0_139, %c0_140, %c576_141], %271 {strides = array<i32>} : memref<1x8x768xbf16, #tpu.memory_space<vmem>>, vector<1x8x64xbf16>,
    %c0_142 = arith.constant 0 : index
    %c0_143 = arith.constant 0 : index
    %c640 = arith.constant 640 : index
    %272 = vector.load %arg1[%c0_142, %c0_143, %c640] : memref<1x8x2304xbf16, #tpu.memory_space<vmem>>, vector<1x8x64xbf16>
    %273 = vector.shape_cast %272 : vector<1x8x64xbf16> to vector<8x64xbf16>
    %cst_144 = arith.constant 1.250000e-01 : bf16
    %274 = vector.broadcast %cst_144 : bf16 to vector<8x64xbf16>
    %275 = arith.mulf %273, %274 : vector<8x64xbf16>
    %c0_145 = arith.constant 0 : index
    %c0_146 = arith.constant 0 : index
    %c1408 = arith.constant 1408 : index
    %276 = vector.load %arg1[%c0_145, %c0_146, %c1408] : memref<1x8x2304xbf16, #tpu.memory_space<vmem>>, vector<1x8x64xbf16>
    %277 = vector.shape_cast %276 : vector<1x8x64xbf16> to vector<8x64xbf16>
    %c0_147 = arith.constant 0 : index
    %c0_148 = arith.constant 0 : index
    %c2176 = arith.constant 2176 : index
    %278 = vector.load %arg1[%c0_147, %c0_148, %c2176] : memref<1x8x2304xbf16, #tpu.memory_space<vmem>>, vector<1x8x64xbf16>
    %279 = vector.shape_cast %278 : vector<1x8x64xbf16> to vector<8x64xbf16>
    %cst_149 = arith.constant dense<0.000000e+00> : vector<8x8xf32>
    %280 = tpu.matmul %275, %277, %cst_149 {dimension_numbers = #tpu.dot_dimension_numbers<[1], [1], [0], [0], [0, 0, 1, 0], [], []>} : vector<8x64xbf16>, vector<8x64xbf16>, vector<8x8xf32> -> vector<8x8xf32>
    %281 = vector.broadcast %1 : vector<1x8xf32> to vector<8x8xf32>
    %282 = arith.addf %280, %281 : vector<8x8xf32>
    %cst_150 = arith.constant dense<0xFF800000> : vector<8xf32>
    %283 = vector.multi_reduction <maximumf>, %282, %cst_150 [1] : vector<8x8xf32> to vector<8xf32>
    %284 = vector.shape_cast %283 : vector<8xf32> to vector<8x1xf32>
    %285 = vector.broadcast %284 : vector<8x1xf32> to vector<8x8xf32>
    %286 = arith.subf %282, %285 : vector<8x8xf32>
    %287 = math.exp %286 : vector<8x8xf32>
    %cst_151 = arith.constant dense<0.000000e+00> : vector<8xf32>
    %288 = vector.multi_reduction <add>, %287, %cst_151 [1] : vector<8x8xf32> to vector<8xf32>
    %289 = vector.shape_cast %288 : vector<8xf32> to vector<8x1xf32>
    %290 = tpu.reciprocal %289 {approx = true} : vector<8x1xf32> -> vector<8x1xf32>
    %291 = vector.broadcast %290 : vector<8x1xf32> to vector<8x8xf32>
    %292 = arith.mulf %287, %291 : vector<8x8xf32>
    %293 = arith.truncf %292 : vector<8x8xf32> to vector<8x8xbf16>
    %cst_152 = arith.constant dense<0.000000e+00> : vector<8x64xf32>
    %294 = tpu.matmul %293, %279, %cst_152 {dimension_numbers = #tpu.dot_dimension_numbers<[1], [0], [0], [1], [0, 0, 1, 1], [], []>} : vector<8x8xbf16>, vector<8x64xbf16>, vector<8x64xf32> -> vector<8x64xf32>
    %295 = arith.truncf %294 : vector<8x64xf32> to vector<8x64xbf16>
    %c0_153 = arith.constant 0 : index
    %c0_154 = arith.constant 0 : index
    %c640_155 = arith.constant 640 : index
    %296 = vector.load %arg3[%c0_153, %c0_154, %c640_155] : memref<1x8x768xbf16, #tpu.memory_space<vmem>>, vector<1x8x64xbf16>
    %297 = vector.shape_cast %296 : vector<1x8x64xbf16> to vector<8x64xbf16>
    %298 = vector.shape_cast %295 : vector<8x64xbf16> to vector<1x8x64xbf16>
    tpu.vector_store %arg3[%c0_153, %c0_154, %c640_155], %298 {strides = array<i32>} : memref<1x8x768xbf16, #tpu.memory_space<vmem>>, vector<1x8x64xbf16>,
    %c0_156 = arith.constant 0 : index
    %c0_157 = arith.constant 0 : index
    %c704 = arith.constant 704 : index
    %299 = vector.load %arg1[%c0_156, %c0_157, %c704] : memref<1x8x2304xbf16, #tpu.memory_space<vmem>>, vector<1x8x64xbf16>
    %300 = vector.shape_cast %299 : vector<1x8x64xbf16> to vector<8x64xbf16>
    %cst_158 = arith.constant 1.250000e-01 : bf16
    %301 = vector.broadcast %cst_158 : bf16 to vector<8x64xbf16>
    %302 = arith.mulf %300, %301 : vector<8x64xbf16>
    %c0_159 = arith.constant 0 : index
    %c0_160 = arith.constant 0 : index
    %c1472 = arith.constant 1472 : index
    %303 = vector.load %arg1[%c0_159, %c0_160, %c1472] : memref<1x8x2304xbf16, #tpu.memory_space<vmem>>, vector<1x8x64xbf16>
    %304 = vector.shape_cast %303 : vector<1x8x64xbf16> to vector<8x64xbf16>
    %c0_161 = arith.constant 0 : index
    %c0_162 = arith.constant 0 : index
    %c2240 = arith.constant 2240 : index
    %305 = vector.load %arg1[%c0_161, %c0_162, %c2240] : memref<1x8x2304xbf16, #tpu.memory_space<vmem>>, vector<1x8x64xbf16>
    %306 = vector.shape_cast %305 : vector<1x8x64xbf16> to vector<8x64xbf16>
    %cst_163 = arith.constant dense<0.000000e+00> : vector<8x8xf32>
    %307 = tpu.matmul %302, %304, %cst_163 {dimension_numbers = #tpu.dot_dimension_numbers<[1], [1], [0], [0], [0, 0, 1, 0], [], []>} : vector<8x64xbf16>, vector<8x64xbf16>, vector<8x8xf32> -> vector<8x8xf32>
    %308 = vector.broadcast %1 : vector<1x8xf32> to vector<8x8xf32>
    %309 = arith.addf %307, %308 : vector<8x8xf32>
    %cst_164 = arith.constant dense<0xFF800000> : vector<8xf32>
    %310 = vector.multi_reduction <maximumf>, %309, %cst_164 [1] : vector<8x8xf32> to vector<8xf32>
    %311 = vector.shape_cast %310 : vector<8xf32> to vector<8x1xf32>
    %312 = vector.broadcast %311 : vector<8x1xf32> to vector<8x8xf32>
    %313 = arith.subf %309, %312 : vector<8x8xf32>
    %314 = math.exp %313 : vector<8x8xf32>
    %cst_165 = arith.constant dense<0.000000e+00> : vector<8xf32>
    %315 = vector.multi_reduction <add>, %314, %cst_165 [1] : vector<8x8xf32> to vector<8xf32>
    %316 = vector.shape_cast %315 : vector<8xf32> to vector<8x1xf32>
    %317 = tpu.reciprocal %316 {approx = true} : vector<8x1xf32> -> vector<8x1xf32>
    %318 = vector.broadcast %317 : vector<8x1xf32> to vector<8x8xf32>
    %319 = arith.mulf %314, %318 : vector<8x8xf32>
    %320 = arith.truncf %319 : vector<8x8xf32> to vector<8x8xbf16>
    %cst_166 = arith.constant dense<0.000000e+00> : vector<8x64xf32>
    %321 = tpu.matmul %320, %306, %cst_166 {dimension_numbers = #tpu.dot_dimension_numbers<[1], [0], [0], [1], [0, 0, 1, 1], [], []>} : vector<8x8xbf16>, vector<8x64xbf16>, vector<8x64xf32> -> vector<8x64xf32>
    %322 = arith.truncf %321 : vector<8x64xf32> to vector<8x64xbf16>
    %c0_167 = arith.constant 0 : index
    %c0_168 = arith.constant 0 : index
    %c704_169 = arith.constant 704 : index
    %323 = vector.load %arg3[%c0_167, %c0_168, %c704_169] : memref<1x8x768xbf16, #tpu.memory_space<vmem>>, vector<1x8x64xbf16>
    %324 = vector.shape_cast %323 : vector<1x8x64xbf16> to vector<8x64xbf16>
    %325 = vector.shape_cast %322 : vector<8x64xbf16> to vector<1x8x64xbf16>
    tpu.vector_store %arg3[%c0_167, %c0_168, %c704_169], %325 {strides = array<i32>} : memref<1x8x768xbf16, #tpu.memory_space<vmem>>, vector<1x8x64xbf16>,
    return
  }
  func.func @transform_0(%arg0: i32) -> (i32, i32, i32) {
    %c0_i32 = arith.constant 0 : i32
    %c0_i32_0 = arith.constant 0 : i32
    %c0_i32_1 = arith.constant 0 : i32
    return %arg0, %c0_i32, %c0_i32_0 : i32, i32, i32
  }
  func.func @transform_1(%arg0: i32) -> (i32, i32, i32) {
    %c0_i32 = arith.constant 0 : i32
    %c0_i32_0 = arith.constant 0 : i32
    %c0_i32_1 = arith.constant 0 : i32
    return %arg0, %c0_i32, %c0_i32_0 : i32, i32, i32
  }
  func.func @transform_2(%arg0: i32) -> (i32, i32, i32) {
    %c0_i32 = arith.constant 0 : i32
    %c0_i32_0 = arith.constant 0 : i32
    %c0_i32_1 = arith.constant 0 : i32
    return %arg0, %c0_i32, %c0_i32_0 : i32, i32, i32
  }
}

module attributes {stable_mosaic.version = 11 : i64} {
  func.func @_dense_kernel(%arg0: i32, %arg1: i32, %arg2: i32, %arg3: memref<16x256xbf16, #tpu.memory_space<vmem>>, %arg4: memref<256x256xbf16, #tpu.memory_space<vmem>>, %arg5: memref<1x256xf32, #tpu.memory_space<vmem>>, %arg6: memref<16x256xf32, #tpu.memory_space<vmem>>, %arg7: memref<16x256xf32, #tpu.memory_space<vmem>>) attributes {dimension_semantics = [#tpu.dimension_semantics<parallel>, #tpu.dimension_semantics<parallel>, #tpu.dimension_semantics<arbitrary>], iteration_bounds = array<i64: 1, 3, 3>, scalar_prefetch = 0 : i64, scratch_operands = 1 : i64, tpu.core_type = #tpu.core_type<tc>, window_params = [{transform_indices = @transform_0, window_bounds = array<i64: 16, 256>}, {transform_indices = @transform_1, window_bounds = array<i64: 256, 256>}, {transform_indices = @transform_2, window_bounds = array<i64: 1, 256>}, {transform_indices = @transform_3, window_bounds = array<i64: 16, 256>}]} {
    %c0_i32 = arith.constant 0 : i32
    %0 = arith.cmpi eq, %arg2, %c0_i32 : i32
    %1 = arith.extui %0 : i1 to i32
    %c0_i32_0 = arith.constant 0 : i32
    %2 = arith.cmpi ne, %1, %c0_i32_0 : i32
    scf.if %2 {
      %cst_9 = arith.constant 0.000000e+00 : f32
      %12 = vector.broadcast %cst_9 : f32 to vector<16x256xf32>
      %c0_10 = arith.constant 0 : index
      %c0_11 = arith.constant 0 : index
      %13 = vector.load %arg7[%c0_10, %c0_11] : memref<16x256xf32, #tpu.memory_space<vmem>>, vector<16x256xf32>
      tpu.vector_store %arg7[%c0_10, %c0_11], %12 {strides = array<i32>} : memref<16x256xf32, #tpu.memory_space<vmem>>, vector<16x256xf32>,
    } else {
    }
    %c0 = arith.constant 0 : index
    %c0_1 = arith.constant 0 : index
    %3 = vector.load %arg7[%c0, %c0_1] : memref<16x256xf32, #tpu.memory_space<vmem>>, vector<16x256xf32>
    %c0_2 = arith.constant 0 : index
    %c0_3 = arith.constant 0 : index
    %4 = vector.load %arg3[%c0_2, %c0_3] : memref<16x256xbf16, #tpu.memory_space<vmem>>, vector<16x256xbf16>
    %c0_4 = arith.constant 0 : index
    %c0_5 = arith.constant 0 : index
    %5 = vector.load %arg4[%c0_4, %c0_5] : memref<256x256xbf16, #tpu.memory_space<vmem>>, vector<256x256xbf16>
    %cst = arith.constant dense<0.000000e+00> : vector<16x256xf32>
    %6 = tpu.matmul %4, %5, %cst {dimension_numbers = #tpu.dot_dimension_numbers<[1], [0], [0], [1], [0, 0, 1, 1], [], []>} : vector<16x256xbf16>, vector<256x256xbf16>, vector<16x256xf32> -> vector<16x256xf32>
    %7 = arith.addf %3, %6 : vector<16x256xf32>
    %c0_6 = arith.constant 0 : index
    %c0_7 = arith.constant 0 : index
    %8 = vector.load %arg7[%c0_6, %c0_7] : memref<16x256xf32, #tpu.memory_space<vmem>>, vector<16x256xf32>
    tpu.vector_store %arg7[%c0_6, %c0_7], %7 {strides = array<i32>} : memref<16x256xf32, #tpu.memory_space<vmem>>, vector<16x256xf32>,
    %c2_i32 = arith.constant 2 : i32
    %9 = arith.cmpi eq, %arg2, %c2_i32 : i32
    %10 = arith.extui %9 : i1 to i32
    %c0_i32_8 = arith.constant 0 : i32
    %11 = arith.cmpi ne, %10, %c0_i32_8 : i32
    scf.if %11 {
      %c0_9 = arith.constant 0 : index
      %c0_10 = arith.constant 0 : index
      %12 = vector.load %arg7[%c0_9, %c0_10] : memref<16x256xf32, #tpu.memory_space<vmem>>, vector<16x256xf32>
      %c0_11 = arith.constant 0 : index
      %c0_12 = arith.constant 0 : index
      %13 = vector.load %arg5[%c0_11, %c0_12] : memref<1x256xf32, #tpu.memory_space<vmem>>, vector<1x256xf32>
      %14 = vector.broadcast %13 : vector<1x256xf32> to vector<16x256xf32>
      %15 = arith.addf %12, %14 : vector<16x256xf32>
      %c0_13 = arith.constant 0 : index
      %c0_14 = arith.constant 0 : index
      %16 = vector.load %arg6[%c0_13, %c0_14] : memref<16x256xf32, #tpu.memory_space<vmem>>, vector<16x256xf32>
      tpu.vector_store %arg6[%c0_13, %c0_14], %15 {strides = array<i32>} : memref<16x256xf32, #tpu.memory_space<vmem>>, vector<16x256xf32>,
    } else {
    }
    return
  }
  func.func @transform_0(%arg0: i32, %arg1: i32, %arg2: i32) -> (i32, i32) {
    %c0_i32 = arith.constant 0 : i32
    return %arg0, %arg2 : i32, i32
  }
  func.func @transform_1(%arg0: i32, %arg1: i32, %arg2: i32) -> (i32, i32) {
    %c0_i32 = arith.constant 0 : i32
    return %arg2, %arg1 : i32, i32
  }
  func.func @transform_2(%arg0: i32, %arg1: i32, %arg2: i32) -> (i32, i32) {
    %c0_i32 = arith.constant 0 : i32
    %c0_i32_0 = arith.constant 0 : i32
    return %c0_i32, %arg1 : i32, i32
  }
  func.func @transform_3(%arg0: i32, %arg1: i32, %arg2: i32) -> (i32, i32) {
    %c0_i32 = arith.constant 0 : i32
    return %arg0, %arg1 : i32, i32
  }
}

module attributes {stable_mosaic.version = 11 : i64} {
  func.func @_ln_res_kernel(%arg0: i32, %arg1: memref<16x768xf32, #tpu.memory_space<vmem>>, %arg2: memref<16x768xf32, #tpu.memory_space<vmem>>, %arg3: memref<1x768xf32, #tpu.memory_space<vmem>>, %arg4: memref<1x768xf32, #tpu.memory_space<vmem>>, %arg5: memref<16x768xf32, #tpu.memory_space<vmem>>) attributes {dimension_semantics = [#tpu.dimension_semantics<parallel>], iteration_bounds = array<i64: 1>, scalar_prefetch = 0 : i64, scratch_operands = 0 : i64, tpu.core_type = #tpu.core_type<tc>, window_params = [{transform_indices = @transform_0, window_bounds = array<i64: 16, 768>}, {transform_indices = @transform_1, window_bounds = array<i64: 16, 768>}, {pipeline_mode = #tpu.pipeline_mode<synchronous>, transform_indices = @transform_2, window_bounds = array<i64: 1, 768>}, {pipeline_mode = #tpu.pipeline_mode<synchronous>, transform_indices = @transform_3, window_bounds = array<i64: 1, 768>}, {transform_indices = @transform_4, window_bounds = array<i64: 16, 768>}]} {
    %c0 = arith.constant 0 : index
    %c0_0 = arith.constant 0 : index
    %0 = vector.load %arg1[%c0, %c0_0] : memref<16x768xf32, #tpu.memory_space<vmem>>, vector<16x768xf32>
    %c0_1 = arith.constant 0 : index
    %c0_2 = arith.constant 0 : index
    %1 = vector.load %arg2[%c0_1, %c0_2] : memref<16x768xf32, #tpu.memory_space<vmem>>, vector<16x768xf32>
    %2 = arith.addf %0, %1 : vector<16x768xf32>
    %cst = arith.constant dense<0.000000e+00> : vector<16xf32>
    %3 = vector.multi_reduction <add>, %2, %cst [1] : vector<16x768xf32> to vector<16xf32>
    %4 = vector.shape_cast %3 : vector<16xf32> to vector<16x1xf32>
    %cst_3 = arith.constant 7.680000e+02 : f32
    %5 = vector.broadcast %cst_3 : f32 to vector<16x1xf32>
    %6 = arith.divf %4, %5 : vector<16x1xf32>
    %7 = vector.broadcast %6 : vector<16x1xf32> to vector<16x768xf32>
    %8 = arith.subf %2, %7 : vector<16x768xf32>
    %9 = arith.mulf %8, %8 : vector<16x768xf32>
    %cst_4 = arith.constant dense<0.000000e+00> : vector<16xf32>
    %10 = vector.multi_reduction <add>, %9, %cst_4 [1] : vector<16x768xf32> to vector<16xf32>
    %11 = vector.shape_cast %10 : vector<16xf32> to vector<16x1xf32>
    %cst_5 = arith.constant 7.680000e+02 : f32
    %12 = vector.broadcast %cst_5 : f32 to vector<16x1xf32>
    %13 = arith.divf %11, %12 : vector<16x1xf32>
    %cst_6 = arith.constant 9.99999996E-13 : f32
    %14 = vector.broadcast %cst_6 : f32 to vector<16x1xf32>
    %15 = arith.addf %13, %14 : vector<16x1xf32>
    %16 = math.rsqrt %15 : vector<16x1xf32>
    %17 = vector.broadcast %16 : vector<16x1xf32> to vector<16x768xf32>
    %18 = arith.mulf %8, %17 : vector<16x768xf32>
    %c0_7 = arith.constant 0 : index
    %c0_8 = arith.constant 0 : index
    %19 = vector.load %arg3[%c0_7, %c0_8] : memref<1x768xf32, #tpu.memory_space<vmem>>, vector<1x768xf32>
    %20 = vector.broadcast %19 : vector<1x768xf32> to vector<16x768xf32>
    %21 = arith.mulf %18, %20 : vector<16x768xf32>
    %c0_9 = arith.constant 0 : index
    %c0_10 = arith.constant 0 : index
    %22 = vector.load %arg4[%c0_9, %c0_10] : memref<1x768xf32, #tpu.memory_space<vmem>>, vector<1x768xf32>
    %23 = vector.broadcast %22 : vector<1x768xf32> to vector<16x768xf32>
    %24 = arith.addf %21, %23 : vector<16x768xf32>
    %c0_11 = arith.constant 0 : index
    %c0_12 = arith.constant 0 : index
    %25 = vector.load %arg5[%c0_11, %c0_12] : memref<16x768xf32, #tpu.memory_space<vmem>>, vector<16x768xf32>
    tpu.vector_store %arg5[%c0_11, %c0_12], %24 {strides = array<i32>} : memref<16x768xf32, #tpu.memory_space<vmem>>, vector<16x768xf32>,
    return
  }
  func.func @transform_0(%arg0: i32) -> (i32, i32) {
    %c0_i32 = arith.constant 0 : i32
    %c0_i32_0 = arith.constant 0 : i32
    return %arg0, %c0_i32 : i32, i32
  }
  func.func @transform_1(%arg0: i32) -> (i32, i32) {
    %c0_i32 = arith.constant 0 : i32
    %c0_i32_0 = arith.constant 0 : i32
    return %arg0, %c0_i32 : i32, i32
  }
  func.func @transform_2(%arg0: i32) -> (i32, i32) {
    %c0_i32 = arith.constant 0 : i32
    %c0_i32_0 = arith.constant 0 : i32
    %c0_i32_1 = arith.constant 0 : i32
    return %c0_i32, %c0_i32_0 : i32, i32
  }
  func.func @transform_3(%arg0: i32) -> (i32, i32) {
    %c0_i32 = arith.constant 0 : i32
    %c0_i32_0 = arith.constant 0 : i32
    %c0_i32_1 = arith.constant 0 : i32
    return %c0_i32, %c0_i32_0 : i32, i32
  }
  func.func @transform_4(%arg0: i32) -> (i32, i32) {
    %c0_i32 = arith.constant 0 : i32
    %c0_i32_0 = arith.constant 0 : i32
    return %arg0, %c0_i32 : i32, i32
  }
}

module attributes {stable_mosaic.version = 11 : i64} {
  func.func @_dense_kernel(%arg0: i32, %arg1: i32, %arg2: i32, %arg3: memref<16x256xbf16, #tpu.memory_space<vmem>>, %arg4: memref<256x256xbf16, #tpu.memory_space<vmem>>, %arg5: memref<1x256xf32, #tpu.memory_space<vmem>>, %arg6: memref<16x256xbf16, #tpu.memory_space<vmem>>, %arg7: memref<16x256xf32, #tpu.memory_space<vmem>>) attributes {dimension_semantics = [#tpu.dimension_semantics<parallel>, #tpu.dimension_semantics<parallel>, #tpu.dimension_semantics<arbitrary>], iteration_bounds = array<i64: 1, 12, 3>, scalar_prefetch = 0 : i64, scratch_operands = 1 : i64, tpu.core_type = #tpu.core_type<tc>, window_params = [{transform_indices = @transform_0, window_bounds = array<i64: 16, 256>}, {transform_indices = @transform_1, window_bounds = array<i64: 256, 256>}, {transform_indices = @transform_2, window_bounds = array<i64: 1, 256>}, {transform_indices = @transform_3, window_bounds = array<i64: 16, 256>}]} {
    %c0_i32 = arith.constant 0 : i32
    %0 = arith.cmpi eq, %arg2, %c0_i32 : i32
    %1 = arith.extui %0 : i1 to i32
    %c0_i32_0 = arith.constant 0 : i32
    %2 = arith.cmpi ne, %1, %c0_i32_0 : i32
    scf.if %2 {
      %cst_9 = arith.constant 0.000000e+00 : f32
      %12 = vector.broadcast %cst_9 : f32 to vector<16x256xf32>
      %c0_10 = arith.constant 0 : index
      %c0_11 = arith.constant 0 : index
      %13 = vector.load %arg7[%c0_10, %c0_11] : memref<16x256xf32, #tpu.memory_space<vmem>>, vector<16x256xf32>
      tpu.vector_store %arg7[%c0_10, %c0_11], %12 {strides = array<i32>} : memref<16x256xf32, #tpu.memory_space<vmem>>, vector<16x256xf32>,
    } else {
    }
    %c0 = arith.constant 0 : index
    %c0_1 = arith.constant 0 : index
    %3 = vector.load %arg7[%c0, %c0_1] : memref<16x256xf32, #tpu.memory_space<vmem>>, vector<16x256xf32>
    %c0_2 = arith.constant 0 : index
    %c0_3 = arith.constant 0 : index
    %4 = vector.load %arg3[%c0_2, %c0_3] : memref<16x256xbf16, #tpu.memory_space<vmem>>, vector<16x256xbf16>
    %c0_4 = arith.constant 0 : index
    %c0_5 = arith.constant 0 : index
    %5 = vector.load %arg4[%c0_4, %c0_5] : memref<256x256xbf16, #tpu.memory_space<vmem>>, vector<256x256xbf16>
    %cst = arith.constant dense<0.000000e+00> : vector<16x256xf32>
    %6 = tpu.matmul %4, %5, %cst {dimension_numbers = #tpu.dot_dimension_numbers<[1], [0], [0], [1], [0, 0, 1, 1], [], []>} : vector<16x256xbf16>, vector<256x256xbf16>, vector<16x256xf32> -> vector<16x256xf32>
    %7 = arith.addf %3, %6 : vector<16x256xf32>
    %c0_6 = arith.constant 0 : index
    %c0_7 = arith.constant 0 : index
    %8 = vector.load %arg7[%c0_6, %c0_7] : memref<16x256xf32, #tpu.memory_space<vmem>>, vector<16x256xf32>
    tpu.vector_store %arg7[%c0_6, %c0_7], %7 {strides = array<i32>} : memref<16x256xf32, #tpu.memory_space<vmem>>, vector<16x256xf32>,
    %c2_i32 = arith.constant 2 : i32
    %9 = arith.cmpi eq, %arg2, %c2_i32 : i32
    %10 = arith.extui %9 : i1 to i32
    %c0_i32_8 = arith.constant 0 : i32
    %11 = arith.cmpi ne, %10, %c0_i32_8 : i32
    scf.if %11 {
      %c0_9 = arith.constant 0 : index
      %c0_10 = arith.constant 0 : index
      %12 = vector.load %arg7[%c0_9, %c0_10] : memref<16x256xf32, #tpu.memory_space<vmem>>, vector<16x256xf32>
      %c0_11 = arith.constant 0 : index
      %c0_12 = arith.constant 0 : index
      %13 = vector.load %arg5[%c0_11, %c0_12] : memref<1x256xf32, #tpu.memory_space<vmem>>, vector<1x256xf32>
      %14 = vector.broadcast %13 : vector<1x256xf32> to vector<16x256xf32>
      %15 = arith.addf %12, %14 : vector<16x256xf32>
      %16 = arith.mulf %15, %15 : vector<16x256xf32>
      %17 = arith.mulf %15, %16 : vector<16x256xf32>
      %cst_13 = arith.constant 4.471500e-02 : f32
      %18 = vector.broadcast %cst_13 : f32 to vector<16x256xf32>
      %19 = arith.mulf %18, %17 : vector<16x256xf32>
      %20 = arith.addf %15, %19 : vector<16x256xf32>
      %cst_14 = arith.constant 0.797884583 : f32
      %21 = vector.broadcast %cst_14 : f32 to vector<16x256xf32>
      %22 = arith.mulf %21, %20 : vector<16x256xf32>
      %23 = math.tanh %22 : vector<16x256xf32>
      %cst_15 = arith.constant 1.000000e+00 : f32
      %24 = vector.broadcast %cst_15 : f32 to vector<16x256xf32>
      %25 = arith.addf %24, %23 : vector<16x256xf32>
      %cst_16 = arith.constant 5.000000e-01 : f32
      %26 = vector.broadcast %cst_16 : f32 to vector<16x256xf32>
      %27 = arith.mulf %26, %25 : vector<16x256xf32>
      %28 = arith.mulf %15, %27 : vector<16x256xf32>
      %29 = arith.truncf %28 : vector<16x256xf32> to vector<16x256xbf16>
      %c0_17 = arith.constant 0 : index
      %c0_18 = arith.constant 0 : index
      %30 = vector.load %arg6[%c0_17, %c0_18] : memref<16x256xbf16, #tpu.memory_space<vmem>>, vector<16x256xbf16>
      tpu.vector_store %arg6[%c0_17, %c0_18], %29 {strides = array<i32>} : memref<16x256xbf16, #tpu.memory_space<vmem>>, vector<16x256xbf16>,
    } else {
    }
    return
  }
  func.func @transform_0(%arg0: i32, %arg1: i32, %arg2: i32) -> (i32, i32) {
    %c0_i32 = arith.constant 0 : i32
    return %arg0, %arg2 : i32, i32
  }
  func.func @transform_1(%arg0: i32, %arg1: i32, %arg2: i32) -> (i32, i32) {
    %c0_i32 = arith.constant 0 : i32
    return %arg2, %arg1 : i32, i32
  }
  func.func @transform_2(%arg0: i32, %arg1: i32, %arg2: i32) -> (i32, i32) {
    %c0_i32 = arith.constant 0 : i32
    %c0_i32_0 = arith.constant 0 : i32
    return %c0_i32, %arg1 : i32, i32
  }
  func.func @transform_3(%arg0: i32, %arg1: i32, %arg2: i32) -> (i32, i32) {
    %c0_i32 = arith.constant 0 : i32
    return %arg0, %arg1 : i32, i32
  }
}

module attributes {stable_mosaic.version = 11 : i64} {
  func.func @_dense_kernel(%arg0: i32, %arg1: i32, %arg2: i32, %arg3: memref<16x256xbf16, #tpu.memory_space<vmem>>, %arg4: memref<256x256xbf16, #tpu.memory_space<vmem>>, %arg5: memref<1x256xf32, #tpu.memory_space<vmem>>, %arg6: memref<16x256xf32, #tpu.memory_space<vmem>>, %arg7: memref<16x256xf32, #tpu.memory_space<vmem>>) attributes {dimension_semantics = [#tpu.dimension_semantics<parallel>, #tpu.dimension_semantics<parallel>, #tpu.dimension_semantics<arbitrary>], iteration_bounds = array<i64: 1, 3, 12>, scalar_prefetch = 0 : i64, scratch_operands = 1 : i64, tpu.core_type = #tpu.core_type<tc>, window_params = [{transform_indices = @transform_0, window_bounds = array<i64: 16, 256>}, {transform_indices = @transform_1, window_bounds = array<i64: 256, 256>}, {transform_indices = @transform_2, window_bounds = array<i64: 1, 256>}, {transform_indices = @transform_3, window_bounds = array<i64: 16, 256>}]} {
    %c0_i32 = arith.constant 0 : i32
    %0 = arith.cmpi eq, %arg2, %c0_i32 : i32
    %1 = arith.extui %0 : i1 to i32
    %c0_i32_0 = arith.constant 0 : i32
    %2 = arith.cmpi ne, %1, %c0_i32_0 : i32
    scf.if %2 {
      %cst_9 = arith.constant 0.000000e+00 : f32
      %12 = vector.broadcast %cst_9 : f32 to vector<16x256xf32>
      %c0_10 = arith.constant 0 : index
      %c0_11 = arith.constant 0 : index
      %13 = vector.load %arg7[%c0_10, %c0_11] : memref<16x256xf32, #tpu.memory_space<vmem>>, vector<16x256xf32>
      tpu.vector_store %arg7[%c0_10, %c0_11], %12 {strides = array<i32>} : memref<16x256xf32, #tpu.memory_space<vmem>>, vector<16x256xf32>,
    } else {
    }
    %c0 = arith.constant 0 : index
    %c0_1 = arith.constant 0 : index
    %3 = vector.load %arg7[%c0, %c0_1] : memref<16x256xf32, #tpu.memory_space<vmem>>, vector<16x256xf32>
    %c0_2 = arith.constant 0 : index
    %c0_3 = arith.constant 0 : index
    %4 = vector.load %arg3[%c0_2, %c0_3] : memref<16x256xbf16, #tpu.memory_space<vmem>>, vector<16x256xbf16>
    %c0_4 = arith.constant 0 : index
    %c0_5 = arith.constant 0 : index
    %5 = vector.load %arg4[%c0_4, %c0_5] : memref<256x256xbf16, #tpu.memory_space<vmem>>, vector<256x256xbf16>
    %cst = arith.constant dense<0.000000e+00> : vector<16x256xf32>
    %6 = tpu.matmul %4, %5, %cst {dimension_numbers = #tpu.dot_dimension_numbers<[1], [0], [0], [1], [0, 0, 1, 1], [], []>} : vector<16x256xbf16>, vector<256x256xbf16>, vector<16x256xf32> -> vector<16x256xf32>
    %7 = arith.addf %3, %6 : vector<16x256xf32>
    %c0_6 = arith.constant 0 : index
    %c0_7 = arith.constant 0 : index
    %8 = vector.load %arg7[%c0_6, %c0_7] : memref<16x256xf32, #tpu.memory_space<vmem>>, vector<16x256xf32>
    tpu.vector_store %arg7[%c0_6, %c0_7], %7 {strides = array<i32>} : memref<16x256xf32, #tpu.memory_space<vmem>>, vector<16x256xf32>,
    %c11_i32 = arith.constant 11 : i32
    %9 = arith.cmpi eq, %arg2, %c11_i32 : i32
    %10 = arith.extui %9 : i1 to i32
    %c0_i32_8 = arith.constant 0 : i32
    %11 = arith.cmpi ne, %10, %c0_i32_8 : i32
    scf.if %11 {
      %c0_9 = arith.constant 0 : index
      %c0_10 = arith.constant 0 : index
      %12 = vector.load %arg7[%c0_9, %c0_10] : memref<16x256xf32, #tpu.memory_space<vmem>>, vector<16x256xf32>
      %c0_11 = arith.constant 0 : index
      %c0_12 = arith.constant 0 : index
      %13 = vector.load %arg5[%c0_11, %c0_12] : memref<1x256xf32, #tpu.memory_space<vmem>>, vector<1x256xf32>
      %14 = vector.broadcast %13 : vector<1x256xf32> to vector<16x256xf32>
      %15 = arith.addf %12, %14 : vector<16x256xf32>
      %c0_13 = arith.constant 0 : index
      %c0_14 = arith.constant 0 : index
      %16 = vector.load %arg6[%c0_13, %c0_14] : memref<16x256xf32, #tpu.memory_space<vmem>>, vector<16x256xf32>
      tpu.vector_store %arg6[%c0_13, %c0_14], %15 {strides = array<i32>} : memref<16x256xf32, #tpu.memory_space<vmem>>, vector<16x256xf32>,
    } else {
    }
    return
  }
  func.func @transform_0(%arg0: i32, %arg1: i32, %arg2: i32) -> (i32, i32) {
    %c0_i32 = arith.constant 0 : i32
    return %arg0, %arg2 : i32, i32
  }
  func.func @transform_1(%arg0: i32, %arg1: i32, %arg2: i32) -> (i32, i32) {
    %c0_i32 = arith.constant 0 : i32
    return %arg2, %arg1 : i32, i32
  }
  func.func @transform_2(%arg0: i32, %arg1: i32, %arg2: i32) -> (i32, i32) {
    %c0_i32 = arith.constant 0 : i32
    %c0_i32_0 = arith.constant 0 : i32
    return %c0_i32, %arg1 : i32, i32
  }
  func.func @transform_3(%arg0: i32, %arg1: i32, %arg2: i32) -> (i32, i32) {
    %c0_i32 = arith.constant 0 : i32
    return %arg0, %arg1 : i32, i32
  }
}

module attributes {stable_mosaic.version = 11 : i64} {
  func.func @_pool_cls_kernel(%arg0: memref<2x768xf32, #tpu.memory_space<vmem>>, %arg1: memref<768x768xf32, #tpu.memory_space<vmem>>, %arg2: memref<1x768xf32, #tpu.memory_space<vmem>>, %arg3: memref<768x128xf32, #tpu.memory_space<vmem>>, %arg4: memref<1x128xf32, #tpu.memory_space<vmem>>, %arg5: memref<2x128xf32, #tpu.memory_space<vmem>>) attributes {dimension_semantics = [], scalar_prefetch = 0 : i64, scratch_operands = 0 : i64, tpu.core_type = #tpu.core_type<tc>} {
    %c0 = arith.constant 0 : index
    %c0_0 = arith.constant 0 : index
    %0 = vector.load %arg0[%c0, %c0_0] : memref<2x768xf32, #tpu.memory_space<vmem>>, vector<2x768xf32>
    %c0_1 = arith.constant 0 : index
    %c0_2 = arith.constant 0 : index
    %1 = vector.load %arg1[%c0_1, %c0_2] : memref<768x768xf32, #tpu.memory_space<vmem>>, vector<768x768xf32>
    %cst = arith.constant dense<0.000000e+00> : vector<2x768xf32>
    %2 = tpu.matmul %0, %1, %cst {dimension_numbers = #tpu.dot_dimension_numbers<[1], [0], [0], [1], [0, 0, 1, 1], [], []>} : vector<2x768xf32>, vector<768x768xf32>, vector<2x768xf32> -> vector<2x768xf32>
    %c0_3 = arith.constant 0 : index
    %c0_4 = arith.constant 0 : index
    %3 = vector.load %arg2[%c0_3, %c0_4] : memref<1x768xf32, #tpu.memory_space<vmem>>, vector<1x768xf32>
    %4 = vector.broadcast %3 : vector<1x768xf32> to vector<2x768xf32>
    %5 = arith.addf %2, %4 : vector<2x768xf32>
    %6 = math.tanh %5 : vector<2x768xf32>
    %c0_5 = arith.constant 0 : index
    %c0_6 = arith.constant 0 : index
    %7 = vector.load %arg3[%c0_5, %c0_6] : memref<768x128xf32, #tpu.memory_space<vmem>>, vector<768x128xf32>
    %cst_7 = arith.constant dense<0.000000e+00> : vector<2x128xf32>
    %8 = tpu.matmul %6, %7, %cst_7 {dimension_numbers = #tpu.dot_dimension_numbers<[1], [0], [0], [1], [0, 0, 1, 1], [], []>} : vector<2x768xf32>, vector<768x128xf32>, vector<2x128xf32> -> vector<2x128xf32>
    %c0_8 = arith.constant 0 : index
    %c0_9 = arith.constant 0 : index
    %9 = vector.load %arg4[%c0_8, %c0_9] : memref<1x128xf32, #tpu.memory_space<vmem>>, vector<1x128xf32>
    %10 = vector.broadcast %9 : vector<1x128xf32> to vector<2x128xf32>
    %11 = arith.addf %8, %10 : vector<2x128xf32>
    %cst_10 = arith.constant 0.000000e+00 : f32
    %12 = vector.broadcast %cst_10 : f32 to vector<2x128xf32>
    %13 = arith.maximumf %11, %12 : vector<2x128xf32>
    %c0_11 = arith.constant 0 : index
    %c0_12 = arith.constant 0 : index
    %14 = vector.load %arg5[%c0_11, %c0_12] : memref<2x128xf32, #tpu.memory_space<vmem>>, vector<2x128xf32>
    tpu.vector_store %arg5[%c0_11, %c0_12], %13 {strides = array<i32>} : memref<2x128xf32, #tpu.memory_space<vmem>>, vector<2x128xf32>,
    return
  }
}

</mosaic_0001>

<bundles_post_ra>
// kernel: bert_classifier_forward.16
= control target key start
LH: loop header
LB: loop body
LE: loop exit
PB: predicated region body
PF: predicated region fallthrough
CT: control target
= control target key end

     0   :  { %v101_v63 = vlaneseq  ;;  %s360_s0 = inlined_call_operand.vmem [shape: f32[16,768], index: 0, kind: input, shape index: {}]   ;;  %s361_s1 = inlined_call_operand.vmem [shape: f32[1,768], index: 1, kind: input, shape index: {}]   ;;  %s362_s2 = inlined_call_operand.vmem [shape: f32[1,768], index: 2, kind: input, shape index: {}]   ;;  %s363_s3 = inlined_call_operand.vmem [shape: f32[16,768], index: 3, kind: output, shape index: {}]  }
   0x1   :  { %v14_v0 = vld [vmem:[%s360_s0] sm:$0xff]  ;;  %v15_v1 = vld [vmem:[%s360_s0 + $0x8] sm:$0xff]  ;;  %v16_v2 = vld [vmem:[%s360_s0 + $0x10] sm:$0xff] }
   0x2   :  { %v17_v3 = vld [vmem:[%s360_s0 + $0x18] sm:$0xff]  ;;  %v26_v4 = vadd.f32 %v15_v1, %v14_v0  ;;  %v20_v5 = vld [vmem:[%s360_s0 + $0x30] sm:$0xff]  ;;  %v22_v7 = vld [vmem:[%s360_s0 + $0x40] sm:$0xff] }
   0x3   :  { %v21_v6 = vld [vmem:[%s360_s0 + $0x38] sm:$0xff]  ;;  %v18_v10 = vld [vmem:[%s360_s0 + $0x20] sm:$0xff]  ;;  %v23_v11 = vld [vmem:[%s360_s0 + $0x48] sm:$0xff] }
   0x4   :  { %v27_v8 = vadd.f32 %v26_v4, %v16_v2  ;;  %v33_v9 = vadd.f32 %v21_v6, %v20_v5  ;;  %v19_v14 = vld [vmem:[%s360_s0 + $0x28] sm:$0xff]  ;;  %v24_v15 = vld [vmem:[%s360_s0 + $0x50] sm:$0xff]  ;;  %v25_v18 = vld [vmem:[%s360_s0 + $0x58] sm:$0xff] }
   0x6   :  { %v28_v12 = vadd.f32 %v27_v8, %v17_v3  ;;  %v34_v13 = vadd.f32 %v33_v9, %v22_v7 }
   0x8   :  { %v29_v16 = vadd.f32 %v28_v12, %v18_v10  ;;  %v35_v17 = vadd.f32 %v34_v13, %v23_v11 }
   0xa   :  { %v30_v19 = vadd.f32 %v29_v16, %v19_v14  ;;  %v36_v20 = vadd.f32 %v35_v17, %v24_v15 }
   0xc   :  { %31 = vadd.xlane.f32.xlu0 %v30_v19  ;;  %v37_v21 = vadd.f32 %v36_v20, %v25_v18 }
  0x10   :  { %38 = vadd.xlane.f32.xlu0 %v37_v21 }
  0x95   :  { %v32_v22 = vpop.xlane.xlu0 %31 }
  0x96   :  { %v41_v23 = vmul.f32 0.0013020834, %v32_v22 }
  0x98   :  { %v263_v24 = vsub.f32 %v14_v0, %v41_v23  ;;  %v265_v25 = vsub.f32 %v15_v1, %v41_v23  ;;  %v267_v26 = vsub.f32 %v16_v2, %v41_v23  ;;  %v269_v28 = vsub.f32 %v17_v3, %v41_v23 }
  0x99   :  { %v39_v27 = vpop.xlane.xlu0 %38  ;;  %v275_v32 = vsub.f32 %v18_v10, %v41_v23  ;;  %v48_v38 = vsub.f32 %v19_v14, %v41_v23  ;;  %v102_v3 = vshrl.u32 %v101_v63, 7 }
  0x9a   :  { %v42_v29 = vmul.f32 0.0013020834, %v39_v27  ;;  %v55_v30 = vmul.f32 %v263_v24, %v263_v24  ;;  %v56_v31 = vmul.f32 %v265_v25, %v265_v25  ;;  %v57_v33 = vmul.f32 %v267_v26, %v267_v26 }
  0x9b   :  { %v58_v39 = vmul.f32 %v269_v28, %v269_v28  ;;  %v59_v44 = vmul.f32 %v275_v32, %v275_v32  ;;  %v60_v49 = vmul.f32 %v48_v38, %v48_v38  ;;  %v103_v4 = vsub.s32 0, %v102_v3 }
  0x9c   :  { %v67_v34 = vadd.f32 %v56_v31, %v55_v30  ;;  %v279_v35 = vsub.f32 %v20_v5, %v42_v29  ;;  %v281_v36 = vsub.f32 %v21_v6, %v42_v29  ;;  %v283_v37 = vsub.f32 %v22_v7, %v42_v29  ;;  %v99_v6 = vld [vmem:[%s361_s1] sm:$0x3f] }
  0x9d   :  { %v287_v41 = vsub.f32 %v23_v11, %v42_v29  ;;  %v295_v46 = vsub.f32 %v24_v15, %v42_v29  ;;  %v299_v51 = vsub.f32 %v25_v18, %v42_v29  ;;  %v107_v5 = vsub.s32 1, %v102_v3  ;;  %v143_v11 = vld [vmem:[%s362_s2] sm:$0x3f] }
  0x9e   :  { %v68_v40 = vadd.f32 %v67_v34, %v57_v33  ;;  %v61_v42 = vmul.f32 %v279_v35, %v279_v35  ;;  %v62_v43 = vmul.f32 %v281_v36, %v281_v36  ;;  %v63_v47 = vmul.f32 %v283_v37, %v283_v37 }
  0x9f   :  { %v64_v52 = vmul.f32 %v287_v41, %v287_v41  ;;  %v65_v55 = vmul.f32 %v295_v46, %v295_v46  ;;  %v66_v57 = vmul.f32 %v299_v51, %v299_v51  ;;  %v111_v7 = vsub.s32 2, %v102_v3 }
  0xa0   :  { %v69_v45 = vadd.f32 %v68_v40, %v58_v39  ;;  %v74_v48 = vadd.f32 %v62_v43, %v61_v42  ;;  %v115_v8 = vsub.s32 3, %v102_v3  ;;  %v119_v9 = vsub.s32 4, %v102_v3 }
  0xa1   :  { %v123_v10 = vsub.s32 5, %v102_v3  ;;  %v104_v12 = vrot.slane %v99_v6, %v103_v4  ;;  %v108_v13 = vrot.slane %v99_v6, %v107_v5  ;;  %v112_v14 = vrot.slane %v99_v6, %v111_v7 }
  0xa2   :  { %v70_v50 = vadd.f32 %v69_v45, %v59_v44  ;;  %v75_v53 = vadd.f32 %v74_v48, %v63_v47  ;;  %v116_v15 = vrot.slane %v99_v6, %v115_v8  ;;  %v120_v16 = vrot.slane %v99_v6, %v119_v9 }
  0xa3   :  { %v124_v17 = vrot.slane %v99_v6, %v123_v10  ;;  %v148_v19 = vrot.slane %v143_v11, %v103_v4  ;;  %v152_v20 = vrot.slane %v143_v11, %v107_v5  ;;  %v156_v21 = vrot.slane %v143_v11, %v111_v7 }
  0xa4   :  { %v71_v54 = vadd.f32 %v70_v50, %v60_v49  ;;  %v76_v56 = vadd.f32 %v75_v53, %v64_v52  ;;  %v160_v22 = vrot.slane %v143_v11, %v115_v8  ;;  %v164_v31 = vrot.slane %v143_v11, %v119_v9 }
  0xa5   :  { %v168_v33 = vrot.slane %v143_v11, %v123_v10 }
  0xa6   :  { %72 = vadd.xlane.f32.xlu1 %v71_v54  ;;  %v77_v58 = vadd.f32 %v76_v56, %v65_v55 }
  0xa8   :  { %v78_v59 = vadd.f32 %v77_v58, %v66_v57 }
  0xaa   :  { %79 = vadd.xlane.f32.xlu1 %v78_v59 }
 0x12f   :  { %v73_v60 = vpop.xlane.xlu1 %72 }
 0x130   :  { %v81_v61 = vmul.f32 0.0013020834, %v73_v60 }
 0x132   :  { %v83_v62 = vadd.f32 1e-12, %v81_v61 }
 0x133   :  { %v80_v0 = vpop.xlane.xlu1 %79 }
 0x134   :  { %203 = vrsqrt.f32 %v83_v62  ;;  %v82_v1 = vmul.f32 0.0013020834, %v80_v0 }
 0x136   :  { %v84_v2 = vadd.f32 1e-12, %v82_v1 }
 0x138   :  { %205 = vrsqrt.f32 %v84_v2 }
 0x141   :  { %v204_v18 = vpop.eup %203 }
 0x142   :  { %v87_v23 = vmul.f32 %v204_v18, %v263_v24  ;;  %v88_v27 = vmul.f32 %v204_v18, %v265_v25  ;;  %v89_v29 = vmul.f32 %v204_v18, %v267_v26  ;;  %v90_v30 = vmul.f32 %v204_v18, %v269_v28 }
 0x143   :  { %v91_v34 = vmul.f32 %v204_v18, %v275_v32  ;;  %v92_v39 = vmul.f32 %v204_v18, %v48_v38 }
 0x144   :  { %v131_v40 = vmul.f32 %v104_v12, %v87_v23  ;;  %v132_v42 = vmul.f32 %v108_v13, %v88_v27  ;;  %v133_v43 = vmul.f32 %v112_v14, %v89_v29  ;;  %v134_v44 = vmul.f32 %v116_v15, %v90_v30 }
 0x145   :  { %v206_v45 = vpop.eup %205  ;;  %v135_v47 = vmul.f32 %v120_v16, %v91_v34  ;;  %v136_v48 = vmul.f32 %v124_v17, %v92_v39 }
 0x146   :  { %v175_v49 = vadd.f32 %v148_v19, %v131_v40  ;;  %v176_v24 = vadd.f32 %v152_v20, %v132_v42  ;;  %v177_v50 = vadd.f32 %v156_v21, %v133_v43  ;;  %v178_v25 = vadd.f32 %v160_v22, %v134_v44 }
 0x147   :  { %v179_v52 = vadd.f32 %v164_v31, %v135_v47  ;;  %v180_v26 = vadd.f32 %v168_v33, %v136_v48  ;;  %v93_v28 = vmul.f32 %v206_v45, %v279_v35  ;;  %v94_v53 = vmul.f32 %v206_v45, %v281_v36 }
 0x148   :  { %187 = vst [vmem:[%s363_s3] sm:$0xff] %v175_v49  ;;  %188 = vst [vmem:[%s363_s3 + $0x8] sm:$0xff] %v176_v24  ;;  %v95_v32 = vmul.f32 %v206_v45, %v283_v37  ;;  %v96_v35 = vmul.f32 %v206_v45, %v287_v41  ;;  %v97_v36 = vmul.f32 %v206_v45, %v295_v46 }
 0x149   :  { %189 = vst [vmem:[%s363_s3 + $0x10] sm:$0xff] %v177_v50  ;;  %190 = vst [vmem:[%s363_s3 + $0x18] sm:$0xff] %v178_v25  ;;  %v98_v38 = vmul.f32 %v206_v45, %v299_v51  ;;  %v137_v54 = vmul.f32 %v104_v12, %v93_v28  ;;  %v138_v55 = vmul.f32 %v108_v13, %v94_v53 }
 0x14a   :  { %191 = vst [vmem:[%s363_s3 + $0x20] sm:$0xff] %v179_v52  ;;  %192 = vst [vmem:[%s363_s3 + $0x28] sm:$0xff] %v180_v26  ;;  %v139_v56 = vmul.f32 %v112_v14, %v95_v32  ;;  %v140_v57 = vmul.f32 %v116_v15, %v96_v35  ;;  %v141_v58 = vmul.f32 %v120_v16, %v97_v36 }
 0x14b   :  { %v142_v37 = vmul.f32 %v124_v17, %v98_v38  ;;  %v181_v59 = vadd.f32 %v148_v19, %v137_v54  ;;  %v182_v41 = vadd.f32 %v152_v20, %v138_v55 }
 0x14c   :  { %v183_v60 = vadd.f32 %v156_v21, %v139_v56  ;;  %v184_v46 = vadd.f32 %v160_v22, %v140_v57  ;;  %v185_v61 = vadd.f32 %v164_v31, %v141_v58 }
 0x14d   :  { %v186_v51 = vadd.f32 %v168_v33, %v142_v37  ;;  %193 = vst [vmem:[%s363_s3 + $0x30] sm:$0xff] %v181_v59  ;;  %194 = vst [vmem:[%s363_s3 + $0x38] sm:$0xff] %v182_v41 }
 0x14e   :  { %195 = vst [vmem:[%s363_s3 + $0x40] sm:$0xff] %v183_v60  ;;  %196 = vst [vmem:[%s363_s3 + $0x48] sm:$0xff] %v184_v46 }
 0x14f   :  { %197 = vst [vmem:[%s363_s3 + $0x50] sm:$0xff] %v185_v61  ;;  %198 = vst [vmem:[%s363_s3 + $0x58] sm:$0xff] %v186_v51 }

// kernel: bert_classifier_forward.17
= control target key start
LH: loop header
LB: loop body
LE: loop exit
PB: predicated region body
PF: predicated region fallthrough
CT: control target
= control target key end

     0   :  { %s1217_s12 = smov 0   ;;  %s1219_s13 = smov 0   ;;  %s1504_s0 = inlined_call_operand.vmem [shape: bf16[16,768], index: 0, kind: input, shape index: {}]   ;;  %s1505_s1 = inlined_call_operand.vmem [shape: bf16[768,2304], index: 1, kind: input, shape index: {}]   ;;  %s1506_s2 = inlined_call_operand.vmem [shape: f32[1,2304], index: 2, kind: input, shape index: {}]   ;;  %s1507_s3 = inlined_call_operand.vmem [shape: bf16[16,2304], index: 3, kind: output, shape index: {}]  }
   0x1   :  { %s1221_s14 = smov 0   ;;  %s1223_s15 = smov 0  }
   0x2   :  { %s1225_s16 = smov 0   ;;  %s1227_s17 = smov 0  }
   0x3   :  { %s1229_s18 = smov 0   ;;  %s1231_s19 = smov 0  }
   0x4   :  { %s1233_s20 = smov 0   ;;  %s1235_s21 = smov 0  }
   0x5   :  { %s1237_s22 = smov 0  }
   0x6 LB: > { %s903_s23 = sadd.s32 4294967295, %s1194_s22   ;;  %s25_s24 = sadd.s32 1, %s1186_s20  ;;  %s1194_s22 = sphi %s1237_s22, %s13_s22   ;;  %s1190_s21 = sphi %s1235_s21, %s1528_s21   ;;  %s1186_s20 = sphi %s1233_s20, %s1527_s20   ;;  %s1182_s19 = sphi %s1231_s19, %s1526_s19   ;;  %s1178_s18 = sphi %s1229_s18, %s1525_s18   ;;  %s1174_s17 = sphi %s1227_s17, %s1524_s17   ;;  %s1170_s16 = sphi %s1225_s16, %s1523_s16   ;;  %s1166_s15 = sphi %s1223_s15, %s1522_s15   ;;  %s1162_s14 = sphi %s1221_s14, %s1521_s14   ;;  %s1158_s13 = sphi %s1219_s13, %s1520_s13   ;;  %s1154_s12 = sphi %s1217_s12, %s1519_s12  }
   0x7   : > { %p26_p0 = scmp.ge.s32.totalorder %s25_s24, 3  ;;  %s28_s25 = sadd.s32 1, %s1190_s21 }
   0x8   : > { %s41_s26 = sadd.s32 1, %s1174_s17  ;;  %p48_p1 = scmp.ne.s32.totalorder %s1174_s17, %s1170_s16 }
   0x9   : > { %s1530_s24 = smov (%p26_p0, %s25_s24), 0  ;;  %s1532_s25 = smov (!%p26_p0, %s28_s25), %s1190_s21 }
   0xa   : > { %1510 = sst [smem:[#allocation6_spill]] %s1530_s24  ;;  %s37_s27 = ssub.s32 %s1186_s20, %s1530_s24 }
   0xb   : > { %p49_p2 = scmp.eq.s32.totalorder %s1194_s22, 0  ;;  %p30_p3 = scmp.ge.s32.totalorder %s1532_s25, 9 }
   0xc   : > { %p39_p4 = scmp.eq.s32.totalorder %s37_s27, 0  ;;  %s69_s29 = sadd.s32 1, %s1166_s15 }
   0xd   : > { %p1284_p5 = por %p49_p2, %p48_p1  ;;  %s1534_s25 = smov (%p30_p3, %s1532_s25), 0 }
   0xe   : > { %1512 = sst [smem:[#allocation7_spill]] %s1534_s25  ;;  %s65_s4 = ssub.s32 %s1190_s21, %s1534_s25 }
   0xf   : > { %s1292_s30 = scalar_select %p39_p4, %s1174_s17, %s41_s26  }
  0x10   : > { %p76_p6 = scmp.ne.s32.totalorder %s1166_s15, %s1162_s14  ;;  %s66_s5 = sor.u32 %s65_s4, %s37_s27 }
  0x11   : > { %1513 = sst [smem:[#allocation8_spill]] %s1292_s30  ;;  %p121_p7 = scmp.eq.s32.totalorder %s65_s4, 0 }
  0x12   : > { %p67_p8 = scmp.eq.s32.totalorder %s66_s5, 0  ;;  %p1298_p9 = por %p76_p6, %p49_p2 }
  0x13   : > { %s123_s7 = sadd.s32 1, %s1158_s13  ;;  %p133_p10 = scmp.ne.s32.totalorder %s1158_s13, %s1154_s12 }
  0x14   : > { %s1306_s8 = scalar_select %p67_p8, %s1166_s15, %s69_s29  }
  0x15   : > { %s1309_s9 = scalar_select %p121_p7, %s1158_s13, %s123_s7  }
  0x16   : > { %p134_p11 = scmp.eq.s32.totalorder %s903_s23, 26  ;;  %p906_p13 = scmp.ge.s32.totalorder %s1194_s22, 27 }
  0x18   : > { %p1311_p12 = por %p134_p11, %p133_p10  ;;  %156 = sbr.rel (%p906_p13) target bundleno = 58 (0x3a), region = 16 }
  0x1d   : > { %159 = sbr.rel (!%p1284_p5) target bundleno = 34 (0x22), region = 20  ;;  %s161_s11 = sand.u32 (%p1284_p5), 1, %s1174_s17  }
  0x1e   : > { %s963_s26 = sshll.u32 (%p1284_p5), %s1186_s20, 3  ;;  %s907_s27 = sshll.u32 (%p1284_p5), %s161_s11, 4 }
  0x1f   : > { %s169_s5 = scalar_lea.vmem (%p1284_p5), %s1504_s0, %s963_s26  ;;  %s163_s23 = scalar_lea.vmem (%p1284_p5), [#allocation3], %s907_s27 }
  0x20   : > { %v200_v0 = vld [vmem:[%s169_s5] sm:$0xff] (%p1284_p5)  ;;  %v202_v1 = vld [vmem:[%s169_s5 + $0x18] sm:$0xff] (%p1284_p5) }
  0x21   : > { %201 = vst [vmem:[%s163_s23] sm:$0xff] (%p1284_p5), %v200_v0  ;;  %203 = vst [vmem:[%s163_s23 + $0x8] sm:$0xff] (%p1284_p5), %v202_v1 }
  0x22 PF: > { %209 = sbr.rel (!%p1298_p9) target bundleno = 58 (0x3a), region = 58  ;;  %s211_s28 = sand.u32 (%p1298_p9), 1, %s1166_s15  }
  0x23   : > { %s912_s7 = sshll.u32 (%p1298_p9), %s1190_s21, 1  ;;  %s910_s25 = sshll.u32 (%p1298_p9), %s211_s28, 8 }
  0x24   : > { %s967_s11 = smul.u32 (%p1298_p9), 576, %s1186_s20  ;;  %s1336_s6 = scalar_lea.vmem (%p1298_p9), [#allocation4], %s910_s25 }
  0x26   : > { %s217_s24 = sadd.s32 (%p1298_p9), %s967_s11, %s912_s7 }
  0x27   : > { %s914_s30 = sshll.u32 %s217_s24, 2 }
  0x28   : > { %s1331_s4 = scalar_lea.vmem %s1505_s1, %s914_s30 }
  0x29   : > { %v310_v2 = vld [vmem:[%s1331_s4] sm:$0xff]  ;;  %v312_v3 = vld [vmem:[%s1331_s4 + $0x48] sm:$0xff]  ;;  %v314_v4 = vld [vmem:[%s1331_s4 + $0x90] sm:$0xff] }
  0x2a   : > { %311 = vst [vmem:[%s1336_s6] sm:$0xff] %v310_v2  ;;  %313 = vst [vmem:[%s1336_s6 + $0x8] sm:$0xff] %v312_v3  ;;  %v316_v5 = vld [vmem:[%s1331_s4 + $0xd8] sm:$0xff]  ;;  %v318_v6 = vld [vmem:[%s1331_s4 + $0x120] sm:$0xff] }
  0x2b   : > { %315 = vst [vmem:[%s1336_s6 + $0x10] sm:$0xff] %v314_v4  ;;  %v320_v7 = vld [vmem:[%s1331_s4 + $0x168] sm:$0xff]  ;;  %317 = vst [vmem:[%s1336_s6 + $0x18] sm:$0xff] %v316_v5  ;;  %v322_v8 = vld [vmem:[%s1331_s4 + $0x1b0] sm:$0xff] }
  0x2c   : > { %319 = vst [vmem:[%s1336_s6 + $0x20] sm:$0xff] %v318_v6  ;;  %321 = vst [vmem:[%s1336_s6 + $0x28] sm:$0xff] %v320_v7  ;;  %v324_v9 = vld [vmem:[%s1331_s4 + $0x1f8] sm:$0xff]  ;;  %v326_v10 = vld [vmem:[%s1331_s4 + $0x240] sm:$0xff] }
  0x2d   : > { %323 = vst [vmem:[%s1336_s6 + $0x30] sm:$0xff] %v322_v8  ;;  %325 = vst [vmem:[%s1336_s6 + $0x38] sm:$0xff] %v324_v9  ;;  %v328_v11 = vld [vmem:[%s1331_s4 + $0x288] sm:$0xff]  ;;  %v330_v12 = vld [vmem:[%s1331_s4 + $0x2d0] sm:$0xff] }
  0x2e   : > { %327 = vst [vmem:[%s1336_s6 + $0x40] sm:$0xff] %v326_v10  ;;  %v332_v13 = vld [vmem:[%s1331_s4 + $0x318] sm:$0xff]  ;;  %329 = vst [vmem:[%s1336_s6 + $0x48] sm:$0xff] %v328_v11  ;;  %v334_v14 = vld [vmem:[%s1331_s4 + $0x360] sm:$0xff] }
  0x2f   : > { %331 = vst [vmem:[%s1336_s6 + $0x50] sm:$0xff] %v330_v12  ;;  %333 = vst [vmem:[%s1336_s6 + $0x58] sm:$0xff] %v332_v13  ;;  %v336_v15 = vld [vmem:[%s1331_s4 + $0x3a8] sm:$0xff]  ;;  %v338_v16 = vld [vmem:[%s1331_s4 + $0x3f0] sm:$0xff] }
  0x30   : > { %335 = vst [vmem:[%s1336_s6 + $0x60] sm:$0xff] %v334_v14  ;;  %337 = vst [vmem:[%s1336_s6 + $0x68] sm:$0xff] %v336_v15  ;;  %v340_v17 = vld [vmem:[%s1331_s4 + $0x438] sm:$0xff]  ;;  %v342_v18 = vld [vmem:[%s1331_s4 + $0x480] sm:$0xff] }
  0x31   : > { %339 = vst [vmem:[%s1336_s6 + $0x70] sm:$0xff] %v338_v16  ;;  %v344_v19 = vld [vmem:[%s1331_s4 + $0x4c8] sm:$0xff]  ;;  %341 = vst [vmem:[%s1336_s6 + $0x78] sm:$0xff] %v340_v17  ;;  %v346_v20 = vld [vmem:[%s1331_s4 + $0x510] sm:$0xff] }
  0x32   : > { %343 = vst [vmem:[%s1336_s6 + $0x80] sm:$0xff] %v342_v18  ;;  %345 = vst [vmem:[%s1336_s6 + $0x88] sm:$0xff] %v344_v19  ;;  %v348_v21 = vld [vmem:[%s1331_s4 + $0x558] sm:$0xff]  ;;  %v350_v22 = vld [vmem:[%s1331_s4 + $0x5a0] sm:$0xff] }
  0x33   : > { %347 = vst [vmem:[%s1336_s6 + $0x90] sm:$0xff] %v346_v20  ;;  %349 = vst [vmem:[%s1336_s6 + $0x98] sm:$0xff] %v348_v21  ;;  %v352_v23 = vld [vmem:[%s1331_s4 + $0x5e8] sm:$0xff]  ;;  %v354_v24 = vld [vmem:[%s1331_s4 + $0x630] sm:$0xff] }
  0x34   : > { %351 = vst [vmem:[%s1336_s6 + $0xa0] sm:$0xff] %v350_v22  ;;  %v356_v25 = vld [vmem:[%s1331_s4 + $0x678] sm:$0xff]  ;;  %353 = vst [vmem:[%s1336_s6 + $0xa8] sm:$0xff] %v352_v23  ;;  %v358_v26 = vld [vmem:[%s1331_s4 + $0x6c0] sm:$0xff] }
  0x35   : > { %355 = vst [vmem:[%s1336_s6 + $0xb0] sm:$0xff] %v354_v24  ;;  %357 = vst [vmem:[%s1336_s6 + $0xb8] sm:$0xff] %v356_v25  ;;  %v360_v27 = vld [vmem:[%s1331_s4 + $0x708] sm:$0xff]  ;;  %v362_v28 = vld [vmem:[%s1331_s4 + $0x750] sm:$0xff] }
  0x36   : > { %359 = vst [vmem:[%s1336_s6 + $0xc0] sm:$0xff] %v358_v26  ;;  %361 = vst [vmem:[%s1336_s6 + $0xc8] sm:$0xff] %v360_v27  ;;  %v364_v29 = vld [vmem:[%s1331_s4 + $0x798] sm:$0xff]  ;;  %v366_v30 = vld [vmem:[%s1331_s4 + $0x7e0] sm:$0xff] }
  0x37   : > { %363 = vst [vmem:[%s1336_s6 + $0xd0] sm:$0xff] %v362_v28  ;;  %v368_v31 = vld [vmem:[%s1331_s4 + $0x828] sm:$0xff]  ;;  %365 = vst [vmem:[%s1336_s6 + $0xd8] sm:$0xff] %v364_v29  ;;  %v370_v32 = vld [vmem:[%s1331_s4 + $0x870] sm:$0xff] }
  0x38   : > { %367 = vst [vmem:[%s1336_s6 + $0xe0] sm:$0xff] %v366_v30  ;;  %369 = vst [vmem:[%s1336_s6 + $0xe8] sm:$0xff] %v368_v31  ;;  %v372_v33 = vld [vmem:[%s1331_s4 + $0x8b8] sm:$0xff] }
  0x39   : > { %371 = vst [vmem:[%s1336_s6 + $0xf0] sm:$0xff] %v370_v32  ;;  %373 = vst [vmem:[%s1336_s6 + $0xf8] sm:$0xff] %v372_v33 }
  0x3a PF: > { %p915_p0 = scmp.ge.s32.totalorder %s1194_s22, 1  ;;  %p386_p1 = scmp.lt.s32.totalorder %s1194_s22, 28 }
  0x3c   : > { %p387_p2 = pnand %p915_p0, %p386_p1 }
  0x3d   : > { %s393_s24 = sand.u32 (!%p387_p2), 1, %s1170_s16   ;;  %s400_s25 = sand.u32 (!%p387_p2), 1, %s1162_s14  }
  0x3e   : > { %390 = sbr.rel (%p387_p2) target bundleno = 365 (0x16d), region = 100  ;;  %s1403_s30 = sshll.u32 (!%p387_p2), %s393_s24, 4 }
  0x3f   : > { %s917_s27 = sshll.u32 (!%p387_p2), %s400_s25, 8  ;;  %s427_s5 = sand.u32 (!%p387_p2), 1, %s1154_s12  }
  0x40   : > { %s919_s23 = sshll.u32 (!%p387_p2), %s1182_s19, 1  ;;  %s918_s28 = sshll.u32 (!%p387_p2), %s427_s5, 4 }
  0x41   : > { %p435_p3 = scmp.lt.s32.totalorder (!%p387_p2), %s919_s23, 17  ;;  %s395_s26 = scalar_lea.vmem (!%p387_p2), [#allocation3], %s1403_s30 }
  0x42   : > { %s1414_s4 = scalar_lea.vmem (!%p387_p2), [#allocation4], %s917_s27  ;;  %s1416_s16 = scalar_lea.vmem (!%p387_p2), [#allocation5], %s918_s28 }
  0x43   : > { %s1536_s23 = smov (!%p435_p3, %s919_s23), 17  ;;  %p920_p4 = scmp.ne.s32.totalorder %s1178_s18, 0 }
  0x44   : > { %s437_s29 = scalar_lea.vmem %s1506_s2, %s1536_s23 }
  0x45   : > { %444 = sbr.rel (%p920_p4) target bundleno = 77 (0x4d), region = 112 }
  0x4a   : > { %v1196_v34 = vmov 0.0  }
  0x4b   : > { %445 = vst [vmem:[#allocation2 + $0x10] sm:$0xff] %v1196_v34  ;;  %446 = vst [vmem:[#allocation2] sm:$0xff] %v1196_v34 }
  0x4c   : > { %447 = vst [vmem:[#allocation2 + $0x18] sm:$0xff] %v1196_v34  ;;  %448 = vst [vmem:[#allocation2 + $0x8] sm:$0xff] %v1196_v34 }
  0x4d PF: > { %v1057_v35 = vld [vmem:[%s1414_s4 + $0x74] ss:$8 sps:$4 sm:$0xff]   ;;  %v1059_v36 = vld [vmem:[%s1414_s4 + $0x70] ss:$8 sps:$4 sm:$0xff]   ;;  %v1060_v37 = vld [vmem:[%s1414_s4 + $0x64] ss:$8 sps:$4 sm:$0xff]  }
  0x4e   : > { %657 = vmatprep.subr.bf16.mxu0 %v1057_v35  ;;  %v1062_v38 = vld [vmem:[%s1414_s4 + $0x60] ss:$8 sps:$4 sm:$0xff]   ;;  %v1063_v39 = vld [vmem:[%s1414_s4 + $0x54] ss:$8 sps:$4 sm:$0xff]   ;;  %v1065_v40 = vld [vmem:[%s1414_s4 + $0x50] ss:$8 sps:$4 sm:$0xff]  }
  0x4f   : > { %658 = vmatpush1.bf16.msra.mxu0 %v1059_v36  ;;  %v1066_v41 = vld [vmem:[%s1414_s4 + $0x44] ss:$8 sps:$4 sm:$0xff]   ;;  %v1068_v42 = vld [vmem:[%s1414_s4 + $0x40] ss:$8 sps:$4 sm:$0xff]   ;;  %v1069_v43 = vld [vmem:[%s1414_s4 + $0x34] ss:$8 sps:$4 sm:$0xff]  }
  0x50   : > { %659 = vmatprep.subr.bf16.mxu0 %v1060_v37  ;;  %v1071_v44 = vld [vmem:[%s1414_s4 + $0x30] ss:$8 sps:$4 sm:$0xff]   ;;  %v1072_v45 = vld [vmem:[%s1414_s4 + $0x24] ss:$8 sps:$4 sm:$0xff]   ;;  %v1074_v46 = vld [vmem:[%s1414_s4 + $0x20] ss:$8 sps:$4 sm:$0xff]  }
  0x51   : > { %v1075_v47 = vld [vmem:[%s1414_s4 + $0x14] ss:$8 sps:$4 sm:$0xff]   ;;  %v1077_v49 = vld [vmem:[%s1414_s4 + $0x10] ss:$8 sps:$4 sm:$0xff]   ;;  %v1078_v50 = vld [vmem:[%s1414_s4 + $0x4] ss:$8 sps:$4 sm:$0xff]  }
  0x52   : > { %v1107_v48 = vld [vmem:[%s395_s26 + $0x4] ss:$8 sps:$4 sm:$0xff]   ;;  %v1080_v51 = vld [vmem:[%s1414_s4] ss:$8 sps:$4 sm:$0xff]   ;;  %v1083_v53 = vld [vmem:[%s1414_s4 + $0xf0] ss:$8 sps:$4 sm:$0xff]  }
  0x53   : > { %660 = vmatpush1.bf16.msra.mxu0 %v1062_v38  ;;  %689 = vmatprep.mubr.bf16.mxu0 %v1107_v48  ;;  %v1081_v52 = vld [vmem:[%s1414_s4 + $0xf4] ss:$8 sps:$4 sm:$0xff]   ;;  %v1084_v54 = vld [vmem:[%s1414_s4 + $0xe4] ss:$8 sps:$4 sm:$0xff]   ;;  %v1086_v55 = vld [vmem:[%s1414_s4 + $0xe0] ss:$8 sps:$4 sm:$0xff]  }
  0x54   : > { %661 = vmatprep.subr.bf16.mxu0 %v1063_v39  ;;  %v1087_v56 = vld [vmem:[%s1414_s4 + $0xd4] ss:$8 sps:$4 sm:$0xff]   ;;  %v1089_v57 = vld [vmem:[%s1414_s4 + $0xd0] ss:$8 sps:$4 sm:$0xff]   ;;  %v1090_v58 = vld [vmem:[%s1414_s4 + $0xc4] ss:$8 sps:$4 sm:$0xff]  }
  0x55   : > { %v1092_v59 = vld [vmem:[%s1414_s4 + $0xc0] ss:$8 sps:$4 sm:$0xff]   ;;  %v1093_v60 = vld [vmem:[%s1414_s4 + $0xb4] ss:$8 sps:$4 sm:$0xff]   ;;  %v1095_v61 = vld [vmem:[%s1414_s4 + $0xb0] ss:$8 sps:$4 sm:$0xff]  }
  0x56   : > { %v1096_v62 = vld [vmem:[%s1414_s4 + $0xa4] ss:$8 sps:$4 sm:$0xff]   ;;  %v1098_v63 = vld [vmem:[%s1414_s4 + $0xa0] ss:$8 sps:$4 sm:$0xff]   ;;  %v1099_v0 = vld [vmem:[%s1414_s4 + $0x94] ss:$8 sps:$4 sm:$0xff]  }
  0x57   : > { %662 = vmatpush1.bf16.msra.mxu0 %v1065_v40  ;;  %v1101_v1 = vld [vmem:[%s1414_s4 + $0x90] ss:$8 sps:$4 sm:$0xff]   ;;  %v1102_v2 = vld [vmem:[%s1414_s4 + $0x84] ss:$8 sps:$4 sm:$0xff]   ;;  %v1104_v3 = vld [vmem:[%s1414_s4 + $0x80] ss:$8 sps:$4 sm:$0xff]  }
  0x58   : > { %663 = vmatprep.subr.bf16.mxu0 %v1066_v41  ;;  %v1105_v4 = vld [vmem:[%s395_s26] ss:$8 sps:$4 sm:$0xff]   ;;  %p955_p5 = scmp.ne.s32.totalorder %s1178_s18, 2 }
  0x59   : > { %v449_v5 = vld [vmem:[#allocation2 + $0x10] sm:$0xff]  ;;  %v450_v7 = vld [vmem:[#allocation2] sm:$0xff]  ;;  %v451_v10 = vld [vmem:[#allocation2 + $0x18] sm:$0xff] }
  0x5a   : > { %v452_v13 = vld [vmem:[#allocation2 + $0x8] sm:$0xff] }
  0x5b   : > { %664 = vmatpush1.bf16.msra.mxu0 %v1068_v42 }
  0x5c   : > { %665 = vmatprep.subr.bf16.mxu0 %v1069_v43 }
  0x5f   : > { %666 = vmatpush1.bf16.msra.mxu0 %v1071_v44 }
  0x60   : > { %667 = vmatprep.subr.bf16.mxu0 %v1072_v45 }
  0x63   : > { %668 = vmatpush1.bf16.msra.mxu0 %v1074_v46 }
  0x64   : > { %669 = vmatprep.subr.bf16.mxu0 %v1075_v47 }
  0x67   : > { %670 = vmatpush1.bf16.msra.mxu0 %v1077_v49 }
  0x68   : > { %671 = vmatprep.subr.bf16.mxu0 %v1078_v50 }
  0x6b   : > { %672 = vmatpush1.bf16.msra.mxu0 %v1080_v51 }
  0x6c   : > { %673 = vmatprep.subr.bf16.mxu0 %v1081_v52 }
  0x6f   : > { %674 = vmatpush2.bf16.msra.mxu0 %v1083_v53 }
  0x70   : > { %675 = vmatprep.subr.bf16.mxu0 %v1084_v54 }
  0x73   : > { %676 = vmatpush2.bf16.msra.mxu0 %v1086_v55 }
  0x74   : > { %677 = vmatprep.subr.bf16.mxu0 %v1087_v56 }
  0x77   : > { %678 = vmatpush2.bf16.msra.mxu0 %v1089_v57 }
  0x78   : > { %679 = vmatprep.subr.bf16.mxu0 %v1090_v58 }
  0x7b   : > { %680 = vmatpush2.bf16.msra.mxu0 %v1092_v59 }
  0x7c   : > { %681 = vmatprep.subr.bf16.mxu0 %v1093_v60 }
  0x7f   : > { %682 = vmatpush2.bf16.msra.mxu0 %v1095_v61 }
  0x80   : > { %683 = vmatprep.subr.bf16.mxu0 %v1096_v62 }
  0x83   : > { %684 = vmatpush2.bf16.msra.mxu0 %v1098_v63 }
  0x84   : > { %685 = vmatprep.subr.bf16.mxu0 %v1099_v0 }
  0x87   : > { %686 = vmatpush2.bf16.msra.mxu0 %v1101_v1 }
  0x88   : > { %687 = vmatprep.subr.bf16.mxu0 %v1102_v2 }
  0x8b   : > { %688 = vmatpush2.bf16.msra.mxu0 %v1104_v3 }
  0x8e   : > { %690 = vmatmul.mubr.bf16.vlgmr.msra.gmra.mxu0 %v1105_v4 }
 0x14e   : > { %v691_v6 = vpop.f32.mrf.mxu0 }
 0x14f   : > { %v700_v8 = vadd.f32 %v691_v6, %v449_v5 }
 0x150   : > { %v693_v9 = vpop.f32.mrf.mxu0 }
 0x151   : > { %704 = vst [vmem:[#allocation2 + $0x10] sm:$0xff] %v700_v8  ;;  %v701_v11 = vadd.f32 %v693_v9, %v450_v7 }
 0x152   : > { %v695_v12 = vpop.f32.mrf.mxu0 }
 0x153   : > { %705 = vst [vmem:[#allocation2] sm:$0xff] %v701_v11  ;;  %v702_v14 = vadd.f32 %v695_v12, %v451_v10  ;;  %711 = sbr.rel (%p955_p5) target bundleno = 357 (0x165), region = 116 }
 0x154   : > { %v697_v15 = vpop.f32.mrf.mxu0 }
 0x155   : > { %706 = vst [vmem:[#allocation2 + $0x18] sm:$0xff] %v702_v14  ;;  %v703_v16 = vadd.f32 %v697_v15, %v452_v13 }
 0x157   : > { %707 = vst [vmem:[#allocation2 + $0x8] sm:$0xff] %v703_v16 }
 0x158   : > { %v718_v17 = vlaneseq  ;;  %v716_v19 = vld [vmem:[%s437_s29] sm:$0x3]  ;;  %v712_v20 = vld [vmem:[#allocation2 + $0x10] sm:$0xff] }
 0x15a   : > { %v719_v18 = vshrl.u32 %v718_v17, 7  ;;  %v713_v23 = vld [vmem:[#allocation2] sm:$0xff] }
 0x15c   : > { %v720_v21 = vsub.s32 0, %v719_v18  ;;  %v724_v22 = vsub.s32 1, %v719_v18  ;;  %v714_v24 = vld [vmem:[#allocation2 + $0x18] sm:$0xff] }
 0x15e   : > { %v715_v25 = vld [vmem:[#allocation2 + $0x8] sm:$0xff]  ;;  %v721_v26 = vrot.slane %v716_v19, %v720_v21  ;;  %v725_v27 = vrot.slane %v716_v19, %v724_v22 }
 0x160   : > { %v728_v28 = vadd.f32 %v721_v26, %v712_v20  ;;  %v729_v29 = vadd.f32 %v725_v27, %v713_v23  ;;  %v730_v30 = vadd.f32 %v721_v26, %v714_v24  ;;  %v731_v31 = vadd.f32 %v725_v27, %v715_v25 }
 0x162   : > { %v964_v32 = vpack.c.bf16 %v729_v29, %v728_v28  ;;  %v965_v33 = vpack.c.bf16 %v731_v31, %v730_v30 }
 0x164   : > { %744 = vst [vmem:[%s1416_s16] sm:$0xff] %v964_v32  ;;  %745 = vst [vmem:[%s1416_s16 + $0x8] sm:$0xff] %v965_v33 }
 0x165 PF: > { %752 = sbr.rel (!%p1311_p12) target bundleno = 365 (0x16d), region = 120  ;;  %s966_s18 = sshll.u32 (%p1311_p12), %s1182_s19, 3 }
 0x166   : > { %s758_s25 = scalar_lea.vmem (%p1311_p12), %s1507_s3, %s966_s18 }
 0x16b   : > { %v789_v34 = vld [vmem:[%s1416_s16] sm:$0xff]  ;;  %v791_v35 = vld [vmem:[%s1416_s16 + $0x8] sm:$0xff] }
 0x16c   : > { %790 = vst [vmem:[%s758_s25] sm:$0xff] %v789_v34  ;;  %792 = vst [vmem:[%s758_s25 + $0x48] sm:$0xff] %v791_v35 }
 0x16d PF: > { %s13_s22 = sadd.s32 1, %s1194_s22   ;;  %s1516_s10 = sld [smem:[#allocation8_spill]] }
 0x16e   : > { %p10_p6 = scmp.ge.s32.totalorder %s13_s22, 29   ;;  %s1517_s30 = sld [smem:[#allocation6_spill]] }
 0x16f   : > { %s1518_s27 = sld [smem:[#allocation7_spill]]  ;;  %s1519_s12 = smov %s1158_s13 }
 0x170   : > { %s1520_s13 = smov %s1309_s9  ;;  %s1521_s14 = smov %s1166_s15 }
 0x171   : > { %s1522_s15 = smov %s1306_s8  ;;  %s1523_s16 = smov %s1174_s17 }
 0x172   : > { %s1525_s18 = smov %s1186_s20  ;;  %s1526_s19 = smov %s1190_s21 }
 0x173   : > { %s1524_s17 = smov %s1516_s10  ;;  %12 = sbr.rel (!%p10_p6) target bundleno = 6 (0x6), region = 200 }
 0x174   : > { %s1527_s20 = smov %s1517_s30 }
 0x175   : > { %s1528_s21 = smov %s1518_s27 }

// kernel: bert_classifier_forward.18
= control target key start
LH: loop header
LB: loop body
LE: loop exit
PB: predicated region body
PF: predicated region fallthrough
CT: control target
= control target key end

     0   :  { %s2037_s9 = smov 0   ;;  %s2396_s0 = inlined_call_operand.vmem [shape: bf16[2,8,2304], index: 0, kind: input, shape index: {}]   ;;  %s2397_s1 = inlined_call_operand.vmem [shape: f32[2,1,8], index: 1, kind: input, shape index: {}]   ;;  %s2398_s2 = inlined_call_operand.vmem [shape: bf16[2,8,768], index: 2, kind: output, shape index: {}]  }
   0x1 LB: > { %s1682_s10 = sadd.s32 4294967295, %s2017_s9   ;;  %p1686_p0 = scmp.ge.s32.totalorder %s2017_s9, 1  ;;  %s2017_s9 = sphi %s2037_s9, %s12_s9  }
   0x2   : > { %p120_p1 = scmp.lt.s32.totalorder %s2017_s9, 3 }
   0x4   : > { %p121_p2 = pnand %p1686_p0, %p120_p1 }
   0x5   : > { %p145_p3 = scmp.lt.s32.totalorder (!%p121_p2), %s1682_s10, 1  ;;  %s2021_s18 = smov (!%p121_p2), 64  }
   0x6   : > { %124 = sbr.rel (%p121_p2) target bundleno = 1507 (0x5e3), region = 28 }
   0xb   : > { %v2019_v0 = vmov 0.0   ;;  %vm2020_vm0 = vmmov 0   ;;  %s2400_s10 = smov (!%p145_p3, %s1682_s10), 1  ;;  %vm171_vm1 = vcmask 523264   ;;  %vm218_vm2 = vcmask 64512  }
   0xc   : > { %1794 = vmatprep.subr.bf16.mxu0 %v2019_v0  ;;  %1796 = vmatprep.mubr.msk.bf16.mxu0 %vm2020_vm0, %v2019_v0  ;;  %s1938_s11 = smul.u32 72, %s2400_s10  ;;  %s152_s17 = scalar_lea.vmem %s2397_s1, %s2400_s10  ;;  %vm234_vm3 = vcmask 1043456   ;;  %vm279_vm4 = vcmask 519168   ;;  %vm411_vm5 = vcmask 1043968  }
   0xd   : > { %1800 = vmatprep.subr.bf16.mxu1 %v2019_v0  ;;  %1802 = vmatprep.mubr.msk.bf16.mxu1 %vm2020_vm0, %v2019_v0  ;;  %v2070_v5 = vld [vmem:[%s152_s17] ss:$0 sm:$0xff]  ;;  %s1939_s19 = smul.u32 24, %s2400_s10 }
   0xe   : > { %s2057_s14 = scalar_lea.vmem %s2396_s0, %s1938_s11 }
   0xf   : > { %v163_v1 = vld [vmem:[%s2057_s14 + $0x18] sm:$0xf]  ;;  %v161_v3 = vld [vmem:[%s2057_s14] sm:$0xf]  ;;  %v523_v16 = vld [vmem:[%s2057_s14 + $0x4] sm:$0xf]  ;;  %s2171_s22 = scalar_lea.vmem %s2398_s2, %s1939_s19 }
  0x10   : > { %v176_v2 = vsel %vm171_vm1, %v163_v1, 0  ;;  %v162_v4 = vmul.bf16 1040203264, %v161_v3  ;;  %v1951_v12 = vld [vmem:[%s2057_s14 + $0x18] ss:$0 sps:$4 sm:$0xff]  }
  0x11   : > { %1795 = vmatpush3.bf16.xpose.msra.mxu0 %v176_v2  ;;  %v281_v13 = vld [vmem:[%s2057_s14] sm:$0xf]  ;;  %293 = vrot.lane.b32.xlu1 %v1951_v12, %s2021_s18  ;;  %v524_v17 = vmul.bf16 1040203264, %v523_v16  ;;  %v764_v18 = vld [vmem:[%s2057_s14 + $0x8] sm:$0xf] }
  0x12   : > { %1812 = vmatprep.subr.bf16.mxu0 %v2019_v0  ;;  %v282_v14 = vmul.bf16 1040203264, %v281_v13  ;;  %v1953_v20 = vld [vmem:[%s2057_s14 + $0x20] ss:$0 sps:$4 sm:$0xff]   ;;  %v765_v21 = vmul.bf16 1040203264, %v764_v18 }
  0x13   : > { %v1700_v19 = vcombine.low %v524_v17, %v524_v17  ;;  %v1005_v23 = vld [vmem:[%s2057_s14 + $0xc] sm:$0xf]  ;;  %v1954_v24 = vld [vmem:[%s2057_s14 + $0x24] ss:$0 sps:$4 sm:$0xff]   ;;  %v1955_v27 = vld [vmem:[%s2057_s14 + $0x28] ss:$0 sps:$4 sm:$0xff]  }
  0x14   : > { %v1692_v15 = vcombine.low %v282_v14, %v282_v14  ;;  %v1708_v22 = vcombine.low %v765_v21, %v765_v21  ;;  %v1006_v25 = vmul.bf16 1040203264, %v1005_v23  ;;  %v1956_v28 = vld [vmem:[%s2057_s14 + $0x2c] ss:$0 sps:$4 sm:$0xff]   ;;  %v164_v34 = vld [vmem:[%s2057_s14 + $0x30] sm:$0xf] }
  0x15   : > { %v236_v35 = vsel %vm234_vm3, %v164_v34, 0  ;;  %v1246_v36 = vld [vmem:[%s2057_s14 + $0x10] sm:$0xf]  ;;  %v1952_v37 = vld [vmem:[%s2057_s14 + $0x1c] ss:$0 sps:$4 sm:$0xff]  }
  0x16   : > { %288 = vrot.lane.b32.xlu1 %v1692_v15, %s2021_s18  ;;  %v1716_v26 = vcombine.low %v1006_v25, %v1006_v25  ;;  %1801 = vmatpush3.bf16.msra.mxu1 %v236_v35  ;;  %v1247_v38 = vmul.bf16 1040203264, %v1246_v36  ;;  %v1487_v39 = vld [vmem:[%s2057_s14 + $0x14] sm:$0xf]  ;;  %v415_v49 = vld [vmem:[%s2057_s14 + $0x1c] sm:$0xf] }
  0x17   : > { %1806 = vmatprep.subr.bf16.mxu1 %v2019_v0  ;;  %v1488_v41 = vmul.bf16 1040203264, %v1487_v39  ;;  %v421_v51 = vsel %vm171_vm1, %v415_v49, 0  ;;  %v413_v52 = vld [vmem:[%s2057_s14 + $0x4] sm:$0xf] }
  0x18   : > { %1797 = vmatmul.mubr.msk.bf16.vlgmr.msra.gmra.mxu0 %vm171_vm1, %v162_v4  ;;  %v1724_v40 = vcombine.low %v1247_v38, %v1247_v38  ;;  %v414_v54 = vmul.bf16 1040203264, %v413_v52  ;;  %v656_v56 = vld [vmem:[%s2057_s14 + $0x20] sm:$0xf]  ;;  %v654_v59 = vld [vmem:[%s2057_s14 + $0x8] sm:$0xf] }
  0x19   : > { %1814 = vmatprep.mubr.msk.bf16.mxu0 %vm2020_vm0, %v2019_v0  ;;  %v1732_v42 = vcombine.low %v1488_v41, %v1488_v41  ;;  %v662_v58 = vsel %vm171_vm1, %v656_v56, 0  ;;  %v655_v61 = vmul.bf16 1040203264, %v654_v59  ;;  %v897_v63 = vld [vmem:[%s2057_s14 + $0x24] sm:$0xf] }
  0x1a   : > { %530 = vrot.lane.b32.xlu1 %v1700_v19, %s2021_s18  ;;  %v903_v2 = vsel %vm171_vm1, %v897_v63, 0  ;;  %v895_v3 = vld [vmem:[%s2057_s14 + $0xc] sm:$0xf]  ;;  %v1377_v18 = vld [vmem:[%s2057_s14 + $0x14] sm:$0xf] }
  0x1b   : > { %v1379_v15 = vld [vmem:[%s2057_s14 + $0x2c] sm:$0xf] }
  0x1c   : > { %v1385_v17 = vsel %vm171_vm1, %v1379_v15, 0 }
  0x1e   : > { %776 = vrot.lane.b32.xlu1 %v1953_v20, %s2021_s18  ;;  %v1378_v20 = vmul.bf16 1040203264, %v1377_v18 }
  0x22   : > { %771 = vrot.lane.b32.xlu1 %v1708_v22, %s2021_s18 }
  0x26   : > { %1017 = vrot.lane.b32.xlu1 %v1954_v24, %s2021_s18 }
  0x2a   : > { %1012 = vrot.lane.b32.xlu1 %v1716_v26, %s2021_s18 }
  0x2e   : > { %1258 = vrot.lane.b32.xlu1 %v1955_v27, %s2021_s18 }
  0x32   : > { %1499 = vrot.lane.b32.xlu1 %v1956_v28, %s2021_s18 }
  0x83   : > { %v294_v45 = vpop.permute.xlu1 %293 }
  0x84   : > { %v299_v47 = vsel %vm171_vm1, %v294_v45, 0 }
  0x88   : > { %v289_v50 = vpop.permute.xlu1 %288 }
  0x8c   : > { %v531_v57 = vpop.permute.xlu1 %530 }
  0x90   : > { %v777_v60 = vpop.permute.xlu1 %776 }
  0x91   : > { %v782_v62 = vsel %vm171_vm1, %v777_v60, 0 }
  0x94   : > { %v772_v1 = vpop.permute.xlu1 %771 }
  0x98   : > { %v1018_v4 = vpop.permute.xlu1 %1017 }
  0xd8   : > { %v212_v6 = vpop.f32.mrf.mxu0 }
  0xd9   : > { %v213_v7 = vadd.f32 %v2070_v5, %v212_v6  ;;  %v896_v6 = vmul.bf16 1040203264, %v895_v3 }
  0xda   : > { %v1798_v8 = vpop.f32.mrf.mxu0 }
  0xdb   : > { %v219_v9 = vsel %vm218_vm2, %v213_v7, -inf  ;;  %v1138_v8 = vld [vmem:[%s2057_s14 + $0x28] sm:$0xf] }
  0xdc   : > { %220 = vmax.xlane.f32.xlu0 %v219_v9  ;;  %v215_v10 = vpop.f32.mrf.mxu0  ;;  %v1013_v9 = vpop.permute.xlu1 %1012 }
  0xdd   : > { %v1144_v10 = vsel %vm171_vm1, %v1138_v8, 0 }
  0xde   : > { %v1799_v11 = vpop.f32.mrf.mxu0 }
  0xdf   : > { %v1136_v11 = vld [vmem:[%s2057_s14 + $0x10] sm:$0xf] }
  0xe0   : > { %v1259_v12 = vpop.permute.xlu1 %1258  ;;  %v1137_v13 = vmul.bf16 1040203264, %v1136_v11 }
  0xe1   : > { %v1264_v14 = vsel %vm171_vm1, %v1259_v12, 0 }
  0xe4   : > { %v1500_v19 = vpop.permute.xlu1 %1499 }
  0xe5   : > { %v1505_v21 = vsel %vm171_vm1, %v1500_v19, 0 }
 0x165   : > { %v221_v29 = vpop.xlane.xlu0 %220 }
 0x166   : > { %v222_v30 = vsub.f32 %v213_v7, %v221_v29  ;;  %v1023_v7 = vsel %vm171_vm1, %v1018_v4, 0 }
 0x168   : > { %v223_v31 = vmul.f32 1.442695, %v222_v30 }
 0x16a   : > { %1963 = vpow2.f32 %v223_v31 }
 0x177   : > { %v1964_v32 = vpop.eup %1963 }
 0x178   : > { %v225_v33 = vsel %vm218_vm2, %v1964_v32, 0.0 }
 0x179   : > { %226 = vadd.xlane.f32.xlu0 %v225_v33 }
 0x18f   : > { %535 = vrot.lane.b32.xlu0 %v1952_v37, %s2021_s18 }
 0x193   : > { %1253 = vrot.lane.b32.xlu0 %v1724_v40, %s2021_s18 }
 0x197   : > { %1494 = vrot.lane.b32.xlu0 %v1732_v42, %s2021_s18 }
 0x202   : > { %v227_v43 = vpop.xlane.xlu0 %226 }
 0x203   : > { %1965 = vrcp.f32 %v227_v43 }
 0x206   : > { %v536_v53 = vpop.permute.xlu0 %535 }
 0x207   : > { %v541_v55 = vsel %vm171_vm1, %v536_v53, 0 }
 0x20a   : > { %v1254_v16 = vpop.permute.xlu0 %1253 }
 0x20e   : > { %v1495_v22 = vpop.permute.xlu0 %1494 }
 0x210   : > { %v1966_v44 = vpop.eup %1965 }
 0x211   : > { %v229_v46 = vmul.f32 %v1966_v44, %v1964_v32 }
 0x213   : > { %v230_v48 = vpack.c.bf16 %v229_v46, %v229_v46 }
 0x215   : > { %1803 = vmatmul.mubr.msk.bf16.vlgmr.msra.gmra.mxu1 %vm218_vm2, %v230_v48 }
 0x216   : > { %1807 = vmatpush3.bf16.xpose.msra.mxu1 %v299_v47  ;;  %1808 = vmatprep.mubr.msk.bf16.mxu1 %vm2020_vm0, %v2019_v0 }
 0x217   : > { %1818 = vmatprep.subr.bf16.mxu1 %v2019_v0 }
 0x21d   : > { %1809 = vmatmul.mubr.msk.bf16.vlgmr.msra.gmra.mxu1 %vm171_vm1, %v289_v50 }
 0x21e   : > { %1819 = vmatpush3.bf16.xpose.msra.mxu1 %v421_v51  ;;  %1820 = vmatprep.mubr.msk.bf16.mxu1 %vm2020_vm0, %v2019_v0 }
 0x21f   : > { %1830 = vmatprep.subr.bf16.mxu1 %v2019_v0 }
 0x225   : > { %1821 = vmatmul.mubr.msk.bf16.vlgmr.msra.gmra.mxu1 %vm171_vm1, %v414_v54 }
 0x226   : > { %1831 = vmatpush3.bf16.xpose.msra.mxu1 %v541_v55  ;;  %1832 = vmatprep.mubr.msk.bf16.mxu1 %vm2020_vm0, %v2019_v0 }
 0x227   : > { %1842 = vmatprep.subr.bf16.mxu1 %v2019_v0 }
 0x22d   : > { %1833 = vmatmul.mubr.msk.bf16.vlgmr.msra.gmra.mxu1 %vm171_vm1, %v531_v57 }
 0x22e   : > { %1843 = vmatpush3.bf16.xpose.msra.mxu1 %v662_v58  ;;  %1844 = vmatprep.mubr.msk.bf16.mxu1 %vm2020_vm0, %v2019_v0 }
 0x22f   : > { %1854 = vmatprep.subr.bf16.mxu1 %v2019_v0 }
 0x235   : > { %1845 = vmatmul.mubr.msk.bf16.vlgmr.msra.gmra.mxu1 %vm171_vm1, %v655_v61 }
 0x236   : > { %1855 = vmatpush3.bf16.xpose.msra.mxu1 %v782_v62  ;;  %1856 = vmatprep.mubr.msk.bf16.mxu1 %vm2020_vm0, %v2019_v0 }
 0x237   : > { %1866 = vmatprep.subr.bf16.mxu1 %v2019_v0 }
 0x23d   : > { %1857 = vmatmul.mubr.msk.bf16.vlgmr.msra.gmra.mxu1 %vm171_vm1, %v772_v1 }
 0x23e   : > { %1867 = vmatpush3.bf16.xpose.msra.mxu1 %v903_v2  ;;  %1868 = vmatprep.mubr.msk.bf16.mxu1 %vm2020_vm0, %v2019_v0 }
 0x23f   : > { %1878 = vmatprep.subr.bf16.mxu1 %v2019_v0 }
 0x245   : > { %1869 = vmatmul.mubr.msk.bf16.vlgmr.msra.gmra.mxu1 %vm171_vm1, %v896_v6 }
 0x246   : > { %1879 = vmatpush3.bf16.xpose.msra.mxu1 %v1023_v7  ;;  %1880 = vmatprep.mubr.msk.bf16.mxu1 %vm2020_vm0, %v2019_v0 }
 0x247   : > { %1890 = vmatprep.subr.bf16.mxu1 %v2019_v0 }
 0x24d   : > { %1881 = vmatmul.mubr.msk.bf16.vlgmr.msra.gmra.mxu1 %vm171_vm1, %v1013_v9 }
 0x24e   : > { %1891 = vmatpush3.bf16.xpose.msra.mxu1 %v1144_v10  ;;  %1892 = vmatprep.mubr.msk.bf16.mxu1 %vm2020_vm0, %v2019_v0 }
 0x24f   : > { %1902 = vmatprep.subr.bf16.mxu1 %v2019_v0 }
 0x255   : > { %1893 = vmatmul.mubr.msk.bf16.vlgmr.msra.gmra.mxu1 %vm171_vm1, %v1137_v13 }
 0x256   : > { %1903 = vmatpush3.bf16.xpose.msra.mxu1 %v1264_v14  ;;  %1904 = vmatprep.mubr.msk.bf16.mxu1 %vm2020_vm0, %v2019_v0 }
 0x257   : > { %1914 = vmatprep.subr.bf16.mxu1 %v2019_v0 }
 0x25d   : > { %1905 = vmatmul.mubr.msk.bf16.vlgmr.msra.gmra.mxu1 %vm171_vm1, %v1254_v16 }
 0x25e   : > { %1915 = vmatpush3.bf16.xpose.msra.mxu1 %v1385_v17  ;;  %1916 = vmatprep.mubr.msk.bf16.mxu1 %vm2020_vm0, %v2019_v0 }
 0x25f   : > { %1926 = vmatprep.subr.bf16.mxu1 %v2019_v0 }
 0x265   : > { %1917 = vmatmul.mubr.msk.bf16.vlgmr.msra.gmra.mxu1 %vm171_vm1, %v1378_v20 }
 0x266   : > { %1927 = vmatpush3.bf16.xpose.msra.mxu1 %v1505_v21  ;;  %1928 = vmatprep.mubr.msk.bf16.mxu1 %vm2020_vm0, %v2019_v0 }
 0x26d   : > { %1929 = vmatmul.mubr.msk.bf16.vlgmr.msra.gmra.mxu1 %vm171_vm1, %v1495_v22 }
 0x2d5   : > { %v272_v23 = vpop.f32.mrf.mxu1 }
 0x2d6   : > { %v278_v24 = vpack.c.bf16 %v272_v23, %v272_v23 }
 0x2d7   : > { %v1804_v25 = vpop.f32.mrf.mxu1 }
 0x2d8   : > { %280 = vst.msk [vmem:[%s2171_s22] sm:$0xf] %vm279_vm4, %v278_v24 }
 0x2d9   : > { %v275_v26 = vpop.f32.mrf.mxu1 }
 0x2db   : > { %v1805_v27 = vpop.f32.mrf.mxu1 }
 0x2dd   : > { %v335_v28 = vpop.f32.mrf.mxu1 }
 0x2de   : > { %v2176_v29 = vadd.f32 %v2070_v5, %v335_v28 }
 0x2df   : > { %v1810_v30 = vpop.f32.mrf.mxu1 }
 0x2e0   : > { %v341_v31 = vsel %vm218_vm2, %v2176_v29, -inf }
 0x2e1   : > { %342 = vmax.xlane.f32.xlu1 %v341_v31  ;;  %v338_v32 = vpop.f32.mrf.mxu1 }
 0x2e3   : > { %v1811_v33 = vpop.f32.mrf.mxu1 }
 0x2e5   : > { %v457_v34 = vpop.f32.mrf.mxu1 }
 0x2e6   : > { %v2181_v35 = vadd.f32 %v2070_v5, %v457_v34 }
 0x2e7   : > { %v1822_v36 = vpop.f32.mrf.mxu1 }
 0x2e8   : > { %v463_v37 = vsel %vm218_vm2, %v2181_v35, -inf }
 0x2e9   : > { %464 = vmax.xlane.f32.xlu0 %v463_v37  ;;  %v460_v38 = vpop.f32.mrf.mxu1 }
 0x2eb   : > { %v1823_v39 = vpop.f32.mrf.mxu1 }
 0x2ed   : > { %v577_v40 = vpop.f32.mrf.mxu1 }
 0x2ee   : > { %v2186_v41 = vadd.f32 %v2070_v5, %v577_v40 }
 0x2ef   : > { %v1834_v42 = vpop.f32.mrf.mxu1 }
 0x2f0   : > { %v583_v43 = vsel %vm218_vm2, %v2186_v41, -inf }
 0x2f1   : > { %584 = vmax.xlane.f32.xlu0 %v583_v43  ;;  %v580_v44 = vpop.f32.mrf.mxu1 }
 0x2f3   : > { %v1835_v45 = vpop.f32.mrf.mxu1 }
 0x2f5   : > { %v698_v46 = vpop.f32.mrf.mxu1 }
 0x2f6   : > { %v2191_v47 = vadd.f32 %v2070_v5, %v698_v46 }
 0x2f7   : > { %v1846_v48 = vpop.f32.mrf.mxu1 }
 0x2f8   : > { %v704_v49 = vsel %vm218_vm2, %v2191_v47, -inf  ;;  %v1958_v48 = vld [vmem:[%s2057_s14 + $0x30] ss:$0 sps:$4 sm:$0xff]  }
 0x2f9   : > { %705 = vmax.xlane.f32.xlu1 %v704_v49  ;;  %v701_v50 = vpop.f32.mrf.mxu1 }
 0x2fb   : > { %v1847_v51 = vpop.f32.mrf.mxu1 }
 0x2fd   : > { %v818_v52 = vpop.f32.mrf.mxu1 }
 0x2fe   : > { %v2196_v53 = vadd.f32 %v2070_v5, %v818_v52 }
 0x2ff   : > { %v1858_v54 = vpop.f32.mrf.mxu1 }
 0x300   : > { %v824_v55 = vsel %vm218_vm2, %v2196_v53, -inf }
 0x301   : > { %825 = vmax.xlane.f32.xlu0 %v824_v55  ;;  %v821_v56 = vpop.f32.mrf.mxu1 }
 0x303   : > { %v1859_v57 = vpop.f32.mrf.mxu1 }
 0x305   : > { %v939_v58 = vpop.f32.mrf.mxu1 }
 0x306   : > { %v2201_v59 = vadd.f32 %v2070_v5, %v939_v58 }
 0x307   : > { %v1870_v60 = vpop.f32.mrf.mxu1 }
 0x308   : > { %v945_v61 = vsel %vm218_vm2, %v2201_v59, -inf }
 0x309   : > { %946 = vmax.xlane.f32.xlu1 %v945_v61  ;;  %v942_v62 = vpop.f32.mrf.mxu1 }
 0x30b   : > { %v1871_v63 = vpop.f32.mrf.mxu1 }
 0x30d   : > { %v1059_v1 = vpop.f32.mrf.mxu1 }
 0x30e   : > { %v2206_v2 = vadd.f32 %v2070_v5, %v1059_v1 }
 0x30f   : > { %v1882_v3 = vpop.f32.mrf.mxu1 }
 0x310   : > { %v1065_v4 = vsel %vm218_vm2, %v2206_v2, -inf }
 0x311   : > { %1066 = vmax.xlane.f32.xlu0 %v1065_v4  ;;  %v1062_v6 = vpop.f32.mrf.mxu1 }
 0x312   : > { %v1959_v6 = vld [vmem:[%s2057_s14 + $0x38] ss:$0 sps:$4 sm:$0xff]  }
 0x313   : > { %v1883_v7 = vpop.f32.mrf.mxu1 }
 0x314   : > { %v1960_v7 = vld [vmem:[%s2057_s14 + $0x3c] ss:$0 sps:$4 sm:$0xff]  }
 0x315   : > { %v1180_v8 = vpop.f32.mrf.mxu1 }
 0x316   : > { %v2211_v9 = vadd.f32 %v2070_v5, %v1180_v8 }
 0x317   : > { %v1894_v10 = vpop.f32.mrf.mxu1 }
 0x318   : > { %v1186_v11 = vsel %vm218_vm2, %v2211_v9, -inf }
 0x319   : > { %1187 = vmax.xlane.f32.xlu1 %v1186_v11  ;;  %v1183_v12 = vpop.f32.mrf.mxu1 }
 0x31b   : > { %v1895_v13 = vpop.f32.mrf.mxu1 }
 0x31d   : > { %v1300_v14 = vpop.f32.mrf.mxu1 }
 0x31e   : > { %v2216_v15 = vadd.f32 %v2070_v5, %v1300_v14 }
 0x31f   : > { %v1906_v16 = vpop.f32.mrf.mxu1 }
 0x320   : > { %v1306_v17 = vsel %vm218_vm2, %v2216_v15, -inf }
 0x321   : > { %1307 = vmax.xlane.f32.xlu0 %v1306_v17  ;;  %v1303_v18 = vpop.f32.mrf.mxu1 }
 0x323   : > { %v1907_v19 = vpop.f32.mrf.mxu1 }
 0x325   : > { %v1421_v20 = vpop.f32.mrf.mxu1 }
 0x326   : > { %v2221_v21 = vadd.f32 %v2070_v5, %v1421_v20 }
 0x327   : > { %v1918_v22 = vpop.f32.mrf.mxu1 }
 0x328   : > { %v1427_v23 = vsel %vm218_vm2, %v2221_v21, -inf }
 0x329   : > { %1428 = vmax.xlane.f32.xlu1 %v1427_v23  ;;  %v1424_v24 = vpop.f32.mrf.mxu1 }
 0x32b   : > { %v1919_v25 = vpop.f32.mrf.mxu1 }
 0x32d   : > { %v1541_v26 = vpop.f32.mrf.mxu1 }
 0x32e   : > { %v2226_v27 = vadd.f32 %v2070_v5, %v1541_v26 }
 0x32f   : > { %v1930_v28 = vpop.f32.mrf.mxu1 }
 0x330   : > { %v1547_v30 = vsel %vm218_vm2, %v2226_v27, -inf }
 0x331   : > { %1548 = vmax.xlane.f32.xlu0 %v1547_v30  ;;  %v1544_v31 = vpop.f32.mrf.mxu1 }
 0x332   : > { %v1961_v31 = vld [vmem:[%s2057_s14 + $0x40] ss:$0 sps:$4 sm:$0xff]  }
 0x333   : > { %v1931_v32 = vpop.f32.mrf.mxu1 }
 0x334   : > { %v1962_v32 = vld [vmem:[%s2057_s14 + $0x44] ss:$0 sps:$4 sm:$0xff]  }
 0x36a   : > { %v343_v33 = vpop.xlane.xlu1 %342 }
 0x36b   : > { %v344_v34 = vsub.f32 %v2176_v29, %v343_v33 }
 0x36d   : > { %v345_v36 = vmul.f32 1.442695, %v344_v34 }
 0x36f   : > { %1967 = vpow2.f32 %v345_v36 }
 0x372   : > { %v465_v37 = vpop.xlane.xlu0 %464 }
 0x373   : > { %v466_v38 = vsub.f32 %v2181_v35, %v465_v37 }
 0x375   : > { %v467_v39 = vmul.f32 1.442695, %v466_v38  ;;  %v416_v38 = vld [vmem:[%s2057_s14 + $0x34] sm:$0xf] }
 0x377   : > { %1969 = vpow2.f32 %v467_v39 }
 0x37a   : > { %v585_v5 = vpop.xlane.xlu0 %584 }
 0x37b   : > { %v586_v40 = vsub.f32 %v2186_v41, %v585_v5  ;;  %v1957_v41 = vld [vmem:[%s2057_s14 + $0x34] ss:$0 sps:$4 sm:$0xff]  }
 0x37c   : > { %v2233_v42 = vpop.eup %1967 }
 0x37d   : > { %v587_v43 = vmul.f32 1.442695, %v586_v40  ;;  %v347_v44 = vsel %vm218_vm2, %v2233_v42, 0.0  ;;  %v479_v40 = vsel %vm234_vm3, %v416_v38, 0 }
 0x37e   : > { %348 = vadd.xlane.f32.xlu1 %v347_v44 }
 0x37f   : > { %1971 = vpow2.f32 %v587_v43 }
 0x382   : > { %v706_v49 = vpop.xlane.xlu1 %705 }
 0x383   : > { %v707_v50 = vsub.f32 %v2191_v47, %v706_v49  ;;  %v657_v49 = vld [vmem:[%s2057_s14 + $0x38] sm:$0xf] }
 0x384   : > { %v2237_v29 = vpop.eup %1969 }
 0x385   : > { %v469_v35 = vsel %vm218_vm2, %v2237_v29, 0.0  ;;  %v708_v52 = vmul.f32 1.442695, %v707_v50 }
 0x386   : > { %470 = vadd.xlane.f32.xlu0 %v469_v35 }
 0x387   : > { %1973 = vpow2.f32 %v708_v52 }
 0x38a   : > { %v826_v51 = vpop.xlane.xlu0 %825 }
 0x38b   : > { %v827_v54 = vsub.f32 %v2196_v53, %v826_v51  ;;  %v720_v51 = vsel %vm234_vm3, %v657_v49, 0 }
 0x38c   : > { %v2241_v45 = vpop.eup %1971 }
 0x38d   : > { %v589_v46 = vsel %vm218_vm2, %v2241_v45, 0.0  ;;  %v828_v58 = vmul.f32 1.442695, %v827_v54 }
 0x38e   : > { %590 = vadd.xlane.f32.xlu1 %v589_v46 }
 0x38f   : > { %1975 = vpow2.f32 %v828_v58 }
 0x392   : > { %v947_v55 = vpop.xlane.xlu1 %946 }
 0x393   : > { %v948_v57 = vsub.f32 %v2201_v59, %v947_v55 }
 0x394   : > { %v2253_v47 = vpop.eup %1973 }
 0x395   : > { %v949_v61 = vmul.f32 1.442695, %v948_v57  ;;  %v710_v53 = vsel %vm218_vm2, %v2253_v47, 0.0 }
 0x397   : > { %1977 = vpow2.f32 %v949_v61 }
 0x39a   : > { %v1067_v56 = vpop.xlane.xlu0 %1066 }
 0x39b   : > { %v1068_v60 = vsub.f32 %v2206_v2, %v1067_v56 }
 0x39c   : > { %598 = vrot.lane.b32.xlu0 %v1957_v41, %s2021_s18  ;;  %v2257_v63 = vpop.eup %1975 }
 0x39d   : > { %v1069_v62 = vmul.f32 1.442695, %v1068_v60  ;;  %v830_v1 = vsel %vm218_vm2, %v2257_v63, 0.0 }
 0x39f   : > { %356 = vrot.lane.b32.xlu1 %v1958_v48, %s2021_s18  ;;  %1979 = vpow2.f32 %v1069_v62 }
 0x3a2   : > { %v1188_v10 = vpop.xlane.xlu1 %1187 }
 0x3a3   : > { %v1189_v12 = vsub.f32 %v2211_v9, %v1188_v10 }
 0x3a4   : > { %v2259_v59 = vpop.eup %1977 }
 0x3a5   : > { %v951_v3 = vsel %vm218_vm2, %v2259_v59, 0.0  ;;  %v1190_v14 = vmul.f32 1.442695, %v1189_v12 }
 0x3a7   : > { %1981 = vpow2.f32 %v1190_v14 }
 0x3aa   : > { %v1308_v8 = vpop.xlane.xlu0 %1307 }
 0x3ab   : > { %v1309_v16 = vsub.f32 %v2216_v15, %v1308_v8 }
 0x3ac   : > { %v2263_v2 = vpop.eup %1979 }
 0x3ad   : > { %v1071_v4 = vsel %vm218_vm2, %v2263_v2, 0.0  ;;  %v1310_v19 = vmul.f32 1.442695, %v1309_v16 }
 0x3b2   : > { %v1429_v18 = vpop.xlane.xlu1 %1428 }
 0x3b3   : > { %v1430_v20 = vsub.f32 %v2221_v21, %v1429_v18 }
 0x3b4   : > { %v2277_v23 = vpop.eup %1981 }
 0x3b5   : > { %v1431_v22 = vmul.f32 1.442695, %v1430_v20  ;;  %v1192_v9 = vsel %vm218_vm2, %v2277_v23, 0.0 }
 0x3ba   : > { %v1549_v11 = vpop.xlane.xlu0 %1548 }
 0x3bb   : > { %711 = vadd.xlane.f32.xlu0 %v710_v53  ;;  %v1550_v13 = vsub.f32 %v2226_v27, %v1549_v11  ;;  %v898_v53 = vld [vmem:[%s2057_s14 + $0x3c] sm:$0xf]  ;;  %v1139_v11 = vld [vmem:[%s2057_s14 + $0x40] sm:$0xf] }
 0x3bd   : > { %v1551_v17 = vmul.f32 1.442695, %v1550_v13  ;;  %v1202_v13 = vsel %vm234_vm3, %v1139_v11, 0 }
 0x3bf   : > { %831 = vadd.xlane.f32.xlu0 %v830_v1  ;;  %1983 = vpow2.f32 %v1551_v17 }
 0x3c0   : > { %1985 = vpow2.f32 %v1310_v19 }
 0x3c1   : > { %1987 = vpow2.f32 %v1431_v22 }
 0x3c3   : > { %952 = vadd.xlane.f32.xlu0 %v951_v3  ;;  %1072 = vadd.xlane.f32.xlu1 %v1071_v4  ;;  %v961_v3 = vsel %vm234_vm3, %v898_v53, 0 }
 0x3cc   : > { %v2279_v24 = vpop.eup %1983 }
 0x3cd   : > { %v1553_v15 = vsel %vm218_vm2, %v2279_v24, 0.0  ;;  %v2285_v25 = vpop.eup %1985 }
 0x3ce   : > { %v1312_v21 = vsel %vm218_vm2, %v2285_v25, 0.0  ;;  %v2289_v26 = vpop.eup %1987 }
 0x3cf   : > { %v1433_v27 = vsel %vm218_vm2, %v2289_v26, 0.0 }
 0x3d4   : > { %839 = vrot.lane.b32.xlu1 %v1959_v6, %s2021_s18 }
 0x3d9   : > { %1080 = vrot.lane.b32.xlu0 %v1960_v7, %s2021_s18 }
 0x3f8   : > { %1193 = vadd.xlane.f32.xlu0 %v1192_v9  ;;  %1554 = vadd.xlane.f32.xlu1 %v1553_v15 }
 0x3fc   : > { %1313 = vadd.xlane.f32.xlu0 %v1312_v21  ;;  %v1380_v21 = vld [vmem:[%s2057_s14 + $0x44] sm:$0xf] }
 0x400   : > { %1434 = vadd.xlane.f32.xlu0 %v1433_v27 }
 0x407   : > { %v349_v28 = vpop.xlane.xlu1 %348 }
 0x408   : > { %1989 = vrcp.f32 %v349_v28 }
 0x40f   : > { %v471_v30 = vpop.xlane.xlu0 %470 }
 0x410   : > { %1991 = vrcp.f32 %v471_v30 }
 0x413   : > { %v599_v44 = vpop.permute.xlu0 %598 }
 0x414   : > { %v604_v41 = vsel %vm234_vm3, %v599_v44, 0 }
 0x415   : > { %v1990_v33 = vpop.eup %1989 }
 0x416   : > { %1321 = vrot.lane.b32.xlu0 %v1961_v31, %s2021_s18  ;;  %v351_v36 = vmul.f32 %v1990_v33, %v2233_v42 }
 0x417   : > { %v591_v34 = vpop.xlane.xlu1 %590 }
 0x418   : > { %1993 = vrcp.f32 %v591_v34  ;;  %v352_v5 = vpack.c.bf16 %v351_v36, %v351_v36 }
 0x41a   : > { %1562 = vrot.lane.b32.xlu0 %v1962_v32, %s2021_s18 }
 0x41b   : > { %v357_v37 = vpop.permute.xlu1 %356 }
 0x41c   : > { %v362_v39 = vsel %vm234_vm3, %v357_v37, 0 }
 0x41d   : > { %1813 = vmatpush3.bf16.msra.mxu0 %v362_v39  ;;  %v1992_v43 = vpop.eup %1991 }
 0x41e   : > { %1824 = vmatprep.subr.bf16.mxu0 %v2019_v0  ;;  %v473_v42 = vmul.f32 %v1992_v43, %v2237_v29 }
 0x420   : > { %1815 = vmatmul.mubr.msk.bf16.vlgmr.msra.gmra.mxu0 %vm218_vm2, %v352_v5  ;;  %v474_v35 = vpack.c.bf16 %v473_v42, %v473_v42 }
 0x421   : > { %1825 = vmatpush3.bf16.msra.mxu0 %v479_v40  ;;  %1826 = vmatprep.mubr.msk.bf16.mxu0 %vm2020_vm0, %v2019_v0 }
 0x422   : > { %1836 = vmatprep.subr.bf16.mxu0 %v2019_v0 }
 0x425   : > { %v1994_v46 = vpop.eup %1993 }
 0x426   : > { %v593_v48 = vmul.f32 %v1994_v46, %v2241_v45 }
 0x428   : > { %1827 = vmatmul.mubr.msk.bf16.vlgmr.msra.gmra.mxu0 %vm218_vm2, %v474_v35  ;;  %v594_v50 = vpack.c.bf16 %v593_v48, %v593_v48 }
 0x429   : > { %1837 = vmatpush3.bf16.msra.mxu0 %v604_v41  ;;  %1838 = vmatprep.mubr.msk.bf16.mxu0 %vm2020_vm0, %v2019_v0 }
 0x42a   : > { %1848 = vmatprep.subr.bf16.mxu0 %v2019_v0 }
 0x430   : > { %1839 = vmatmul.mubr.msk.bf16.vlgmr.msra.gmra.mxu0 %vm218_vm2, %v594_v50 }
 0x431   : > { %1849 = vmatpush3.bf16.msra.mxu0 %v720_v51  ;;  %1850 = vmatprep.mubr.msk.bf16.mxu0 %vm2020_vm0, %v2019_v0 }
 0x432   : > { %1860 = vmatprep.subr.bf16.mxu0 %v2019_v0 }
 0x444   : > { %v712_v29 = vpop.xlane.xlu0 %711 }
 0x445   : > { %1995 = vrcp.f32 %v712_v29 }
 0x448   : > { %v832_v52 = vpop.xlane.xlu0 %831 }
 0x449   : > { %1997 = vrcp.f32 %v832_v52 }
 0x44c   : > { %v1073_v45 = vpop.xlane.xlu1 %1072  ;;  %v953_v54 = vpop.xlane.xlu0 %952 }
 0x44d   : > { %1999 = vrcp.f32 %v953_v54 }
 0x44e   : > { %2001 = vrcp.f32 %v1073_v45 }
 0x450   : > { %v840_v56 = vpop.permute.xlu1 %839  ;;  %v1081_v6 = vpop.permute.xlu0 %1080 }
 0x451   : > { %v845_v60 = vsel %vm234_vm3, %v840_v56, 0  ;;  %v1086_v8 = vsel %vm234_vm3, %v1081_v6, 0 }
 0x452   : > { %v1996_v55 = vpop.eup %1995 }
 0x453   : > { %v714_v57 = vmul.f32 %v1996_v55, %v2253_v47 }
 0x455   : > { %v715_v58 = vpack.c.bf16 %v714_v57, %v714_v57 }
 0x456   : > { %v1998_v61 = vpop.eup %1997 }
 0x457   : > { %1851 = vmatmul.mubr.msk.bf16.vlgmr.msra.gmra.mxu0 %vm218_vm2, %v715_v58  ;;  %v834_v62 = vmul.f32 %v1998_v61, %v2257_v63 }
 0x458   : > { %1861 = vmatpush3.bf16.msra.mxu0 %v845_v60  ;;  %1862 = vmatprep.mubr.msk.bf16.mxu0 %vm2020_vm0, %v2019_v0 }
 0x459   : > { %1872 = vmatprep.subr.bf16.mxu0 %v2019_v0  ;;  %v835_v1 = vpack.c.bf16 %v834_v62, %v834_v62 }
 0x45a   : > { %v2000_v47 = vpop.eup %1999 }
 0x45b   : > { %v955_v4 = vmul.f32 %v2000_v47, %v2259_v59  ;;  %v2002_v7 = vpop.eup %2001 }
 0x45c   : > { %v1075_v10 = vmul.f32 %v2002_v7, %v2263_v2 }
 0x45d   : > { %v956_v63 = vpack.c.bf16 %v955_v4, %v955_v4 }
 0x45e   : > { %v1076_v12 = vpack.c.bf16 %v1075_v10, %v1075_v10 }
 0x45f   : > { %1863 = vmatmul.mubr.msk.bf16.vlgmr.msra.gmra.mxu0 %vm218_vm2, %v835_v1 }
 0x460   : > { %1873 = vmatpush3.bf16.msra.mxu0 %v961_v3  ;;  %1874 = vmatprep.mubr.msk.bf16.mxu0 %vm2020_vm0, %v2019_v0 }
 0x461   : > { %1884 = vmatprep.subr.bf16.mxu0 %v2019_v0 }
 0x467   : > { %1875 = vmatmul.mubr.msk.bf16.vlgmr.msra.gmra.mxu0 %vm218_vm2, %v956_v63 }
 0x468   : > { %1885 = vmatpush3.bf16.msra.mxu0 %v1086_v8  ;;  %1886 = vmatprep.mubr.msk.bf16.mxu0 %vm2020_vm0, %v2019_v0 }
 0x469   : > { %1896 = vmatprep.subr.bf16.mxu0 %v2019_v0 }
 0x46f   : > { %1887 = vmatmul.mubr.msk.bf16.vlgmr.msra.gmra.mxu0 %vm218_vm2, %v1076_v12 }
 0x470   : > { %1897 = vmatpush3.bf16.msra.mxu0 %v1202_v13  ;;  %1898 = vmatprep.mubr.msk.bf16.mxu0 %vm2020_vm0, %v2019_v0 }
 0x471   : > { %1908 = vmatprep.subr.bf16.mxu0 %v2019_v0 }
 0x481   : > { %v1194_v59 = vpop.xlane.xlu0 %1193  ;;  %v1555_v9 = vpop.xlane.xlu1 %1554 }
 0x482   : > { %2003 = vrcp.f32 %v1194_v59 }
 0x485   : > { %v1314_v14 = vpop.xlane.xlu0 %1313 }
 0x486   : > { %2005 = vrcp.f32 %v1314_v14 }
 0x489   : > { %v1435_v2 = vpop.xlane.xlu0 %1434 }
 0x48a   : > { %2007 = vrcp.f32 %v1435_v2 }
 0x48b   : > { %2009 = vrcp.f32 %v1555_v9 }
 0x48d   : > { %v1322_v17 = vpop.permute.xlu0 %1321 }
 0x48e   : > { %v1327_v19 = vsel %vm234_vm3, %v1322_v17, 0 }
 0x48f   : > { %v2004_v16 = vpop.eup %2003 }
 0x490   : > { %v1196_v18 = vmul.f32 %v2004_v16, %v2277_v23  ;;  %v1443_v23 = vsel %vm234_vm3, %v1380_v21, 0 }
 0x491   : > { %v1563_v31 = vpop.permute.xlu0 %1562 }
 0x492   : > { %v1197_v20 = vpack.c.bf16 %v1196_v18, %v1196_v18  ;;  %v1568_v32 = vsel %vm234_vm3, %v1563_v31, 0 }
 0x493   : > { %v2006_v22 = vpop.eup %2005 }
 0x494   : > { %1899 = vmatmul.mubr.msk.bf16.vlgmr.msra.gmra.mxu0 %vm218_vm2, %v1197_v20  ;;  %v1316_v15 = vmul.f32 %v2006_v22, %v2285_v25 }
 0x495   : > { %1909 = vmatpush3.bf16.msra.mxu0 %v1327_v19  ;;  %1910 = vmatprep.mubr.msk.bf16.mxu0 %vm2020_vm0, %v2019_v0 }
 0x496   : > { %1920 = vmatprep.subr.bf16.mxu0 %v2019_v0  ;;  %v1317_v27 = vpack.c.bf16 %v1316_v15, %v1316_v15 }
 0x497   : > { %v2008_v28 = vpop.eup %2007 }
 0x498   : > { %v1437_v30 = vmul.f32 %v2008_v28, %v2289_v26  ;;  %v2010_v25 = vpop.eup %2009 }
 0x499   : > { %v1557_v34 = vmul.f32 %v2010_v25, %v2279_v24 }
 0x49a   : > { %v1438_v33 = vpack.c.bf16 %v1437_v30, %v1437_v30 }
 0x49b   : > { %v1558_v36 = vpack.c.bf16 %v1557_v34, %v1557_v34 }
 0x49c   : > { %1911 = vmatmul.mubr.msk.bf16.vlgmr.msra.gmra.mxu0 %vm218_vm2, %v1317_v27 }
 0x49d   : > { %1921 = vmatpush3.bf16.msra.mxu0 %v1443_v23  ;;  %1922 = vmatprep.mubr.msk.bf16.mxu0 %vm2020_vm0, %v2019_v0 }
 0x49e   : > { %1932 = vmatprep.subr.bf16.mxu0 %v2019_v0 }
 0x4a4   : > { %1923 = vmatmul.mubr.msk.bf16.vlgmr.msra.gmra.mxu0 %vm218_vm2, %v1438_v33 }
 0x4a5   : > { %1933 = vmatpush3.bf16.msra.mxu0 %v1568_v32  ;;  %1934 = vmatprep.mubr.msk.bf16.mxu0 %vm2020_vm0, %v2019_v0 }
 0x4ac   : > { %1935 = vmatmul.mubr.msk.bf16.vlgmr.msra.gmra.mxu0 %vm218_vm2, %v1558_v36 }
 0x4e0   : > { %v398_v37 = vpop.f32.mrf.mxu0 }
 0x4e1   : > { %v1740_v38 = vpack.c.bf16 %v398_v37, %v398_v37 }
 0x4e2   : > { %v1816_v26 = vpop.f32.mrf.mxu0 }
 0x4e3   : > { %408 = vrot.lane.b32.xlu0 %v1740_v38, %s2021_s18 }
 0x4e4   : > { %v401_v39 = vpop.f32.mrf.mxu0 }
 0x4e6   : > { %v1817_v5 = vpop.f32.mrf.mxu0 }
 0x4e8   : > { %v515_v40 = vpop.f32.mrf.mxu0 }
 0x4e9   : > { %v521_v43 = vpack.c.bf16 %v515_v40, %v515_v40 }
 0x4ea   : > { %v1828_v42 = vpop.f32.mrf.mxu0 }
 0x4eb   : > { %522 = vst.msk [vmem:[%s2171_s22 + $0x4] sm:$0xf] %vm279_vm4, %v521_v43 }
 0x4ec   : > { %v518_v44 = vpop.f32.mrf.mxu0 }
 0x4ee   : > { %v1829_v0 = vpop.f32.mrf.mxu0 }
 0x4f0   : > { %v640_v35 = vpop.f32.mrf.mxu0 }
 0x4f1   : > { %v1741_v24 = vpack.c.bf16 %v640_v35, %v640_v35 }
 0x4f2   : > { %v1840_v46 = vpop.f32.mrf.mxu0 }
 0x4f3   : > { %650 = vrot.lane.b32.xlu0 %v1741_v24, %s2021_s18 }
 0x4f4   : > { %v643_v41 = vpop.f32.mrf.mxu0 }
 0x4f6   : > { %v1841_v48 = vpop.f32.mrf.mxu0 }
 0x517   : > { %v756_v49 = vpop.f32.mrf.mxu0 }
 0x518   : > { %v762_v50 = vpack.c.bf16 %v756_v49, %v756_v49 }
 0x519   : > { %v1852_v51 = vpop.f32.mrf.mxu0 }
 0x51a   : > { %763 = vst.msk [vmem:[%s2171_s22 + $0x8] sm:$0xf] %vm279_vm4, %v762_v50 }
 0x51b   : > { %v759_v29 = vpop.f32.mrf.mxu0 }
 0x51d   : > { %v1853_v52 = vpop.f32.mrf.mxu0 }
 0x51f   : > { %v881_v45 = vpop.f32.mrf.mxu0 }
 0x520   : > { %v1742_v54 = vpack.c.bf16 %v881_v45, %v881_v45 }
 0x521   : > { %v1864_v55 = vpop.f32.mrf.mxu0 }
 0x522   : > { %891 = vrot.lane.b32.xlu1 %v1742_v54, %s2021_s18 }
 0x523   : > { %v884_v56 = vpop.f32.mrf.mxu0 }
 0x525   : > { %v1865_v57 = vpop.f32.mrf.mxu0 }
 0x527   : > { %v997_v58 = vpop.f32.mrf.mxu0 }
 0x528   : > { %v1003_v60 = vpack.c.bf16 %v997_v58, %v997_v58 }
 0x529   : > { %v1876_v61 = vpop.f32.mrf.mxu0 }
 0x52a   : > { %1004 = vst.msk [vmem:[%s2171_s22 + $0xc] sm:$0xf] %vm279_vm4, %v1003_v60 }
 0x52b   : > { %v1000_v62 = vpop.f32.mrf.mxu0 }
 0x52d   : > { %v1877_v53 = vpop.f32.mrf.mxu0 }
 0x52f   : > { %v1122_v1 = vpop.f32.mrf.mxu0 }
 0x530   : > { %v1743_v3 = vpack.c.bf16 %v1122_v1, %v1122_v1 }
 0x531   : > { %v1888_v47 = vpop.f32.mrf.mxu0 }
 0x532   : > { %1132 = vrot.lane.b32.xlu0 %v1743_v3, %s2021_s18 }
 0x533   : > { %v1125_v4 = vpop.f32.mrf.mxu0 }
 0x535   : > { %v1889_v6 = vpop.f32.mrf.mxu0 }
 0x554   : > { %v1238_v63 = vpop.f32.mrf.mxu0 }
 0x555   : > { %v409_v7 = vpop.permute.xlu0 %408  ;;  %v1244_v8 = vpack.c.bf16 %v1238_v63, %v1238_v63 }
 0x556   : > { %412 = vst.msk [vmem:[%s2171_s22] sm:$0xf] %vm411_vm5, %v409_v7  ;;  %v1900_v10 = vpop.f32.mrf.mxu0 }
 0x557   : > { %1245 = vst.msk [vmem:[%s2171_s22 + $0x10] sm:$0xf] %vm279_vm4, %v1244_v8 }
 0x558   : > { %v1241_v11 = vpop.f32.mrf.mxu0 }
 0x55a   : > { %v1901_v12 = vpop.f32.mrf.mxu0 }
 0x55c   : > { %v1363_v13 = vpop.f32.mrf.mxu0 }
 0x55d   : > { %v1744_v59 = vpack.c.bf16 %v1363_v13, %v1363_v13 }
 0x55e   : > { %v1912_v14 = vpop.f32.mrf.mxu0 }
 0x55f   : > { %1373 = vrot.lane.b32.xlu0 %v1744_v59, %s2021_s18 }
 0x560   : > { %v1366_v2 = vpop.f32.mrf.mxu0 }
 0x562   : > { %v1913_v16 = vpop.f32.mrf.mxu0 }
 0x564   : > { %v1479_v17 = vpop.f32.mrf.mxu0 }
 0x565   : > { %v651_v18 = vpop.permute.xlu0 %650  ;;  %v1485_v19 = vpack.c.bf16 %v1479_v17, %v1479_v17 }
 0x566   : > { %653 = vst.msk [vmem:[%s2171_s22 + $0x4] sm:$0xf] %vm411_vm5, %v651_v18  ;;  %v1924_v20 = vpop.f32.mrf.mxu0 }
 0x567   : > { %1486 = vst.msk [vmem:[%s2171_s22 + $0x14] sm:$0xf] %vm279_vm4, %v1485_v19 }
 0x568   : > { %v1482_v22 = vpop.f32.mrf.mxu0 }
 0x56a   : > { %v1925_v9 = vpop.f32.mrf.mxu0 }
 0x56c   : > { %v1604_v15 = vpop.f32.mrf.mxu0 }
 0x56d   : > { %v1745_v21 = vpack.c.bf16 %v1604_v15, %v1604_v15 }
 0x56e   : > { %v1936_v27 = vpop.f32.mrf.mxu0 }
 0x56f   : > { %1614 = vrot.lane.b32.xlu0 %v1745_v21, %s2021_s18 }
 0x570   : > { %v1607_v23 = vpop.f32.mrf.mxu0 }
 0x572   : > { %v1937_v28 = vpop.f32.mrf.mxu0 }
 0x594   : > { %v892_v30 = vpop.permute.xlu1 %891 }
 0x595   : > { %894 = vst.msk [vmem:[%s2171_s22 + $0x8] sm:$0xf] %vm411_vm5, %v892_v30 }
 0x5a4   : > { %v1133_v31 = vpop.permute.xlu0 %1132 }
 0x5a5   : > { %1135 = vst.msk [vmem:[%s2171_s22 + $0xc] sm:$0xf] %vm411_vm5, %v1133_v31 }
 0x5d1   : > { %v1374_v32 = vpop.permute.xlu0 %1373 }
 0x5d2   : > { %1376 = vst.msk [vmem:[%s2171_s22 + $0x10] sm:$0xf] %vm411_vm5, %v1374_v32 }
 0x5e1   : > { %v1615_v33 = vpop.permute.xlu0 %1614 }
 0x5e2   : > { %1617 = vst.msk [vmem:[%s2171_s22 + $0x14] sm:$0xf] %vm411_vm5, %v1615_v33 }
 0x5e3 PF: > { %s12_s9 = sadd.s32 1, %s2017_s9  }
 0x5e4   : > { %p9_p4 = scmp.ge.s32.totalorder %s12_s9, 4  }
 0x5e6   :  { %11 = sbr.rel (!%p9_p4) target bundleno = 1 (0x1), region = 61 }

// kernel: bert_classifier_forward.19
= control target key start
LH: loop header
LB: loop body
LE: loop exit
PB: predicated region body
PF: predicated region fallthrough
CT: control target
= control target key end

     0   :  { %s1189_s12 = smov 0   ;;  %s1191_s13 = smov 0   ;;  %s1480_s0 = inlined_call_operand.vmem [shape: bf16[16,768], index: 0, kind: input, shape index: {}]   ;;  %s1481_s1 = inlined_call_operand.vmem [shape: bf16[768,768], index: 1, kind: input, shape index: {}]   ;;  %s1482_s2 = inlined_call_operand.vmem [shape: f32[1,768], index: 2, kind: input, shape index: {}]   ;;  %s1483_s3 = inlined_call_operand.vmem [shape: f32[16,768], index: 3, kind: output, shape index: {}]  }
   0x1   :  { %s1193_s14 = smov 0   ;;  %s1195_s15 = smov 0  }
   0x2   :  { %s1197_s16 = smov 0   ;;  %s1199_s17 = smov 0  }
   0x3   :  { %s1201_s18 = smov 0   ;;  %s1203_s19 = smov 0  }
   0x4   :  { %s1205_s20 = smov 0   ;;  %s1207_s21 = smov 0  }
   0x5   :  { %s1209_s22 = smov 0  }
   0x6 LB: > { %s879_s23 = sadd.s32 4294967295, %s1166_s22   ;;  %s25_s24 = sadd.s32 1, %s1158_s20  ;;  %s1166_s22 = sphi %s1209_s22, %s13_s22   ;;  %s1162_s21 = sphi %s1207_s21, %s1504_s21   ;;  %s1158_s20 = sphi %s1205_s20, %s1503_s20   ;;  %s1154_s19 = sphi %s1203_s19, %s1502_s19   ;;  %s1150_s18 = sphi %s1201_s18, %s1501_s18   ;;  %s1146_s17 = sphi %s1199_s17, %s1500_s17   ;;  %s1142_s16 = sphi %s1197_s16, %s1499_s16   ;;  %s1138_s15 = sphi %s1195_s15, %s1498_s15   ;;  %s1134_s14 = sphi %s1193_s14, %s1497_s14   ;;  %s1130_s13 = sphi %s1191_s13, %s1496_s13   ;;  %s1126_s12 = sphi %s1189_s12, %s1495_s12  }
   0x7   : > { %p26_p0 = scmp.ge.s32.totalorder %s25_s24, 3  ;;  %s28_s25 = sadd.s32 1, %s1162_s21 }
   0x8   : > { %s41_s26 = sadd.s32 1, %s1146_s17  ;;  %p48_p1 = scmp.ne.s32.totalorder %s1146_s17, %s1142_s16 }
   0x9   : > { %s1506_s24 = smov (%p26_p0, %s25_s24), 0  ;;  %s1508_s25 = smov (!%p26_p0, %s28_s25), %s1162_s21 }
   0xa   : > { %1486 = sst [smem:[#allocation6_spill]] %s1506_s24  ;;  %s37_s27 = ssub.s32 %s1158_s20, %s1506_s24 }
   0xb   : > { %p49_p2 = scmp.eq.s32.totalorder %s1166_s22, 0  ;;  %p30_p3 = scmp.ge.s32.totalorder %s1508_s25, 3 }
   0xc   : > { %p39_p4 = scmp.eq.s32.totalorder %s37_s27, 0  ;;  %s69_s29 = sadd.s32 1, %s1138_s15 }
   0xd   : > { %p1256_p5 = por %p49_p2, %p48_p1  ;;  %s1510_s25 = smov (%p30_p3, %s1508_s25), 0 }
   0xe   : > { %1488 = sst [smem:[#allocation7_spill]] %s1510_s25  ;;  %s65_s4 = ssub.s32 %s1162_s21, %s1510_s25 }
   0xf   : > { %s1264_s30 = scalar_select %p39_p4, %s1146_s17, %s41_s26  }
  0x10   : > { %p76_p6 = scmp.ne.s32.totalorder %s1138_s15, %s1134_s14  ;;  %s66_s5 = sor.u32 %s65_s4, %s37_s27 }
  0x11   : > { %1489 = sst [smem:[#allocation8_spill]] %s1264_s30  ;;  %p121_p7 = scmp.eq.s32.totalorder %s65_s4, 0 }
  0x12   : > { %p67_p8 = scmp.eq.s32.totalorder %s66_s5, 0  ;;  %p1270_p9 = por %p76_p6, %p49_p2 }
  0x13   : > { %s123_s7 = sadd.s32 1, %s1130_s13  ;;  %p133_p10 = scmp.ne.s32.totalorder %s1130_s13, %s1126_s12 }
  0x14   : > { %s1278_s8 = scalar_select %p67_p8, %s1138_s15, %s69_s29  }
  0x15   : > { %s1281_s9 = scalar_select %p121_p7, %s1130_s13, %s123_s7  }
  0x16   : > { %p134_p11 = scmp.eq.s32.totalorder %s879_s23, 8  ;;  %p882_p13 = scmp.ge.s32.totalorder %s1166_s22, 9 }
  0x18   : > { %p1283_p12 = por %p134_p11, %p133_p10  ;;  %156 = sbr.rel (%p882_p13) target bundleno = 58 (0x3a), region = 16 }
  0x1d   : > { %159 = sbr.rel (!%p1256_p5) target bundleno = 34 (0x22), region = 20  ;;  %s161_s11 = sand.u32 (%p1256_p5), 1, %s1146_s17  }
  0x1e   : > { %s937_s26 = sshll.u32 (%p1256_p5), %s1158_s20, 3  ;;  %s883_s27 = sshll.u32 (%p1256_p5), %s161_s11, 4 }
  0x1f   : > { %s169_s5 = scalar_lea.vmem (%p1256_p5), %s1480_s0, %s937_s26  ;;  %s163_s23 = scalar_lea.vmem (%p1256_p5), [#allocation3], %s883_s27 }
  0x20   : > { %v200_v0 = vld [vmem:[%s169_s5] sm:$0xff] (%p1256_p5)  ;;  %v202_v1 = vld [vmem:[%s169_s5 + $0x18] sm:$0xff] (%p1256_p5) }
  0x21   : > { %201 = vst [vmem:[%s163_s23] sm:$0xff] (%p1256_p5), %v200_v0  ;;  %203 = vst [vmem:[%s163_s23 + $0x8] sm:$0xff] (%p1256_p5), %v202_v1 }
  0x22 PF: > { %209 = sbr.rel (!%p1270_p9) target bundleno = 58 (0x3a), region = 58  ;;  %s211_s28 = sand.u32 (%p1270_p9), 1, %s1138_s15  }
  0x23   : > { %s888_s7 = sshll.u32 (%p1270_p9), %s1162_s21, 1  ;;  %s886_s25 = sshll.u32 (%p1270_p9), %s211_s28, 8 }
  0x24   : > { %s939_s11 = smul.u32 (%p1270_p9), 192, %s1158_s20  ;;  %s1308_s6 = scalar_lea.vmem (%p1270_p9), [#allocation4], %s886_s25 }
  0x26   : > { %s217_s24 = sadd.s32 (%p1270_p9), %s939_s11, %s888_s7 }
  0x27   : > { %s890_s30 = sshll.u32 %s217_s24, 2 }
  0x28   : > { %s1303_s4 = scalar_lea.vmem %s1481_s1, %s890_s30 }
  0x29   : > { %v310_v2 = vld [vmem:[%s1303_s4] sm:$0xff]  ;;  %v312_v3 = vld [vmem:[%s1303_s4 + $0x18] sm:$0xff]  ;;  %v314_v4 = vld [vmem:[%s1303_s4 + $0x30] sm:$0xff] }
  0x2a   : > { %311 = vst [vmem:[%s1308_s6] sm:$0xff] %v310_v2  ;;  %313 = vst [vmem:[%s1308_s6 + $0x8] sm:$0xff] %v312_v3  ;;  %v316_v5 = vld [vmem:[%s1303_s4 + $0x48] sm:$0xff]  ;;  %v318_v6 = vld [vmem:[%s1303_s4 + $0x60] sm:$0xff] }
  0x2b   : > { %315 = vst [vmem:[%s1308_s6 + $0x10] sm:$0xff] %v314_v4  ;;  %v320_v7 = vld [vmem:[%s1303_s4 + $0x78] sm:$0xff]  ;;  %317 = vst [vmem:[%s1308_s6 + $0x18] sm:$0xff] %v316_v5  ;;  %v322_v8 = vld [vmem:[%s1303_s4 + $0x90] sm:$0xff] }
  0x2c   : > { %319 = vst [vmem:[%s1308_s6 + $0x20] sm:$0xff] %v318_v6  ;;  %321 = vst [vmem:[%s1308_s6 + $0x28] sm:$0xff] %v320_v7  ;;  %v324_v9 = vld [vmem:[%s1303_s4 + $0xa8] sm:$0xff]  ;;  %v326_v10 = vld [vmem:[%s1303_s4 + $0xc0] sm:$0xff] }
  0x2d   : > { %323 = vst [vmem:[%s1308_s6 + $0x30] sm:$0xff] %v322_v8  ;;  %325 = vst [vmem:[%s1308_s6 + $0x38] sm:$0xff] %v324_v9  ;;  %v328_v11 = vld [vmem:[%s1303_s4 + $0xd8] sm:$0xff]  ;;  %v330_v12 = vld [vmem:[%s1303_s4 + $0xf0] sm:$0xff] }
  0x2e   : > { %327 = vst [vmem:[%s1308_s6 + $0x40] sm:$0xff] %v326_v10  ;;  %v332_v13 = vld [vmem:[%s1303_s4 + $0x108] sm:$0xff]  ;;  %329 = vst [vmem:[%s1308_s6 + $0x48] sm:$0xff] %v328_v11  ;;  %v334_v14 = vld [vmem:[%s1303_s4 + $0x120] sm:$0xff] }
  0x2f   : > { %331 = vst [vmem:[%s1308_s6 + $0x50] sm:$0xff] %v330_v12  ;;  %333 = vst [vmem:[%s1308_s6 + $0x58] sm:$0xff] %v332_v13  ;;  %v336_v15 = vld [vmem:[%s1303_s4 + $0x138] sm:$0xff]  ;;  %v338_v16 = vld [vmem:[%s1303_s4 + $0x150] sm:$0xff] }
  0x30   : > { %335 = vst [vmem:[%s1308_s6 + $0x60] sm:$0xff] %v334_v14  ;;  %337 = vst [vmem:[%s1308_s6 + $0x68] sm:$0xff] %v336_v15  ;;  %v340_v17 = vld [vmem:[%s1303_s4 + $0x168] sm:$0xff]  ;;  %v342_v18 = vld [vmem:[%s1303_s4 + $0x180] sm:$0xff] }
  0x31   : > { %339 = vst [vmem:[%s1308_s6 + $0x70] sm:$0xff] %v338_v16  ;;  %v344_v19 = vld [vmem:[%s1303_s4 + $0x198] sm:$0xff]  ;;  %341 = vst [vmem:[%s1308_s6 + $0x78] sm:$0xff] %v340_v17  ;;  %v346_v20 = vld [vmem:[%s1303_s4 + $0x1b0] sm:$0xff] }
  0x32   : > { %343 = vst [vmem:[%s1308_s6 + $0x80] sm:$0xff] %v342_v18  ;;  %345 = vst [vmem:[%s1308_s6 + $0x88] sm:$0xff] %v344_v19  ;;  %v348_v21 = vld [vmem:[%s1303_s4 + $0x1c8] sm:$0xff]  ;;  %v350_v22 = vld [vmem:[%s1303_s4 + $0x1e0] sm:$0xff] }
  0x33   : > { %347 = vst [vmem:[%s1308_s6 + $0x90] sm:$0xff] %v346_v20  ;;  %349 = vst [vmem:[%s1308_s6 + $0x98] sm:$0xff] %v348_v21  ;;  %v352_v23 = vld [vmem:[%s1303_s4 + $0x1f8] sm:$0xff]  ;;  %v354_v24 = vld [vmem:[%s1303_s4 + $0x210] sm:$0xff] }
  0x34   : > { %351 = vst [vmem:[%s1308_s6 + $0xa0] sm:$0xff] %v350_v22  ;;  %v356_v25 = vld [vmem:[%s1303_s4 + $0x228] sm:$0xff]  ;;  %353 = vst [vmem:[%s1308_s6 + $0xa8] sm:$0xff] %v352_v23  ;;  %v358_v26 = vld [vmem:[%s1303_s4 + $0x240] sm:$0xff] }
  0x35   : > { %355 = vst [vmem:[%s1308_s6 + $0xb0] sm:$0xff] %v354_v24  ;;  %357 = vst [vmem:[%s1308_s6 + $0xb8] sm:$0xff] %v356_v25  ;;  %v360_v27 = vld [vmem:[%s1303_s4 + $0x258] sm:$0xff]  ;;  %v362_v28 = vld [vmem:[%s1303_s4 + $0x270] sm:$0xff] }
  0x36   : > { %359 = vst [vmem:[%s1308_s6 + $0xc0] sm:$0xff] %v358_v26  ;;  %361 = vst [vmem:[%s1308_s6 + $0xc8] sm:$0xff] %v360_v27  ;;  %v364_v29 = vld [vmem:[%s1303_s4 + $0x288] sm:$0xff]  ;;  %v366_v30 = vld [vmem:[%s1303_s4 + $0x2a0] sm:$0xff] }
  0x37   : > { %363 = vst [vmem:[%s1308_s6 + $0xd0] sm:$0xff] %v362_v28  ;;  %v368_v31 = vld [vmem:[%s1303_s4 + $0x2b8] sm:$0xff]  ;;  %365 = vst [vmem:[%s1308_s6 + $0xd8] sm:$0xff] %v364_v29  ;;  %v370_v32 = vld [vmem:[%s1303_s4 + $0x2d0] sm:$0xff] }
  0x38   : > { %367 = vst [vmem:[%s1308_s6 + $0xe0] sm:$0xff] %v366_v30  ;;  %369 = vst [vmem:[%s1308_s6 + $0xe8] sm:$0xff] %v368_v31  ;;  %v372_v33 = vld [vmem:[%s1303_s4 + $0x2e8] sm:$0xff] }
  0x39   : > { %371 = vst [vmem:[%s1308_s6 + $0xf0] sm:$0xff] %v370_v32  ;;  %373 = vst [vmem:[%s1308_s6 + $0xf8] sm:$0xff] %v372_v33 }
  0x3a PF: > { %p891_p0 = scmp.ge.s32.totalorder %s1166_s22, 1  ;;  %p386_p1 = scmp.lt.s32.totalorder %s1166_s22, 10 }
  0x3c   : > { %p387_p2 = pnand %p891_p0, %p386_p1 }
  0x3d   : > { %s393_s24 = sand.u32 (!%p387_p2), 1, %s1142_s16   ;;  %s400_s25 = sand.u32 (!%p387_p2), 1, %s1134_s14  }
  0x3e   : > { %390 = sbr.rel (%p387_p2) target bundleno = 364 (0x16c), region = 100  ;;  %s1375_s30 = sshll.u32 (!%p387_p2), %s393_s24, 4 }
  0x3f   : > { %s893_s27 = sshll.u32 (!%p387_p2), %s400_s25, 8  ;;  %s427_s5 = sand.u32 (!%p387_p2), 1, %s1126_s12  }
  0x40   : > { %s895_s23 = sshll.u32 (!%p387_p2), %s1154_s19, 1  ;;  %s894_s28 = sshll.u32 (!%p387_p2), %s427_s5, 5 }
  0x41   : > { %p435_p3 = scmp.lt.s32.totalorder (!%p387_p2), %s895_s23, 5  ;;  %s395_s26 = scalar_lea.vmem (!%p387_p2), [#allocation3], %s1375_s30 }
  0x42   : > { %s1386_s4 = scalar_lea.vmem (!%p387_p2), [#allocation4], %s893_s27  ;;  %s1388_s16 = scalar_lea.vmem (!%p387_p2), [#allocation5], %s894_s28 }
  0x43   : > { %s1512_s23 = smov (!%p435_p3, %s895_s23), 5  ;;  %p896_p4 = scmp.ne.s32.totalorder %s1150_s18, 0 }
  0x44   : > { %s437_s29 = scalar_lea.vmem %s1482_s2, %s1512_s23 }
  0x45   : > { %444 = sbr.rel (%p896_p4) target bundleno = 77 (0x4d), region = 112 }
  0x4a   : > { %v1168_v34 = vmov 0.0  }
  0x4b   : > { %445 = vst [vmem:[#allocation2 + $0x10] sm:$0xff] %v1168_v34  ;;  %446 = vst [vmem:[#allocation2] sm:$0xff] %v1168_v34 }
  0x4c   : > { %447 = vst [vmem:[#allocation2 + $0x18] sm:$0xff] %v1168_v34  ;;  %448 = vst [vmem:[#allocation2 + $0x8] sm:$0xff] %v1168_v34 }
  0x4d PF: > { %v1029_v35 = vld [vmem:[%s1386_s4 + $0x74] ss:$8 sps:$4 sm:$0xff]   ;;  %v1031_v36 = vld [vmem:[%s1386_s4 + $0x70] ss:$8 sps:$4 sm:$0xff]   ;;  %v1032_v37 = vld [vmem:[%s1386_s4 + $0x64] ss:$8 sps:$4 sm:$0xff]  }
  0x4e   : > { %657 = vmatprep.subr.bf16.mxu0 %v1029_v35  ;;  %v1034_v38 = vld [vmem:[%s1386_s4 + $0x60] ss:$8 sps:$4 sm:$0xff]   ;;  %v1035_v39 = vld [vmem:[%s1386_s4 + $0x54] ss:$8 sps:$4 sm:$0xff]   ;;  %v1037_v40 = vld [vmem:[%s1386_s4 + $0x50] ss:$8 sps:$4 sm:$0xff]  }
  0x4f   : > { %658 = vmatpush1.bf16.msra.mxu0 %v1031_v36  ;;  %v1038_v41 = vld [vmem:[%s1386_s4 + $0x44] ss:$8 sps:$4 sm:$0xff]   ;;  %v1040_v42 = vld [vmem:[%s1386_s4 + $0x40] ss:$8 sps:$4 sm:$0xff]   ;;  %v1041_v43 = vld [vmem:[%s1386_s4 + $0x34] ss:$8 sps:$4 sm:$0xff]  }
  0x50   : > { %659 = vmatprep.subr.bf16.mxu0 %v1032_v37  ;;  %v1043_v44 = vld [vmem:[%s1386_s4 + $0x30] ss:$8 sps:$4 sm:$0xff]   ;;  %v1044_v45 = vld [vmem:[%s1386_s4 + $0x24] ss:$8 sps:$4 sm:$0xff]   ;;  %v1046_v46 = vld [vmem:[%s1386_s4 + $0x20] ss:$8 sps:$4 sm:$0xff]  }
  0x51   : > { %v1047_v47 = vld [vmem:[%s1386_s4 + $0x14] ss:$8 sps:$4 sm:$0xff]   ;;  %v1049_v49 = vld [vmem:[%s1386_s4 + $0x10] ss:$8 sps:$4 sm:$0xff]   ;;  %v1050_v50 = vld [vmem:[%s1386_s4 + $0x4] ss:$8 sps:$4 sm:$0xff]  }
  0x52   : > { %v1079_v48 = vld [vmem:[%s395_s26 + $0x4] ss:$8 sps:$4 sm:$0xff]   ;;  %v1052_v51 = vld [vmem:[%s1386_s4] ss:$8 sps:$4 sm:$0xff]   ;;  %v1055_v53 = vld [vmem:[%s1386_s4 + $0xf0] ss:$8 sps:$4 sm:$0xff]  }
  0x53   : > { %660 = vmatpush1.bf16.msra.mxu0 %v1034_v38  ;;  %689 = vmatprep.mubr.bf16.mxu0 %v1079_v48  ;;  %v1053_v52 = vld [vmem:[%s1386_s4 + $0xf4] ss:$8 sps:$4 sm:$0xff]   ;;  %v1056_v54 = vld [vmem:[%s1386_s4 + $0xe4] ss:$8 sps:$4 sm:$0xff]   ;;  %v1058_v55 = vld [vmem:[%s1386_s4 + $0xe0] ss:$8 sps:$4 sm:$0xff]  }
  0x54   : > { %661 = vmatprep.subr.bf16.mxu0 %v1035_v39  ;;  %v1059_v56 = vld [vmem:[%s1386_s4 + $0xd4] ss:$8 sps:$4 sm:$0xff]   ;;  %v1061_v57 = vld [vmem:[%s1386_s4 + $0xd0] ss:$8 sps:$4 sm:$0xff]   ;;  %v1062_v58 = vld [vmem:[%s1386_s4 + $0xc4] ss:$8 sps:$4 sm:$0xff]  }
  0x55   : > { %v1064_v59 = vld [vmem:[%s1386_s4 + $0xc0] ss:$8 sps:$4 sm:$0xff]   ;;  %v1065_v60 = vld [vmem:[%s1386_s4 + $0xb4] ss:$8 sps:$4 sm:$0xff]   ;;  %v1067_v61 = vld [vmem:[%s1386_s4 + $0xb0] ss:$8 sps:$4 sm:$0xff]  }
  0x56   : > { %v1068_v62 = vld [vmem:[%s1386_s4 + $0xa4] ss:$8 sps:$4 sm:$0xff]   ;;  %v1070_v63 = vld [vmem:[%s1386_s4 + $0xa0] ss:$8 sps:$4 sm:$0xff]   ;;  %v1071_v0 = vld [vmem:[%s1386_s4 + $0x94] ss:$8 sps:$4 sm:$0xff]  }
  0x57   : > { %662 = vmatpush1.bf16.msra.mxu0 %v1037_v40  ;;  %v1073_v1 = vld [vmem:[%s1386_s4 + $0x90] ss:$8 sps:$4 sm:$0xff]   ;;  %v1074_v2 = vld [vmem:[%s1386_s4 + $0x84] ss:$8 sps:$4 sm:$0xff]   ;;  %v1076_v3 = vld [vmem:[%s1386_s4 + $0x80] ss:$8 sps:$4 sm:$0xff]  }
  0x58   : > { %663 = vmatprep.subr.bf16.mxu0 %v1038_v41  ;;  %v1077_v4 = vld [vmem:[%s395_s26] ss:$8 sps:$4 sm:$0xff]   ;;  %p931_p5 = scmp.ne.s32.totalorder %s1150_s18, 2 }
  0x59   : > { %v449_v5 = vld [vmem:[#allocation2 + $0x10] sm:$0xff]  ;;  %v450_v7 = vld [vmem:[#allocation2] sm:$0xff]  ;;  %v451_v10 = vld [vmem:[#allocation2 + $0x18] sm:$0xff] }
  0x5a   : > { %v452_v13 = vld [vmem:[#allocation2 + $0x8] sm:$0xff] }
  0x5b   : > { %664 = vmatpush1.bf16.msra.mxu0 %v1040_v42 }
  0x5c   : > { %665 = vmatprep.subr.bf16.mxu0 %v1041_v43 }
  0x5f   : > { %666 = vmatpush1.bf16.msra.mxu0 %v1043_v44 }
  0x60   : > { %667 = vmatprep.subr.bf16.mxu0 %v1044_v45 }
  0x63   : > { %668 = vmatpush1.bf16.msra.mxu0 %v1046_v46 }
  0x64   : > { %669 = vmatprep.subr.bf16.mxu0 %v1047_v47 }
  0x67   : > { %670 = vmatpush1.bf16.msra.mxu0 %v1049_v49 }
  0x68   : > { %671 = vmatprep.subr.bf16.mxu0 %v1050_v50 }
  0x6b   : > { %672 = vmatpush1.bf16.msra.mxu0 %v1052_v51 }
  0x6c   : > { %673 = vmatprep.subr.bf16.mxu0 %v1053_v52 }
  0x6f   : > { %674 = vmatpush2.bf16.msra.mxu0 %v1055_v53 }
  0x70   : > { %675 = vmatprep.subr.bf16.mxu0 %v1056_v54 }
  0x73   : > { %676 = vmatpush2.bf16.msra.mxu0 %v1058_v55 }
  0x74   : > { %677 = vmatprep.subr.bf16.mxu0 %v1059_v56 }
  0x77   : > { %678 = vmatpush2.bf16.msra.mxu0 %v1061_v57 }
  0x78   : > { %679 = vmatprep.subr.bf16.mxu0 %v1062_v58 }
  0x7b   : > { %680 = vmatpush2.bf16.msra.mxu0 %v1064_v59 }
  0x7c   : > { %681 = vmatprep.subr.bf16.mxu0 %v1065_v60 }
  0x7f   : > { %682 = vmatpush2.bf16.msra.mxu0 %v1067_v61 }
  0x80   : > { %683 = vmatprep.subr.bf16.mxu0 %v1068_v62 }
  0x83   : > { %684 = vmatpush2.bf16.msra.mxu0 %v1070_v63 }
  0x84   : > { %685 = vmatprep.subr.bf16.mxu0 %v1071_v0 }
  0x87   : > { %686 = vmatpush2.bf16.msra.mxu0 %v1073_v1 }
  0x88   : > { %687 = vmatprep.subr.bf16.mxu0 %v1074_v2 }
  0x8b   : > { %688 = vmatpush2.bf16.msra.mxu0 %v1076_v3 }
  0x8e   : > { %690 = vmatmul.mubr.bf16.vlgmr.msra.gmra.mxu0 %v1077_v4 }
 0x14e   : > { %v691_v6 = vpop.f32.mrf.mxu0 }
 0x14f   : > { %v700_v8 = vadd.f32 %v691_v6, %v449_v5 }
 0x150   : > { %v693_v9 = vpop.f32.mrf.mxu0 }
 0x151   : > { %704 = vst [vmem:[#allocation2 + $0x10] sm:$0xff] %v700_v8  ;;  %v701_v11 = vadd.f32 %v693_v9, %v450_v7 }
 0x152   : > { %v695_v12 = vpop.f32.mrf.mxu0 }
 0x153   : > { %705 = vst [vmem:[#allocation2] sm:$0xff] %v701_v11  ;;  %v702_v14 = vadd.f32 %v695_v12, %v451_v10  ;;  %711 = sbr.rel (%p931_p5) target bundleno = 356 (0x164), region = 116 }
 0x154   : > { %v697_v15 = vpop.f32.mrf.mxu0 }
 0x155   : > { %706 = vst [vmem:[#allocation2 + $0x18] sm:$0xff] %v702_v14  ;;  %v703_v16 = vadd.f32 %v697_v15, %v452_v13 }
 0x157   : > { %707 = vst [vmem:[#allocation2 + $0x8] sm:$0xff] %v703_v16 }
 0x158   : > { %v718_v17 = vlaneseq  ;;  %v716_v19 = vld [vmem:[%s437_s29] sm:$0x3]  ;;  %v712_v20 = vld [vmem:[#allocation2 + $0x10] sm:$0xff] }
 0x15a   : > { %v719_v18 = vshrl.u32 %v718_v17, 7  ;;  %v713_v23 = vld [vmem:[#allocation2] sm:$0xff] }
 0x15c   : > { %v720_v21 = vsub.s32 0, %v719_v18  ;;  %v724_v22 = vsub.s32 1, %v719_v18  ;;  %v714_v24 = vld [vmem:[#allocation2 + $0x18] sm:$0xff] }
 0x15e   : > { %v715_v25 = vld [vmem:[#allocation2 + $0x8] sm:$0xff]  ;;  %v721_v26 = vrot.slane %v716_v19, %v720_v21  ;;  %v725_v27 = vrot.slane %v716_v19, %v724_v22 }
 0x160   : > { %v728_v28 = vadd.f32 %v721_v26, %v712_v20  ;;  %v729_v29 = vadd.f32 %v725_v27, %v713_v23  ;;  %v730_v30 = vadd.f32 %v721_v26, %v714_v24  ;;  %v731_v31 = vadd.f32 %v725_v27, %v715_v25 }
 0x162   : > { %732 = vst [vmem:[%s1388_s16] sm:$0xff] %v728_v28  ;;  %733 = vst [vmem:[%s1388_s16 + $0x8] sm:$0xff] %v729_v29 }
 0x163   : > { %734 = vst [vmem:[%s1388_s16 + $0x10] sm:$0xff] %v730_v30  ;;  %735 = vst [vmem:[%s1388_s16 + $0x18] sm:$0xff] %v731_v31 }
 0x164 PF: > { %742 = sbr.rel (!%p1283_p12) target bundleno = 364 (0x16c), region = 120  ;;  %s938_s18 = sshll.u32 (%p1283_p12), %s1154_s19, 4 }
 0x165   : > { %s748_s25 = scalar_lea.vmem (%p1283_p12), %s1483_s3, %s938_s18 }
 0x169   : > { %v761_v32 = vld [vmem:[%s1388_s16] sm:$0xff]  ;;  %v763_v33 = vld [vmem:[%s1388_s16 + $0x8] sm:$0xff] }
 0x16a   : > { %v765_v34 = vld [vmem:[%s1388_s16 + $0x10] sm:$0xff]  ;;  %v767_v35 = vld [vmem:[%s1388_s16 + $0x18] sm:$0xff]  ;;  %762 = vst [vmem:[%s748_s25] sm:$0xff] %v761_v32  ;;  %764 = vst [vmem:[%s748_s25 + $0x8] sm:$0xff] %v763_v33 }
 0x16b   : > { %766 = vst [vmem:[%s748_s25 + $0x30] sm:$0xff] %v765_v34  ;;  %768 = vst [vmem:[%s748_s25 + $0x38] sm:$0xff] %v767_v35 }
 0x16c PF: > { %s13_s22 = sadd.s32 1, %s1166_s22   ;;  %s1492_s19 = sld [smem:[#allocation8_spill]] }
 0x16d   : > { %p10_p6 = scmp.ge.s32.totalorder %s13_s22, 11   ;;  %s1493_s10 = sld [smem:[#allocation6_spill]] }
 0x16e   : > { %s1494_s30 = sld [smem:[#allocation7_spill]]  ;;  %s1495_s12 = smov %s1130_s13 }
 0x16f   : > { %s1496_s13 = smov %s1281_s9  ;;  %s1497_s14 = smov %s1138_s15 }
 0x170   : > { %s1498_s15 = smov %s1278_s8  ;;  %s1499_s16 = smov %s1146_s17 }
 0x171   : > { %s1501_s18 = smov %s1158_s20  ;;  %12 = sbr.rel (!%p10_p6) target bundleno = 6 (0x6), region = 185 }
 0x172   : > { %s1500_s17 = smov %s1492_s19  ;;  %s1502_s19 = smov %s1162_s21 }
 0x173   : > { %s1503_s20 = smov %s1493_s10 }
 0x174   : > { %s1504_s21 = smov %s1494_s30 }

// kernel: bert_classifier_forward.20
= control target key start
LH: loop header
LB: loop body
LE: loop exit
PB: predicated region body
PF: predicated region fallthrough
CT: control target
= control target key end

     0   :  { %s428_s0 = inlined_call_operand.vmem [shape: f32[16,768], index: 0, kind: input, shape index: {}]   ;;  %s429_s1 = inlined_call_operand.vmem [shape: f32[16,768], index: 1, kind: input, shape index: {}]   ;;  %s430_s2 = inlined_call_operand.vmem [shape: f32[1,768], index: 2, kind: input, shape index: {}]   ;;  %s431_s3 = inlined_call_operand.vmem [shape: f32[1,768], index: 3, kind: input, shape index: {}]   ;;  %s432_s4 = inlined_call_operand.vmem [shape: f32[16,768], index: 4, kind: output, shape index: {}]  }
   0x1   :  { %v17_v0 = vld [vmem:[%s428_s0] sm:$0xff]  ;;  %v18_v1 = vld [vmem:[%s428_s0 + $0x8] sm:$0xff]  ;;  %v19_v2 = vld [vmem:[%s428_s0 + $0x10] sm:$0xff] }
   0x2   :  { %v20_v3 = vld [vmem:[%s428_s0 + $0x18] sm:$0xff]  ;;  %v29_v4 = vld [vmem:[%s429_s1] sm:$0xff]  ;;  %v30_v5 = vld [vmem:[%s429_s1 + $0x8] sm:$0xff] }
   0x3   :  { %v31_v6 = vld [vmem:[%s429_s1 + $0x10] sm:$0xff]  ;;  %v21_v7 = vld [vmem:[%s428_s0 + $0x20] sm:$0xff]  ;;  %v32_v8 = vld [vmem:[%s429_s1 + $0x18] sm:$0xff]  ;;  %v41_v10 = vadd.f32 %v29_v4, %v17_v0  ;;  %v42_v11 = vadd.f32 %v30_v5, %v18_v1 }
   0x4   :  { %v33_v9 = vld [vmem:[%s429_s1 + $0x20] sm:$0xff]  ;;  %v43_v12 = vadd.f32 %v31_v6, %v19_v2  ;;  %v23_v13 = vld [vmem:[%s428_s0 + $0x30] sm:$0xff]  ;;  %v24_v14 = vld [vmem:[%s428_s0 + $0x38] sm:$0xff]  ;;  %v44_v18 = vadd.f32 %v32_v8, %v20_v3 }
   0x5   :  { %v25_v15 = vld [vmem:[%s428_s0 + $0x40] sm:$0xff]  ;;  %v22_v16 = vld [vmem:[%s428_s0 + $0x28] sm:$0xff]  ;;  %v53_v19 = vadd.f32 %v42_v11, %v41_v10  ;;  %v45_v21 = vadd.f32 %v33_v9, %v21_v7  ;;  %v35_v22 = vld [vmem:[%s429_s1 + $0x30] sm:$0xff] }
   0x6   :  { %v34_v17 = vld [vmem:[%s429_s1 + $0x28] sm:$0xff]  ;;  %v36_v23 = vld [vmem:[%s429_s1 + $0x38] sm:$0xff]  ;;  %v37_v24 = vld [vmem:[%s429_s1 + $0x40] sm:$0xff]  ;;  %v47_v27 = vadd.f32 %v35_v22, %v23_v13 }
   0x7   :  { %v26_v20 = vld [vmem:[%s428_s0 + $0x48] sm:$0xff]  ;;  %v54_v25 = vadd.f32 %v53_v19, %v43_v12  ;;  %v48_v28 = vadd.f32 %v36_v23, %v24_v14  ;;  %v49_v29 = vadd.f32 %v37_v24, %v25_v15  ;;  %v27_v30 = vld [vmem:[%s428_s0 + $0x50] sm:$0xff]  ;;  %v46_v32 = vadd.f32 %v34_v17, %v22_v16  ;;  %v28_v36 = vld [vmem:[%s428_s0 + $0x58] sm:$0xff] }
   0x8   :  { %v38_v26 = vld [vmem:[%s429_s1 + $0x48] sm:$0xff]  ;;  %v39_v31 = vld [vmem:[%s429_s1 + $0x50] sm:$0xff]  ;;  %v40_v37 = vld [vmem:[%s429_s1 + $0x58] sm:$0xff]  ;;  %v128_v23 = vlaneseq }
   0x9   :  { %v55_v33 = vadd.f32 %v54_v25, %v44_v18  ;;  %v50_v34 = vadd.f32 %v38_v26, %v26_v20  ;;  %v60_v35 = vadd.f32 %v48_v28, %v47_v27  ;;  %v51_v39 = vadd.f32 %v39_v31, %v27_v30  ;;  %v126_v30 = vld [vmem:[%s430_s2] sm:$0x3f] }
   0xa   :  { %v52_v42 = vadd.f32 %v40_v37, %v28_v36 }
   0xb   :  { %v56_v38 = vadd.f32 %v55_v33, %v45_v21  ;;  %v61_v40 = vadd.f32 %v60_v35, %v49_v29  ;;  %v170_v35 = vld [vmem:[%s431_s3] sm:$0x3f] }
   0xd   :  { %v57_v41 = vadd.f32 %v56_v38, %v46_v32  ;;  %v62_v43 = vadd.f32 %v61_v40, %v50_v34 }
   0xf   :  { %58 = vadd.xlane.f32.xlu0 %v57_v41  ;;  %v63_v44 = vadd.f32 %v62_v43, %v51_v39 }
  0x11   :  { %v64_v45 = vadd.f32 %v63_v44, %v52_v42 }
  0x13   :  { %65 = vadd.xlane.f32.xlu0 %v64_v45 }
  0x98   :  { %v59_v46 = vpop.xlane.xlu0 %58 }
  0x99   :  { %v68_v47 = vmul.f32 0.0013020834, %v59_v46 }
  0x9b   :  { %v331_v48 = vsub.f32 %v41_v10, %v68_v47  ;;  %v333_v49 = vsub.f32 %v42_v11, %v68_v47  ;;  %v335_v50 = vsub.f32 %v43_v12, %v68_v47  ;;  %v337_v52 = vsub.f32 %v44_v18, %v68_v47 }
  0x9c   :  { %v66_v51 = vpop.xlane.xlu0 %65  ;;  %v343_v56 = vsub.f32 %v45_v21, %v68_v47  ;;  %v75_v62 = vsub.f32 %v46_v32, %v68_v47 }
  0x9d   :  { %v69_v53 = vmul.f32 0.0013020834, %v66_v51  ;;  %v82_v54 = vmul.f32 %v331_v48, %v331_v48  ;;  %v83_v55 = vmul.f32 %v333_v49, %v333_v49  ;;  %v84_v57 = vmul.f32 %v335_v50, %v335_v50 }
  0x9e   :  { %v85_v63 = vmul.f32 %v337_v52, %v337_v52  ;;  %v86_v4 = vmul.f32 %v343_v56, %v343_v56  ;;  %v87_v9 = vmul.f32 %v75_v62, %v75_v62 }
  0x9f   :  { %v94_v58 = vadd.f32 %v83_v55, %v82_v54  ;;  %v347_v59 = vsub.f32 %v47_v27, %v69_v53  ;;  %v349_v60 = vsub.f32 %v48_v28, %v69_v53  ;;  %v351_v61 = vsub.f32 %v49_v29, %v69_v53 }
  0xa0   :  { %v355_v1 = vsub.f32 %v50_v34, %v69_v53  ;;  %v363_v6 = vsub.f32 %v51_v39, %v69_v53  ;;  %v367_v11 = vsub.f32 %v52_v42, %v69_v53  ;;  %v129_v27 = vshrl.u32 %v128_v23, 7 }
  0xa1   :  { %v95_v0 = vadd.f32 %v94_v58, %v84_v57  ;;  %v88_v2 = vmul.f32 %v347_v59, %v347_v59  ;;  %v89_v3 = vmul.f32 %v349_v60, %v349_v60  ;;  %v90_v7 = vmul.f32 %v351_v61, %v351_v61 }
  0xa2   :  { %v91_v12 = vmul.f32 %v355_v1, %v355_v1  ;;  %v92_v15 = vmul.f32 %v363_v6, %v363_v6  ;;  %v93_v17 = vmul.f32 %v367_v11, %v367_v11  ;;  %v130_v28 = vsub.s32 0, %v129_v27 }
  0xa3   :  { %v96_v5 = vadd.f32 %v95_v0, %v85_v63  ;;  %v101_v8 = vadd.f32 %v89_v3, %v88_v2  ;;  %v134_v29 = vsub.s32 1, %v129_v27  ;;  %v138_v31 = vsub.s32 2, %v129_v27 }
  0xa4   :  { %v142_v32 = vsub.s32 3, %v129_v27  ;;  %v146_v33 = vsub.s32 4, %v129_v27  ;;  %v150_v34 = vsub.s32 5, %v129_v27  ;;  %v131_v36 = vrot.slane %v126_v30, %v130_v28 }
  0xa5   :  { %v97_v10 = vadd.f32 %v96_v5, %v86_v4  ;;  %v102_v13 = vadd.f32 %v101_v8, %v90_v7  ;;  %v135_v37 = vrot.slane %v126_v30, %v134_v29  ;;  %v139_v38 = vrot.slane %v126_v30, %v138_v31 }
  0xa6   :  { %v143_v39 = vrot.slane %v126_v30, %v142_v32  ;;  %v147_v40 = vrot.slane %v126_v30, %v146_v33  ;;  %v151_v41 = vrot.slane %v126_v30, %v150_v34  ;;  %v175_v43 = vrot.slane %v170_v35, %v130_v28 }
  0xa7   :  { %v98_v14 = vadd.f32 %v97_v10, %v87_v9  ;;  %v103_v16 = vadd.f32 %v102_v13, %v91_v12  ;;  %v179_v44 = vrot.slane %v170_v35, %v134_v29  ;;  %v183_v45 = vrot.slane %v170_v35, %v138_v31 }
  0xa8   :  { %v187_v46 = vrot.slane %v170_v35, %v142_v32  ;;  %v191_v55 = vrot.slane %v170_v35, %v146_v33  ;;  %v195_v57 = vrot.slane %v170_v35, %v150_v34 }
  0xa9   :  { %99 = vadd.xlane.f32.xlu1 %v98_v14  ;;  %v104_v18 = vadd.f32 %v103_v16, %v92_v15 }
  0xab   :  { %v105_v19 = vadd.f32 %v104_v18, %v93_v17 }
  0xad   :  { %106 = vadd.xlane.f32.xlu1 %v105_v19 }
 0x132   :  { %v100_v20 = vpop.xlane.xlu1 %99 }
 0x133   :  { %v108_v21 = vmul.f32 0.0013020834, %v100_v20 }
 0x135   :  { %v110_v22 = vadd.f32 1e-12, %v108_v21 }
 0x136   :  { %v107_v24 = vpop.xlane.xlu1 %106 }
 0x137   :  { %230 = vrsqrt.f32 %v110_v22  ;;  %v109_v25 = vmul.f32 0.0013020834, %v107_v24 }
 0x139   :  { %v111_v26 = vadd.f32 1e-12, %v109_v25 }
 0x13b   :  { %232 = vrsqrt.f32 %v111_v26 }
 0x144   :  { %v231_v42 = vpop.eup %230 }
 0x145   :  { %v114_v47 = vmul.f32 %v231_v42, %v331_v48  ;;  %v115_v51 = vmul.f32 %v231_v42, %v333_v49  ;;  %v116_v53 = vmul.f32 %v231_v42, %v335_v50  ;;  %v117_v54 = vmul.f32 %v231_v42, %v337_v52 }
 0x146   :  { %v118_v58 = vmul.f32 %v231_v42, %v343_v56  ;;  %v119_v63 = vmul.f32 %v231_v42, %v75_v62 }
 0x147   :  { %v158_v0 = vmul.f32 %v131_v36, %v114_v47  ;;  %v159_v2 = vmul.f32 %v135_v37, %v115_v51  ;;  %v160_v3 = vmul.f32 %v139_v38, %v116_v53  ;;  %v161_v4 = vmul.f32 %v143_v39, %v117_v54 }
 0x148   :  { %v233_v5 = vpop.eup %232  ;;  %v162_v7 = vmul.f32 %v147_v40, %v118_v58  ;;  %v163_v8 = vmul.f32 %v151_v41, %v119_v63 }
 0x149   :  { %v202_v9 = vadd.f32 %v175_v43, %v158_v0  ;;  %v203_v48 = vadd.f32 %v179_v44, %v159_v2  ;;  %v204_v10 = vadd.f32 %v183_v45, %v160_v3  ;;  %v205_v49 = vadd.f32 %v187_v46, %v161_v4 }
 0x14a   :  { %v206_v12 = vadd.f32 %v191_v55, %v162_v7  ;;  %v207_v50 = vadd.f32 %v195_v57, %v163_v8  ;;  %v120_v52 = vmul.f32 %v233_v5, %v347_v59  ;;  %v121_v13 = vmul.f32 %v233_v5, %v349_v60 }
 0x14b   :  { %214 = vst [vmem:[%s432_s4] sm:$0xff] %v202_v9  ;;  %215 = vst [vmem:[%s432_s4 + $0x8] sm:$0xff] %v203_v48  ;;  %v122_v56 = vmul.f32 %v233_v5, %v351_v61  ;;  %v123_v59 = vmul.f32 %v233_v5, %v355_v1  ;;  %v124_v60 = vmul.f32 %v233_v5, %v363_v6 }
 0x14c   :  { %216 = vst [vmem:[%s432_s4 + $0x10] sm:$0xff] %v204_v10  ;;  %217 = vst [vmem:[%s432_s4 + $0x18] sm:$0xff] %v205_v49  ;;  %v125_v62 = vmul.f32 %v233_v5, %v367_v11  ;;  %v164_v14 = vmul.f32 %v131_v36, %v120_v52  ;;  %v165_v15 = vmul.f32 %v135_v37, %v121_v13 }
 0x14d   :  { %218 = vst [vmem:[%s432_s4 + $0x20] sm:$0xff] %v206_v12  ;;  %219 = vst [vmem:[%s432_s4 + $0x28] sm:$0xff] %v207_v50  ;;  %v166_v16 = vmul.f32 %v139_v38, %v122_v56  ;;  %v167_v17 = vmul.f32 %v143_v39, %v123_v59  ;;  %v168_v18 = vmul.f32 %v147_v40, %v124_v60 }
 0x14e   :  { %v169_v61 = vmul.f32 %v151_v41, %v125_v62  ;;  %v208_v19 = vadd.f32 %v175_v43, %v164_v14  ;;  %v209_v1 = vadd.f32 %v179_v44, %v165_v15 }
 0x14f   :  { %v210_v20 = vadd.f32 %v183_v45, %v166_v16  ;;  %v211_v6 = vadd.f32 %v187_v46, %v167_v17  ;;  %v212_v21 = vadd.f32 %v191_v55, %v168_v18 }
 0x150   :  { %v213_v11 = vadd.f32 %v195_v57, %v169_v61  ;;  %220 = vst [vmem:[%s432_s4 + $0x30] sm:$0xff] %v208_v19  ;;  %221 = vst [vmem:[%s432_s4 + $0x38] sm:$0xff] %v209_v1 }
 0x151   :  { %222 = vst [vmem:[%s432_s4 + $0x40] sm:$0xff] %v210_v20  ;;  %223 = vst [vmem:[%s432_s4 + $0x48] sm:$0xff] %v211_v6 }
 0x152   :  { %224 = vst [vmem:[%s432_s4 + $0x50] sm:$0xff] %v212_v21  ;;  %225 = vst [vmem:[%s432_s4 + $0x58] sm:$0xff] %v213_v11 }

// kernel: bert_classifier_forward.21
= control target key start
LH: loop header
LB: loop body
LE: loop exit
PB: predicated region body
PF: predicated region fallthrough
CT: control target
= control target key end

     0   :  { %s1261_s12 = smov 0   ;;  %s1263_s13 = smov 0   ;;  %s1548_s0 = inlined_call_operand.vmem [shape: bf16[16,768], index: 0, kind: input, shape index: {}]   ;;  %s1549_s1 = inlined_call_operand.vmem [shape: bf16[768,3072], index: 1, kind: input, shape index: {}]   ;;  %s1550_s2 = inlined_call_operand.vmem [shape: f32[1,3072], index: 2, kind: input, shape index: {}]   ;;  %s1551_s3 = inlined_call_operand.vmem [shape: bf16[16,3072], index: 3, kind: output, shape index: {}]  }
   0x1   :  { %s1265_s14 = smov 0   ;;  %s1267_s15 = smov 0  }
   0x2   :  { %s1269_s16 = smov 0   ;;  %s1271_s17 = smov 0  }
   0x3   :  { %s1273_s18 = smov 0   ;;  %s1275_s19 = smov 0  }
   0x4   :  { %s1277_s20 = smov 0   ;;  %s1279_s21 = smov 0  }
   0x5   :  { %s1281_s22 = smov 0  }
   0x6 LB: > { %s939_s23 = sadd.s32 4294967295, %s1238_s22   ;;  %s25_s24 = sadd.s32 1, %s1230_s20  ;;  %s1238_s22 = sphi %s1281_s22, %s13_s22   ;;  %s1234_s21 = sphi %s1279_s21, %s1572_s21   ;;  %s1230_s20 = sphi %s1277_s20, %s1571_s20   ;;  %s1226_s19 = sphi %s1275_s19, %s1570_s19   ;;  %s1222_s18 = sphi %s1273_s18, %s1569_s18   ;;  %s1218_s17 = sphi %s1271_s17, %s1568_s17   ;;  %s1214_s16 = sphi %s1269_s16, %s1567_s16   ;;  %s1210_s15 = sphi %s1267_s15, %s1566_s15   ;;  %s1206_s14 = sphi %s1265_s14, %s1565_s14   ;;  %s1202_s13 = sphi %s1263_s13, %s1564_s13   ;;  %s1198_s12 = sphi %s1261_s12, %s1563_s12  }
   0x7   : > { %p26_p0 = scmp.ge.s32.totalorder %s25_s24, 3  ;;  %s28_s25 = sadd.s32 1, %s1234_s21 }
   0x8   : > { %s41_s26 = sadd.s32 1, %s1218_s17  ;;  %p48_p1 = scmp.ne.s32.totalorder %s1218_s17, %s1214_s16 }
   0x9   : > { %s1574_s24 = smov (%p26_p0, %s25_s24), 0  ;;  %s1576_s25 = smov (!%p26_p0, %s28_s25), %s1234_s21 }
   0xa   : > { %1554 = sst [smem:[#allocation6_spill]] %s1574_s24  ;;  %s37_s27 = ssub.s32 %s1230_s20, %s1574_s24 }
   0xb   : > { %p49_p2 = scmp.eq.s32.totalorder %s1238_s22, 0  ;;  %p30_p3 = scmp.ge.s32.totalorder %s1576_s25, 12 }
   0xc   : > { %p39_p4 = scmp.eq.s32.totalorder %s37_s27, 0  ;;  %s69_s29 = sadd.s32 1, %s1210_s15 }
   0xd   : > { %p1328_p5 = por %p49_p2, %p48_p1  ;;  %s1578_s25 = smov (%p30_p3, %s1576_s25), 0 }
   0xe   : > { %1556 = sst [smem:[#allocation7_spill]] %s1578_s25  ;;  %s65_s4 = ssub.s32 %s1234_s21, %s1578_s25 }
   0xf   : > { %s1336_s30 = scalar_select %p39_p4, %s1218_s17, %s41_s26  }
  0x10   : > { %p76_p6 = scmp.ne.s32.totalorder %s1210_s15, %s1206_s14  ;;  %s66_s5 = sor.u32 %s65_s4, %s37_s27 }
  0x11   : > { %1557 = sst [smem:[#allocation8_spill]] %s1336_s30  ;;  %p121_p7 = scmp.eq.s32.totalorder %s65_s4, 0 }
  0x12   : > { %p67_p8 = scmp.eq.s32.totalorder %s66_s5, 0  ;;  %p1342_p9 = por %p76_p6, %p49_p2 }
  0x13   : > { %s123_s7 = sadd.s32 1, %s1202_s13  ;;  %p133_p10 = scmp.ne.s32.totalorder %s1202_s13, %s1198_s12 }
  0x14   : > { %s1350_s8 = scalar_select %p67_p8, %s1210_s15, %s69_s29  }
  0x15   : > { %s1353_s9 = scalar_select %p121_p7, %s1202_s13, %s123_s7  }
  0x16   : > { %p134_p11 = scmp.eq.s32.totalorder %s939_s23, 35  ;;  %p942_p13 = scmp.ge.s32.totalorder %s1238_s22, 36 }
  0x18   : > { %p1355_p12 = por %p134_p11, %p133_p10  ;;  %156 = sbr.rel (%p942_p13) target bundleno = 74 (0x4a), region = 16 }
  0x1d   : > { %159 = sbr.rel (!%p1328_p5) target bundleno = 34 (0x22), region = 20  ;;  %s161_s11 = sand.u32 (%p1328_p5), 1, %s1218_s17  }
  0x1e   : > { %s999_s26 = sshll.u32 (%p1328_p5), %s1230_s20, 3  ;;  %s943_s27 = sshll.u32 (%p1328_p5), %s161_s11, 4 }
  0x1f   : > { %s169_s5 = scalar_lea.vmem (%p1328_p5), %s1548_s0, %s999_s26  ;;  %s163_s23 = scalar_lea.vmem (%p1328_p5), [#allocation3], %s943_s27 }
  0x20   : > { %v200_v0 = vld [vmem:[%s169_s5] sm:$0xff] (%p1328_p5)  ;;  %v202_v1 = vld [vmem:[%s169_s5 + $0x18] sm:$0xff] (%p1328_p5) }
  0x21   : > { %201 = vst [vmem:[%s163_s23] sm:$0xff] (%p1328_p5), %v200_v0  ;;  %203 = vst [vmem:[%s163_s23 + $0x8] sm:$0xff] (%p1328_p5), %v202_v1 }
  0x22 PF: > { %209 = sbr.rel (!%p1342_p9) target bundleno = 74 (0x4a), region = 58  ;;  %s211_s28 = sand.u32 (%p1342_p9), 1, %s1210_s15  }
  0x23   : > { %s948_s7 = sshll.u32 (%p1342_p9), %s1234_s21, 1  ;;  %s946_s25 = sshll.u32 (%p1342_p9), %s211_s28, 8 }
  0x24   : > { %s1003_s11 = smul.u32 (%p1342_p9), 768, %s1230_s20  ;;  %s1380_s6 = scalar_lea.vmem (%p1342_p9), [#allocation4], %s946_s25 }
  0x26   : > { %s217_s24 = sadd.s32 (%p1342_p9), %s1003_s11, %s948_s7 }
  0x27   : > { %s950_s30 = sshll.u32 %s217_s24, 2 }
  0x28   : > { %s1375_s4 = scalar_lea.vmem %s1549_s1, %s950_s30 }
  0x29   : > { %v310_v2 = vld [vmem:[%s1375_s4] sm:$0xff] }
  0x2a   : > { %v312_v3 = vld [vmem:[%s1375_s4 + $0x60] sm:$0xff]  ;;  %311 = vst [vmem:[%s1380_s6] sm:$0xff] %v310_v2 }
  0x2b   : > { %v314_v4 = vld [vmem:[%s1375_s4 + $0xc0] sm:$0xff]  ;;  %313 = vst [vmem:[%s1380_s6 + $0x8] sm:$0xff] %v312_v3 }
  0x2c   : > { %315 = vst [vmem:[%s1380_s6 + $0x10] sm:$0xff] %v314_v4  ;;  %v316_v5 = vld [vmem:[%s1375_s4 + $0x120] sm:$0xff] }
  0x2d   : > { %v318_v6 = vld [vmem:[%s1375_s4 + $0x180] sm:$0xff]  ;;  %317 = vst [vmem:[%s1380_s6 + $0x18] sm:$0xff] %v316_v5 }
  0x2e   : > { %v320_v7 = vld [vmem:[%s1375_s4 + $0x1e0] sm:$0xff]  ;;  %319 = vst [vmem:[%s1380_s6 + $0x20] sm:$0xff] %v318_v6 }
  0x2f   : > { %321 = vst [vmem:[%s1380_s6 + $0x28] sm:$0xff] %v320_v7  ;;  %v322_v8 = vld [vmem:[%s1375_s4 + $0x240] sm:$0xff] }
  0x30   : > { %v324_v9 = vld [vmem:[%s1375_s4 + $0x2a0] sm:$0xff]  ;;  %323 = vst [vmem:[%s1380_s6 + $0x30] sm:$0xff] %v322_v8 }
  0x31   : > { %v326_v10 = vld [vmem:[%s1375_s4 + $0x300] sm:$0xff]  ;;  %325 = vst [vmem:[%s1380_s6 + $0x38] sm:$0xff] %v324_v9 }
  0x32   : > { %327 = vst [vmem:[%s1380_s6 + $0x40] sm:$0xff] %v326_v10  ;;  %v328_v11 = vld [vmem:[%s1375_s4 + $0x360] sm:$0xff] }
  0x33   : > { %v330_v12 = vld [vmem:[%s1375_s4 + $0x3c0] sm:$0xff]  ;;  %329 = vst [vmem:[%s1380_s6 + $0x48] sm:$0xff] %v328_v11 }
  0x34   : > { %v332_v13 = vld [vmem:[%s1375_s4 + $0x420] sm:$0xff]  ;;  %331 = vst [vmem:[%s1380_s6 + $0x50] sm:$0xff] %v330_v12 }
  0x35   : > { %333 = vst [vmem:[%s1380_s6 + $0x58] sm:$0xff] %v332_v13  ;;  %v334_v14 = vld [vmem:[%s1375_s4 + $0x480] sm:$0xff] }
  0x36   : > { %v336_v15 = vld [vmem:[%s1375_s4 + $0x4e0] sm:$0xff]  ;;  %335 = vst [vmem:[%s1380_s6 + $0x60] sm:$0xff] %v334_v14 }
  0x37   : > { %v338_v16 = vld [vmem:[%s1375_s4 + $0x540] sm:$0xff]  ;;  %337 = vst [vmem:[%s1380_s6 + $0x68] sm:$0xff] %v336_v15 }
  0x38   : > { %339 = vst [vmem:[%s1380_s6 + $0x70] sm:$0xff] %v338_v16  ;;  %v340_v17 = vld [vmem:[%s1375_s4 + $0x5a0] sm:$0xff] }
  0x39   : > { %v342_v18 = vld [vmem:[%s1375_s4 + $0x600] sm:$0xff]  ;;  %341 = vst [vmem:[%s1380_s6 + $0x78] sm:$0xff] %v340_v17 }
  0x3a   : > { %v344_v19 = vld [vmem:[%s1375_s4 + $0x660] sm:$0xff]  ;;  %343 = vst [vmem:[%s1380_s6 + $0x80] sm:$0xff] %v342_v18 }
  0x3b   : > { %345 = vst [vmem:[%s1380_s6 + $0x88] sm:$0xff] %v344_v19  ;;  %v346_v20 = vld [vmem:[%s1375_s4 + $0x6c0] sm:$0xff] }
  0x3c   : > { %v348_v21 = vld [vmem:[%s1375_s4 + $0x720] sm:$0xff]  ;;  %347 = vst [vmem:[%s1380_s6 + $0x90] sm:$0xff] %v346_v20 }
  0x3d   : > { %v350_v22 = vld [vmem:[%s1375_s4 + $0x780] sm:$0xff]  ;;  %349 = vst [vmem:[%s1380_s6 + $0x98] sm:$0xff] %v348_v21 }
  0x3e   : > { %351 = vst [vmem:[%s1380_s6 + $0xa0] sm:$0xff] %v350_v22  ;;  %v352_v23 = vld [vmem:[%s1375_s4 + $0x7e0] sm:$0xff] }
  0x3f   : > { %v354_v24 = vld [vmem:[%s1375_s4 + $0x840] sm:$0xff]  ;;  %353 = vst [vmem:[%s1380_s6 + $0xa8] sm:$0xff] %v352_v23 }
  0x40   : > { %v356_v25 = vld [vmem:[%s1375_s4 + $0x8a0] sm:$0xff]  ;;  %355 = vst [vmem:[%s1380_s6 + $0xb0] sm:$0xff] %v354_v24 }
  0x41   : > { %357 = vst [vmem:[%s1380_s6 + $0xb8] sm:$0xff] %v356_v25  ;;  %v358_v26 = vld [vmem:[%s1375_s4 + $0x900] sm:$0xff] }
  0x42   : > { %v360_v27 = vld [vmem:[%s1375_s4 + $0x960] sm:$0xff]  ;;  %359 = vst [vmem:[%s1380_s6 + $0xc0] sm:$0xff] %v358_v26 }
  0x43   : > { %v362_v28 = vld [vmem:[%s1375_s4 + $0x9c0] sm:$0xff]  ;;  %361 = vst [vmem:[%s1380_s6 + $0xc8] sm:$0xff] %v360_v27 }
  0x44   : > { %363 = vst [vmem:[%s1380_s6 + $0xd0] sm:$0xff] %v362_v28  ;;  %v364_v29 = vld [vmem:[%s1375_s4 + $0xa20] sm:$0xff] }
  0x45   : > { %v366_v30 = vld [vmem:[%s1375_s4 + $0xa80] sm:$0xff]  ;;  %365 = vst [vmem:[%s1380_s6 + $0xd8] sm:$0xff] %v364_v29 }
  0x46   : > { %v368_v31 = vld [vmem:[%s1375_s4 + $0xae0] sm:$0xff]  ;;  %367 = vst [vmem:[%s1380_s6 + $0xe0] sm:$0xff] %v366_v30 }
  0x47   : > { %369 = vst [vmem:[%s1380_s6 + $0xe8] sm:$0xff] %v368_v31  ;;  %v370_v32 = vld [vmem:[%s1375_s4 + $0xb40] sm:$0xff] }
  0x48   : > { %v372_v33 = vld [vmem:[%s1375_s4 + $0xba0] sm:$0xff]  ;;  %371 = vst [vmem:[%s1380_s6 + $0xf0] sm:$0xff] %v370_v32 }
  0x49   : > { %373 = vst [vmem:[%s1380_s6 + $0xf8] sm:$0xff] %v372_v33 }
  0x4a PF: > { %p951_p0 = scmp.ge.s32.totalorder %s1238_s22, 1  ;;  %p386_p1 = scmp.lt.s32.totalorder %s1238_s22, 37 }
  0x4c   : > { %p387_p2 = pnand %p951_p0, %p386_p1 }
  0x4d   : > { %s393_s24 = sand.u32 (!%p387_p2), 1, %s1214_s16   ;;  %s400_s25 = sand.u32 (!%p387_p2), 1, %s1206_s14  }
  0x4e   : > { %390 = sbr.rel (%p387_p2) target bundleno = 414 (0x19e), region = 100  ;;  %s1447_s30 = sshll.u32 (!%p387_p2), %s393_s24, 4 }
  0x4f   : > { %s953_s27 = sshll.u32 (!%p387_p2), %s400_s25, 8  ;;  %s427_s5 = sand.u32 (!%p387_p2), 1, %s1198_s12  }
  0x50   : > { %s955_s23 = sshll.u32 (!%p387_p2), %s1226_s19, 1  ;;  %s954_s28 = sshll.u32 (!%p387_p2), %s427_s5, 4 }
  0x51   : > { %p435_p3 = scmp.lt.s32.totalorder (!%p387_p2), %s955_s23, 23  ;;  %s395_s26 = scalar_lea.vmem (!%p387_p2), [#allocation3], %s1447_s30 }
  0x52   : > { %s1458_s4 = scalar_lea.vmem (!%p387_p2), [#allocation4], %s953_s27  ;;  %s1460_s16 = scalar_lea.vmem (!%p387_p2), [#allocation5], %s954_s28 }
  0x53   : > { %s1580_s23 = smov (!%p435_p3, %s955_s23), 23  ;;  %p956_p4 = scmp.ne.s32.totalorder %s1222_s18, 0 }
  0x54   : > { %s437_s29 = scalar_lea.vmem %s1550_s2, %s1580_s23 }
  0x55   : > { %444 = sbr.rel (%p956_p4) target bundleno = 93 (0x5d), region = 112 }
  0x5a   : > { %v1240_v34 = vmov 0.0  }
  0x5b   : > { %445 = vst [vmem:[#allocation2 + $0x10] sm:$0xff] %v1240_v34  ;;  %446 = vst [vmem:[#allocation2] sm:$0xff] %v1240_v34 }
  0x5c   : > { %447 = vst [vmem:[#allocation2 + $0x18] sm:$0xff] %v1240_v34  ;;  %448 = vst [vmem:[#allocation2 + $0x8] sm:$0xff] %v1240_v34 }
  0x5d PF: > { %v1093_v35 = vld [vmem:[%s1458_s4 + $0x74] ss:$8 sps:$4 sm:$0xff]   ;;  %v1095_v36 = vld [vmem:[%s1458_s4 + $0x70] ss:$8 sps:$4 sm:$0xff]   ;;  %v1096_v37 = vld [vmem:[%s1458_s4 + $0x64] ss:$8 sps:$4 sm:$0xff]  }
  0x5e   : > { %657 = vmatprep.subr.bf16.mxu0 %v1093_v35  ;;  %v1098_v38 = vld [vmem:[%s1458_s4 + $0x60] ss:$8 sps:$4 sm:$0xff]   ;;  %v1099_v39 = vld [vmem:[%s1458_s4 + $0x54] ss:$8 sps:$4 sm:$0xff]   ;;  %v1101_v40 = vld [vmem:[%s1458_s4 + $0x50] ss:$8 sps:$4 sm:$0xff]  }
  0x5f   : > { %658 = vmatpush1.bf16.msra.mxu0 %v1095_v36  ;;  %v1102_v41 = vld [vmem:[%s1458_s4 + $0x44] ss:$8 sps:$4 sm:$0xff]   ;;  %v1104_v42 = vld [vmem:[%s1458_s4 + $0x40] ss:$8 sps:$4 sm:$0xff]   ;;  %v1105_v43 = vld [vmem:[%s1458_s4 + $0x34] ss:$8 sps:$4 sm:$0xff]  }
  0x60   : > { %659 = vmatprep.subr.bf16.mxu0 %v1096_v37  ;;  %v1107_v44 = vld [vmem:[%s1458_s4 + $0x30] ss:$8 sps:$4 sm:$0xff]   ;;  %v1108_v45 = vld [vmem:[%s1458_s4 + $0x24] ss:$8 sps:$4 sm:$0xff]   ;;  %v1110_v46 = vld [vmem:[%s1458_s4 + $0x20] ss:$8 sps:$4 sm:$0xff]  }
  0x61   : > { %v1111_v47 = vld [vmem:[%s1458_s4 + $0x14] ss:$8 sps:$4 sm:$0xff]   ;;  %v1113_v49 = vld [vmem:[%s1458_s4 + $0x10] ss:$8 sps:$4 sm:$0xff]   ;;  %v1114_v50 = vld [vmem:[%s1458_s4 + $0x4] ss:$8 sps:$4 sm:$0xff]  }
  0x62   : > { %v1143_v48 = vld [vmem:[%s395_s26 + $0x4] ss:$8 sps:$4 sm:$0xff]   ;;  %v1116_v51 = vld [vmem:[%s1458_s4] ss:$8 sps:$4 sm:$0xff]   ;;  %v1119_v53 = vld [vmem:[%s1458_s4 + $0xf0] ss:$8 sps:$4 sm:$0xff]  }
  0x63   : > { %660 = vmatpush1.bf16.msra.mxu0 %v1098_v38  ;;  %689 = vmatprep.mubr.bf16.mxu0 %v1143_v48  ;;  %v1117_v52 = vld [vmem:[%s1458_s4 + $0xf4] ss:$8 sps:$4 sm:$0xff]   ;;  %v1120_v54 = vld [vmem:[%s1458_s4 + $0xe4] ss:$8 sps:$4 sm:$0xff]   ;;  %v1122_v55 = vld [vmem:[%s1458_s4 + $0xe0] ss:$8 sps:$4 sm:$0xff]  }
  0x64   : > { %661 = vmatprep.subr.bf16.mxu0 %v1099_v39  ;;  %v1123_v56 = vld [vmem:[%s1458_s4 + $0xd4] ss:$8 sps:$4 sm:$0xff]   ;;  %v1125_v57 = vld [vmem:[%s1458_s4 + $0xd0] ss:$8 sps:$4 sm:$0xff]   ;;  %v1126_v58 = vld [vmem:[%s1458_s4 + $0xc4] ss:$8 sps:$4 sm:$0xff]  }
  0x65   : > { %v1128_v59 = vld [vmem:[%s1458_s4 + $0xc0] ss:$8 sps:$4 sm:$0xff]   ;;  %v1129_v60 = vld [vmem:[%s1458_s4 + $0xb4] ss:$8 sps:$4 sm:$0xff]   ;;  %v1131_v61 = vld [vmem:[%s1458_s4 + $0xb0] ss:$8 sps:$4 sm:$0xff]  }
  0x66   : > { %v1132_v62 = vld [vmem:[%s1458_s4 + $0xa4] ss:$8 sps:$4 sm:$0xff]   ;;  %v1134_v63 = vld [vmem:[%s1458_s4 + $0xa0] ss:$8 sps:$4 sm:$0xff]   ;;  %v1135_v0 = vld [vmem:[%s1458_s4 + $0x94] ss:$8 sps:$4 sm:$0xff]  }
  0x67   : > { %662 = vmatpush1.bf16.msra.mxu0 %v1101_v40  ;;  %v1137_v1 = vld [vmem:[%s1458_s4 + $0x90] ss:$8 sps:$4 sm:$0xff]   ;;  %v1138_v2 = vld [vmem:[%s1458_s4 + $0x84] ss:$8 sps:$4 sm:$0xff]   ;;  %v1140_v3 = vld [vmem:[%s1458_s4 + $0x80] ss:$8 sps:$4 sm:$0xff]  }
  0x68   : > { %663 = vmatprep.subr.bf16.mxu0 %v1102_v41  ;;  %v1141_v4 = vld [vmem:[%s395_s26] ss:$8 sps:$4 sm:$0xff]   ;;  %p991_p5 = scmp.ne.s32.totalorder %s1222_s18, 2 }
  0x69   : > { %v449_v5 = vld [vmem:[#allocation2 + $0x10] sm:$0xff]  ;;  %v450_v7 = vld [vmem:[#allocation2] sm:$0xff]  ;;  %v451_v10 = vld [vmem:[#allocation2 + $0x18] sm:$0xff] }
  0x6a   : > { %v452_v13 = vld [vmem:[#allocation2 + $0x8] sm:$0xff] }
  0x6b   : > { %664 = vmatpush1.bf16.msra.mxu0 %v1104_v42 }
  0x6c   : > { %665 = vmatprep.subr.bf16.mxu0 %v1105_v43 }
  0x6f   : > { %666 = vmatpush1.bf16.msra.mxu0 %v1107_v44 }
  0x70   : > { %667 = vmatprep.subr.bf16.mxu0 %v1108_v45 }
  0x73   : > { %668 = vmatpush1.bf16.msra.mxu0 %v1110_v46 }
  0x74   : > { %669 = vmatprep.subr.bf16.mxu0 %v1111_v47 }
  0x77   : > { %670 = vmatpush1.bf16.msra.mxu0 %v1113_v49 }
  0x78   : > { %671 = vmatprep.subr.bf16.mxu0 %v1114_v50 }
  0x7b   : > { %672 = vmatpush1.bf16.msra.mxu0 %v1116_v51 }
  0x7c   : > { %673 = vmatprep.subr.bf16.mxu0 %v1117_v52 }
  0x7f   : > { %674 = vmatpush2.bf16.msra.mxu0 %v1119_v53 }
  0x80   : > { %675 = vmatprep.subr.bf16.mxu0 %v1120_v54 }
  0x83   : > { %676 = vmatpush2.bf16.msra.mxu0 %v1122_v55 }
  0x84   : > { %677 = vmatprep.subr.bf16.mxu0 %v1123_v56 }
  0x87   : > { %678 = vmatpush2.bf16.msra.mxu0 %v1125_v57 }
  0x88   : > { %679 = vmatprep.subr.bf16.mxu0 %v1126_v58 }
  0x8b   : > { %680 = vmatpush2.bf16.msra.mxu0 %v1128_v59 }
  0x8c   : > { %681 = vmatprep.subr.bf16.mxu0 %v1129_v60 }
  0x8f   : > { %682 = vmatpush2.bf16.msra.mxu0 %v1131_v61 }
  0x90   : > { %683 = vmatprep.subr.bf16.mxu0 %v1132_v62 }
  0x93   : > { %684 = vmatpush2.bf16.msra.mxu0 %v1134_v63 }
  0x94   : > { %685 = vmatprep.subr.bf16.mxu0 %v1135_v0 }
  0x97   : > { %686 = vmatpush2.bf16.msra.mxu0 %v1137_v1 }
  0x98   : > { %687 = vmatprep.subr.bf16.mxu0 %v1138_v2 }
  0x9b   : > { %688 = vmatpush2.bf16.msra.mxu0 %v1140_v3 }
  0x9e   : > { %690 = vmatmul.mubr.bf16.vlgmr.msra.gmra.mxu0 %v1141_v4 }
 0x15e   : > { %v691_v6 = vpop.f32.mrf.mxu0 }
 0x15f   : > { %v700_v8 = vadd.f32 %v691_v6, %v449_v5 }
 0x160   : > { %v693_v9 = vpop.f32.mrf.mxu0 }
 0x161   : > { %704 = vst [vmem:[#allocation2 + $0x10] sm:$0xff] %v700_v8  ;;  %v701_v11 = vadd.f32 %v693_v9, %v450_v7 }
 0x162   : > { %v695_v12 = vpop.f32.mrf.mxu0 }
 0x163   : > { %705 = vst [vmem:[#allocation2] sm:$0xff] %v701_v11  ;;  %v702_v14 = vadd.f32 %v695_v12, %v451_v10  ;;  %711 = sbr.rel (%p991_p5) target bundleno = 406 (0x196), region = 116 }
 0x164   : > { %v697_v15 = vpop.f32.mrf.mxu0 }
 0x165   : > { %706 = vst [vmem:[#allocation2 + $0x18] sm:$0xff] %v702_v14  ;;  %v703_v16 = vadd.f32 %v697_v15, %v452_v13 }
 0x167   : > { %707 = vst [vmem:[#allocation2 + $0x8] sm:$0xff] %v703_v16 }
 0x168   : > { %v718_v17 = vlaneseq  ;;  %v716_v19 = vld [vmem:[%s437_s29] sm:$0x3]  ;;  %v712_v20 = vld [vmem:[#allocation2 + $0x10] sm:$0xff] }
 0x16a   : > { %v719_v18 = vshrl.u32 %v718_v17, 7  ;;  %v713_v23 = vld [vmem:[#allocation2] sm:$0xff] }
 0x16c   : > { %v720_v21 = vsub.s32 0, %v719_v18  ;;  %v724_v22 = vsub.s32 1, %v719_v18  ;;  %v714_v24 = vld [vmem:[#allocation2 + $0x18] sm:$0xff] }
 0x16e   : > { %v715_v25 = vld [vmem:[#allocation2 + $0x8] sm:$0xff]  ;;  %v721_v26 = vrot.slane %v716_v19, %v720_v21  ;;  %v725_v27 = vrot.slane %v716_v19, %v724_v22 }
 0x170   : > { %v728_v28 = vadd.f32 %v721_v26, %v712_v20  ;;  %v729_v29 = vadd.f32 %v725_v27, %v713_v23  ;;  %v730_v30 = vadd.f32 %v721_v26, %v714_v24  ;;  %v731_v31 = vadd.f32 %v725_v27, %v715_v25 }
 0x172   : > { %v732_v32 = vmul.f32 %v728_v28, %v728_v28  ;;  %v733_v33 = vmul.f32 %v729_v29, %v729_v29  ;;  %v734_v34 = vmul.f32 %v730_v30, %v730_v30  ;;  %v735_v35 = vmul.f32 %v731_v31, %v731_v31 }
 0x174   : > { %v736_v36 = vmul.f32 %v732_v32, %v728_v28  ;;  %v737_v37 = vmul.f32 %v733_v33, %v729_v29  ;;  %v738_v38 = vmul.f32 %v734_v34, %v730_v30  ;;  %v739_v39 = vmul.f32 %v735_v35, %v731_v31 }
 0x176   : > { %v740_v40 = vmul.f32 0.044715, %v736_v36  ;;  %v741_v41 = vmul.f32 0.044715, %v737_v37  ;;  %v742_v42 = vmul.f32 0.044715, %v738_v38 }
 0x177   : > { %v743_v43 = vmul.f32 0.044715, %v739_v39 }
 0x178   : > { %v744_v44 = vadd.f32 %v740_v40, %v728_v28  ;;  %v745_v45 = vadd.f32 %v741_v41, %v729_v29  ;;  %v746_v46 = vadd.f32 %v742_v42, %v730_v30 }
 0x179   : > { %v747_v47 = vadd.f32 %v743_v43, %v731_v31 }
 0x17a   : > { %v748_v48 = vmul.f32 0.7978846, %v744_v44  ;;  %v749_v49 = vmul.f32 0.7978846, %v745_v45  ;;  %v750_v50 = vmul.f32 0.7978846, %v746_v46 }
 0x17b   : > { %v751_v51 = vmul.f32 0.7978846, %v747_v47 }
 0x17c   : > { %1144 = vtanh.f32 %v748_v48 }
 0x17d   : > { %1146 = vtanh.f32 %v749_v49 }
 0x17e   : > { %1148 = vtanh.f32 %v750_v50 }
 0x17f   : > { %1150 = vtanh.f32 %v751_v51 }
 0x189   : > { %v1145_v52 = vpop.eup %1144 }
 0x18a   : > { %v1147_v53 = vpop.eup %1146  ;;  %v756_v54 = vadd.f32 1.0, %v1145_v52 }
 0x18b   : > { %v1149_v55 = vpop.eup %1148  ;;  %v757_v56 = vadd.f32 1.0, %v1147_v53 }
 0x18c   : > { %v1151_v57 = vpop.eup %1150  ;;  %v760_v58 = vmul.f32 0.5, %v756_v54  ;;  %v758_v59 = vadd.f32 1.0, %v1149_v55 }
 0x18d   : > { %v761_v60 = vmul.f32 0.5, %v757_v56  ;;  %v759_v61 = vadd.f32 1.0, %v1151_v57 }
 0x18e   : > { %v764_v62 = vmul.f32 %v760_v58, %v728_v28  ;;  %v762_v63 = vmul.f32 0.5, %v758_v59 }
 0x18f   : > { %v765_v0 = vmul.f32 %v761_v60, %v729_v29  ;;  %v763_v1 = vmul.f32 0.5, %v759_v61 }
 0x190   : > { %v766_v2 = vmul.f32 %v762_v63, %v730_v30 }
 0x191   : > { %v1000_v3 = vpack.c.bf16 %v765_v0, %v764_v62  ;;  %v767_v4 = vmul.f32 %v763_v1, %v731_v31 }
 0x193   : > { %780 = vst [vmem:[%s1460_s16] sm:$0xff] %v1000_v3  ;;  %v1001_v5 = vpack.c.bf16 %v767_v4, %v766_v2 }
 0x195   : > { %781 = vst [vmem:[%s1460_s16 + $0x8] sm:$0xff] %v1001_v5 }
 0x196 PF: > { %788 = sbr.rel (!%p1355_p12) target bundleno = 414 (0x19e), region = 120  ;;  %s1002_s18 = sshll.u32 (%p1355_p12), %s1226_s19, 3 }
 0x197   : > { %s794_s25 = scalar_lea.vmem (%p1355_p12), %s1551_s3, %s1002_s18 }
 0x19a   : > { %v825_v6 = vld [vmem:[%s1460_s16] sm:$0xff] (%p1355_p12) }
 0x19b   : > { %826 = vst [vmem:[%s794_s25] sm:$0xff] %v825_v6 }
 0x19c   : > { %v827_v7 = vld [vmem:[%s1460_s16 + $0x8] sm:$0xff] }
 0x19d   : > { %828 = vst [vmem:[%s794_s25 + $0x60] sm:$0xff] %v827_v7 }
 0x19e PF: > { %s13_s22 = sadd.s32 1, %s1238_s22   ;;  %s1560_s10 = sld [smem:[#allocation8_spill]] }
 0x19f   : > { %p10_p6 = scmp.ge.s32.totalorder %s13_s22, 38   ;;  %s1561_s30 = sld [smem:[#allocation6_spill]] }
 0x1a0   : > { %s1562_s27 = sld [smem:[#allocation7_spill]]  ;;  %s1563_s12 = smov %s1202_s13 }
 0x1a1   : > { %s1564_s13 = smov %s1353_s9  ;;  %s1565_s14 = smov %s1210_s15 }
 0x1a2   : > { %s1566_s15 = smov %s1350_s8  ;;  %s1567_s16 = smov %s1218_s17 }
 0x1a3   : > { %s1569_s18 = smov %s1230_s20  ;;  %s1570_s19 = smov %s1234_s21 }
 0x1a4   : > { %s1568_s17 = smov %s1560_s10  ;;  %12 = sbr.rel (!%p10_p6) target bundleno = 6 (0x6), region = 200 }
 0x1a5   : > { %s1571_s20 = smov %s1561_s30 }
 0x1a6   : > { %s1572_s21 = smov %s1562_s27 }

// kernel: bert_classifier_forward.22
= control target key start
LH: loop header
LB: loop body
LE: loop exit
PB: predicated region body
PF: predicated region fallthrough
CT: control target
= control target key end

     0   :  { %s1189_s12 = smov 0   ;;  %s1191_s13 = smov 0   ;;  %s1480_s0 = inlined_call_operand.vmem [shape: bf16[16,3072], index: 0, kind: input, shape index: {}]   ;;  %s1481_s1 = inlined_call_operand.vmem [shape: bf16[3072,768], index: 1, kind: input, shape index: {}]   ;;  %s1482_s2 = inlined_call_operand.vmem [shape: f32[1,768], index: 2, kind: input, shape index: {}]   ;;  %s1483_s3 = inlined_call_operand.vmem [shape: f32[16,768], index: 3, kind: output, shape index: {}]  }
   0x1   :  { %s1193_s14 = smov 0   ;;  %s1195_s15 = smov 0  }
   0x2   :  { %s1197_s16 = smov 0   ;;  %s1199_s17 = smov 0  }
   0x3   :  { %s1201_s18 = smov 0   ;;  %s1203_s19 = smov 0  }
   0x4   :  { %s1205_s20 = smov 0   ;;  %s1207_s21 = smov 0  }
   0x5   :  { %s1209_s22 = smov 0  }
   0x6 LB: > { %s879_s23 = sadd.s32 4294967295, %s1166_s22   ;;  %s25_s24 = sadd.s32 1, %s1158_s20  ;;  %s1166_s22 = sphi %s1209_s22, %s13_s22   ;;  %s1162_s21 = sphi %s1207_s21, %s1504_s21   ;;  %s1158_s20 = sphi %s1205_s20, %s1503_s20   ;;  %s1154_s19 = sphi %s1203_s19, %s1502_s19   ;;  %s1150_s18 = sphi %s1201_s18, %s1501_s18   ;;  %s1146_s17 = sphi %s1199_s17, %s1500_s17   ;;  %s1142_s16 = sphi %s1197_s16, %s1499_s16   ;;  %s1138_s15 = sphi %s1195_s15, %s1498_s15   ;;  %s1134_s14 = sphi %s1193_s14, %s1497_s14   ;;  %s1130_s13 = sphi %s1191_s13, %s1496_s13   ;;  %s1126_s12 = sphi %s1189_s12, %s1495_s12  }
   0x7   : > { %p26_p0 = scmp.ge.s32.totalorder %s25_s24, 12  ;;  %s28_s25 = sadd.s32 1, %s1162_s21 }
   0x8   : > { %s41_s26 = sadd.s32 1, %s1146_s17  ;;  %p48_p1 = scmp.ne.s32.totalorder %s1146_s17, %s1142_s16 }
   0x9   : > { %s1506_s24 = smov (%p26_p0, %s25_s24), 0  ;;  %s1508_s25 = smov (!%p26_p0, %s28_s25), %s1162_s21 }
   0xa   : > { %1486 = sst [smem:[#allocation6_spill]] %s1506_s24  ;;  %s37_s27 = ssub.s32 %s1158_s20, %s1506_s24 }
   0xb   : > { %p49_p2 = scmp.eq.s32.totalorder %s1166_s22, 0  ;;  %p30_p3 = scmp.ge.s32.totalorder %s1508_s25, 3 }
   0xc   : > { %p39_p4 = scmp.eq.s32.totalorder %s37_s27, 0  ;;  %s69_s29 = sadd.s32 1, %s1138_s15 }
   0xd   : > { %p1256_p5 = por %p49_p2, %p48_p1  ;;  %s1510_s25 = smov (%p30_p3, %s1508_s25), 0 }
   0xe   : > { %1488 = sst [smem:[#allocation7_spill]] %s1510_s25  ;;  %s65_s4 = ssub.s32 %s1162_s21, %s1510_s25 }
   0xf   : > { %s1264_s30 = scalar_select %p39_p4, %s1146_s17, %s41_s26  }
  0x10   : > { %p76_p6 = scmp.ne.s32.totalorder %s1138_s15, %s1134_s14  ;;  %s66_s5 = sor.u32 %s65_s4, %s37_s27 }
  0x11   : > { %1489 = sst [smem:[#allocation8_spill]] %s1264_s30  ;;  %p121_p7 = scmp.eq.s32.totalorder %s65_s4, 0 }
  0x12   : > { %p67_p8 = scmp.eq.s32.totalorder %s66_s5, 0  ;;  %p1270_p9 = por %p76_p6, %p49_p2 }
  0x13   : > { %s123_s7 = sadd.s32 1, %s1130_s13  ;;  %p133_p10 = scmp.ne.s32.totalorder %s1130_s13, %s1126_s12 }
  0x14   : > { %s1278_s8 = scalar_select %p67_p8, %s1138_s15, %s69_s29  }
  0x15   : > { %s1281_s9 = scalar_select %p121_p7, %s1130_s13, %s123_s7  }
  0x16   : > { %p134_p11 = scmp.eq.s32.totalorder %s879_s23, 35  ;;  %p882_p13 = scmp.ge.s32.totalorder %s1166_s22, 36 }
  0x18   : > { %p1283_p12 = por %p134_p11, %p133_p10  ;;  %156 = sbr.rel (%p882_p13) target bundleno = 59 (0x3b), region = 16 }
  0x1d   : > { %159 = sbr.rel (!%p1256_p5) target bundleno = 35 (0x23), region = 20  ;;  %s161_s11 = sand.u32 (%p1256_p5), 1, %s1146_s17  }
  0x1e   : > { %s937_s26 = sshll.u32 (%p1256_p5), %s1158_s20, 3  ;;  %s883_s27 = sshll.u32 (%p1256_p5), %s161_s11, 4 }
  0x1f   : > { %s169_s5 = scalar_lea.vmem (%p1256_p5), %s1480_s0, %s937_s26  ;;  %s163_s23 = scalar_lea.vmem (%p1256_p5), [#allocation3], %s883_s27 }
  0x20   : > { %v200_v0 = vld [vmem:[%s169_s5] sm:$0xff] (%p1256_p5) }
  0x21   : > { %v202_v1 = vld [vmem:[%s169_s5 + $0x60] sm:$0xff] (%p1256_p5)  ;;  %201 = vst [vmem:[%s163_s23] sm:$0xff] (%p1256_p5), %v200_v0 }
  0x22   : > { %203 = vst [vmem:[%s163_s23 + $0x8] sm:$0xff] %v202_v1 }
  0x23 PF: > { %209 = sbr.rel (!%p1270_p9) target bundleno = 59 (0x3b), region = 58  ;;  %s211_s28 = sand.u32 (%p1270_p9), 1, %s1138_s15  }
  0x24   : > { %s888_s7 = sshll.u32 (%p1270_p9), %s1162_s21, 1  ;;  %s886_s25 = sshll.u32 (%p1270_p9), %s211_s28, 8 }
  0x25   : > { %s939_s11 = smul.u32 (%p1270_p9), 192, %s1158_s20  ;;  %s1308_s6 = scalar_lea.vmem (%p1270_p9), [#allocation4], %s886_s25 }
  0x27   : > { %s217_s24 = sadd.s32 (%p1270_p9), %s939_s11, %s888_s7 }
  0x28   : > { %s890_s30 = sshll.u32 %s217_s24, 2 }
  0x29   : > { %s1303_s4 = scalar_lea.vmem %s1481_s1, %s890_s30 }
  0x2a   : > { %v310_v2 = vld [vmem:[%s1303_s4] sm:$0xff]  ;;  %v312_v3 = vld [vmem:[%s1303_s4 + $0x18] sm:$0xff]  ;;  %v314_v4 = vld [vmem:[%s1303_s4 + $0x30] sm:$0xff] }
  0x2b   : > { %311 = vst [vmem:[%s1308_s6] sm:$0xff] %v310_v2  ;;  %313 = vst [vmem:[%s1308_s6 + $0x8] sm:$0xff] %v312_v3  ;;  %v316_v5 = vld [vmem:[%s1303_s4 + $0x48] sm:$0xff]  ;;  %v318_v6 = vld [vmem:[%s1303_s4 + $0x60] sm:$0xff] }
  0x2c   : > { %315 = vst [vmem:[%s1308_s6 + $0x10] sm:$0xff] %v314_v4  ;;  %v320_v7 = vld [vmem:[%s1303_s4 + $0x78] sm:$0xff]  ;;  %317 = vst [vmem:[%s1308_s6 + $0x18] sm:$0xff] %v316_v5  ;;  %v322_v8 = vld [vmem:[%s1303_s4 + $0x90] sm:$0xff] }
  0x2d   : > { %319 = vst [vmem:[%s1308_s6 + $0x20] sm:$0xff] %v318_v6  ;;  %321 = vst [vmem:[%s1308_s6 + $0x28] sm:$0xff] %v320_v7  ;;  %v324_v9 = vld [vmem:[%s1303_s4 + $0xa8] sm:$0xff]  ;;  %v326_v10 = vld [vmem:[%s1303_s4 + $0xc0] sm:$0xff] }
  0x2e   : > { %323 = vst [vmem:[%s1308_s6 + $0x30] sm:$0xff] %v322_v8  ;;  %325 = vst [vmem:[%s1308_s6 + $0x38] sm:$0xff] %v324_v9  ;;  %v328_v11 = vld [vmem:[%s1303_s4 + $0xd8] sm:$0xff]  ;;  %v330_v12 = vld [vmem:[%s1303_s4 + $0xf0] sm:$0xff] }
  0x2f   : > { %327 = vst [vmem:[%s1308_s6 + $0x40] sm:$0xff] %v326_v10  ;;  %v332_v13 = vld [vmem:[%s1303_s4 + $0x108] sm:$0xff]  ;;  %329 = vst [vmem:[%s1308_s6 + $0x48] sm:$0xff] %v328_v11  ;;  %v334_v14 = vld [vmem:[%s1303_s4 + $0x120] sm:$0xff] }
  0x30   : > { %331 = vst [vmem:[%s1308_s6 + $0x50] sm:$0xff] %v330_v12  ;;  %333 = vst [vmem:[%s1308_s6 + $0x58] sm:$0xff] %v332_v13  ;;  %v336_v15 = vld [vmem:[%s1303_s4 + $0x138] sm:$0xff]  ;;  %v338_v16 = vld [vmem:[%s1303_s4 + $0x150] sm:$0xff] }
  0x31   : > { %335 = vst [vmem:[%s1308_s6 + $0x60] sm:$0xff] %v334_v14  ;;  %337 = vst [vmem:[%s1308_s6 + $0x68] sm:$0xff] %v336_v15  ;;  %v340_v17 = vld [vmem:[%s1303_s4 + $0x168] sm:$0xff]  ;;  %v342_v18 = vld [vmem:[%s1303_s4 + $0x180] sm:$0xff] }
  0x32   : > { %339 = vst [vmem:[%s1308_s6 + $0x70] sm:$0xff] %v338_v16  ;;  %v344_v19 = vld [vmem:[%s1303_s4 + $0x198] sm:$0xff]  ;;  %341 = vst [vmem:[%s1308_s6 + $0x78] sm:$0xff] %v340_v17  ;;  %v346_v20 = vld [vmem:[%s1303_s4 + $0x1b0] sm:$0xff] }
  0x33   : > { %343 = vst [vmem:[%s1308_s6 + $0x80] sm:$0xff] %v342_v18  ;;  %345 = vst [vmem:[%s1308_s6 + $0x88] sm:$0xff] %v344_v19  ;;  %v348_v21 = vld [vmem:[%s1303_s4 + $0x1c8] sm:$0xff]  ;;  %v350_v22 = vld [vmem:[%s1303_s4 + $0x1e0] sm:$0xff] }
  0x34   : > { %347 = vst [vmem:[%s1308_s6 + $0x90] sm:$0xff] %v346_v20  ;;  %349 = vst [vmem:[%s1308_s6 + $0x98] sm:$0xff] %v348_v21  ;;  %v352_v23 = vld [vmem:[%s1303_s4 + $0x1f8] sm:$0xff]  ;;  %v354_v24 = vld [vmem:[%s1303_s4 + $0x210] sm:$0xff] }
  0x35   : > { %351 = vst [vmem:[%s1308_s6 + $0xa0] sm:$0xff] %v350_v22  ;;  %v356_v25 = vld [vmem:[%s1303_s4 + $0x228] sm:$0xff]  ;;  %353 = vst [vmem:[%s1308_s6 + $0xa8] sm:$0xff] %v352_v23  ;;  %v358_v26 = vld [vmem:[%s1303_s4 + $0x240] sm:$0xff] }
  0x36   : > { %355 = vst [vmem:[%s1308_s6 + $0xb0] sm:$0xff] %v354_v24  ;;  %357 = vst [vmem:[%s1308_s6 + $0xb8] sm:$0xff] %v356_v25  ;;  %v360_v27 = vld [vmem:[%s1303_s4 + $0x258] sm:$0xff]  ;;  %v362_v28 = vld [vmem:[%s1303_s4 + $0x270] sm:$0xff] }
  0x37   : > { %359 = vst [vmem:[%s1308_s6 + $0xc0] sm:$0xff] %v358_v26  ;;  %361 = vst [vmem:[%s1308_s6 + $0xc8] sm:$0xff] %v360_v27  ;;  %v364_v29 = vld [vmem:[%s1303_s4 + $0x288] sm:$0xff]  ;;  %v366_v30 = vld [vmem:[%s1303_s4 + $0x2a0] sm:$0xff] }
  0x38   : > { %363 = vst [vmem:[%s1308_s6 + $0xd0] sm:$0xff] %v362_v28  ;;  %v368_v31 = vld [vmem:[%s1303_s4 + $0x2b8] sm:$0xff]  ;;  %365 = vst [vmem:[%s1308_s6 + $0xd8] sm:$0xff] %v364_v29  ;;  %v370_v32 = vld [vmem:[%s1303_s4 + $0x2d0] sm:$0xff] }
  0x39   : > { %367 = vst [vmem:[%s1308_s6 + $0xe0] sm:$0xff] %v366_v30  ;;  %369 = vst [vmem:[%s1308_s6 + $0xe8] sm:$0xff] %v368_v31  ;;  %v372_v33 = vld [vmem:[%s1303_s4 + $0x2e8] sm:$0xff] }
  0x3a   : > { %371 = vst [vmem:[%s1308_s6 + $0xf0] sm:$0xff] %v370_v32  ;;  %373 = vst [vmem:[%s1308_s6 + $0xf8] sm:$0xff] %v372_v33 }
  0x3b PF: > { %p891_p0 = scmp.ge.s32.totalorder %s1166_s22, 1  ;;  %p386_p1 = scmp.lt.s32.totalorder %s1166_s22, 37 }
  0x3d   : > { %p387_p2 = pnand %p891_p0, %p386_p1 }
  0x3e   : > { %s393_s24 = sand.u32 (!%p387_p2), 1, %s1142_s16   ;;  %s400_s25 = sand.u32 (!%p387_p2), 1, %s1134_s14  }
  0x3f   : > { %390 = sbr.rel (%p387_p2) target bundleno = 365 (0x16d), region = 100  ;;  %s1375_s30 = sshll.u32 (!%p387_p2), %s393_s24, 4 }
  0x40   : > { %s893_s27 = sshll.u32 (!%p387_p2), %s400_s25, 8  ;;  %s427_s5 = sand.u32 (!%p387_p2), 1, %s1126_s12  }
  0x41   : > { %s895_s23 = sshll.u32 (!%p387_p2), %s1154_s19, 1  ;;  %s894_s28 = sshll.u32 (!%p387_p2), %s427_s5, 5 }
  0x42   : > { %p435_p3 = scmp.lt.s32.totalorder (!%p387_p2), %s895_s23, 5  ;;  %s395_s26 = scalar_lea.vmem (!%p387_p2), [#allocation3], %s1375_s30 }
  0x43   : > { %s1386_s4 = scalar_lea.vmem (!%p387_p2), [#allocation4], %s893_s27  ;;  %s1388_s16 = scalar_lea.vmem (!%p387_p2), [#allocation5], %s894_s28 }
  0x44   : > { %s1512_s23 = smov (!%p435_p3, %s895_s23), 5  ;;  %p896_p4 = scmp.ne.s32.totalorder %s1150_s18, 0 }
  0x45   : > { %s437_s29 = scalar_lea.vmem %s1482_s2, %s1512_s23 }
  0x46   : > { %444 = sbr.rel (%p896_p4) target bundleno = 78 (0x4e), region = 112 }
  0x4b   : > { %v1168_v34 = vmov 0.0  }
  0x4c   : > { %445 = vst [vmem:[#allocation2 + $0x10] sm:$0xff] %v1168_v34  ;;  %446 = vst [vmem:[#allocation2] sm:$0xff] %v1168_v34 }
  0x4d   : > { %447 = vst [vmem:[#allocation2 + $0x18] sm:$0xff] %v1168_v34  ;;  %448 = vst [vmem:[#allocation2 + $0x8] sm:$0xff] %v1168_v34 }
  0x4e PF: > { %v1029_v35 = vld [vmem:[%s1386_s4 + $0x74] ss:$8 sps:$4 sm:$0xff]   ;;  %v1031_v36 = vld [vmem:[%s1386_s4 + $0x70] ss:$8 sps:$4 sm:$0xff]   ;;  %v1032_v37 = vld [vmem:[%s1386_s4 + $0x64] ss:$8 sps:$4 sm:$0xff]  }
  0x4f   : > { %657 = vmatprep.subr.bf16.mxu0 %v1029_v35  ;;  %v1034_v38 = vld [vmem:[%s1386_s4 + $0x60] ss:$8 sps:$4 sm:$0xff]   ;;  %v1035_v39 = vld [vmem:[%s1386_s4 + $0x54] ss:$8 sps:$4 sm:$0xff]   ;;  %v1037_v40 = vld [vmem:[%s1386_s4 + $0x50] ss:$8 sps:$4 sm:$0xff]  }
  0x50   : > { %658 = vmatpush1.bf16.msra.mxu0 %v1031_v36  ;;  %v1038_v41 = vld [vmem:[%s1386_s4 + $0x44] ss:$8 sps:$4 sm:$0xff]   ;;  %v1040_v42 = vld [vmem:[%s1386_s4 + $0x40] ss:$8 sps:$4 sm:$0xff]   ;;  %v1041_v43 = vld [vmem:[%s1386_s4 + $0x34] ss:$8 sps:$4 sm:$0xff]  }
  0x51   : > { %659 = vmatprep.subr.bf16.mxu0 %v1032_v37  ;;  %v1043_v44 = vld [vmem:[%s1386_s4 + $0x30] ss:$8 sps:$4 sm:$0xff]   ;;  %v1044_v45 = vld [vmem:[%s1386_s4 + $0x24] ss:$8 sps:$4 sm:$0xff]   ;;  %v1046_v46 = vld [vmem:[%s1386_s4 + $0x20] ss:$8 sps:$4 sm:$0xff]  }
  0x52   : > { %v1047_v47 = vld [vmem:[%s1386_s4 + $0x14] ss:$8 sps:$4 sm:$0xff]   ;;  %v1049_v49 = vld [vmem:[%s1386_s4 + $0x10] ss:$8 sps:$4 sm:$0xff]   ;;  %v1050_v50 = vld [vmem:[%s1386_s4 + $0x4] ss:$8 sps:$4 sm:$0xff]  }
  0x53   : > { %v1079_v48 = vld [vmem:[%s395_s26 + $0x4] ss:$8 sps:$4 sm:$0xff]   ;;  %v1052_v51 = vld [vmem:[%s1386_s4] ss:$8 sps:$4 sm:$0xff]   ;;  %v1055_v53 = vld [vmem:[%s1386_s4 + $0xf0] ss:$8 sps:$4 sm:$0xff]  }
  0x54   : > { %660 = vmatpush1.bf16.msra.mxu0 %v1034_v38  ;;  %689 = vmatprep.mubr.bf16.mxu0 %v1079_v48  ;;  %v1053_v52 = vld [vmem:[%s1386_s4 + $0xf4] ss:$8 sps:$4 sm:$0xff]   ;;  %v1056_v54 = vld [vmem:[%s1386_s4 + $0xe4] ss:$8 sps:$4 sm:$0xff]   ;;  %v1058_v55 = vld [vmem:[%s1386_s4 + $0xe0] ss:$8 sps:$4 sm:$0xff]  }
  0x55   : > { %661 = vmatprep.subr.bf16.mxu0 %v1035_v39  ;;  %v1059_v56 = vld [vmem:[%s1386_s4 + $0xd4] ss:$8 sps:$4 sm:$0xff]   ;;  %v1061_v57 = vld [vmem:[%s1386_s4 + $0xd0] ss:$8 sps:$4 sm:$0xff]   ;;  %v1062_v58 = vld [vmem:[%s1386_s4 + $0xc4] ss:$8 sps:$4 sm:$0xff]  }
  0x56   : > { %v1064_v59 = vld [vmem:[%s1386_s4 + $0xc0] ss:$8 sps:$4 sm:$0xff]   ;;  %v1065_v60 = vld [vmem:[%s1386_s4 + $0xb4] ss:$8 sps:$4 sm:$0xff]   ;;  %v1067_v61 = vld [vmem:[%s1386_s4 + $0xb0] ss:$8 sps:$4 sm:$0xff]  }
  0x57   : > { %v1068_v62 = vld [vmem:[%s1386_s4 + $0xa4] ss:$8 sps:$4 sm:$0xff]   ;;  %v1070_v63 = vld [vmem:[%s1386_s4 + $0xa0] ss:$8 sps:$4 sm:$0xff]   ;;  %v1071_v0 = vld [vmem:[%s1386_s4 + $0x94] ss:$8 sps:$4 sm:$0xff]  }
  0x58   : > { %662 = vmatpush1.bf16.msra.mxu0 %v1037_v40  ;;  %v1073_v1 = vld [vmem:[%s1386_s4 + $0x90] ss:$8 sps:$4 sm:$0xff]   ;;  %v1074_v2 = vld [vmem:[%s1386_s4 + $0x84] ss:$8 sps:$4 sm:$0xff]   ;;  %v1076_v3 = vld [vmem:[%s1386_s4 + $0x80] ss:$8 sps:$4 sm:$0xff]  }
  0x59   : > { %663 = vmatprep.subr.bf16.mxu0 %v1038_v41  ;;  %v1077_v4 = vld [vmem:[%s395_s26] ss:$8 sps:$4 sm:$0xff]   ;;  %p931_p5 = scmp.ne.s32.totalorder %s1150_s18, 11 }
  0x5a   : > { %v449_v5 = vld [vmem:[#allocation2 + $0x10] sm:$0xff]  ;;  %v450_v7 = vld [vmem:[#allocation2] sm:$0xff]  ;;  %v451_v10 = vld [vmem:[#allocation2 + $0x18] sm:$0xff] }
  0x5b   : > { %v452_v13 = vld [vmem:[#allocation2 + $0x8] sm:$0xff] }
  0x5c   : > { %664 = vmatpush1.bf16.msra.mxu0 %v1040_v42 }
  0x5d   : > { %665 = vmatprep.subr.bf16.mxu0 %v1041_v43 }
  0x60   : > { %666 = vmatpush1.bf16.msra.mxu0 %v1043_v44 }
  0x61   : > { %667 = vmatprep.subr.bf16.mxu0 %v1044_v45 }
  0x64   : > { %668 = vmatpush1.bf16.msra.mxu0 %v1046_v46 }
  0x65   : > { %669 = vmatprep.subr.bf16.mxu0 %v1047_v47 }
  0x68   : > { %670 = vmatpush1.bf16.msra.mxu0 %v1049_v49 }
  0x69   : > { %671 = vmatprep.subr.bf16.mxu0 %v1050_v50 }
  0x6c   : > { %672 = vmatpush1.bf16.msra.mxu0 %v1052_v51 }
  0x6d   : > { %673 = vmatprep.subr.bf16.mxu0 %v1053_v52 }
  0x70   : > { %674 = vmatpush2.bf16.msra.mxu0 %v1055_v53 }
  0x71   : > { %675 = vmatprep.subr.bf16.mxu0 %v1056_v54 }
  0x74   : > { %676 = vmatpush2.bf16.msra.mxu0 %v1058_v55 }
  0x75   : > { %677 = vmatprep.subr.bf16.mxu0 %v1059_v56 }
  0x78   : > { %678 = vmatpush2.bf16.msra.mxu0 %v1061_v57 }
  0x79   : > { %679 = vmatprep.subr.bf16.mxu0 %v1062_v58 }
  0x7c   : > { %680 = vmatpush2.bf16.msra.mxu0 %v1064_v59 }
  0x7d   : > { %681 = vmatprep.subr.bf16.mxu0 %v1065_v60 }
  0x80   : > { %682 = vmatpush2.bf16.msra.mxu0 %v1067_v61 }
  0x81   : > { %683 = vmatprep.subr.bf16.mxu0 %v1068_v62 }
  0x84   : > { %684 = vmatpush2.bf16.msra.mxu0 %v1070_v63 }
  0x85   : > { %685 = vmatprep.subr.bf16.mxu0 %v1071_v0 }
  0x88   : > { %686 = vmatpush2.bf16.msra.mxu0 %v1073_v1 }
  0x89   : > { %687 = vmatprep.subr.bf16.mxu0 %v1074_v2 }
  0x8c   : > { %688 = vmatpush2.bf16.msra.mxu0 %v1076_v3 }
  0x8f   : > { %690 = vmatmul.mubr.bf16.vlgmr.msra.gmra.mxu0 %v1077_v4 }
 0x14f   : > { %v691_v6 = vpop.f32.mrf.mxu0 }
 0x150   : > { %v700_v8 = vadd.f32 %v691_v6, %v449_v5 }
 0x151   : > { %v693_v9 = vpop.f32.mrf.mxu0 }
 0x152   : > { %704 = vst [vmem:[#allocation2 + $0x10] sm:$0xff] %v700_v8  ;;  %v701_v11 = vadd.f32 %v693_v9, %v450_v7 }
 0x153   : > { %v695_v12 = vpop.f32.mrf.mxu0 }
 0x154   : > { %705 = vst [vmem:[#allocation2] sm:$0xff] %v701_v11  ;;  %v702_v14 = vadd.f32 %v695_v12, %v451_v10  ;;  %711 = sbr.rel (%p931_p5) target bundleno = 357 (0x165), region = 116 }
 0x155   : > { %v697_v15 = vpop.f32.mrf.mxu0 }
 0x156   : > { %706 = vst [vmem:[#allocation2 + $0x18] sm:$0xff] %v702_v14  ;;  %v703_v16 = vadd.f32 %v697_v15, %v452_v13 }
 0x158   : > { %707 = vst [vmem:[#allocation2 + $0x8] sm:$0xff] %v703_v16 }
 0x159   : > { %v718_v17 = vlaneseq  ;;  %v716_v19 = vld [vmem:[%s437_s29] sm:$0x3]  ;;  %v712_v20 = vld [vmem:[#allocation2 + $0x10] sm:$0xff] }
 0x15b   : > { %v719_v18 = vshrl.u32 %v718_v17, 7  ;;  %v713_v23 = vld [vmem:[#allocation2] sm:$0xff] }
 0x15d   : > { %v720_v21 = vsub.s32 0, %v719_v18  ;;  %v724_v22 = vsub.s32 1, %v719_v18  ;;  %v714_v24 = vld [vmem:[#allocation2 + $0x18] sm:$0xff] }
 0x15f   : > { %v715_v25 = vld [vmem:[#allocation2 + $0x8] sm:$0xff]  ;;  %v721_v26 = vrot.slane %v716_v19, %v720_v21  ;;  %v725_v27 = vrot.slane %v716_v19, %v724_v22 }
 0x161   : > { %v728_v28 = vadd.f32 %v721_v26, %v712_v20  ;;  %v729_v29 = vadd.f32 %v725_v27, %v713_v23  ;;  %v730_v30 = vadd.f32 %v721_v26, %v714_v24  ;;  %v731_v31 = vadd.f32 %v725_v27, %v715_v25 }
 0x163   : > { %732 = vst [vmem:[%s1388_s16] sm:$0xff] %v728_v28  ;;  %733 = vst [vmem:[%s1388_s16 + $0x8] sm:$0xff] %v729_v29 }
 0x164   : > { %734 = vst [vmem:[%s1388_s16 + $0x10] sm:$0xff] %v730_v30  ;;  %735 = vst [vmem:[%s1388_s16 + $0x18] sm:$0xff] %v731_v31 }
 0x165 PF: > { %742 = sbr.rel (!%p1283_p12) target bundleno = 365 (0x16d), region = 120  ;;  %s938_s18 = sshll.u32 (%p1283_p12), %s1154_s19, 4 }
 0x166   : > { %s748_s25 = scalar_lea.vmem (%p1283_p12), %s1483_s3, %s938_s18 }
 0x16a   : > { %v761_v32 = vld [vmem:[%s1388_s16] sm:$0xff]  ;;  %v763_v33 = vld [vmem:[%s1388_s16 + $0x8] sm:$0xff] }
 0x16b   : > { %v765_v34 = vld [vmem:[%s1388_s16 + $0x10] sm:$0xff]  ;;  %v767_v35 = vld [vmem:[%s1388_s16 + $0x18] sm:$0xff]  ;;  %762 = vst [vmem:[%s748_s25] sm:$0xff] %v761_v32  ;;  %764 = vst [vmem:[%s748_s25 + $0x8] sm:$0xff] %v763_v33 }
 0x16c   : > { %766 = vst [vmem:[%s748_s25 + $0x30] sm:$0xff] %v765_v34  ;;  %768 = vst [vmem:[%s748_s25 + $0x38] sm:$0xff] %v767_v35 }
 0x16d PF: > { %s13_s22 = sadd.s32 1, %s1166_s22   ;;  %s1492_s19 = sld [smem:[#allocation8_spill]] }
 0x16e   : > { %p10_p6 = scmp.ge.s32.totalorder %s13_s22, 38   ;;  %s1493_s10 = sld [smem:[#allocation6_spill]] }
 0x16f   : > { %s1494_s30 = sld [smem:[#allocation7_spill]]  ;;  %s1495_s12 = smov %s1130_s13 }
 0x170   : > { %s1496_s13 = smov %s1281_s9  ;;  %s1497_s14 = smov %s1138_s15 }
 0x171   : > { %s1498_s15 = smov %s1278_s8  ;;  %s1499_s16 = smov %s1146_s17 }
 0x172   : > { %s1501_s18 = smov %s1158_s20  ;;  %12 = sbr.rel (!%p10_p6) target bundleno = 6 (0x6), region = 185 }
 0x173   : > { %s1500_s17 = smov %s1492_s19  ;;  %s1502_s19 = smov %s1162_s21 }
 0x174   : > { %s1503_s20 = smov %s1493_s10 }
 0x175   : > { %s1504_s21 = smov %s1494_s30 }

// kernel: bert_classifier_forward.31
= control target key start
LH: loop header
LB: loop body
LE: loop exit
PB: predicated region body
PF: predicated region fallthrough
CT: control target
= control target key end

     0   :  { %s3901_s0 = inlined_call_operand.vmem [shape: f32[2,768], index: 0, kind: input, shape index: {}]   ;;  %s3902_s1 = inlined_call_operand.vmem [shape: f32[768,768], index: 1, kind: input, shape index: {}]   ;;  %s3903_s2 = inlined_call_operand.vmem [shape: f32[1,768], index: 2, kind: input, shape index: {}]   ;;  %s3904_s3 = inlined_call_operand.vmem [shape: f32[768,128], index: 3, kind: input, shape index: {}]   ;;  %s3905_s4 = inlined_call_operand.vmem [shape: f32[1,128], index: 4, kind: input, shape index: {}]   ;;  %s3906_s5 = inlined_call_operand.hbm [shape: f32[2,128], index: 5, kind: output, shape index: {}]  }
   0x1   :  { %v114_v0 = vld [vmem:[%s3902_s1 + $0x2d8] sm:$0xff]  ;;  %v113_v1 = vld [vmem:[%s3902_s1 + $0x2d0] sm:$0xff]  ;;  %v108_v2 = vld [vmem:[%s3902_s1 + $0x2a8] sm:$0xff] }
   0x2   :  { %664 = vmatprep.subr.mxu0 %v114_v0  ;;  %v306_v3 = vld [vmem:[%s3902_s1 + $0x8d8] sm:$0xff]  ;;  %v107_v4 = vld [vmem:[%s3902_s1 + $0x2a0] sm:$0xff]  ;;  %v305_v5 = vld [vmem:[%s3902_s1 + $0x8d0] sm:$0xff] }
   0x3   :  { %665 = vmatpush1.msra.mxu0 %v113_v1  ;;  %735 = vmatprep.subr.mxu1 %v306_v3  ;;  %v102_v6 = vld [vmem:[%s3902_s1 + $0x278] sm:$0xff]  ;;  %v300_v7 = vld [vmem:[%s3902_s1 + $0x8a8] sm:$0xff]  ;;  %v101_v8 = vld [vmem:[%s3902_s1 + $0x270] sm:$0xff] }
   0x4   :  { %666 = vmatprep.subr.mxu0 %v108_v2  ;;  %736 = vmatpush1.msra.mxu1 %v305_v5  ;;  %v299_v9 = vld [vmem:[%s3902_s1 + $0x8a0] sm:$0xff]  ;;  %v294_v10 = vld [vmem:[%s3902_s1 + $0x878] sm:$0xff]  ;;  %v96_v11 = vld [vmem:[%s3902_s1 + $0x248] sm:$0xff] }
   0x5   :  { %667 = vmatpush1.msra.mxu0 %v107_v4  ;;  %737 = vmatprep.subr.mxu1 %v300_v7  ;;  %v293_v12 = vld [vmem:[%s3902_s1 + $0x870] sm:$0xff]  ;;  %v95_v13 = vld [vmem:[%s3902_s1 + $0x240] sm:$0xff]  ;;  %v288_v14 = vld [vmem:[%s3902_s1 + $0x848] sm:$0xff] }
   0x6   :  { %668 = vmatprep.subr.mxu0 %v102_v6  ;;  %738 = vmatpush1.msra.mxu1 %v299_v9  ;;  %v90_v15 = vld [vmem:[%s3902_s1 + $0x218] sm:$0xff]  ;;  %v287_v16 = vld [vmem:[%s3902_s1 + $0x840] sm:$0xff]  ;;  %v89_v17 = vld [vmem:[%s3902_s1 + $0x210] sm:$0xff] }
   0x7   :  { %669 = vmatpush1.msra.mxu0 %v101_v8  ;;  %739 = vmatprep.subr.mxu1 %v294_v10  ;;  %v282_v18 = vld [vmem:[%s3902_s1 + $0x818] sm:$0xff]  ;;  %v84_v19 = vld [vmem:[%s3902_s1 + $0x1e8] sm:$0xff]  ;;  %v281_v20 = vld [vmem:[%s3902_s1 + $0x810] sm:$0xff] }
   0x8   :  { %670 = vmatprep.subr.mxu0 %v96_v11  ;;  %740 = vmatpush1.msra.mxu1 %v293_v12  ;;  %v83_v21 = vld [vmem:[%s3902_s1 + $0x1e0] sm:$0xff]  ;;  %v276_v22 = vld [vmem:[%s3902_s1 + $0x7e8] sm:$0xff]  ;;  %v78_v23 = vld [vmem:[%s3902_s1 + $0x1b8] sm:$0xff] }
   0x9   :  { %671 = vmatpush1.msra.mxu0 %v95_v13  ;;  %741 = vmatprep.subr.mxu1 %v288_v14  ;;  %v275_v24 = vld [vmem:[%s3902_s1 + $0x7e0] sm:$0xff]  ;;  %v77_v25 = vld [vmem:[%s3902_s1 + $0x1b0] sm:$0xff]  ;;  %v270_v26 = vld [vmem:[%s3902_s1 + $0x7b8] sm:$0xff] }
   0xa   :  { %672 = vmatprep.subr.mxu0 %v90_v15  ;;  %742 = vmatpush1.msra.mxu1 %v287_v16  ;;  %v72_v27 = vld [vmem:[%s3902_s1 + $0x188] sm:$0xff]  ;;  %v269_v28 = vld [vmem:[%s3902_s1 + $0x7b0] sm:$0xff]  ;;  %v71_v29 = vld [vmem:[%s3902_s1 + $0x180] sm:$0xff] }
   0xb   :  { %673 = vmatpush1.msra.mxu0 %v89_v17  ;;  %743 = vmatprep.subr.mxu1 %v282_v18  ;;  %v264_v30 = vld [vmem:[%s3902_s1 + $0x788] sm:$0xff]  ;;  %v66_v31 = vld [vmem:[%s3902_s1 + $0x158] sm:$0xff]  ;;  %v263_v32 = vld [vmem:[%s3902_s1 + $0x780] sm:$0xff] }
   0xc   :  { %674 = vmatprep.subr.mxu0 %v84_v19  ;;  %744 = vmatpush1.msra.mxu1 %v281_v20  ;;  %v65_v33 = vld [vmem:[%s3902_s1 + $0x150] sm:$0xff]  ;;  %v258_v34 = vld [vmem:[%s3902_s1 + $0x758] sm:$0xff]  ;;  %v60_v35 = vld [vmem:[%s3902_s1 + $0x128] sm:$0xff] }
   0xd   :  { %675 = vmatpush1.msra.mxu0 %v83_v21  ;;  %745 = vmatprep.subr.mxu1 %v276_v22  ;;  %v257_v36 = vld [vmem:[%s3902_s1 + $0x750] sm:$0xff]  ;;  %v59_v37 = vld [vmem:[%s3902_s1 + $0x120] sm:$0xff]  ;;  %v252_v38 = vld [vmem:[%s3902_s1 + $0x728] sm:$0xff] }
   0xe   :  { %676 = vmatprep.subr.mxu0 %v78_v23  ;;  %746 = vmatpush1.msra.mxu1 %v275_v24  ;;  %v54_v39 = vld [vmem:[%s3902_s1 + $0xf8] sm:$0xff]  ;;  %v251_v40 = vld [vmem:[%s3902_s1 + $0x720] sm:$0xff]  ;;  %v53_v41 = vld [vmem:[%s3902_s1 + $0xf0] sm:$0xff] }
   0xf   :  { %677 = vmatpush1.msra.mxu0 %v77_v25  ;;  %747 = vmatprep.subr.mxu1 %v270_v26  ;;  %v246_v42 = vld [vmem:[%s3902_s1 + $0x6f8] sm:$0xff]  ;;  %v48_v43 = vld [vmem:[%s3902_s1 + $0xc8] sm:$0xff]  ;;  %v245_v44 = vld [vmem:[%s3902_s1 + $0x6f0] sm:$0xff] }
  0x10   :  { %678 = vmatprep.subr.mxu0 %v72_v27  ;;  %748 = vmatpush1.msra.mxu1 %v269_v28  ;;  %v47_v45 = vld [vmem:[%s3902_s1 + $0xc0] sm:$0xff]  ;;  %v240_v46 = vld [vmem:[%s3902_s1 + $0x6c8] sm:$0xff]  ;;  %v42_v47 = vld [vmem:[%s3902_s1 + $0x98] sm:$0xff]  ;;  %v601_v27 = vlaneseq  ;;  %v1783_v28 = vmov 1983009808  }
  0x11   :  { %679 = vmatpush1.msra.mxu0 %v71_v29  ;;  %749 = vmatprep.subr.mxu1 %v264_v30  ;;  %v239_v48 = vld [vmem:[%s3902_s1 + $0x6c0] sm:$0xff]  ;;  %v41_v49 = vld [vmem:[%s3902_s1 + $0x90] sm:$0xff]  ;;  %v234_v50 = vld [vmem:[%s3902_s1 + $0x698] sm:$0xff]  ;;  %v635_v29 = vunpack.c.l.s4 %v1783_v28 }
  0x12   :  { %680 = vmatprep.subr.mxu0 %v66_v31  ;;  %750 = vmatpush1.msra.mxu1 %v263_v32  ;;  %v36_v51 = vld [vmem:[%s3902_s1 + $0x68] sm:$0xff]  ;;  %v233_v52 = vld [vmem:[%s3902_s1 + $0x690] sm:$0xff]  ;;  %v35_v53 = vld [vmem:[%s3902_s1 + $0x60] sm:$0xff] }
  0x13   :  { %681 = vmatpush1.msra.mxu0 %v65_v33  ;;  %751 = vmatprep.subr.mxu1 %v258_v34  ;;  %v228_v54 = vld [vmem:[%s3902_s1 + $0x668] sm:$0xff]  ;;  %v30_v55 = vld [vmem:[%s3902_s1 + $0x38] sm:$0xff]  ;;  %v227_v56 = vld [vmem:[%s3902_s1 + $0x660] sm:$0xff] }
  0x14   :  { %682 = vmatprep.subr.mxu0 %v60_v35  ;;  %752 = vmatpush1.msra.mxu1 %v257_v36  ;;  %v29_v57 = vld [vmem:[%s3902_s1 + $0x30] sm:$0xff]  ;;  %v222_v58 = vld [vmem:[%s3902_s1 + $0x638] sm:$0xff]  ;;  %v24_v59 = vld [vmem:[%s3902_s1 + $0x8] sm:$0xff] }
  0x15   :  { %683 = vmatpush1.msra.mxu0 %v59_v37  ;;  %753 = vmatprep.subr.mxu1 %v252_v38  ;;  %v221_v60 = vld [vmem:[%s3902_s1 + $0x630] sm:$0xff]  ;;  %v23_v61 = vld [vmem:[%s3902_s1] sm:$0xff]  ;;  %v216_v62 = vld [vmem:[%s3902_s1 + $0x608] sm:$0xff]  ;;  %v2112_v38 = vshrl.u32 %v601_v27, 7 }
  0x16   :  { %684 = vmatprep.subr.mxu0 %v54_v39  ;;  %754 = vmatpush1.msra.mxu1 %v251_v40  ;;  %v210_v63 = vld [vmem:[%s3902_s1 + $0x5d8] sm:$0xff]  ;;  %v215_v0 = vld [vmem:[%s3902_s1 + $0x600] sm:$0xff]  ;;  %v209_v1 = vld [vmem:[%s3902_s1 + $0x5d0] sm:$0xff]  ;;  %v636_v39 = vunpack.c.0.s8 %v635_v29 }
  0x17   :  { %685 = vmatpush1.msra.mxu0 %v53_v41  ;;  %755 = vmatprep.subr.mxu1 %v246_v42  ;;  %v402_v2 = vld [vmem:[%s3902_s1 + $0xbd8] sm:$0xff]  ;;  %v204_v3 = vld [vmem:[%s3902_s1 + $0x5a8] sm:$0xff]  ;;  %v401_v4 = vld [vmem:[%s3902_s1 + $0xbd0] sm:$0xff] }
  0x18   :  { %686 = vmatprep.subr.mxu0 %v48_v43  ;;  %756 = vmatpush1.msra.mxu1 %v245_v44  ;;  %v203_v5 = vld [vmem:[%s3902_s1 + $0x5a0] sm:$0xff]  ;;  %v396_v6 = vld [vmem:[%s3902_s1 + $0xba8] sm:$0xff]  ;;  %v198_v7 = vld [vmem:[%s3902_s1 + $0x578] sm:$0xff] }
  0x19   :  { %687 = vmatpush1.msra.mxu0 %v47_v45  ;;  %757 = vmatprep.subr.mxu1 %v240_v46  ;;  %v395_v8 = vld [vmem:[%s3902_s1 + $0xba0] sm:$0xff]  ;;  %v197_v9 = vld [vmem:[%s3902_s1 + $0x570] sm:$0xff]  ;;  %v390_v10 = vld [vmem:[%s3902_s1 + $0xb78] sm:$0xff] }
  0x1a   :  { %688 = vmatprep.subr.mxu0 %v42_v47  ;;  %758 = vmatpush1.msra.mxu1 %v239_v48  ;;  %v192_v11 = vld [vmem:[%s3902_s1 + $0x548] sm:$0xff]  ;;  %v389_v12 = vld [vmem:[%s3902_s1 + $0xb70] sm:$0xff]  ;;  %v191_v13 = vld [vmem:[%s3902_s1 + $0x540] sm:$0xff]  ;;  %v639_v48 = vsub.s32 %v636_v39, %v2112_v38 }
  0x1b   :  { %689 = vmatpush1.msra.mxu0 %v41_v49  ;;  %759 = vmatprep.subr.mxu1 %v234_v50  ;;  %v384_v14 = vld [vmem:[%s3902_s1 + $0xb48] sm:$0xff]  ;;  %v186_v15 = vld [vmem:[%s3902_s1 + $0x518] sm:$0xff]  ;;  %v383_v16 = vld [vmem:[%s3902_s1 + $0xb40] sm:$0xff] }
  0x1c   :  { %690 = vmatprep.subr.mxu0 %v36_v51  ;;  %760 = vmatpush1.msra.mxu1 %v233_v52  ;;  %v185_v17 = vld [vmem:[%s3902_s1 + $0x510] sm:$0xff]  ;;  %v378_v18 = vld [vmem:[%s3902_s1 + $0xb18] sm:$0xff]  ;;  %v180_v19 = vld [vmem:[%s3902_s1 + $0x4e8] sm:$0xff] }
  0x1d   :  { %691 = vmatpush1.msra.mxu0 %v35_v53  ;;  %761 = vmatprep.subr.mxu1 %v228_v54  ;;  %v377_v20 = vld [vmem:[%s3902_s1 + $0xb10] sm:$0xff]  ;;  %v179_v21 = vld [vmem:[%s3902_s1 + $0x4e0] sm:$0xff]  ;;  %v372_v22 = vld [vmem:[%s3902_s1 + $0xae8] sm:$0xff] }
  0x1e   :  { %692 = vmatprep.subr.mxu0 %v30_v55  ;;  %762 = vmatpush1.msra.mxu1 %v227_v56  ;;  %v174_v23 = vld [vmem:[%s3902_s1 + $0x4b8] sm:$0xff]  ;;  %v371_v24 = vld [vmem:[%s3902_s1 + $0xae0] sm:$0xff]  ;;  %v173_v25 = vld [vmem:[%s3902_s1 + $0x4b0] sm:$0xff] }
  0x1f   :  { %693 = vmatpush1.msra.mxu0 %v29_v57  ;;  %763 = vmatprep.subr.mxu1 %v222_v58  ;;  %v366_v26 = vld [vmem:[%s3902_s1 + $0xab8] sm:$0xff]  ;;  %v168_v30 = vld [vmem:[%s3902_s1 + $0x488] sm:$0xff]  ;;  %v365_v31 = vld [vmem:[%s3902_s1 + $0xab0] sm:$0xff] }
  0x20   :  { %694 = vmatprep.subr.mxu0 %v24_v59  ;;  %764 = vmatpush1.msra.mxu1 %v221_v60  ;;  %v167_v32 = vld [vmem:[%s3902_s1 + $0x480] sm:$0xff]  ;;  %v360_v33 = vld [vmem:[%s3902_s1 + $0xa88] sm:$0xff]  ;;  %v162_v34 = vld [vmem:[%s3902_s1 + $0x458] sm:$0xff] }
  0x21   :  { %695 = vmatpush1.msra.mxu0 %v23_v61  ;;  %765 = vmatprep.subr.mxu1 %v216_v62  ;;  %v359_v35 = vld [vmem:[%s3902_s1 + $0xa80] sm:$0xff]  ;;  %v161_v36 = vld [vmem:[%s3902_s1 + $0x450] sm:$0xff]  ;;  %v354_v37 = vld [vmem:[%s3902_s1 + $0xa58] sm:$0xff] }
  0x22   :  { %696 = vmatprep.subr.mxu0 %v210_v63  ;;  %766 = vmatpush1.msra.mxu1 %v215_v0  ;;  %v156_v40 = vld [vmem:[%s3902_s1 + $0x428] sm:$0xff]  ;;  %v353_v41 = vld [vmem:[%s3902_s1 + $0xa50] sm:$0xff]  ;;  %v155_v42 = vld [vmem:[%s3902_s1 + $0x420] sm:$0xff] }
  0x23   :  { %697 = vmatpush2.msra.mxu0 %v209_v1  ;;  %767 = vmatprep.subr.mxu1 %v402_v2  ;;  %v348_v43 = vld [vmem:[%s3902_s1 + $0xa28] sm:$0xff]  ;;  %v150_v44 = vld [vmem:[%s3902_s1 + $0x3f8] sm:$0xff]  ;;  %v347_v45 = vld [vmem:[%s3902_s1 + $0xa20] sm:$0xff] }
  0x24   :  { %698 = vmatprep.subr.mxu0 %v204_v3  ;;  %768 = vmatpush2.msra.mxu1 %v401_v4  ;;  %v149_v46 = vld [vmem:[%s3902_s1 + $0x3f0] sm:$0xff]  ;;  %v342_v47 = vld [vmem:[%s3902_s1 + $0x9f8] sm:$0xff]  ;;  %v144_v49 = vld [vmem:[%s3902_s1 + $0x3c8] sm:$0xff] }
  0x25   :  { %699 = vmatpush2.msra.mxu0 %v203_v5  ;;  %769 = vmatprep.subr.mxu1 %v396_v6  ;;  %v341_v50 = vld [vmem:[%s3902_s1 + $0x9f0] sm:$0xff]  ;;  %v21_v51 = vld [vmem:[%s3901_s0] sm:$0xff]  ;;  %v336_v53 = vld [vmem:[%s3902_s1 + $0x9c8] sm:$0xff] }
  0x26   :  { %700 = vmatprep.subr.mxu0 %v198_v7  ;;  %770 = vmatpush2.msra.mxu1 %v395_v8  ;;  %v143_v52 = vld [vmem:[%s3902_s1 + $0x3c0] sm:$0xff]  ;;  %v138_v54 = vld [vmem:[%s3902_s1 + $0x398] sm:$0xff]  ;;  %v137_v56 = vld [vmem:[%s3902_s1 + $0x390] sm:$0xff]  ;;  %v2166_v58 = vrot.slane %v21_v51, %v639_v48  ;;  %v633_v59 = vcombine.high %v21_v51, %v21_v51 }
  0x27   :  { %701 = vmatpush2.msra.mxu0 %v197_v9  ;;  %771 = vmatprep.subr.mxu1 %v390_v10  ;;  %v335_v55 = vld [vmem:[%s3902_s1 + $0x9c0] sm:$0xff]  ;;  %v330_v57 = vld [vmem:[%s3902_s1 + $0x998] sm:$0xff]  ;;  %v132_v60 = vld [vmem:[%s3902_s1 + $0x368] sm:$0xff] }
  0x28   :  { %702 = vmatprep.subr.mxu0 %v192_v11  ;;  %772 = vmatpush2.msra.mxu1 %v389_v12  ;;  %v329_v61 = vld [vmem:[%s3902_s1 + $0x990] sm:$0xff]  ;;  %v131_v62 = vld [vmem:[%s3902_s1 + $0x360] sm:$0xff]  ;;  %v324_v63 = vld [vmem:[%s3902_s1 + $0x968] sm:$0xff]  ;;  %v2194_v4 = vcombine.high %v2166_v58, %v2166_v58  ;;  %v2196_v5 = vrot.slane %v633_v59, %v639_v48 }
  0x29   :  { %703 = vmatpush2.msra.mxu0 %v191_v13  ;;  %773 = vmatprep.subr.mxu1 %v384_v14  ;;  %v126_v0 = vld [vmem:[%s3902_s1 + $0x338] sm:$0xff]  ;;  %v323_v1 = vld [vmem:[%s3902_s1 + $0x960] sm:$0xff]  ;;  %v125_v2 = vld [vmem:[%s3902_s1 + $0x330] sm:$0xff] }
  0x2a   :  { %704 = vmatprep.subr.mxu0 %v186_v15  ;;  %774 = vmatpush2.msra.mxu1 %v383_v16  ;;  %v318_v3 = vld [vmem:[%s3902_s1 + $0x938] sm:$0xff]  ;;  %v120_v6 = vld [vmem:[%s3902_s1 + $0x308] sm:$0xff]  ;;  %v119_v7 = vld [vmem:[%s3902_s1 + $0x300] sm:$0xff]  ;;  %v2219_v12 = vcombine.high %v2196_v5, %v2196_v5 }
  0x2b   :  { %705 = vmatpush2.msra.mxu0 %v185_v17  ;;  %775 = vmatprep.subr.mxu1 %v378_v18  ;;  %v317_v8 = vld [vmem:[%s3902_s1 + $0x930] sm:$0xff]  ;;  %v312_v9 = vld [vmem:[%s3902_s1 + $0x908] sm:$0xff]  ;;  %v498_v10 = vld [vmem:[%s3902_s1 + $0xed8] sm:$0xff] }
  0x2c   :  { %706 = vmatprep.subr.mxu0 %v180_v19  ;;  %776 = vmatpush2.msra.mxu1 %v377_v20  ;;  %v311_v11 = vld [vmem:[%s3902_s1 + $0x900] sm:$0xff]  ;;  %v497_v13 = vld [vmem:[%s3902_s1 + $0xed0] sm:$0xff]  ;;  %v492_v14 = vld [vmem:[%s3902_s1 + $0xea8] sm:$0xff] }
  0x2d   :  { %707 = vmatpush2.msra.mxu0 %v179_v21  ;;  %777 = vmatprep.subr.mxu1 %v372_v22  ;;  %v116_v15 = vld [vmem:[%s3902_s1 + $0x2e8] sm:$0xff]  ;;  %v491_v16 = vld [vmem:[%s3902_s1 + $0xea0] sm:$0xff]  ;;  %v486_v18 = vld [vmem:[%s3902_s1 + $0xe78] sm:$0xff] }
  0x2e   :  { %708 = vmatprep.subr.mxu0 %v174_v23  ;;  %778 = vmatpush2.msra.mxu1 %v371_v24  ;;  %v115_v17 = vld [vmem:[%s3902_s1 + $0x2e0] sm:$0xff]  ;;  %v110_v19 = vld [vmem:[%s3902_s1 + $0x2b8] sm:$0xff]  ;;  %v485_v20 = vld [vmem:[%s3902_s1 + $0xe70] sm:$0xff] }
  0x2f   :  { %709 = vmatpush2.msra.mxu0 %v173_v25  ;;  %779 = vmatprep.subr.mxu1 %v366_v26  ;;  %v109_v21 = vld [vmem:[%s3902_s1 + $0x2b0] sm:$0xff]  ;;  %v480_v22 = vld [vmem:[%s3902_s1 + $0xe48] sm:$0xff]  ;;  %v479_v24 = vld [vmem:[%s3902_s1 + $0xe40] sm:$0xff] }
  0x30   :  { %710 = vmatprep.subr.mxu0 %v168_v30  ;;  %780 = vmatpush2.msra.mxu1 %v365_v31  ;;  %v104_v23 = vld [vmem:[%s3902_s1 + $0x288] sm:$0xff]  ;;  %v103_v25 = vld [vmem:[%s3902_s1 + $0x280] sm:$0xff]  ;;  %v474_v26 = vld [vmem:[%s3902_s1 + $0xe18] sm:$0xff] }
  0x31   :  { %711 = vmatpush2.msra.mxu0 %v167_v32  ;;  %781 = vmatprep.subr.mxu1 %v360_v33  ;;  %v98_v27 = vld [vmem:[%s3902_s1 + $0x258] sm:$0xff]  ;;  %v473_v28 = vld [vmem:[%s3902_s1 + $0xe10] sm:$0xff]  ;;  %v468_v30 = vld [vmem:[%s3902_s1 + $0xde8] sm:$0xff] }
  0x32   :  { %712 = vmatprep.subr.mxu0 %v162_v34  ;;  %782 = vmatpush2.msra.mxu1 %v359_v35  ;;  %v97_v29 = vld [vmem:[%s3902_s1 + $0x250] sm:$0xff]  ;;  %v92_v31 = vld [vmem:[%s3902_s1 + $0x228] sm:$0xff]  ;;  %v467_v32 = vld [vmem:[%s3902_s1 + $0xde0] sm:$0xff] }
  0x33   :  { %713 = vmatpush2.msra.mxu0 %v161_v36  ;;  %783 = vmatprep.subr.mxu1 %v354_v37  ;;  %v91_v33 = vld [vmem:[%s3902_s1 + $0x220] sm:$0xff]  ;;  %v462_v34 = vld [vmem:[%s3902_s1 + $0xdb8] sm:$0xff]  ;;  %v461_v36 = vld [vmem:[%s3902_s1 + $0xdb0] sm:$0xff] }
  0x34   :  { %714 = vmatprep.subr.mxu0 %v156_v40  ;;  %784 = vmatpush2.msra.mxu1 %v353_v41  ;;  %v86_v35 = vld [vmem:[%s3902_s1 + $0x1f8] sm:$0xff]  ;;  %v85_v37 = vld [vmem:[%s3902_s1 + $0x1f0] sm:$0xff]  ;;  %v456_v39 = vld [vmem:[%s3902_s1 + $0xd88] sm:$0xff] }
  0x35   :  { %715 = vmatpush2.msra.mxu0 %v155_v42  ;;  %785 = vmatprep.subr.mxu1 %v348_v43  ;;  %v80_v40 = vld [vmem:[%s3902_s1 + $0x1c8] sm:$0xff]  ;;  %v455_v41 = vld [vmem:[%s3902_s1 + $0xd80] sm:$0xff]  ;;  %v450_v43 = vld [vmem:[%s3902_s1 + $0xd58] sm:$0xff] }
  0x36   :  { %716 = vmatprep.subr.mxu0 %v150_v44  ;;  %786 = vmatpush2.msra.mxu1 %v347_v45  ;;  %v79_v42 = vld [vmem:[%s3902_s1 + $0x1c0] sm:$0xff]  ;;  %v74_v44 = vld [vmem:[%s3902_s1 + $0x198] sm:$0xff]  ;;  %v449_v45 = vld [vmem:[%s3902_s1 + $0xd50] sm:$0xff] }
  0x37   :  { %717 = vmatpush2.msra.mxu0 %v149_v46  ;;  %787 = vmatprep.subr.mxu1 %v342_v47  ;;  %v73_v46 = vld [vmem:[%s3902_s1 + $0x190] sm:$0xff]  ;;  %v444_v47 = vld [vmem:[%s3902_s1 + $0xd28] sm:$0xff]  ;;  %v438_v51 = vld [vmem:[%s3902_s1 + $0xcf8] sm:$0xff] }
  0x38   :  { %718 = vmatprep.subr.mxu0 %v144_v49  ;;  %788 = vmatpush2.msra.mxu1 %v341_v50  ;;  %v68_v48 = vld [vmem:[%s3902_s1 + $0x168] sm:$0xff]  ;;  %v443_v49 = vld [vmem:[%s3902_s1 + $0xd20] sm:$0xff] }
  0x39   :  { %719 = vmatpush2.msra.mxu0 %v143_v52  ;;  %789 = vmatprep.subr.mxu1 %v336_v53  ;;  %v67_v50 = vld [vmem:[%s3902_s1 + $0x160] sm:$0xff]  ;;  %v62_v52 = vld [vmem:[%s3902_s1 + $0x138] sm:$0xff]  ;;  %v437_v53 = vld [vmem:[%s3902_s1 + $0xcf0] sm:$0xff] }
  0x3a   :  { %720 = vmatprep.subr.mxu0 %v138_v54  ;;  %790 = vmatpush2.msra.mxu1 %v335_v55  ;;  %v61_v54 = vld [vmem:[%s3902_s1 + $0x130] sm:$0xff]  ;;  %v432_v55 = vld [vmem:[%s3902_s1 + $0xcc8] sm:$0xff]  ;;  %v55_v59 = vld [vmem:[%s3902_s1 + $0x100] sm:$0xff] }
  0x3b   :  { %721 = vmatpush2.msra.mxu0 %v137_v56  ;;  %791 = vmatprep.subr.mxu1 %v330_v57  ;;  %v56_v56 = vld [vmem:[%s3902_s1 + $0x108] sm:$0xff]  ;;  %v431_v57 = vld [vmem:[%s3902_s1 + $0xcc0] sm:$0xff] }
  0x3c   :  { %722 = vmatprep.subr.mxu0 %v132_v60  ;;  %792 = vmatpush2.msra.mxu1 %v329_v61  ;;  %v426_v60 = vld [vmem:[%s3902_s1 + $0xc98] sm:$0xff] }
  0x3d   :  { %723 = vmatpush2.msra.mxu0 %v131_v62  ;;  %793 = vmatprep.subr.mxu1 %v324_v63  ;;  %v50_v61 = vld [vmem:[%s3902_s1 + $0xd8] sm:$0xff]  ;;  %v425_v62 = vld [vmem:[%s3902_s1 + $0xc90] sm:$0xff] }
  0x3e   :  { %724 = vmatprep.subr.mxu0 %v126_v0  ;;  %794 = vmatpush2.msra.mxu1 %v323_v1  ;;  %v49_v63 = vld [vmem:[%s3902_s1 + $0xd0] sm:$0xff]  ;;  %v420_v0 = vld [vmem:[%s3902_s1 + $0xc68] sm:$0xff] }
  0x3f   :  { %725 = vmatpush2.msra.mxu0 %v125_v2  ;;  %795 = vmatprep.subr.mxu1 %v318_v3  ;;  %v44_v1 = vld [vmem:[%s3902_s1 + $0xa8] sm:$0xff]  ;;  %v419_v2 = vld [vmem:[%s3902_s1 + $0xc60] sm:$0xff] }
  0x40   :  { %726 = vmatprep.subr.mxu0 %v120_v6  ;;  %728 = vmatprep.mubr.f32.mxu0 %v2194_v4  ;;  %v43_v3 = vld [vmem:[%s3902_s1 + $0xa0] sm:$0xff]  ;;  %v414_v6 = vld [vmem:[%s3902_s1 + $0xc38] sm:$0xff] }
  0x41   :  { %727 = vmatpush2.msra.mxu0 %v119_v7  ;;  %796 = vmatpush2.msra.mxu1 %v317_v8  ;;  %v38_v7 = vld [vmem:[%s3902_s1 + $0x78] sm:$0xff]  ;;  %v413_v8 = vld [vmem:[%s3902_s1 + $0xc30] sm:$0xff] }
  0x42   :  { %729 = vmatmul.mubr.f32.vlgmr.msra.gmra.mxu0 %v2166_v58  ;;  %797 = vmatprep.subr.mxu1 %v312_v9  ;;  %v37_v9 = vld [vmem:[%s3902_s1 + $0x70] sm:$0xff] }
  0x43   :  { %806 = vmatprep.subr.mxu0 %v498_v10  ;;  %798 = vmatpush2.msra.mxu1 %v311_v11  ;;  %v408_v10 = vld [vmem:[%s3902_s1 + $0xc08] sm:$0xff] }
  0x44   :  { %799 = vmatprep.mubr.f32.mxu1 %v2219_v12  ;;  %807 = vmatpush1.msra.mxu0 %v497_v13  ;;  %v32_v11 = vld [vmem:[%s3902_s1 + $0x48] sm:$0xff]  ;;  %v407_v13 = vld [vmem:[%s3902_s1 + $0xc00] sm:$0xff] }
  0x45   :  { %800 = vmatmul.mubr.f32.vlgmr.msra.gmra.mxu1 %v2196_v5  ;;  %808 = vmatprep.subr.mxu0 %v492_v14  ;;  %v31_v14 = vld [vmem:[%s3902_s1 + $0x40] sm:$0xff] }
  0x46   :  { %877 = vmatprep.subr.mxu1 %v116_v15  ;;  %809 = vmatpush1.msra.mxu0 %v491_v16  ;;  %v594_v15 = vld [vmem:[%s3902_s1 + $0x11d8] sm:$0xff] }
  0x47   :  { %878 = vmatpush1.msra.mxu1 %v115_v17  ;;  %810 = vmatprep.subr.mxu0 %v486_v18  ;;  %v26_v16 = vld [vmem:[%s3902_s1 + $0x18] sm:$0xff]  ;;  %v593_v17 = vld [vmem:[%s3902_s1 + $0x11d0] sm:$0xff] }
  0x48   :  { %879 = vmatprep.subr.mxu1 %v110_v19  ;;  %811 = vmatpush1.msra.mxu0 %v485_v20  ;;  %v25_v18 = vld [vmem:[%s3902_s1 + $0x10] sm:$0xff]  ;;  %v588_v19 = vld [vmem:[%s3902_s1 + $0x11a8] sm:$0xff] }
  0x49   :  { %880 = vmatpush1.msra.mxu1 %v109_v21  ;;  %812 = vmatprep.subr.mxu0 %v480_v22  ;;  %v212_v20 = vld [vmem:[%s3902_s1 + $0x5e8] sm:$0xff]  ;;  %v587_v21 = vld [vmem:[%s3902_s1 + $0x11a0] sm:$0xff] }
  0x4a   :  { %881 = vmatprep.subr.mxu1 %v104_v23  ;;  %813 = vmatpush1.msra.mxu0 %v479_v24  ;;  %v211_v22 = vld [vmem:[%s3902_s1 + $0x5e0] sm:$0xff]  ;;  %v582_v23 = vld [vmem:[%s3902_s1 + $0x1178] sm:$0xff] }
  0x4b   :  { %882 = vmatpush1.msra.mxu1 %v103_v25  ;;  %814 = vmatprep.subr.mxu0 %v474_v26  ;;  %v206_v24 = vld [vmem:[%s3902_s1 + $0x5b8] sm:$0xff]  ;;  %v581_v25 = vld [vmem:[%s3902_s1 + $0x1170] sm:$0xff] }
  0x4c   :  { %883 = vmatprep.subr.mxu1 %v98_v27  ;;  %815 = vmatpush1.msra.mxu0 %v473_v28  ;;  %v205_v26 = vld [vmem:[%s3902_s1 + $0x5b0] sm:$0xff]  ;;  %v576_v27 = vld [vmem:[%s3902_s1 + $0x1148] sm:$0xff] }
  0x4d   :  { %884 = vmatpush1.msra.mxu1 %v97_v29  ;;  %816 = vmatprep.subr.mxu0 %v468_v30  ;;  %v200_v28 = vld [vmem:[%s3902_s1 + $0x588] sm:$0xff]  ;;  %v575_v29 = vld [vmem:[%s3902_s1 + $0x1140] sm:$0xff] }
  0x4e   :  { %885 = vmatprep.subr.mxu1 %v92_v31  ;;  %817 = vmatpush1.msra.mxu0 %v467_v32  ;;  %v199_v30 = vld [vmem:[%s3902_s1 + $0x580] sm:$0xff]  ;;  %v570_v31 = vld [vmem:[%s3902_s1 + $0x1118] sm:$0xff] }
  0x4f   :  { %886 = vmatpush1.msra.mxu1 %v91_v33  ;;  %818 = vmatprep.subr.mxu0 %v462_v34  ;;  %v194_v32 = vld [vmem:[%s3902_s1 + $0x558] sm:$0xff]  ;;  %v569_v33 = vld [vmem:[%s3902_s1 + $0x1110] sm:$0xff] }
  0x50   :  { %887 = vmatprep.subr.mxu1 %v86_v35  ;;  %819 = vmatpush1.msra.mxu0 %v461_v36  ;;  %v193_v34 = vld [vmem:[%s3902_s1 + $0x550] sm:$0xff]  ;;  %v564_v35 = vld [vmem:[%s3902_s1 + $0x10e8] sm:$0xff] }
  0x51   :  { %888 = vmatpush1.msra.mxu1 %v85_v37  ;;  %820 = vmatprep.subr.mxu0 %v456_v39  ;;  %v188_v36 = vld [vmem:[%s3902_s1 + $0x528] sm:$0xff]  ;;  %v563_v37 = vld [vmem:[%s3902_s1 + $0x10e0] sm:$0xff] }
  0x52   :  { %889 = vmatprep.subr.mxu1 %v80_v40  ;;  %821 = vmatpush1.msra.mxu0 %v455_v41  ;;  %v187_v39 = vld [vmem:[%s3902_s1 + $0x520] sm:$0xff]  ;;  %v558_v40 = vld [vmem:[%s3902_s1 + $0x10b8] sm:$0xff] }
  0x53   :  { %890 = vmatpush1.msra.mxu1 %v79_v42  ;;  %822 = vmatprep.subr.mxu0 %v450_v43  ;;  %v182_v41 = vld [vmem:[%s3902_s1 + $0x4f8] sm:$0xff]  ;;  %v557_v42 = vld [vmem:[%s3902_s1 + $0x10b0] sm:$0xff] }
  0x54   :  { %891 = vmatprep.subr.mxu1 %v74_v44  ;;  %823 = vmatpush1.msra.mxu0 %v449_v45  ;;  %v181_v43 = vld [vmem:[%s3902_s1 + $0x4f0] sm:$0xff]  ;;  %v552_v44 = vld [vmem:[%s3902_s1 + $0x1088] sm:$0xff] }
  0x55   :  { %892 = vmatpush1.msra.mxu1 %v73_v46  ;;  %824 = vmatprep.subr.mxu0 %v444_v47  ;;  %v176_v45 = vld [vmem:[%s3902_s1 + $0x4c8] sm:$0xff]  ;;  %v551_v46 = vld [vmem:[%s3902_s1 + $0x1080] sm:$0xff] }
  0x56   :  { %893 = vmatprep.subr.mxu1 %v68_v48  ;;  %825 = vmatpush1.msra.mxu0 %v443_v49  ;;  %v175_v47 = vld [vmem:[%s3902_s1 + $0x4c0] sm:$0xff]  ;;  %v546_v48 = vld [vmem:[%s3902_s1 + $0x1058] sm:$0xff] }
  0x57   :  { %894 = vmatpush1.msra.mxu1 %v67_v50  ;;  %826 = vmatprep.subr.mxu0 %v438_v51  ;;  %v170_v49 = vld [vmem:[%s3902_s1 + $0x498] sm:$0xff]  ;;  %v545_v50 = vld [vmem:[%s3902_s1 + $0x1050] sm:$0xff] }
  0x58   :  { %895 = vmatprep.subr.mxu1 %v62_v52  ;;  %827 = vmatpush1.msra.mxu0 %v437_v53  ;;  %v169_v51 = vld [vmem:[%s3902_s1 + $0x490] sm:$0xff]  ;;  %v540_v52 = vld [vmem:[%s3902_s1 + $0x1028] sm:$0xff] }
  0x59   :  { %896 = vmatpush1.msra.mxu1 %v61_v54  ;;  %828 = vmatprep.subr.mxu0 %v432_v55  ;;  %v164_v53 = vld [vmem:[%s3902_s1 + $0x468] sm:$0xff]  ;;  %v539_v54 = vld [vmem:[%s3902_s1 + $0x1020] sm:$0xff] }
  0x5a   :  { %897 = vmatprep.subr.mxu1 %v56_v56  ;;  %829 = vmatpush1.msra.mxu0 %v431_v57  ;;  %v163_v55 = vld [vmem:[%s3902_s1 + $0x460] sm:$0xff]  ;;  %v534_v56 = vld [vmem:[%s3902_s1 + $0xff8] sm:$0xff] }
  0x5b   :  { %898 = vmatpush1.msra.mxu1 %v55_v59  ;;  %830 = vmatprep.subr.mxu0 %v426_v60  ;;  %v158_v57 = vld [vmem:[%s3902_s1 + $0x438] sm:$0xff]  ;;  %v533_v59 = vld [vmem:[%s3902_s1 + $0xff0] sm:$0xff] }
  0x5c   :  { %899 = vmatprep.subr.mxu1 %v50_v61  ;;  %831 = vmatpush1.msra.mxu0 %v425_v62  ;;  %v157_v60 = vld [vmem:[%s3902_s1 + $0x430] sm:$0xff]  ;;  %v528_v61 = vld [vmem:[%s3902_s1 + $0xfc8] sm:$0xff] }
  0x5d   :  { %900 = vmatpush1.msra.mxu1 %v49_v63  ;;  %832 = vmatprep.subr.mxu0 %v420_v0  ;;  %v152_v62 = vld [vmem:[%s3902_s1 + $0x408] sm:$0xff]  ;;  %v527_v63 = vld [vmem:[%s3902_s1 + $0xfc0] sm:$0xff] }
  0x5e   :  { %901 = vmatprep.subr.mxu1 %v44_v1  ;;  %833 = vmatpush1.msra.mxu0 %v419_v2  ;;  %v151_v0 = vld [vmem:[%s3902_s1 + $0x400] sm:$0xff]  ;;  %v522_v1 = vld [vmem:[%s3902_s1 + $0xf98] sm:$0xff] }
  0x5f   :  { %902 = vmatpush1.msra.mxu1 %v43_v3  ;;  %834 = vmatprep.subr.mxu0 %v414_v6  ;;  %v146_v2 = vld [vmem:[%s3902_s1 + $0x3d8] sm:$0xff]  ;;  %v521_v3 = vld [vmem:[%s3902_s1 + $0xf90] sm:$0xff] }
  0x60   :  { %903 = vmatprep.subr.mxu1 %v38_v7  ;;  %835 = vmatpush1.msra.mxu0 %v413_v8  ;;  %v145_v6 = vld [vmem:[%s3902_s1 + $0x3d0] sm:$0xff]  ;;  %v516_v7 = vld [vmem:[%s3902_s1 + $0xf68] sm:$0xff] }
  0x61   :  { %904 = vmatpush1.msra.mxu1 %v37_v9  ;;  %836 = vmatprep.subr.mxu0 %v408_v10  ;;  %v140_v8 = vld [vmem:[%s3902_s1 + $0x3a8] sm:$0xff]  ;;  %v515_v9 = vld [vmem:[%s3902_s1 + $0xf60] sm:$0xff] }
  0x62   :  { %905 = vmatprep.subr.mxu1 %v32_v11  ;;  %837 = vmatpush1.msra.mxu0 %v407_v13  ;;  %v139_v10 = vld [vmem:[%s3902_s1 + $0x3a0] sm:$0xff]  ;;  %v510_v11 = vld [vmem:[%s3902_s1 + $0xf38] sm:$0xff]  ;;  %v2581_v13 = vld.sshfl [vmem:[%s3901_s0 + $0x8] sm:$0x33 pattern:$0x76325410] }
  0x63   :  { %906 = vmatpush1.msra.mxu1 %v31_v14  ;;  %838 = vmatprep.subr.mxu0 %v594_v15  ;;  %v134_v14 = vld [vmem:[%s3902_s1 + $0x378] sm:$0xff]  ;;  %v509_v15 = vld [vmem:[%s3902_s1 + $0xf30] sm:$0xff] }
  0x64   :  { %907 = vmatprep.subr.mxu1 %v26_v16  ;;  %839 = vmatpush2.msra.mxu0 %v593_v17  ;;  %v133_v16 = vld [vmem:[%s3902_s1 + $0x370] sm:$0xff]  ;;  %v504_v17 = vld [vmem:[%s3902_s1 + $0xf08] sm:$0xff] }
  0x65   :  { %908 = vmatpush1.msra.mxu1 %v25_v18  ;;  %840 = vmatprep.subr.mxu0 %v588_v19  ;;  %v128_v18 = vld [vmem:[%s3902_s1 + $0x348] sm:$0xff]  ;;  %v503_v19 = vld [vmem:[%s3902_s1 + $0xf00] sm:$0xff] }
  0x66   :  { %909 = vmatprep.subr.mxu1 %v212_v20  ;;  %841 = vmatpush2.msra.mxu0 %v587_v21  ;;  %v2603_v20 = vcombine.high %v2581_v13, %v2581_v13  ;;  %v127_v21 = vld [vmem:[%s3902_s1 + $0x340] sm:$0xff] }
  0x67   :  { %910 = vmatpush2.msra.mxu1 %v211_v22  ;;  %842 = vmatprep.subr.mxu0 %v582_v23  ;;  %v122_v22 = vld [vmem:[%s3902_s1 + $0x318] sm:$0xff]  ;;  %v308_v23 = vld [vmem:[%s3902_s1 + $0x8e8] sm:$0xff] }
  0x68   :  { %911 = vmatprep.subr.mxu1 %v206_v24  ;;  %843 = vmatpush2.msra.mxu0 %v581_v25  ;;  %v121_v24 = vld [vmem:[%s3902_s1 + $0x310] sm:$0xff]  ;;  %v307_v25 = vld [vmem:[%s3902_s1 + $0x8e0] sm:$0xff] }
  0x69   :  { %912 = vmatpush2.msra.mxu1 %v205_v26  ;;  %844 = vmatprep.subr.mxu0 %v576_v27  ;;  %v302_v26 = vld [vmem:[%s3902_s1 + $0x8b8] sm:$0xff]  ;;  %v500_v27 = vld [vmem:[%s3902_s1 + $0xee8] sm:$0xff] }
  0x6a   :  { %913 = vmatprep.subr.mxu1 %v200_v28  ;;  %845 = vmatpush2.msra.mxu0 %v575_v29  ;;  %v301_v28 = vld [vmem:[%s3902_s1 + $0x8b0] sm:$0xff]  ;;  %v499_v29 = vld [vmem:[%s3902_s1 + $0xee0] sm:$0xff] }
  0x6b   :  { %914 = vmatpush2.msra.mxu1 %v199_v30  ;;  %846 = vmatprep.subr.mxu0 %v570_v31  ;;  %v296_v30 = vld [vmem:[%s3902_s1 + $0x888] sm:$0xff]  ;;  %v494_v31 = vld [vmem:[%s3902_s1 + $0xeb8] sm:$0xff] }
  0x6c   :  { %915 = vmatprep.subr.mxu1 %v194_v32  ;;  %847 = vmatpush2.msra.mxu0 %v569_v33  ;;  %v295_v32 = vld [vmem:[%s3902_s1 + $0x880] sm:$0xff]  ;;  %v493_v33 = vld [vmem:[%s3902_s1 + $0xeb0] sm:$0xff] }
  0x6d   :  { %916 = vmatpush2.msra.mxu1 %v193_v34  ;;  %848 = vmatprep.subr.mxu0 %v564_v35  ;;  %v290_v34 = vld [vmem:[%s3902_s1 + $0x858] sm:$0xff]  ;;  %v488_v35 = vld [vmem:[%s3902_s1 + $0xe88] sm:$0xff] }
  0x6e   :  { %917 = vmatprep.subr.mxu1 %v188_v36  ;;  %849 = vmatpush2.msra.mxu0 %v563_v37  ;;  %v289_v36 = vld [vmem:[%s3902_s1 + $0x850] sm:$0xff]  ;;  %v487_v37 = vld [vmem:[%s3902_s1 + $0xe80] sm:$0xff] }
  0x6f   :  { %918 = vmatpush2.msra.mxu1 %v187_v39  ;;  %850 = vmatprep.subr.mxu0 %v558_v40  ;;  %v284_v39 = vld [vmem:[%s3902_s1 + $0x828] sm:$0xff]  ;;  %v482_v40 = vld [vmem:[%s3902_s1 + $0xe58] sm:$0xff] }
  0x70   :  { %919 = vmatprep.subr.mxu1 %v182_v41  ;;  %851 = vmatpush2.msra.mxu0 %v557_v42  ;;  %v283_v41 = vld [vmem:[%s3902_s1 + $0x820] sm:$0xff]  ;;  %v481_v42 = vld [vmem:[%s3902_s1 + $0xe50] sm:$0xff] }
  0x71   :  { %920 = vmatpush2.msra.mxu1 %v181_v43  ;;  %852 = vmatprep.subr.mxu0 %v552_v44  ;;  %v278_v43 = vld [vmem:[%s3902_s1 + $0x7f8] sm:$0xff]  ;;  %v476_v44 = vld [vmem:[%s3902_s1 + $0xe28] sm:$0xff] }
  0x72   :  { %921 = vmatprep.subr.mxu1 %v176_v45  ;;  %853 = vmatpush2.msra.mxu0 %v551_v46  ;;  %v277_v45 = vld [vmem:[%s3902_s1 + $0x7f0] sm:$0xff]  ;;  %v475_v46 = vld [vmem:[%s3902_s1 + $0xe20] sm:$0xff] }
  0x73   :  { %922 = vmatpush2.msra.mxu1 %v175_v47  ;;  %854 = vmatprep.subr.mxu0 %v546_v48  ;;  %v272_v47 = vld [vmem:[%s3902_s1 + $0x7c8] sm:$0xff]  ;;  %v470_v48 = vld [vmem:[%s3902_s1 + $0xdf8] sm:$0xff] }
  0x74   :  { %923 = vmatprep.subr.mxu1 %v170_v49  ;;  %855 = vmatpush2.msra.mxu0 %v545_v50  ;;  %v271_v49 = vld [vmem:[%s3902_s1 + $0x7c0] sm:$0xff]  ;;  %v469_v50 = vld [vmem:[%s3902_s1 + $0xdf0] sm:$0xff] }
  0x75   :  { %924 = vmatpush2.msra.mxu1 %v169_v51  ;;  %856 = vmatprep.subr.mxu0 %v540_v52  ;;  %v266_v51 = vld [vmem:[%s3902_s1 + $0x798] sm:$0xff]  ;;  %v464_v52 = vld [vmem:[%s3902_s1 + $0xdc8] sm:$0xff] }
  0x76   :  { %925 = vmatprep.subr.mxu1 %v164_v53  ;;  %857 = vmatpush2.msra.mxu0 %v539_v54  ;;  %v265_v53 = vld [vmem:[%s3902_s1 + $0x790] sm:$0xff]  ;;  %v463_v54 = vld [vmem:[%s3902_s1 + $0xdc0] sm:$0xff] }
  0x77   :  { %926 = vmatpush2.msra.mxu1 %v163_v55  ;;  %858 = vmatprep.subr.mxu0 %v534_v56  ;;  %v260_v55 = vld [vmem:[%s3902_s1 + $0x768] sm:$0xff]  ;;  %v458_v56 = vld [vmem:[%s3902_s1 + $0xd98] sm:$0xff] }
  0x78   :  { %927 = vmatprep.subr.mxu1 %v158_v57  ;;  %859 = vmatpush2.msra.mxu0 %v533_v59  ;;  %v259_v57 = vld [vmem:[%s3902_s1 + $0x760] sm:$0xff]  ;;  %v457_v59 = vld [vmem:[%s3902_s1 + $0xd90] sm:$0xff] }
  0x79   :  { %928 = vmatpush2.msra.mxu1 %v157_v60  ;;  %860 = vmatprep.subr.mxu0 %v528_v61  ;;  %v254_v60 = vld [vmem:[%s3902_s1 + $0x738] sm:$0xff]  ;;  %v452_v61 = vld [vmem:[%s3902_s1 + $0xd68] sm:$0xff] }
  0x7a   :  { %929 = vmatprep.subr.mxu1 %v152_v62  ;;  %861 = vmatpush2.msra.mxu0 %v527_v63  ;;  %v253_v62 = vld [vmem:[%s3902_s1 + $0x730] sm:$0xff]  ;;  %v451_v63 = vld [vmem:[%s3902_s1 + $0xd60] sm:$0xff] }
  0x7b   :  { %930 = vmatpush2.msra.mxu1 %v151_v0  ;;  %862 = vmatprep.subr.mxu0 %v522_v1  ;;  %v248_v0 = vld [vmem:[%s3902_s1 + $0x708] sm:$0xff]  ;;  %v446_v1 = vld [vmem:[%s3902_s1 + $0xd38] sm:$0xff] }
  0x7c   :  { %931 = vmatprep.subr.mxu1 %v146_v2  ;;  %863 = vmatpush2.msra.mxu0 %v521_v3  ;;  %v247_v2 = vld [vmem:[%s3902_s1 + $0x700] sm:$0xff]  ;;  %v445_v3 = vld [vmem:[%s3902_s1 + $0xd30] sm:$0xff] }
  0x7d   :  { %932 = vmatpush2.msra.mxu1 %v145_v6  ;;  %864 = vmatprep.subr.mxu0 %v516_v7  ;;  %v242_v6 = vld [vmem:[%s3902_s1 + $0x6d8] sm:$0xff]  ;;  %v440_v7 = vld [vmem:[%s3902_s1 + $0xd08] sm:$0xff] }
  0x7e   :  { %933 = vmatprep.subr.mxu1 %v140_v8  ;;  %865 = vmatpush2.msra.mxu0 %v515_v9  ;;  %v241_v8 = vld [vmem:[%s3902_s1 + $0x6d0] sm:$0xff]  ;;  %v439_v9 = vld [vmem:[%s3902_s1 + $0xd00] sm:$0xff] }
  0x7f   :  { %934 = vmatpush2.msra.mxu1 %v139_v10  ;;  %866 = vmatprep.subr.mxu0 %v510_v11  ;;  %v236_v10 = vld [vmem:[%s3902_s1 + $0x6a8] sm:$0xff]  ;;  %v434_v11 = vld [vmem:[%s3902_s1 + $0xcd8] sm:$0xff] }
  0x80   :  { %935 = vmatprep.subr.mxu1 %v134_v14  ;;  %867 = vmatpush2.msra.mxu0 %v509_v15  ;;  %v235_v14 = vld [vmem:[%s3902_s1 + $0x6a0] sm:$0xff]  ;;  %v433_v15 = vld [vmem:[%s3902_s1 + $0xcd0] sm:$0xff] }
  0x81   :  { %936 = vmatpush2.msra.mxu1 %v133_v16  ;;  %868 = vmatprep.subr.mxu0 %v504_v17  ;;  %v230_v16 = vld [vmem:[%s3902_s1 + $0x678] sm:$0xff]  ;;  %v428_v17 = vld [vmem:[%s3902_s1 + $0xca8] sm:$0xff] }
  0x82   :  { %937 = vmatprep.subr.mxu1 %v128_v18  ;;  %869 = vmatpush2.msra.mxu0 %v503_v19  ;;  %v229_v18 = vld [vmem:[%s3902_s1 + $0x670] sm:$0xff]  ;;  %v427_v19 = vld [vmem:[%s3902_s1 + $0xca0] sm:$0xff] }
  0x83   :  { %870 = vmatprep.mubr.f32.mxu0 %v2603_v20  ;;  %938 = vmatpush2.msra.mxu1 %v127_v21  ;;  %v224_v21 = vld [vmem:[%s3902_s1 + $0x648] sm:$0xff] }
  0x84   :  { %871 = vmatmul.mubr.f32.vlgmr.msra.gmra.mxu0 %v2581_v13  ;;  %939 = vmatprep.subr.mxu1 %v122_v22  ;;  %v422_v22 = vld [vmem:[%s3902_s1 + $0xc78] sm:$0xff] }
  0x85   :  { %948 = vmatprep.subr.mxu0 %v308_v23  ;;  %940 = vmatpush2.msra.mxu1 %v121_v24  ;;  %v223_v23 = vld [vmem:[%s3902_s1 + $0x640] sm:$0xff]  ;;  %v421_v24 = vld [vmem:[%s3902_s1 + $0xc70] sm:$0xff] }
  0x86   :  { %949 = vmatpush1.msra.mxu0 %v307_v25  ;;  %941 = vmatprep.mubr.f32.mxu1 %v2194_v4  ;;  %v218_v25 = vld [vmem:[%s3902_s1 + $0x618] sm:$0xff] }
  0x87   :  { %950 = vmatprep.subr.mxu0 %v302_v26  ;;  %1019 = vmatprep.subr.mxu1 %v500_v27  ;;  %v416_v26 = vld [vmem:[%s3902_s1 + $0xc48] sm:$0xff]  ;;  %v217_v27 = vld [vmem:[%s3902_s1 + $0x610] sm:$0xff] }
  0x88   :  { %942 = vmatmul.mubr.f32.vlgmr.msra.gmra.mxu1 %v2166_v58  ;;  %951 = vmatpush1.msra.mxu0 %v301_v28  ;;  %v415_v28 = vld [vmem:[%s3902_s1 + $0xc40] sm:$0xff] }
  0x89   :  { %1020 = vmatpush1.msra.mxu1 %v499_v29  ;;  %952 = vmatprep.subr.mxu0 %v296_v30  ;;  %v404_v29 = vld [vmem:[%s3902_s1 + $0xbe8] sm:$0xff]  ;;  %v410_v30 = vld [vmem:[%s3902_s1 + $0xc18] sm:$0xff] }
  0x8a   :  { %1021 = vmatprep.subr.mxu1 %v494_v31  ;;  %953 = vmatpush1.msra.mxu0 %v295_v32  ;;  %v403_v31 = vld [vmem:[%s3902_s1 + $0xbe0] sm:$0xff]  ;;  %v409_v32 = vld [vmem:[%s3902_s1 + $0xc10] sm:$0xff] }
  0x8b   :  { %1022 = vmatpush1.msra.mxu1 %v493_v33  ;;  %954 = vmatprep.subr.mxu0 %v290_v34  ;;  %v398_v33 = vld [vmem:[%s3902_s1 + $0xbb8] sm:$0xff]  ;;  %v596_v34 = vld [vmem:[%s3902_s1 + $0x11e8] sm:$0xff] }
  0x8c   :  { %1023 = vmatprep.subr.mxu1 %v488_v35  ;;  %955 = vmatpush1.msra.mxu0 %v289_v36  ;;  %v397_v35 = vld [vmem:[%s3902_s1 + $0xbb0] sm:$0xff]  ;;  %v595_v36 = vld [vmem:[%s3902_s1 + $0x11e0] sm:$0xff] }
  0x8d   :  { %1024 = vmatpush1.msra.mxu1 %v487_v37  ;;  %956 = vmatprep.subr.mxu0 %v284_v39  ;;  %v392_v37 = vld [vmem:[%s3902_s1 + $0xb88] sm:$0xff]  ;;  %v590_v39 = vld [vmem:[%s3902_s1 + $0x11b8] sm:$0xff] }
  0x8e   :  { %1025 = vmatprep.subr.mxu1 %v482_v40  ;;  %957 = vmatpush1.msra.mxu0 %v283_v41  ;;  %v391_v40 = vld [vmem:[%s3902_s1 + $0xb80] sm:$0xff]  ;;  %v589_v41 = vld [vmem:[%s3902_s1 + $0x11b0] sm:$0xff] }
  0x8f   :  { %1026 = vmatpush1.msra.mxu1 %v481_v42  ;;  %958 = vmatprep.subr.mxu0 %v278_v43  ;;  %v386_v42 = vld [vmem:[%s3902_s1 + $0xb58] sm:$0xff]  ;;  %v584_v43 = vld [vmem:[%s3902_s1 + $0x1188] sm:$0xff] }
  0x90   :  { %1027 = vmatprep.subr.mxu1 %v476_v44  ;;  %959 = vmatpush1.msra.mxu0 %v277_v45  ;;  %v385_v44 = vld [vmem:[%s3902_s1 + $0xb50] sm:$0xff]  ;;  %v583_v45 = vld [vmem:[%s3902_s1 + $0x1180] sm:$0xff] }
  0x91   :  { %1028 = vmatpush1.msra.mxu1 %v475_v46  ;;  %960 = vmatprep.subr.mxu0 %v272_v47  ;;  %v380_v46 = vld [vmem:[%s3902_s1 + $0xb28] sm:$0xff]  ;;  %v578_v47 = vld [vmem:[%s3902_s1 + $0x1158] sm:$0xff] }
  0x92   :  { %1029 = vmatprep.subr.mxu1 %v470_v48  ;;  %961 = vmatpush1.msra.mxu0 %v271_v49  ;;  %v379_v48 = vld [vmem:[%s3902_s1 + $0xb20] sm:$0xff]  ;;  %v577_v49 = vld [vmem:[%s3902_s1 + $0x1150] sm:$0xff] }
  0x93   :  { %1030 = vmatpush1.msra.mxu1 %v469_v50  ;;  %962 = vmatprep.subr.mxu0 %v266_v51  ;;  %v374_v50 = vld [vmem:[%s3902_s1 + $0xaf8] sm:$0xff]  ;;  %v572_v51 = vld [vmem:[%s3902_s1 + $0x1128] sm:$0xff] }
  0x94   :  { %1031 = vmatprep.subr.mxu1 %v464_v52  ;;  %963 = vmatpush1.msra.mxu0 %v265_v53  ;;  %v373_v52 = vld [vmem:[%s3902_s1 + $0xaf0] sm:$0xff]  ;;  %v571_v53 = vld [vmem:[%s3902_s1 + $0x1120] sm:$0xff] }
  0x95   :  { %1032 = vmatpush1.msra.mxu1 %v463_v54  ;;  %964 = vmatprep.subr.mxu0 %v260_v55  ;;  %v368_v54 = vld [vmem:[%s3902_s1 + $0xac8] sm:$0xff]  ;;  %v566_v55 = vld [vmem:[%s3902_s1 + $0x10f8] sm:$0xff] }
  0x96   :  { %1033 = vmatprep.subr.mxu1 %v458_v56  ;;  %965 = vmatpush1.msra.mxu0 %v259_v57  ;;  %v367_v56 = vld [vmem:[%s3902_s1 + $0xac0] sm:$0xff]  ;;  %v565_v57 = vld [vmem:[%s3902_s1 + $0x10f0] sm:$0xff] }
  0x97   :  { %1034 = vmatpush1.msra.mxu1 %v457_v59  ;;  %966 = vmatprep.subr.mxu0 %v254_v60  ;;  %v362_v59 = vld [vmem:[%s3902_s1 + $0xa98] sm:$0xff]  ;;  %v560_v60 = vld [vmem:[%s3902_s1 + $0x10c8] sm:$0xff] }
  0x98   :  { %1035 = vmatprep.subr.mxu1 %v452_v61  ;;  %967 = vmatpush1.msra.mxu0 %v253_v62  ;;  %v361_v61 = vld [vmem:[%s3902_s1 + $0xa90] sm:$0xff]  ;;  %v559_v62 = vld [vmem:[%s3902_s1 + $0x10c0] sm:$0xff] }
  0x99   :  { %1036 = vmatpush1.msra.mxu1 %v451_v63  ;;  %968 = vmatprep.subr.mxu0 %v248_v0  ;;  %v356_v63 = vld [vmem:[%s3902_s1 + $0xa68] sm:$0xff]  ;;  %v554_v0 = vld [vmem:[%s3902_s1 + $0x1098] sm:$0xff] }
  0x9a   :  { %1037 = vmatprep.subr.mxu1 %v446_v1  ;;  %969 = vmatpush1.msra.mxu0 %v247_v2  ;;  %v355_v1 = vld [vmem:[%s3902_s1 + $0xa60] sm:$0xff]  ;;  %v553_v2 = vld [vmem:[%s3902_s1 + $0x1090] sm:$0xff] }
  0x9b   :  { %1038 = vmatpush1.msra.mxu1 %v445_v3  ;;  %970 = vmatprep.subr.mxu0 %v242_v6  ;;  %v350_v3 = vld [vmem:[%s3902_s1 + $0xa38] sm:$0xff]  ;;  %v548_v6 = vld [vmem:[%s3902_s1 + $0x1068] sm:$0xff] }
  0x9c   :  { %1039 = vmatprep.subr.mxu1 %v440_v7  ;;  %971 = vmatpush1.msra.mxu0 %v241_v8  ;;  %v349_v7 = vld [vmem:[%s3902_s1 + $0xa30] sm:$0xff]  ;;  %v547_v8 = vld [vmem:[%s3902_s1 + $0x1060] sm:$0xff] }
  0x9d   :  { %1040 = vmatpush1.msra.mxu1 %v439_v9  ;;  %972 = vmatprep.subr.mxu0 %v236_v10  ;;  %v344_v9 = vld [vmem:[%s3902_s1 + $0xa08] sm:$0xff]  ;;  %v542_v10 = vld [vmem:[%s3902_s1 + $0x1038] sm:$0xff] }
  0x9e   :  { %1041 = vmatprep.subr.mxu1 %v434_v11  ;;  %973 = vmatpush1.msra.mxu0 %v235_v14  ;;  %v343_v11 = vld [vmem:[%s3902_s1 + $0xa00] sm:$0xff]  ;;  %v541_v14 = vld [vmem:[%s3902_s1 + $0x1030] sm:$0xff] }
  0x9f   :  { %1042 = vmatpush1.msra.mxu1 %v433_v15  ;;  %974 = vmatprep.subr.mxu0 %v230_v16  ;;  %v338_v15 = vld [vmem:[%s3902_s1 + $0x9d8] sm:$0xff]  ;;  %v536_v16 = vld [vmem:[%s3902_s1 + $0x1008] sm:$0xff] }
  0xa0   :  { %1043 = vmatprep.subr.mxu1 %v428_v17  ;;  %975 = vmatpush1.msra.mxu0 %v229_v18  ;;  %v337_v17 = vld [vmem:[%s3902_s1 + $0x9d0] sm:$0xff]  ;;  %v535_v18 = vld [vmem:[%s3902_s1 + $0x1000] sm:$0xff] }
  0xa1   :  { %1044 = vmatpush1.msra.mxu1 %v427_v19  ;;  %976 = vmatprep.subr.mxu0 %v224_v21  ;;  %v332_v19 = vld [vmem:[%s3902_s1 + $0x9a8] sm:$0xff]  ;;  %v530_v21 = vld [vmem:[%s3902_s1 + $0xfd8] sm:$0xff] }
  0xa2   :  { %1045 = vmatprep.subr.mxu1 %v422_v22  ;;  %977 = vmatpush1.msra.mxu0 %v223_v23  ;;  %v331_v22 = vld [vmem:[%s3902_s1 + $0x9a0] sm:$0xff]  ;;  %v529_v23 = vld [vmem:[%s3902_s1 + $0xfd0] sm:$0xff] }
  0xa3   :  { %1046 = vmatpush1.msra.mxu1 %v421_v24  ;;  %978 = vmatprep.subr.mxu0 %v218_v25  ;;  %v326_v24 = vld [vmem:[%s3902_s1 + $0x978] sm:$0xff]  ;;  %v524_v25 = vld [vmem:[%s3902_s1 + $0xfa8] sm:$0xff] }
  0xa4   :  { %1047 = vmatprep.subr.mxu1 %v416_v26  ;;  %979 = vmatpush1.msra.mxu0 %v217_v27  ;;  %v325_v26 = vld [vmem:[%s3902_s1 + $0x970] sm:$0xff]  ;;  %v523_v27 = vld [vmem:[%s3902_s1 + $0xfa0] sm:$0xff] }
  0xa5   :  { %1048 = vmatpush1.msra.mxu1 %v415_v28  ;;  %980 = vmatprep.subr.mxu0 %v404_v29  ;;  %v320_v28 = vld [vmem:[%s3902_s1 + $0x948] sm:$0xff]  ;;  %v518_v29 = vld [vmem:[%s3902_s1 + $0xf78] sm:$0xff] }
  0xa6   :  { %1049 = vmatprep.subr.mxu1 %v410_v30  ;;  %981 = vmatpush2.msra.mxu0 %v403_v31  ;;  %v319_v30 = vld [vmem:[%s3902_s1 + $0x940] sm:$0xff]  ;;  %v517_v31 = vld [vmem:[%s3902_s1 + $0xf70] sm:$0xff] }
  0xa7   :  { %1050 = vmatpush1.msra.mxu1 %v409_v32  ;;  %982 = vmatprep.subr.mxu0 %v398_v33  ;;  %v314_v32 = vld [vmem:[%s3902_s1 + $0x918] sm:$0xff]  ;;  %v512_v33 = vld [vmem:[%s3902_s1 + $0xf48] sm:$0xff] }
  0xa8   :  { %1051 = vmatprep.subr.mxu1 %v596_v34  ;;  %983 = vmatpush2.msra.mxu0 %v397_v35  ;;  %v313_v34 = vld [vmem:[%s3902_s1 + $0x910] sm:$0xff]  ;;  %v511_v35 = vld [vmem:[%s3902_s1 + $0xf40] sm:$0xff] }
  0xa9   :  { %1052 = vmatpush2.msra.mxu1 %v595_v36  ;;  %984 = vmatprep.subr.mxu0 %v392_v37 }
  0xaa   :  { %1053 = vmatprep.subr.mxu1 %v590_v39  ;;  %985 = vmatpush2.msra.mxu0 %v391_v40 }
  0xab   :  { %1054 = vmatpush2.msra.mxu1 %v589_v41  ;;  %986 = vmatprep.subr.mxu0 %v386_v42 }
  0xac   :  { %1055 = vmatprep.subr.mxu1 %v584_v43  ;;  %987 = vmatpush2.msra.mxu0 %v385_v44 }
  0xad   :  { %1056 = vmatpush2.msra.mxu1 %v583_v45  ;;  %988 = vmatprep.subr.mxu0 %v380_v46 }
  0xae   :  { %1057 = vmatprep.subr.mxu1 %v578_v47  ;;  %989 = vmatpush2.msra.mxu0 %v379_v48 }
  0xaf   :  { %1058 = vmatpush2.msra.mxu1 %v577_v49  ;;  %990 = vmatprep.subr.mxu0 %v374_v50 }
  0xb0   :  { %1059 = vmatprep.subr.mxu1 %v572_v51  ;;  %991 = vmatpush2.msra.mxu0 %v373_v52 }
  0xb1   :  { %1060 = vmatpush2.msra.mxu1 %v571_v53  ;;  %992 = vmatprep.subr.mxu0 %v368_v54 }
  0xb2   :  { %1061 = vmatprep.subr.mxu1 %v566_v55  ;;  %993 = vmatpush2.msra.mxu0 %v367_v56 }
  0xb3   :  { %1062 = vmatpush2.msra.mxu1 %v565_v57  ;;  %994 = vmatprep.subr.mxu0 %v362_v59 }
  0xb4   :  { %1063 = vmatprep.subr.mxu1 %v560_v60  ;;  %995 = vmatpush2.msra.mxu0 %v361_v61 }
  0xb5   :  { %1064 = vmatpush2.msra.mxu1 %v559_v62  ;;  %996 = vmatprep.subr.mxu0 %v356_v63 }
  0xb6   :  { %1065 = vmatprep.subr.mxu1 %v554_v0  ;;  %997 = vmatpush2.msra.mxu0 %v355_v1 }
  0xb7   :  { %1066 = vmatpush2.msra.mxu1 %v553_v2  ;;  %998 = vmatprep.subr.mxu0 %v350_v3 }
  0xb8   :  { %1067 = vmatprep.subr.mxu1 %v548_v6  ;;  %999 = vmatpush2.msra.mxu0 %v349_v7 }
  0xb9   :  { %1068 = vmatpush2.msra.mxu1 %v547_v8  ;;  %1000 = vmatprep.subr.mxu0 %v344_v9 }
  0xba   :  { %1069 = vmatprep.subr.mxu1 %v542_v10  ;;  %1001 = vmatpush2.msra.mxu0 %v343_v11 }
  0xbb   :  { %1070 = vmatpush2.msra.mxu1 %v541_v14  ;;  %1002 = vmatprep.subr.mxu0 %v338_v15 }
  0xbc   :  { %1071 = vmatprep.subr.mxu1 %v536_v16  ;;  %1003 = vmatpush2.msra.mxu0 %v337_v17 }
  0xbd   :  { %1072 = vmatpush2.msra.mxu1 %v535_v18  ;;  %1004 = vmatprep.subr.mxu0 %v332_v19 }
  0xbe   :  { %1073 = vmatprep.subr.mxu1 %v530_v21  ;;  %1005 = vmatpush2.msra.mxu0 %v331_v22 }
  0xbf   :  { %1074 = vmatpush2.msra.mxu1 %v529_v23  ;;  %1006 = vmatprep.subr.mxu0 %v326_v24 }
  0xc0   :  { %1075 = vmatprep.subr.mxu1 %v524_v25  ;;  %1007 = vmatpush2.msra.mxu0 %v325_v26 }
  0xc1   :  { %1076 = vmatpush2.msra.mxu1 %v523_v27  ;;  %1008 = vmatprep.subr.mxu0 %v320_v28 }
  0xc2   :  { %1077 = vmatprep.subr.mxu1 %v518_v29  ;;  %1009 = vmatpush2.msra.mxu0 %v319_v30 }
  0xc3   :  { %10 = vsyncpa [#allocation3], 0  ;;  %1078 = vmatpush2.msra.mxu1 %v517_v31  ;;  %1010 = vmatprep.subr.mxu0 %v314_v32  ;;  %v506_v36 = vld [vmem:[%s3902_s1 + $0xf18] sm:$0xff]  ;;  %v505_v39 = vld [vmem:[%s3902_s1 + $0xf10] sm:$0xff]  ;;  %s1784_s30 = smov [#allocation2]  }
  0xc4   :  { %1079 = vmatprep.subr.mxu1 %v512_v33  ;;  %1011 = vmatpush2.msra.mxu0 %v313_v34  ;;  %v118_v37 = vld [vmem:[%s3902_s1 + $0x2f8] sm:$0xff]  ;;  %v117_v40 = vld [vmem:[%s3902_s1 + $0x2f0] sm:$0xff]  ;;  %v112_v41 = vld [vmem:[%s3902_s1 + $0x2c8] sm:$0xff]  ;;  %s1630_s6 = sshll.u32 %s1784_s30, 4  ;;  %s1631_s6 = int_to_ptr.vmem [resolvable:$true] %s1630_s6 }
  0xc5   :  { %1012 = vmatprep.mubr.f32.mxu0 %v2219_v12  ;;  %1080 = vmatpush2.msra.mxu1 %v511_v35  ;;  %v310_v42 = vld [vmem:[%s3902_s1 + $0x8f8] sm:$0xff]  ;;  %v111_v43 = vld [vmem:[%s3902_s1 + $0x2c0] sm:$0xff]  ;;  %v309_v44 = vld [vmem:[%s3902_s1 + $0x8f0] sm:$0xff]  ;;  %s1761_s7 = scalar_lea.vmem %s1631_s6, 32  ;;  %p1766_p1 = scmp.lt.s32.totalorder %s1631_s6, %s1631_s6 }
  0xc6   :  { %1013 = vmatmul.mubr.f32.vlgmr.msra.gmra.mxu0 %v2196_v5  ;;  %1081 = vmatprep.subr.mxu1 %v506_v36  ;;  %v106_v45 = vld [vmem:[%s3902_s1 + $0x298] sm:$0xff]  ;;  %v304_v46 = vld [vmem:[%s3902_s1 + $0x8c8] sm:$0xff]  ;;  %v105_v47 = vld [vmem:[%s3902_s1 + $0x290] sm:$0xff]  ;;  %p1762_p0 = scmp.ne.s32.totalorder %s1631_s6, %s1761_s7  ;;  %p1767_p2 = scmp.lt.s32.totalorder %s1761_s7, %s1761_s7 }
  0xc7   :  { %1090 = vmatprep.subr.mxu0 %v118_v37  ;;  %1082 = vmatpush2.msra.mxu1 %v505_v39  ;;  %v303_v48 = vld [vmem:[%s3902_s1 + $0x8c0] sm:$0xff]  ;;  %v100_v49 = vld [vmem:[%s3902_s1 + $0x268] sm:$0xff]  ;;  %v297_v51 = vld [vmem:[%s3902_s1 + $0x890] sm:$0xff] }
  0xc8   :  { %1083 = vmatprep.mubr.f32.mxu1 %v2603_v20  ;;  %1091 = vmatpush1.msra.mxu0 %v117_v40  ;;  %v99_v50 = vld [vmem:[%s3902_s1 + $0x260] sm:$0xff]  ;;  %v94_v52 = vld [vmem:[%s3902_s1 + $0x238] sm:$0xff]  ;;  %v292_v53 = vld [vmem:[%s3902_s1 + $0x868] sm:$0xff]  ;;  %p1768_p3 = por %p1767_p2, %p1766_p1 }
  0xc9   :  { %1084 = vmatmul.mubr.f32.vlgmr.msra.gmra.mxu1 %v2581_v13  ;;  %1092 = vmatprep.subr.mxu0 %v112_v41  ;;  %v298_v13 = vld [vmem:[%s3902_s1 + $0x898] sm:$0xff]  ;;  %v93_v54 = vld [vmem:[%s3902_s1 + $0x230] sm:$0xff]  ;;  %v291_v55 = vld [vmem:[%s3902_s1 + $0x860] sm:$0xff] }
  0xca   :  { %1161 = vmatprep.subr.mxu1 %v310_v42  ;;  %1093 = vmatpush1.msra.mxu0 %v111_v43  ;;  %v88_v56 = vld [vmem:[%s3902_s1 + $0x208] sm:$0xff]  ;;  %v286_v57 = vld [vmem:[%s3902_s1 + $0x838] sm:$0xff]  ;;  %v87_v59 = vld [vmem:[%s3902_s1 + $0x200] sm:$0xff]  ;;  %p1769_p4 = pnand %p1768_p3, %p1762_p0 }
  0xcb   :  { %1162 = vmatpush1.msra.mxu1 %v309_v44  ;;  %1094 = vmatprep.subr.mxu0 %v106_v45  ;;  %v285_v60 = vld [vmem:[%s3902_s1 + $0x830] sm:$0xff]  ;;  %v82_v61 = vld [vmem:[%s3902_s1 + $0x1d8] sm:$0xff]  ;;  %v280_v62 = vld [vmem:[%s3902_s1 + $0x808] sm:$0xff] }
  0xcc   :  { %1163 = vmatprep.subr.mxu1 %v304_v46  ;;  %1095 = vmatpush1.msra.mxu0 %v105_v47  ;;  %v81_v63 = vld [vmem:[%s3902_s1 + $0x1d0] sm:$0xff]  ;;  %v279_v0 = vld [vmem:[%s3902_s1 + $0x800] sm:$0xff]  ;;  %v76_v1 = vld [vmem:[%s3902_s1 + $0x1a8] sm:$0xff] }
  0xcd   :  { %1164 = vmatpush1.msra.mxu1 %v303_v48  ;;  %1096 = vmatprep.subr.mxu0 %v100_v49  ;;  %v274_v2 = vld [vmem:[%s3902_s1 + $0x7d8] sm:$0xff]  ;;  %v75_v3 = vld [vmem:[%s3902_s1 + $0x1a0] sm:$0xff]  ;;  %v273_v6 = vld [vmem:[%s3902_s1 + $0x7d0] sm:$0xff] }
  0xce   :  { %1165 = vmatprep.subr.mxu1 %v298_v13  ;;  %1097 = vmatpush1.msra.mxu0 %v99_v50  ;;  %v70_v7 = vld [vmem:[%s3902_s1 + $0x178] sm:$0xff]  ;;  %v268_v8 = vld [vmem:[%s3902_s1 + $0x7a8] sm:$0xff]  ;;  %v69_v9 = vld [vmem:[%s3902_s1 + $0x170] sm:$0xff] }
  0xcf   :  { %1166 = vmatpush1.msra.mxu1 %v297_v51  ;;  %1098 = vmatprep.subr.mxu0 %v94_v52  ;;  %v267_v10 = vld [vmem:[%s3902_s1 + $0x7a0] sm:$0xff]  ;;  %v64_v11 = vld [vmem:[%s3902_s1 + $0x148] sm:$0xff]  ;;  %v262_v14 = vld [vmem:[%s3902_s1 + $0x778] sm:$0xff] }
  0xd0   :  { %1167 = vmatprep.subr.mxu1 %v292_v53  ;;  %1099 = vmatpush1.msra.mxu0 %v93_v54  ;;  %v63_v15 = vld [vmem:[%s3902_s1 + $0x140] sm:$0xff]  ;;  %v261_v16 = vld [vmem:[%s3902_s1 + $0x770] sm:$0xff]  ;;  %v58_v17 = vld [vmem:[%s3902_s1 + $0x118] sm:$0xff] }
  0xd1   :  { %1168 = vmatpush1.msra.mxu1 %v291_v55  ;;  %1100 = vmatprep.subr.mxu0 %v88_v56  ;;  %v256_v18 = vld [vmem:[%s3902_s1 + $0x748] sm:$0xff]  ;;  %v57_v19 = vld [vmem:[%s3902_s1 + $0x110] sm:$0xff]  ;;  %v255_v21 = vld [vmem:[%s3902_s1 + $0x740] sm:$0xff] }
  0xd2   :  { %1169 = vmatprep.subr.mxu1 %v286_v57  ;;  %1101 = vmatpush1.msra.mxu0 %v87_v59  ;;  %v52_v22 = vld [vmem:[%s3902_s1 + $0xe8] sm:$0xff]  ;;  %v250_v23 = vld [vmem:[%s3902_s1 + $0x718] sm:$0xff]  ;;  %v51_v24 = vld [vmem:[%s3902_s1 + $0xe0] sm:$0xff] }
  0xd3   :  { %1170 = vmatpush1.msra.mxu1 %v285_v60  ;;  %1102 = vmatprep.subr.mxu0 %v82_v61  ;;  %v249_v25 = vld [vmem:[%s3902_s1 + $0x710] sm:$0xff]  ;;  %v46_v26 = vld [vmem:[%s3902_s1 + $0xb8] sm:$0xff]  ;;  %v244_v27 = vld [vmem:[%s3902_s1 + $0x6e8] sm:$0xff] }
  0xd4   :  { %1171 = vmatprep.subr.mxu1 %v280_v62  ;;  %1103 = vmatpush1.msra.mxu0 %v81_v63  ;;  %v45_v28 = vld [vmem:[%s3902_s1 + $0xb0] sm:$0xff]  ;;  %v243_v29 = vld [vmem:[%s3902_s1 + $0x6e0] sm:$0xff]  ;;  %v40_v30 = vld [vmem:[%s3902_s1 + $0x88] sm:$0xff] }
  0xd5   :  { %1172 = vmatpush1.msra.mxu1 %v279_v0  ;;  %1104 = vmatprep.subr.mxu0 %v76_v1  ;;  %v238_v31 = vld [vmem:[%s3902_s1 + $0x6b8] sm:$0xff]  ;;  %v39_v32 = vld [vmem:[%s3902_s1 + $0x80] sm:$0xff]  ;;  %v237_v33 = vld [vmem:[%s3902_s1 + $0x6b0] sm:$0xff] }
  0xd6   :  { %1173 = vmatprep.subr.mxu1 %v274_v2  ;;  %1105 = vmatpush1.msra.mxu0 %v75_v3  ;;  %v34_v34 = vld [vmem:[%s3902_s1 + $0x58] sm:$0xff]  ;;  %v232_v35 = vld [vmem:[%s3902_s1 + $0x688] sm:$0xff]  ;;  %v33_v36 = vld [vmem:[%s3902_s1 + $0x50] sm:$0xff] }
  0xd7   :  { %1174 = vmatpush1.msra.mxu1 %v273_v6  ;;  %1106 = vmatprep.subr.mxu0 %v70_v7  ;;  %v231_v37 = vld [vmem:[%s3902_s1 + $0x680] sm:$0xff]  ;;  %v28_v39 = vld [vmem:[%s3902_s1 + $0x28] sm:$0xff]  ;;  %v226_v40 = vld [vmem:[%s3902_s1 + $0x658] sm:$0xff] }
  0xd8   :  { %1175 = vmatprep.subr.mxu1 %v268_v8  ;;  %1107 = vmatpush1.msra.mxu0 %v69_v9  ;;  %v27_v41 = vld [vmem:[%s3902_s1 + $0x20] sm:$0xff]  ;;  %v225_v42 = vld [vmem:[%s3902_s1 + $0x650] sm:$0xff]  ;;  %v214_v43 = vld [vmem:[%s3902_s1 + $0x5f8] sm:$0xff] }
  0xd9   :  { %1176 = vmatpush1.msra.mxu1 %v267_v10  ;;  %1108 = vmatprep.subr.mxu0 %v64_v11  ;;  %v220_v44 = vld [vmem:[%s3902_s1 + $0x628] sm:$0xff]  ;;  %v213_v45 = vld [vmem:[%s3902_s1 + $0x5f0] sm:$0xff]  ;;  %v219_v46 = vld [vmem:[%s3902_s1 + $0x620] sm:$0xff] }
  0xda   :  { %1177 = vmatprep.subr.mxu1 %v262_v14  ;;  %1109 = vmatpush1.msra.mxu0 %v63_v15  ;;  %v208_v47 = vld [vmem:[%s3902_s1 + $0x5c8] sm:$0xff]  ;;  %v406_v48 = vld [vmem:[%s3902_s1 + $0xbf8] sm:$0xff]  ;;  %v207_v49 = vld [vmem:[%s3902_s1 + $0x5c0] sm:$0xff] }
  0xdb   :  { %1178 = vmatpush1.msra.mxu1 %v261_v16  ;;  %1110 = vmatprep.subr.mxu0 %v58_v17  ;;  %v405_v13 = vld [vmem:[%s3902_s1 + $0xbf0] sm:$0xff]  ;;  %v202_v50 = vld [vmem:[%s3902_s1 + $0x598] sm:$0xff]  ;;  %v400_v51 = vld [vmem:[%s3902_s1 + $0xbc8] sm:$0xff] }
  0xdc   :  { %1179 = vmatprep.subr.mxu1 %v256_v18  ;;  %1111 = vmatpush1.msra.mxu0 %v57_v19  ;;  %v201_v52 = vld [vmem:[%s3902_s1 + $0x590] sm:$0xff]  ;;  %v399_v53 = vld [vmem:[%s3902_s1 + $0xbc0] sm:$0xff]  ;;  %v196_v54 = vld [vmem:[%s3902_s1 + $0x568] sm:$0xff] }
  0xdd   :  { %1180 = vmatpush1.msra.mxu1 %v255_v21  ;;  %1112 = vmatprep.subr.mxu0 %v52_v22  ;;  %v394_v55 = vld [vmem:[%s3902_s1 + $0xb98] sm:$0xff]  ;;  %v195_v56 = vld [vmem:[%s3902_s1 + $0x560] sm:$0xff]  ;;  %v393_v57 = vld [vmem:[%s3902_s1 + $0xb90] sm:$0xff] }
  0xde   :  { %1181 = vmatprep.subr.mxu1 %v250_v23  ;;  %1113 = vmatpush1.msra.mxu0 %v51_v24  ;;  %v190_v59 = vld [vmem:[%s3902_s1 + $0x538] sm:$0xff]  ;;  %v388_v60 = vld [vmem:[%s3902_s1 + $0xb68] sm:$0xff]  ;;  %v189_v61 = vld [vmem:[%s3902_s1 + $0x530] sm:$0xff] }
  0xdf   :  { %1182 = vmatpush1.msra.mxu1 %v249_v25  ;;  %1114 = vmatprep.subr.mxu0 %v46_v26  ;;  %v387_v62 = vld [vmem:[%s3902_s1 + $0xb60] sm:$0xff]  ;;  %v184_v63 = vld [vmem:[%s3902_s1 + $0x508] sm:$0xff]  ;;  %v382_v0 = vld [vmem:[%s3902_s1 + $0xb38] sm:$0xff] }
  0xe0   :  { %1183 = vmatprep.subr.mxu1 %v244_v27  ;;  %1115 = vmatpush1.msra.mxu0 %v45_v28  ;;  %v183_v1 = vld [vmem:[%s3902_s1 + $0x500] sm:$0xff]  ;;  %v381_v2 = vld [vmem:[%s3902_s1 + $0xb30] sm:$0xff]  ;;  %v178_v3 = vld [vmem:[%s3902_s1 + $0x4d8] sm:$0xff] }
  0xe1   :  { %1184 = vmatpush1.msra.mxu1 %v243_v29  ;;  %1116 = vmatprep.subr.mxu0 %v40_v30  ;;  %v376_v6 = vld [vmem:[%s3902_s1 + $0xb08] sm:$0xff]  ;;  %v177_v7 = vld [vmem:[%s3902_s1 + $0x4d0] sm:$0xff]  ;;  %v375_v8 = vld [vmem:[%s3902_s1 + $0xb00] sm:$0xff] }
  0xe2   :  { %1185 = vmatprep.subr.mxu1 %v238_v31  ;;  %1117 = vmatpush1.msra.mxu0 %v39_v32  ;;  %v172_v9 = vld [vmem:[%s3902_s1 + $0x4a8] sm:$0xff]  ;;  %v370_v10 = vld [vmem:[%s3902_s1 + $0xad8] sm:$0xff]  ;;  %v171_v11 = vld [vmem:[%s3902_s1 + $0x4a0] sm:$0xff] }
  0xe3   :  { %1186 = vmatpush1.msra.mxu1 %v237_v33  ;;  %1118 = vmatprep.subr.mxu0 %v34_v34  ;;  %v369_v14 = vld [vmem:[%s3902_s1 + $0xad0] sm:$0xff]  ;;  %v166_v15 = vld [vmem:[%s3902_s1 + $0x478] sm:$0xff]  ;;  %v364_v16 = vld [vmem:[%s3902_s1 + $0xaa8] sm:$0xff] }
  0xe4   :  { %1187 = vmatprep.subr.mxu1 %v232_v35  ;;  %1119 = vmatpush1.msra.mxu0 %v33_v36  ;;  %v165_v17 = vld [vmem:[%s3902_s1 + $0x470] sm:$0xff]  ;;  %v363_v18 = vld [vmem:[%s3902_s1 + $0xaa0] sm:$0xff]  ;;  %v160_v19 = vld [vmem:[%s3902_s1 + $0x448] sm:$0xff] }
  0xe5   :  { %1188 = vmatpush1.msra.mxu1 %v231_v37  ;;  %1120 = vmatprep.subr.mxu0 %v28_v39  ;;  %v358_v21 = vld [vmem:[%s3902_s1 + $0xa78] sm:$0xff]  ;;  %v159_v22 = vld [vmem:[%s3902_s1 + $0x440] sm:$0xff]  ;;  %v357_v23 = vld [vmem:[%s3902_s1 + $0xa70] sm:$0xff] }
  0xe6   :  { %1189 = vmatprep.subr.mxu1 %v226_v40  ;;  %1121 = vmatpush1.msra.mxu0 %v27_v41  ;;  %v154_v24 = vld [vmem:[%s3902_s1 + $0x418] sm:$0xff]  ;;  %v352_v25 = vld [vmem:[%s3902_s1 + $0xa48] sm:$0xff]  ;;  %v153_v26 = vld [vmem:[%s3902_s1 + $0x410] sm:$0xff] }
  0xe7   :  { %1190 = vmatpush1.msra.mxu1 %v225_v42  ;;  %1122 = vmatprep.subr.mxu0 %v214_v43  ;;  %v351_v27 = vld [vmem:[%s3902_s1 + $0xa40] sm:$0xff]  ;;  %v148_v28 = vld [vmem:[%s3902_s1 + $0x3e8] sm:$0xff]  ;;  %v346_v29 = vld [vmem:[%s3902_s1 + $0xa18] sm:$0xff] }
  0xe8   :  { %1191 = vmatprep.subr.mxu1 %v220_v44  ;;  %1123 = vmatpush2.msra.mxu0 %v213_v45  ;;  %v147_v30 = vld [vmem:[%s3902_s1 + $0x3e0] sm:$0xff]  ;;  %v345_v31 = vld [vmem:[%s3902_s1 + $0xa10] sm:$0xff]  ;;  %v142_v32 = vld [vmem:[%s3902_s1 + $0x3b8] sm:$0xff] }
  0xe9   :  { %1192 = vmatpush1.msra.mxu1 %v219_v46  ;;  %1124 = vmatprep.subr.mxu0 %v208_v47  ;;  %v340_v33 = vld [vmem:[%s3902_s1 + $0x9e8] sm:$0xff]  ;;  %v141_v34 = vld [vmem:[%s3902_s1 + $0x3b0] sm:$0xff]  ;;  %v339_v35 = vld [vmem:[%s3902_s1 + $0x9e0] sm:$0xff] }
  0xea   :  { %1193 = vmatprep.subr.mxu1 %v406_v48  ;;  %1125 = vmatpush2.msra.mxu0 %v207_v49  ;;  %v136_v36 = vld [vmem:[%s3902_s1 + $0x388] sm:$0xff]  ;;  %v334_v37 = vld [vmem:[%s3902_s1 + $0x9b8] sm:$0xff]  ;;  %v135_v39 = vld [vmem:[%s3902_s1 + $0x380] sm:$0xff] }
  0xeb   :  { %1194 = vmatpush2.msra.mxu1 %v405_v13  ;;  %1126 = vmatprep.subr.mxu0 %v202_v50  ;;  %v333_v40 = vld [vmem:[%s3902_s1 + $0x9b0] sm:$0xff]  ;;  %v130_v41 = vld [vmem:[%s3902_s1 + $0x358] sm:$0xff]  ;;  %v328_v42 = vld [vmem:[%s3902_s1 + $0x988] sm:$0xff] }
  0xec   :  { %1195 = vmatprep.subr.mxu1 %v400_v51  ;;  %1127 = vmatpush2.msra.mxu0 %v201_v52  ;;  %v129_v43 = vld [vmem:[%s3902_s1 + $0x350] sm:$0xff]  ;;  %v327_v44 = vld [vmem:[%s3902_s1 + $0x980] sm:$0xff]  ;;  %v124_v45 = vld [vmem:[%s3902_s1 + $0x328] sm:$0xff] }
  0xed   :  { %1196 = vmatpush2.msra.mxu1 %v399_v53  ;;  %1128 = vmatprep.subr.mxu0 %v196_v54  ;;  %v322_v46 = vld [vmem:[%s3902_s1 + $0x958] sm:$0xff]  ;;  %v123_v47 = vld [vmem:[%s3902_s1 + $0x320] sm:$0xff]  ;;  %v321_v48 = vld [vmem:[%s3902_s1 + $0x950] sm:$0xff] }
  0xee   :  { %1197 = vmatprep.subr.mxu1 %v394_v55  ;;  %1129 = vmatpush2.msra.mxu0 %v195_v56  ;;  %v316_v49 = vld [vmem:[%s3902_s1 + $0x928] sm:$0xff]  ;;  %v502_v13 = vld [vmem:[%s3902_s1 + $0xef8] sm:$0xff]  ;;  %v315_v50 = vld [vmem:[%s3902_s1 + $0x920] sm:$0xff] }
  0xef   :  { %1198 = vmatpush2.msra.mxu1 %v393_v57  ;;  %1130 = vmatprep.subr.mxu0 %v190_v59  ;;  %v501_v51 = vld [vmem:[%s3902_s1 + $0xef0] sm:$0xff]  ;;  %v496_v52 = vld [vmem:[%s3902_s1 + $0xec8] sm:$0xff]  ;;  %v495_v53 = vld [vmem:[%s3902_s1 + $0xec0] sm:$0xff] }
  0xf0   :  { %1199 = vmatprep.subr.mxu1 %v388_v60  ;;  %1131 = vmatpush2.msra.mxu0 %v189_v61  ;;  %v1324_v54 = vld [vmem:[%s3904_s3 + $0x78] sm:$0xff]  ;;  %v489_v55 = vld [vmem:[%s3902_s1 + $0xe90] sm:$0xff]  ;;  %v484_v56 = vld [vmem:[%s3902_s1 + $0xe68] sm:$0xff] }
  0xf1   :  { %1200 = vmatpush2.msra.mxu1 %v387_v62  ;;  %1132 = vmatprep.subr.mxu0 %v184_v63  ;;  %v1323_v57 = vld [vmem:[%s3904_s3 + $0x70] sm:$0xff]  ;;  %v1338_v59 = vld [vmem:[%s3904_s3 + $0xe8] sm:$0xff]  ;;  %v478_v60 = vld [vmem:[%s3902_s1 + $0xe38] sm:$0xff] }
  0xf2   :  { %1201 = vmatprep.subr.mxu1 %v382_v0  ;;  %1133 = vmatpush2.msra.mxu0 %v183_v1  ;;  %v1322_v61 = vld [vmem:[%s3904_s3 + $0x68] sm:$0xff]  ;;  %v477_v62 = vld [vmem:[%s3902_s1 + $0xe30] sm:$0xff]  ;;  %v1337_v63 = vld [vmem:[%s3904_s3 + $0xe0] sm:$0xff] }
  0xf3   :  { %1202 = vmatpush2.msra.mxu1 %v381_v2  ;;  %1134 = vmatprep.subr.mxu0 %v178_v3  ;;  %v472_v0 = vld [vmem:[%s3902_s1 + $0xe08] sm:$0xff]  ;;  %v1321_v1 = vld [vmem:[%s3904_s3 + $0x60] sm:$0xff]  ;;  %v1336_v3 = vld [vmem:[%s3904_s3 + $0xd8] sm:$0xff] }
  0xf4   :  { %1203 = vmatprep.subr.mxu1 %v376_v6  ;;  %1135 = vmatpush2.msra.mxu0 %v177_v7  ;;  %v471_v2 = vld [vmem:[%s3902_s1 + $0xe00] sm:$0xff]  ;;  %v466_v6 = vld [vmem:[%s3902_s1 + $0xdd8] sm:$0xff] }
  0xf5   :  { %1204 = vmatpush2.msra.mxu1 %v375_v8  ;;  %1136 = vmatprep.subr.mxu0 %v172_v9  ;;  %v1320_v7 = vld [vmem:[%s3904_s3 + $0x58] sm:$0xff]  ;;  %v465_v8 = vld [vmem:[%s3902_s1 + $0xdd0] sm:$0xff] }
  0xf6   :  { %1205 = vmatprep.subr.mxu1 %v370_v10  ;;  %1137 = vmatpush2.msra.mxu0 %v171_v11  ;;  %v1335_v9 = vld [vmem:[%s3904_s3 + $0xd0] sm:$0xff]  ;;  %v460_v10 = vld [vmem:[%s3902_s1 + $0xda8] sm:$0xff]  ;;  %v459_v11 = vld [vmem:[%s3902_s1 + $0xda0] sm:$0xff] }
  0xf7   :  { %1206 = vmatpush2.msra.mxu1 %v369_v14  ;;  %1138 = vmatprep.subr.mxu0 %v166_v15  ;;  %v1319_v14 = vld [vmem:[%s3904_s3 + $0x50] sm:$0xff]  ;;  %v454_v15 = vld [vmem:[%s3902_s1 + $0xd78] sm:$0xff] }
  0xf8   :  { %1207 = vmatprep.subr.mxu1 %v364_v16  ;;  %1139 = vmatpush2.msra.mxu0 %v165_v17  ;;  %v1334_v16 = vld [vmem:[%s3904_s3 + $0xc8] sm:$0xff]  ;;  %v453_v17 = vld [vmem:[%s3902_s1 + $0xd70] sm:$0xff] }
  0xf9   :  { %1208 = vmatpush2.msra.mxu1 %v363_v18  ;;  %1140 = vmatprep.subr.mxu0 %v160_v19  ;;  %v1318_v18 = vld [vmem:[%s3904_s3 + $0x48] sm:$0xff] }
  0xfa   :  { %1209 = vmatprep.subr.mxu1 %v358_v21  ;;  %1141 = vmatpush2.msra.mxu0 %v159_v22  ;;  %v448_v19 = vld [vmem:[%s3902_s1 + $0xd48] sm:$0xff]  ;;  %v1333_v21 = vld [vmem:[%s3904_s3 + $0xc0] sm:$0xff] }
  0xfb   :  { %1210 = vmatpush2.msra.mxu1 %v357_v23  ;;  %1142 = vmatprep.subr.mxu0 %v154_v24  ;;  %v447_v22 = vld [vmem:[%s3902_s1 + $0xd40] sm:$0xff]  ;;  %v442_v23 = vld [vmem:[%s3902_s1 + $0xd18] sm:$0xff] }
  0xfc   :  { %1211 = vmatprep.subr.mxu1 %v352_v25  ;;  %1143 = vmatpush2.msra.mxu0 %v153_v26  ;;  %v1332_v24 = vld [vmem:[%s3904_s3 + $0xb8] sm:$0xff]  ;;  %v441_v25 = vld [vmem:[%s3902_s1 + $0xd10] sm:$0xff] }
  0xfd   :  { %1212 = vmatpush2.msra.mxu1 %v351_v27  ;;  %1144 = vmatprep.subr.mxu0 %v148_v28  ;;  %v1316_v26 = vld [vmem:[%s3904_s3 + $0x38] sm:$0xff]  ;;  %v436_v27 = vld [vmem:[%s3902_s1 + $0xce8] sm:$0xff]  ;;  %v1331_v28 = vld [vmem:[%s3904_s3 + $0xb0] sm:$0xff] }
  0xfe   :  { %1213 = vmatprep.subr.mxu1 %v346_v29  ;;  %1145 = vmatpush2.msra.mxu0 %v147_v30  ;;  %v435_v29 = vld [vmem:[%s3902_s1 + $0xce0] sm:$0xff]  ;;  %v1315_v30 = vld [vmem:[%s3904_s3 + $0x30] sm:$0xff] }
  0xff   :  { %1214 = vmatpush2.msra.mxu1 %v345_v31  ;;  %1146 = vmatprep.subr.mxu0 %v142_v32  ;;  %v430_v31 = vld [vmem:[%s3902_s1 + $0xcb8] sm:$0xff]  ;;  %v1330_v32 = vld [vmem:[%s3904_s3 + $0xa8] sm:$0xff] }
 0x100   :  { %1215 = vmatprep.subr.mxu1 %v340_v33  ;;  %1147 = vmatpush2.msra.mxu0 %v141_v34  ;;  %v429_v33 = vld [vmem:[%s3902_s1 + $0xcb0] sm:$0xff]  ;;  %v1314_v34 = vld [vmem:[%s3904_s3 + $0x28] sm:$0xff] }
 0x101   :  { %1216 = vmatpush2.msra.mxu1 %v339_v35  ;;  %1148 = vmatprep.subr.mxu0 %v136_v36  ;;  %v424_v35 = vld [vmem:[%s3902_s1 + $0xc88] sm:$0xff]  ;;  %v1329_v36 = vld [vmem:[%s3904_s3 + $0xa0] sm:$0xff] }
 0x102   :  { %1217 = vmatprep.subr.mxu1 %v334_v37  ;;  %1149 = vmatpush2.msra.mxu0 %v135_v39  ;;  %v423_v37 = vld [vmem:[%s3902_s1 + $0xc80] sm:$0xff] }
 0x103   :  { %1218 = vmatpush2.msra.mxu1 %v333_v40  ;;  %1150 = vmatprep.subr.mxu0 %v130_v41  ;;  %v1313_v39 = vld [vmem:[%s3904_s3 + $0x20] sm:$0xff]  ;;  %v418_v40 = vld [vmem:[%s3902_s1 + $0xc58] sm:$0xff] }
 0x104   :  { %1219 = vmatprep.subr.mxu1 %v328_v42  ;;  %1151 = vmatpush2.msra.mxu0 %v129_v43  ;;  %v1328_v41 = vld [vmem:[%s3904_s3 + $0x98] sm:$0xff]  ;;  %v417_v42 = vld [vmem:[%s3902_s1 + $0xc50] sm:$0xff] }
 0x105   :  { %1220 = vmatpush2.msra.mxu1 %v327_v44  ;;  %1152 = vmatprep.subr.mxu0 %v124_v45  ;;  %v1312_v43 = vld [vmem:[%s3904_s3 + $0x18] sm:$0xff]  ;;  %v412_v44 = vld [vmem:[%s3902_s1 + $0xc28] sm:$0xff]  ;;  %v1327_v45 = vld [vmem:[%s3904_s3 + $0x90] sm:$0xff] }
 0x106   :  { %1221 = vmatprep.subr.mxu1 %v322_v46  ;;  %1153 = vmatpush2.msra.mxu0 %v123_v47  ;;  %v411_v46 = vld [vmem:[%s3902_s1 + $0xc20] sm:$0xff]  ;;  %v1311_v47 = vld [vmem:[%s3904_s3 + $0x10] sm:$0xff] }
 0x107   :  { %1154 = vmatprep.mubr.f32.mxu0 %v2194_v4  ;;  %1222 = vmatpush2.msra.mxu1 %v321_v48  ;;  %v1340_v4 = vld [vmem:[%s3904_s3 + $0xf8] sm:$0xff] }
 0x108   :  { %1155 = vmatmul.mubr.f32.vlgmr.msra.gmra.mxu0 %v2166_v58  ;;  %1223 = vmatprep.subr.mxu1 %v316_v49  ;;  %v490_v58 = vld [vmem:[%s3902_s1 + $0xe98] sm:$0xff]  ;;  %v1326_v49 = vld [vmem:[%s3904_s3 + $0x88] sm:$0xff] }
 0x109   :  { %1232 = vmatprep.subr.mxu0 %v502_v13  ;;  %1224 = vmatpush2.msra.mxu1 %v315_v50  ;;  %v598_v48 = vld [vmem:[%s3902_s1 + $0x11f8] sm:$0xff]  ;;  %v597_v13 = vld [vmem:[%s3902_s1 + $0x11f0] sm:$0xff]  ;;  %v1310_v50 = vld [vmem:[%s3904_s3 + $0x8] sm:$0xff] }
 0x10a   :  { %1225 = vmatprep.mubr.f32.mxu1 %v2219_v12  ;;  %1233 = vmatpush1.msra.mxu0 %v501_v51  ;;  %v1339_v12 = vld [vmem:[%s3904_s3 + $0xf0] sm:$0xff]  ;;  %v592_v51 = vld [vmem:[%s3902_s1 + $0x11c8] sm:$0xff] }
 0x10b   :  { %1226 = vmatmul.mubr.f32.vlgmr.msra.gmra.mxu1 %v2196_v5  ;;  %1234 = vmatprep.subr.mxu0 %v496_v52  ;;  %v483_v5 = vld [vmem:[%s3902_s1 + $0xe60] sm:$0xff] }
 0x10c   :  { %1235 = vmatpush1.msra.mxu0 %v495_v53  ;;  %1640 = vmatprep.subr.mxu1 %v1340_v4  ;;  %v1325_v52 = vld [vmem:[%s3904_s3 + $0x80] sm:$0xff] }
 0x10d   :  { %1236 = vmatprep.subr.mxu0 %v490_v58  ;;  %1641 = vmatpush3.msra.mxu1 %v1324_v54  ;;  %v591_v53 = vld [vmem:[%s3902_s1 + $0x11c0] sm:$0xff]  ;;  %v586_v58 = vld [vmem:[%s3902_s1 + $0x1198] sm:$0xff] }
 0x10e   :  { %1237 = vmatpush1.msra.mxu0 %v489_v55  ;;  %1642 = vmatprep.subr.mxu1 %v1339_v12  ;;  %v1309_v4 = vld [vmem:[%s3904_s3] sm:$0xff]  ;;  %v1372_v54 = vld [vmem:[%s3904_s3 + $0x1f8] sm:$0xff]  ;;  %v585_v55 = vld [vmem:[%s3902_s1 + $0x1190] sm:$0xff] }
 0x10f   :  { %1238 = vmatprep.subr.mxu0 %v484_v56  ;;  %1643 = vmatpush3.msra.mxu1 %v1323_v57  ;;  %v580_v12 = vld [vmem:[%s3902_s1 + $0x1168] sm:$0xff]  ;;  %v579_v56 = vld [vmem:[%s3902_s1 + $0x1160] sm:$0xff]  ;;  %v574_v57 = vld [vmem:[%s3902_s1 + $0x1138] sm:$0xff] }
 0x110   :  { %1239 = vmatpush1.msra.mxu0 %v483_v5  ;;  %1644 = vmatprep.subr.mxu1 %v1338_v59  ;;  %v573_v5 = vld [vmem:[%s3902_s1 + $0x1130] sm:$0xff]  ;;  %v568_v59 = vld [vmem:[%s3902_s1 + $0x1108] sm:$0xff] }
 0x111   :  { %1240 = vmatprep.subr.mxu0 %v478_v60  ;;  %1645 = vmatpush3.msra.mxu1 %v1322_v61  ;;  %v567_v60 = vld [vmem:[%s3902_s1 + $0x1100] sm:$0xff]  ;;  %v562_v61 = vld [vmem:[%s3902_s1 + $0x10d8] sm:$0xff] }
 0x112   :  { %1241 = vmatpush1.msra.mxu0 %v477_v62  ;;  %1646 = vmatprep.subr.mxu1 %v1337_v63  ;;  %v561_v62 = vld [vmem:[%s3902_s1 + $0x10d0] sm:$0xff]  ;;  %v556_v63 = vld [vmem:[%s3902_s1 + $0x10a8] sm:$0xff] }
 0x113   :  { %1242 = vmatprep.subr.mxu0 %v472_v0  ;;  %1647 = vmatpush3.msra.mxu1 %v1321_v1  ;;  %v555_v0 = vld [vmem:[%s3902_s1 + $0x10a0] sm:$0xff]  ;;  %v550_v1 = vld [vmem:[%s3902_s1 + $0x1078] sm:$0xff] }
 0x114   :  { %1243 = vmatpush1.msra.mxu0 %v471_v2  ;;  %1648 = vmatprep.subr.mxu1 %v1336_v3  ;;  %v549_v2 = vld [vmem:[%s3902_s1 + $0x1070] sm:$0xff]  ;;  %v603_v3 = vsub.s32 0, %v2112_v38 }
 0x115   :  { %1244 = vmatprep.subr.mxu0 %v466_v6  ;;  %1649 = vmatpush3.msra.mxu1 %v1320_v7  ;;  %v544_v6 = vld [vmem:[%s3902_s1 + $0x1048] sm:$0xff]  ;;  %v3651_v7 = vld [vmem:[%s3903_s2] sm:$0x3f] }
 0x116   :  { %1245 = vmatpush1.msra.mxu0 %v465_v8  ;;  %1650 = vmatprep.subr.mxu1 %v1335_v9  ;;  %v607_v8 = vsub.s32 1, %v2112_v38  ;;  %v543_v9 = vld [vmem:[%s3902_s1 + $0x1040] sm:$0xff] }
 0x117   :  { %1246 = vmatprep.subr.mxu0 %v460_v10  ;;  %1296 = vmatprep.mubr.f32.mxu0 %v2603_v20  ;;  %v1317_v20 = vld [vmem:[%s3904_s3 + $0x40] sm:$0xff]  ;;  %v730_v10 = vpop.f32.mrf.mxu0 }
 0x118   :  { %1247 = vmatpush1.msra.mxu0 %v459_v11  ;;  %1651 = vmatpush3.msra.mxu1 %v1319_v14  ;;  %v538_v11 = vld [vmem:[%s3902_s1 + $0x1018] sm:$0xff]  ;;  %v537_v14 = vld [vmem:[%s3902_s1 + $0x1010] sm:$0xff] }
 0x119   :  { %1248 = vmatprep.subr.mxu0 %v454_v15  ;;  %1652 = vmatprep.subr.mxu1 %v1334_v16  ;;  %v604_v15 = vrot.slane %v3651_v7, %v603_v3  ;;  %v532_v16 = vld [vmem:[%s3902_s1 + $0xfe8] sm:$0xff]  ;;  %v1363_v3 = vld [vmem:[%s3904_s3 + $0x1b0] sm:$0xff] }
 0x11a   :  { %1249 = vmatpush1.msra.mxu0 %v453_v17  ;;  %1653 = vmatpush3.msra.mxu1 %v1318_v18  ;;  %v608_v17 = vrot.slane %v3651_v7, %v607_v8  ;;  %v531_v18 = vld [vmem:[%s3902_s1 + $0xfe0] sm:$0xff]  ;;  %v1362_v8 = vld [vmem:[%s3904_s3 + $0x1a8] sm:$0xff] }
 0x11b   :  { %1250 = vmatprep.subr.mxu0 %v448_v19  ;;  %1654 = vmatprep.subr.mxu1 %v1333_v21  ;;  %v732_v19 = vpop.f32.mrf.mxu0  ;;  %v801_v21 = vpop.f32.mrf.mxu1 }
 0x11c   :  { %1251 = vmatpush1.msra.mxu0 %v447_v22  ;;  %1655 = vmatpush3.msra.mxu1 %v1317_v20  ;;  %v526_v22 = vld [vmem:[%s3902_s1 + $0xfb8] sm:$0xff]  ;;  %v525_v20 = vld [vmem:[%s3902_s1 + $0xfb0] sm:$0xff] }
 0x11d   :  { %1252 = vmatprep.subr.mxu0 %v442_v23  ;;  %1656 = vmatprep.subr.mxu1 %v1332_v24  ;;  %v731_v23 = vadd.f32 %v730_v10, %v604_v15  ;;  %v520_v24 = vld [vmem:[%s3902_s1 + $0xf88] sm:$0xff]  ;;  %v1361_v10 = vld [vmem:[%s3904_s3 + $0x1a0] sm:$0xff]  ;;  %v1344_v15 = vld [vmem:[%s3904_s3 + $0x118] sm:$0xff] }
 0x11e   :  { %1253 = vmatpush1.msra.mxu0 %v441_v25  ;;  %1657 = vmatpush3.msra.mxu1 %v1316_v26  ;;  %v733_v25 = vadd.f32 %v732_v19, %v608_v17  ;;  %v519_v26 = vld [vmem:[%s3902_s1 + $0xf80] sm:$0xff]  ;;  %v1343_v17 = vld [vmem:[%s3904_s3 + $0x110] sm:$0xff]  ;;  %v1342_v19 = vld [vmem:[%s3904_s3 + $0x108] sm:$0xff] }
 0x11f   :  { %1254 = vmatprep.subr.mxu0 %v436_v27  ;;  %1658 = vmatprep.subr.mxu1 %v1331_v28  ;;  %v803_v27 = vpop.f32.mrf.mxu1  ;;  %v514_v28 = vld [vmem:[%s3902_s1 + $0xf58] sm:$0xff] }
 0x120   :  { %1255 = vmatpush1.msra.mxu0 %v435_v29  ;;  %1659 = vmatpush3.msra.mxu1 %v1315_v30  ;;  %v513_v29 = vld [vmem:[%s3902_s1 + $0xf50] sm:$0xff]  ;;  %v802_v30 = vadd.f32 %v801_v21, %v731_v23  ;;  %v1357_v21 = vld [vmem:[%s3904_s3 + $0x180] sm:$0xff]  ;;  %v615_v23 = vsub.s32 3, %v2112_v38 }
 0x121   :  { %1256 = vmatprep.subr.mxu0 %v430_v31  ;;  %1660 = vmatprep.subr.mxu1 %v1330_v32  ;;  %v508_v31 = vld [vmem:[%s3902_s1 + $0xf28] sm:$0xff] }
 0x122   :  { %1257 = vmatpush1.msra.mxu0 %v429_v33  ;;  %1661 = vmatpush3.msra.mxu1 %v1314_v34  ;;  %v804_v33 = vadd.f32 %v803_v27, %v733_v25  ;;  %v507_v34 = vld [vmem:[%s3902_s1 + $0xf20] sm:$0xff] }
 0x123   :  { %1258 = vmatprep.subr.mxu0 %v424_v35  ;;  %1662 = vmatprep.subr.mxu1 %v1329_v36 }
 0x124   :  { %1259 = vmatpush1.msra.mxu0 %v423_v37  ;;  %1663 = vmatpush3.msra.mxu1 %v1313_v39  ;;  %v1760_v39 = vld.sshfl [vmem:[%s3901_s0 + $0x8] sm:$0x33 pattern:$0x76325410] }
 0x125   :  { %1260 = vmatprep.subr.mxu0 %v418_v40  ;;  %1664 = vmatprep.subr.mxu1 %v1328_v41  ;;  %v1404_v40 = vld [vmem:[%s3904_s3 + $0x2f8] sm:$0xff] }
 0x126   :  { %1261 = vmatpush1.msra.mxu0 %v417_v42  ;;  %1665 = vmatpush3.msra.mxu1 %v1312_v43  ;;  %v1388_v41 = vld [vmem:[%s3904_s3 + $0x278] sm:$0xff]  ;;  %v1403_v42 = vld [vmem:[%s3904_s3 + $0x2f0] sm:$0xff] }
 0x127   :  { %1262 = vmatprep.subr.mxu0 %v412_v44  ;;  %1666 = vmatprep.subr.mxu1 %v1327_v45  ;;  %v1387_v43 = vld [vmem:[%s3904_s3 + $0x270] sm:$0xff]  ;;  %v1402_v44 = vld [vmem:[%s3904_s3 + $0x2e8] sm:$0xff] }
 0x128   :  { %1263 = vmatpush1.msra.mxu0 %v411_v46  ;;  %1667 = vmatpush3.msra.mxu1 %v1311_v47  ;;  %v1386_v45 = vld [vmem:[%s3904_s3 + $0x268] sm:$0xff]  ;;  %v1401_v46 = vld [vmem:[%s3904_s3 + $0x2e0] sm:$0xff] }
 0x129   :  { %1264 = vmatprep.subr.mxu0 %v598_v48  ;;  %1668 = vmatprep.subr.mxu1 %v1326_v49  ;;  %v1385_v47 = vld [vmem:[%s3904_s3 + $0x260] sm:$0xff]  ;;  %v1400_v48 = vld [vmem:[%s3904_s3 + $0x2d8] sm:$0xff] }
 0x12a   :  { %1265 = vmatpush2.msra.mxu0 %v597_v13  ;;  %1669 = vmatpush3.msra.mxu1 %v1310_v50  ;;  %v1384_v49 = vld [vmem:[%s3904_s3 + $0x258] sm:$0xff] }
 0x12b   :  { %1266 = vmatprep.subr.mxu0 %v592_v51  ;;  %1670 = vmatprep.subr.mxu1 %v1325_v52  ;;  %v1356_v50 = vld [vmem:[%s3904_s3 + $0x178] sm:$0xff]  ;;  %v1399_v51 = vld [vmem:[%s3904_s3 + $0x2d0] sm:$0xff] }
 0x12c   :  { %1267 = vmatpush2.msra.mxu0 %v591_v53  ;;  %1671 = vmatpush3.msra.mxu1 %v1309_v4  ;;  %v1371_v53 = vld [vmem:[%s3904_s3 + $0x1f0] sm:$0xff] }
 0x12d   :  { %1268 = vmatprep.subr.mxu0 %v586_v58  ;;  %1675 = vmatprep.subr.mxu1 %v1372_v54  ;;  %v1383_v4 = vld [vmem:[%s3904_s3 + $0x250] sm:$0xff]  ;;  %v1370_v54 = vld [vmem:[%s3904_s3 + $0x1e8] sm:$0xff] }
 0x12e   :  { %1269 = vmatpush2.msra.mxu0 %v585_v55  ;;  %v1355_v58 = vld [vmem:[%s3904_s3 + $0x170] sm:$0xff]  ;;  %v1354_v55 = vld [vmem:[%s3904_s3 + $0x168] sm:$0xff] }
 0x12f   :  { %1270 = vmatprep.subr.mxu0 %v580_v12  ;;  %v1369_v12 = vld [vmem:[%s3904_s3 + $0x1e0] sm:$0xff] }
 0x130   :  { %1271 = vmatpush2.msra.mxu0 %v579_v56  ;;  %v1353_v56 = vld [vmem:[%s3904_s3 + $0x160] sm:$0xff] }
 0x131   :  { %1272 = vmatprep.subr.mxu0 %v574_v57  ;;  %v1368_v57 = vld [vmem:[%s3904_s3 + $0x1d8] sm:$0xff] }
 0x132   :  { %1273 = vmatpush2.msra.mxu0 %v573_v5  ;;  %v1352_v5 = vld [vmem:[%s3904_s3 + $0x158] sm:$0xff] }
 0x133   :  { %1274 = vmatprep.subr.mxu0 %v568_v59  ;;  %v1367_v59 = vld [vmem:[%s3904_s3 + $0x1d0] sm:$0xff] }
 0x134   :  { %1275 = vmatpush2.msra.mxu0 %v567_v60  ;;  %v1351_v60 = vld [vmem:[%s3904_s3 + $0x150] sm:$0xff] }
 0x135   :  { %1276 = vmatprep.subr.mxu0 %v562_v61  ;;  %v1366_v61 = vld [vmem:[%s3904_s3 + $0x1c8] sm:$0xff] }
 0x136   :  { %1277 = vmatpush2.msra.mxu0 %v561_v62  ;;  %v1350_v62 = vld [vmem:[%s3904_s3 + $0x148] sm:$0xff] }
 0x137   :  { %1278 = vmatprep.subr.mxu0 %v556_v63  ;;  %v1365_v63 = vld [vmem:[%s3904_s3 + $0x1c0] sm:$0xff] }
 0x138   :  { %1279 = vmatpush2.msra.mxu0 %v555_v0  ;;  %v1349_v0 = vld [vmem:[%s3904_s3 + $0x140] sm:$0xff] }
 0x139   :  { %1280 = vmatprep.subr.mxu0 %v550_v1  ;;  %v1364_v1 = vld [vmem:[%s3904_s3 + $0x1b8] sm:$0xff] }
 0x13a   :  { %1281 = vmatpush2.msra.mxu0 %v549_v2  ;;  %v1348_v2 = vld [vmem:[%s3904_s3 + $0x138] sm:$0xff] }
 0x13b   :  { %1282 = vmatprep.subr.mxu0 %v544_v6  ;;  %v1347_v6 = vld [vmem:[%s3904_s3 + $0x130] sm:$0xff] }
 0x13c   :  { %1283 = vmatpush2.msra.mxu0 %v543_v9  ;;  %v1346_v9 = vld [vmem:[%s3904_s3 + $0x128] sm:$0xff] }
 0x13d   :  { %1284 = vmatprep.subr.mxu0 %v538_v11  ;;  %v1345_v11 = vld [vmem:[%s3904_s3 + $0x120] sm:$0xff] }
 0x13e   :  { %1285 = vmatpush2.msra.mxu0 %v537_v14  ;;  %v1360_v14 = vld [vmem:[%s3904_s3 + $0x198] sm:$0xff] }
 0x13f   :  { %1286 = vmatprep.subr.mxu0 %v532_v16  ;;  %v1359_v16 = vld [vmem:[%s3904_s3 + $0x190] sm:$0xff] }
 0x140   :  { %1287 = vmatpush2.msra.mxu0 %v531_v18  ;;  %v1358_v18 = vld [vmem:[%s3904_s3 + $0x188] sm:$0xff] }
 0x141   :  { %1288 = vmatprep.subr.mxu0 %v526_v22  ;;  %v1341_v22 = vld [vmem:[%s3904_s3 + $0x100] sm:$0xff] }
 0x142   :  { %1289 = vmatpush2.msra.mxu0 %v525_v20  ;;  %v611_v20 = vsub.s32 2, %v2112_v38 }
 0x143   :  { %1290 = vmatprep.subr.mxu0 %v520_v24 }
 0x144   :  { %1291 = vmatpush2.msra.mxu0 %v519_v26  ;;  %v872_v32 = vpop.f32.mrf.mxu0  ;;  %v612_v25 = vrot.slane %v3651_v7, %v611_v20  ;;  %v616_v26 = vrot.slane %v3651_v7, %v615_v23 }
 0x145   :  { %1292 = vmatprep.subr.mxu0 %v514_v28  ;;  %v873_v35 = vadd.f32 %v872_v32, %v802_v30 }
 0x146   :  { %1293 = vmatpush2.msra.mxu0 %v513_v29  ;;  %v874_v36 = vpop.f32.mrf.mxu0 }
 0x147   :  { %1294 = vmatprep.subr.mxu0 %v508_v31  ;;  %v875_v37 = vadd.f32 %v874_v36, %v804_v33  ;;  %v1398_v33 = vld [vmem:[%s3904_s3 + $0x2c8] sm:$0xff] }
 0x148   :  { %1295 = vmatpush2.msra.mxu0 %v507_v34  ;;  %v943_v24 = vpop.f32.mrf.mxu1  ;;  %v1382_v36 = vld [vmem:[%s3904_s3 + $0x248] sm:$0xff] }
 0x149   :  { %1297 = vmatmul.mubr.f32.vlgmr.msra.gmra.mxu0 %v1760_v39  ;;  %1748 = vtanh.f32 %v875_v37  ;;  %1710 = vmatprep.subr.mxu0 %v1404_v40  ;;  %v944_v28 = vadd.f32 %v943_v24, %v612_v25  ;;  %v1397_v37 = vld [vmem:[%s3904_s3 + $0x2c0] sm:$0xff] }
 0x14a   :  { %1750 = vtanh.f32 %v873_v35  ;;  %1711 = vmatpush3.msra.mxu0 %v1388_v41  ;;  %v945_v27 = vpop.f32.mrf.mxu1  ;;  %v1381_v41 = vld [vmem:[%s3904_s3 + $0x240] sm:$0xff] }
 0x14b   :  { %1712 = vmatprep.subr.mxu0 %v1403_v42  ;;  %v946_v29 = vadd.f32 %v945_v27, %v616_v26 }
 0x14c   :  { %1713 = vmatpush3.msra.mxu0 %v1387_v43  ;;  %v1396_v43 = vld [vmem:[%s3904_s3 + $0x2b8] sm:$0xff] }
 0x14d   :  { %1714 = vmatprep.subr.mxu0 %v1402_v44  ;;  %v1380_v44 = vld [vmem:[%s3904_s3 + $0x238] sm:$0xff] }
 0x14e   :  { %1715 = vmatpush3.msra.mxu0 %v1386_v45  ;;  %v1395_v45 = vld [vmem:[%s3904_s3 + $0x2b0] sm:$0xff] }
 0x14f   :  { %1716 = vmatprep.subr.mxu0 %v1401_v46  ;;  %v1379_v46 = vld [vmem:[%s3904_s3 + $0x230] sm:$0xff] }
 0x150   :  { %1717 = vmatpush3.msra.mxu0 %v1385_v47  ;;  %v1394_v47 = vld [vmem:[%s3904_s3 + $0x2a8] sm:$0xff] }
 0x151   :  { %1718 = vmatprep.subr.mxu0 %v1400_v48  ;;  %v1378_v48 = vld [vmem:[%s3904_s3 + $0x228] sm:$0xff] }
 0x152   :  { %1719 = vmatpush3.msra.mxu0 %v1384_v49  ;;  %v1393_v49 = vld [vmem:[%s3904_s3 + $0x2a0] sm:$0xff] }
 0x153   :  { %1720 = vmatprep.subr.mxu0 %v1399_v51  ;;  %v1376_v51 = vld [vmem:[%s3904_s3 + $0x218] sm:$0xff] }
 0x154   :  { %1721 = vmatpush3.msra.mxu0 %v1383_v4  ;;  %v1390_v4 = vld [vmem:[%s3904_s3 + $0x288] sm:$0xff] }
 0x155   :  { %1722 = vmatprep.subr.mxu0 %v1398_v33 }
 0x156   :  { %v1749_v13 = vpop.eup %1748  ;;  %1723 = vmatpush3.msra.mxu0 %v1382_v36 }
 0x157   :  { %v1751_v52 = vpop.eup %1750  ;;  %1476 = vmatprep.mubr.f32.mxu1 %v1749_v13  ;;  %1724 = vmatprep.subr.mxu0 %v1397_v37  ;;  %v1377_v13 = vld [vmem:[%s3904_s3 + $0x220] sm:$0xff] }
 0x158   :  { %1477 = vmatmul.mubr.f32.vlgmr.msra.gmra.mxu1 %v1751_v52  ;;  %1725 = vmatpush3.msra.mxu0 %v1381_v41  ;;  %v1391_v52 = vld [vmem:[%s3904_s3 + $0x290] sm:$0xff] }
 0x159   :  { %1676 = vmatpush3.msra.mxu1 %v1356_v50  ;;  %1726 = vmatprep.subr.mxu0 %v1396_v43  ;;  %v1392_v50 = vld [vmem:[%s3904_s3 + $0x298] sm:$0xff] }
 0x15a   :  { %1677 = vmatprep.subr.mxu1 %v1371_v53  ;;  %1727 = vmatpush3.msra.mxu0 %v1380_v44  ;;  %v1375_v53 = vld [vmem:[%s3904_s3 + $0x210] sm:$0xff] }
 0x15b   :  { %1678 = vmatpush3.msra.mxu1 %v1355_v58  ;;  %1728 = vmatprep.subr.mxu0 %v1395_v45  ;;  %v1374_v58 = vld [vmem:[%s3904_s3 + $0x208] sm:$0xff] }
 0x15c   :  { %1679 = vmatprep.subr.mxu1 %v1370_v54  ;;  %1729 = vmatpush3.msra.mxu0 %v1379_v46  ;;  %v1389_v54 = vld [vmem:[%s3904_s3 + $0x280] sm:$0xff] }
 0x15d   :  { %1680 = vmatpush3.msra.mxu1 %v1354_v55  ;;  %1730 = vmatprep.subr.mxu0 %v1394_v47  ;;  %v1373_v55 = vld [vmem:[%s3904_s3 + $0x200] sm:$0xff] }
 0x15e   :  { %1681 = vmatprep.subr.mxu1 %v1369_v12  ;;  %1731 = vmatpush3.msra.mxu0 %v1378_v48 }
 0x15f   :  { %1682 = vmatpush3.msra.mxu1 %v1353_v56  ;;  %1732 = vmatprep.subr.mxu0 %v1393_v49 }
 0x160   :  { %1683 = vmatprep.subr.mxu1 %v1368_v57  ;;  %1733 = vmatpush3.msra.mxu0 %v1377_v13  ;;  %v619_v57 = vsub.s32 4, %v2112_v38 }
 0x161   :  { %1684 = vmatpush3.msra.mxu1 %v1352_v5  ;;  %1734 = vmatprep.subr.mxu0 %v1392_v50  ;;  %v623_v5 = vsub.s32 5, %v2112_v38 }
 0x162   :  { %1685 = vmatprep.subr.mxu1 %v1367_v59  ;;  %1735 = vmatpush3.msra.mxu0 %v1376_v51 }
 0x163   :  { %1686 = vmatpush3.msra.mxu1 %v1351_v60  ;;  %1736 = vmatprep.subr.mxu0 %v1391_v52  ;;  %v620_v60 = vrot.slane %v3651_v7, %v619_v57 }
 0x164   :  { %1687 = vmatprep.subr.mxu1 %v1366_v61  ;;  %1737 = vmatpush3.msra.mxu0 %v1375_v53  ;;  %v624_v61 = vrot.slane %v3651_v7, %v623_v5 }
 0x165   :  { %1688 = vmatpush3.msra.mxu1 %v1350_v62  ;;  %1738 = vmatprep.subr.mxu0 %v1390_v4 }
 0x166   :  { %1689 = vmatprep.subr.mxu1 %v1365_v63  ;;  %1739 = vmatpush3.msra.mxu0 %v1374_v58 }
 0x167   :  { %1690 = vmatpush3.msra.mxu1 %v1349_v0  ;;  %1740 = vmatprep.subr.mxu0 %v1389_v54 }
 0x168   :  { %1691 = vmatprep.subr.mxu1 %v1364_v1  ;;  %1741 = vmatpush3.msra.mxu0 %v1373_v55 }
 0x169   :  { %1692 = vmatpush3.msra.mxu1 %v1348_v2 }
 0x16a   :  { %1693 = vmatprep.subr.mxu1 %v1363_v3 }
 0x16b   :  { %1694 = vmatpush3.msra.mxu1 %v1347_v6 }
 0x16c   :  { %1695 = vmatprep.subr.mxu1 %v1362_v8 }
 0x16d   :  { %1696 = vmatpush3.msra.mxu1 %v1346_v9 }
 0x16e   :  { %1697 = vmatprep.subr.mxu1 %v1361_v10 }
 0x16f   :  { %1698 = vmatpush3.msra.mxu1 %v1345_v11 }
 0x170   :  { %1699 = vmatprep.subr.mxu1 %v1360_v14 }
 0x171   :  { %1700 = vmatpush3.msra.mxu1 %v1344_v15 }
 0x172   :  { %1701 = vmatprep.subr.mxu1 %v1359_v16 }
 0x173   :  { %1702 = vmatpush3.msra.mxu1 %v1343_v17 }
 0x174   :  { %1703 = vmatprep.subr.mxu1 %v1358_v18 }
 0x175   :  { %1704 = vmatpush3.msra.mxu1 %v1342_v19  ;;  %v1639_v19 = vld [vmem:[%s3905_s4] ss:$0 sm:$0xff] }
 0x176   :  { %1705 = vmatprep.subr.mxu1 %v1357_v21 }
 0x177   :  { %1706 = vmatpush3.msra.mxu1 %v1341_v22 }
 0x186   :  { %v1014_v30 = vpop.f32.mrf.mxu0 }
 0x187   :  { %v1015_v31 = vadd.f32 %v1014_v30, %v944_v28 }
 0x188   :  { %v1016_v32 = vpop.f32.mrf.mxu0 }
 0x189   :  { %v1017_v34 = vadd.f32 %v1016_v32, %v946_v29  ;;  %v1085_v35 = vpop.f32.mrf.mxu1 }
 0x18a   :  { %v1086_v39 = vadd.f32 %v1085_v35, %v1015_v31 }
 0x18b   :  { %v1087_v40 = vpop.f32.mrf.mxu1 }
 0x18c   :  { %v1088_v42 = vadd.f32 %v1087_v40, %v1017_v34 }
 0x18e   :  { %1752 = vtanh.f32 %v1088_v42 }
 0x18f   :  { %1754 = vtanh.f32 %v1086_v39 }
 0x19b   :  { %v1753_v12 = vpop.eup %1752 }
 0x19c   :  { %v1755_v56 = vpop.eup %1754  ;;  %1546 = vmatprep.mubr.f32.mxu1 %v1753_v12 }
 0x19d   :  { %1547 = vmatmul.mubr.f32.vlgmr.msra.gmra.mxu1 %v1755_v56 }
 0x1c8   :  { %v1156_v59 = vpop.f32.mrf.mxu0 }
 0x1c9   :  { %v1157_v0 = vadd.f32 %v1156_v59, %v620_v60 }
 0x1ca   :  { %v1158_v62 = vpop.f32.mrf.mxu0 }
 0x1cb   :  { %v1227_v63 = vpop.f32.mrf.mxu1  ;;  %v1159_v1 = vadd.f32 %v1158_v62, %v624_v61 }
 0x1cc   :  { %v1228_v3 = vadd.f32 %v1227_v63, %v1157_v0 }
 0x1cd   :  { %v1229_v2 = vpop.f32.mrf.mxu1 }
 0x1ce   :  { %v1230_v8 = vadd.f32 %v1229_v2, %v1159_v1 }
 0x209   :  { %v1298_v6 = vpop.f32.mrf.mxu0 }
 0x20a   :  { %v1299_v9 = vadd.f32 %v1298_v6, %v1228_v3 }
 0x20b   :  { %v1300_v10 = vpop.f32.mrf.mxu0 }
 0x20c   :  { %v1301_v11 = vadd.f32 %v1300_v10, %v1230_v8 }
 0x20e   :  { %1756 = vtanh.f32 %v1301_v11 }
 0x20f   :  { %1758 = vtanh.f32 %v1299_v9 }
 0x218   :  { %v1672_v15 = vpop.f32.mrf.mxu1 }
 0x21a   :  { %v1673_v16 = vpop.f32.mrf.mxu1 }
 0x21b   :  { %v1757_v14 = vpop.eup %1756  ;;  %v1674_v18 = vadd.f32 %v1673_v16, %v1672_v15 }
 0x21c   :  { %v1759_v38 = vpop.eup %1758  ;;  %1616 = vmatprep.mubr.f32.mxu0 %v1757_v14 }
 0x21d   :  { %1617 = vmatmul.mubr.f32.vlgmr.msra.gmra.mxu0 %v1759_v38  ;;  %v1479_v20 = vadd.f32 %v1674_v18, %v1639_v19 }
 0x25d   :  { %v1707_v7 = vpop.f32.mrf.mxu1 }
 0x25f   :  { %v1708_v17 = vpop.f32.mrf.mxu1 }
 0x260   :  { %v1709_v21 = vadd.f32 %v1708_v17, %v1707_v7 }
 0x262   :  { %v1549_v24 = vadd.f32 %v1709_v21, %v1479_v20 }
 0x2dd   :  { %v1742_v22 = vpop.f32.mrf.mxu0 }
 0x2df   :  { %v1743_v23 = vpop.f32.mrf.mxu0 }
 0x2e0   :  { %v1744_v25 = vadd.f32 %v1743_v23, %v1742_v22 }
 0x2e2   :  { %v1619_v26 = vadd.f32 %v1744_v25, %v1549_v24 }
 0x2e4   :  { %v1622_v27 = vmax.f32 %v1619_v26, 0.0 }
 0x2e6   :  { %1623 = vst [vmem:[#allocation2] sm:$0x3] %v1622_v27 }
 0x2e7   :  { %1772 = shalt.err (!%p1769_p4)
}
 0x2e8   :  { %1633 = dma.vmem_to_hbm [thread:$0]  %s1631_s6, 32, %s3906_s5, [#allocation3]  }
 0x2e9   :  { %1781 = dma.done.wait [#allocation3], 32  }
 0x2ea   :  { %1782 = vsyncadd [#allocation3], 4294967264 }
 0x2eb   :  { %1637 = vsyncpa [#allocation3], 1 }

</bundles_post_ra>
